<compile_context>
chip_gen: v7x
topology: tpu7x:2x2x1
jax: 0.10.0
libtpu: 0.0.40
codegen_flags: <defaults>
</compile_context>

<pallas_src>
import numpy as np
import jax
import jax.numpy as jnp
from jax import lax
from jax.experimental import pallas as pl
from jax.experimental.pallas import tpu as pltpu

# ----------------------- small, module-consistent config -----------------------
B = 2            # batch
L = 16           # max_length / sequence length
EL = 8           # number of (head, tail) sentence pairs (sent_h_mapping.size(1))
WORD_DIM = 64    # config.data_word_vec.shape[1]
COREF = 32       # config.coref_size
NER = 32         # config.entity_type_size
DIN = WORD_DIM + COREF + NER          # LSTM input size  (= 128)
H = 128                               # hidden_size (fixed in LSTM_SP)
VOCAB = 50                            # config.data_word_vec.shape[0]
REL = 10                              # config.relation_num
B2P = 8                               # fwd/bwd stacked rows (2B) padded to a sublane tile

VMEM = pl.BlockSpec(memory_space=pltpu.MemorySpace.VMEM)
SMEM = pl.BlockSpec(memory_space=pltpu.MemorySpace.SMEM)


# ------------------------------ fused forward kernel ----------------------------
def _make_fused_kernel(batch, seq, hidden, b2p):
    G = 4 * hidden

    def kernel(sent_ref, wih_ref, bias_ref, whh_ref, lens_ref,
               cmb_ref, wt_ref, bt_ref, hmap_ref, tmap_ref, re_ref, wre_ref, bre_ref,
               out_ref, xs_ref, seq_ref):
        # ---- 1) block-diagonal input projection, both directions, one bf16 dot ----
        # sent rows are pre-gathered time-major & direction-stacked (8 rows / step):
        #   j <  B   : batch j at time s       (features in lanes 0:DIN,   fwd)
        #   B<=j<2B  : batch j-B at time L-1-s (features in lanes DIN:2DIN, bwd)
        #   j >= 2B  : zero padding rows
        xs_ref[...] = jnp.dot(sent_ref[...], wih_ref[...],
                              preferred_element_type=jnp.float32)   # [L*8, 4H] f32

        # ---- 2) per-row helpers, hoisted out of the recurrence ---------------------
        row = lax.broadcasted_iota(jnp.int32, (b2p, 1), 0)
        is_fwd = row < batch                                   # [8,1] bool
        is_real = row < 2 * batch
        fwd_sel = jnp.broadcast_to(is_fwd, (b2p, hidden))      # hoisted broadcast
        lens_col = jnp.zeros((b2p, 1), jnp.int32)
        for b in range(batch):
            lens_col = jnp.where(row % batch == b, lens_ref[b], lens_col)
        # step-validity window per row: fwd valid for s in [0,len), bwd for [L-len, L)
        start_col = jnp.where(is_fwd, 0, seq - lens_col)
        start_col = jnp.where(is_real, start_col, seq)         # pad rows: never valid
        end_col = jnp.where(is_fwd, lens_col, seq)
        bias_v = bias_ref[...]                                  # [8, 4H] f32

        h_wide = jnp.zeros((b2p, 2 * hidden), jnp.float32)      # fwd h in 0:H, bwd in H:2H
        c = jnp.zeros((b2p, hidden), jnp.float32)

        # ---- 3) fully unrolled, direction-stacked LSTM recurrence ------------------
        for s in range(seq):
            blk = xs_ref[s * b2p:(s + 1) * b2p, :]              # [8, 4H] f32
            rec = jnp.dot(h_wide.astype(jnp.bfloat16), whh_ref[...],
                          preferred_element_type=jnp.float32)    # [8, 4H] f32
            gall = (blk + bias_v) + rec                          # bias add off crit path
            sg = jax.nn.sigmoid(gall[:, 0:3 * hidden])           # gates packed (i|f|o|g)
            i = sg[:, 0:hidden]
            f = sg[:, hidden:2 * hidden]
            o = sg[:, 2 * hidden:3 * hidden]
            g = jnp.tanh(gall[:, 3 * hidden:G])
            c_new = f * c + i * g
            h_new = o * jnp.tanh(c_new)
            # packed-sequence semantics: freeze state / zero output outside the window
            valid = jnp.logical_and(start_col <= s, end_col > s)  # [8,1] bool
            c = jnp.where(valid, c_new, c)
            h_raw = jnp.concatenate(
                [jnp.where(fwd_sel, h_new, 0.0), jnp.where(fwd_sel, 0.0, h_new)],
                axis=1)                                          # [8, 2H]
            out_wide = jnp.where(valid, h_raw, 0.0)
            h_wide = jnp.where(valid, h_raw, h_wide)
            # ONE aligned full-tile store per step (time-major, direction-stacked)
            seq_ref[s * b2p:(s + 1) * b2p, :] = out_wide

        # ---- 4) head: combine -> relu(linear_t) -> mapping matmuls -> linear_re -----
        seq_bf = seq_ref[...].astype(jnp.bfloat16)               # [L*8, 2H]
        # 0/1 combine matrix re-orders to batch-major [B*L, 2H] in one tiny MXU dot
        seq_bm = jnp.dot(cmb_ref[...], seq_bf,
                         preferred_element_type=jnp.float32)     # [B*L, 2H]
        ctx = jnp.maximum(
            jnp.dot(seq_bm.astype(jnp.bfloat16), wt_ref[...],
                    preferred_element_type=jnp.float32) + bt_ref[...],
            0.0,
        )                                                        # [B*L, H]
        ctx_bf = ctx.astype(jnp.bfloat16)
        start = jnp.dot(hmap_ref[...], ctx_bf,
                        preferred_element_type=jnp.float32)      # [B*EL, H]
        end = jnp.dot(tmap_ref[...], ctx_bf,
                      preferred_element_type=jnp.float32)        # [B*EL, H]
        # cat([start, end, re]) @ w_re^T  ==  split dot (avoids lane concat), f32
        pred = (
            jnp.sum(start * wre_ref[0:1, :], axis=-1, keepdims=True)
            + jnp.sum(end * wre_ref[1:2, :], axis=-1, keepdims=True)
            + jnp.sum(re_ref[...] * wre_ref[2:3, :], axis=-1, keepdims=True)
            + bre_ref[0, 0]
        )                                                        # [B*EL, 1]
        out_ref[...] = pred

    return kernel


# ------------------------------ parameter packing -------------------------------
def _reorder_gates(w):
    """PyTorch gate order (i|f|g|o) -> kernel order (i|f|o|g) along the last (4H) axis."""
    return jnp.concatenate(
        [w[..., 0:H], w[..., H:2 * H], w[..., 3 * H:4 * H], w[..., 2 * H:3 * H]], axis=-1)


def _combine_matrix():
    """[B*L, L*B2P] 0/1 matrix: row b*L+t picks fwd row (t, b) and bwd row (L-1-t, B+b)."""
    C = np.zeros((B * L, L * B2P), np.float32)
    for b in range(B):
        for t in range(L):
            C[b * L + t, t * B2P + b] = 1.0
            C[b * L + t, (L - 1 - t) * B2P + B + b] = 1.0
    return jnp.asarray(C)


def pack_params(p):
    """One-time repack of PyTorch-layout weights into kernel-friendly layouts."""
    wih_f = _reorder_gates(p["w_ih_fwd"].T)                 # [DIN, 4H]
    wih_b = _reorder_gates(p["w_ih_bwd"].T)
    whh_f = _reorder_gates(p["w_hh_fwd"].T)                 # [H, 4H]
    whh_b = _reorder_gates(p["w_hh_bwd"].T)
    bias_f = _reorder_gates(p["b_ih_fwd"] + p["b_hh_fwd"])  # [4H]
    bias_b = _reorder_gates(p["b_ih_bwd"] + p["b_hh_bwd"])
    bias_bd = jnp.zeros((B2P, 4 * H), jnp.float32)
    bias_bd = bias_bd.at[0:B, :].set(bias_f)
    bias_bd = bias_bd.at[B:2 * B, :].set(bias_b)
    return {
        "word_emb": p["word_emb"].astype(jnp.float32),
        "coref_emb": p["coref_emb"].astype(jnp.float32),
        "ner_emb": p["ner_emb"].astype(jnp.float32),
        "rel_emb": p["rel_emb"].astype(jnp.float32),
        # vertically-stacked (block-input) bf16 weights for the stacked formulation
        "wih": jnp.concatenate([wih_f, wih_b], axis=0).astype(jnp.bfloat16),   # [2*DIN, 4H]
        "whh": jnp.concatenate([whh_f, whh_b], axis=0).astype(jnp.bfloat16),   # [2H, 4H]
        "bias": bias_bd,                                                       # [8, 4H] f32
        "wt": p["linear_t_w"].T.astype(jnp.bfloat16),                          # [2H, H]
        "bt": p["linear_t_b"].reshape(1, H).astype(jnp.float32),
        "wre": p["linear_re_w"].reshape(3, H).astype(jnp.float32),             # [start|end|re]
        "bre": p["linear_re_b"].reshape(1, 1).astype(jnp.float32),
        "cmb": _combine_matrix().astype(jnp.bfloat16),                         # [B*L, L*8]
    }


def _stacked_time_major(idx):
    """[B, L] int indices -> [L, 2B]: row s = [batch@t=s (fwd) | batch@t=L-1-s (bwd)]."""
    return jnp.concatenate([idx.T, idx[:, ::-1].T], axis=1)


def _blockdiag_mapping(m):
    """[B, EL, L] -> block-diagonal [B*EL, B*L]."""
    out = jnp.zeros((B * EL, B * L), m.dtype)
    for b in range(B):
        out = out.at[b * EL:(b + 1) * EL, b * L:(b + 1) * L].set(m[b])
    return out


# --------------------------------- full forward ---------------------------------
def lstm_sp_forward(packed, context_idxs, pos, context_ner, context_char_idxs,
                    context_lens, sent_h_mapping, sent_t_mapping, relation_label):
    del context_char_idxs  # unused by LSTM_SP.forward
    # Embedding gathers (tiny XLA glue) directly into the time-major, direction-
    # stacked, lane-block-diagonal layout the kernel wants.
    idx_st = _stacked_time_major(context_idxs)
    pos_st = _stacked_time_major(pos)
    ner_st = _stacked_time_major(context_ner)
    word = jnp.take(packed["word_emb"], idx_st, axis=0)          # [L, 2B, 64]
    coref = jnp.take(packed["coref_emb"], pos_st, axis=0)
    ner = jnp.take(packed["ner_emb"], ner_st, axis=0)
    feats = jnp.concatenate([word, coref, ner], axis=-1)         # [L, 2B, DIN]
    zpad = jnp.zeros_like(feats[:, :B, :])
    fwd_rows = jnp.concatenate([feats[:, :B, :], zpad], axis=-1)               # lanes 0:DIN
    bwd_rows = jnp.concatenate([zpad, feats[:, B:, :]], axis=-1)               # lanes DIN:2DIN
    pad_rows = jnp.zeros((L, B2P - 2 * B, 2 * DIN), feats.dtype)
    sent_stacked = jnp.concatenate([fwd_rows, bwd_rows, pad_rows], axis=1)
    sent_stacked = sent_stacked.reshape(L * B2P, 2 * DIN).astype(jnp.bfloat16)

    re_vec = jnp.take(packed["rel_emb"], relation_label, axis=0)               # [B, H]
    re_exp = jnp.repeat(re_vec, EL, axis=0).astype(jnp.float32)                # [B*EL, H]
    hmap_bd = _blockdiag_mapping(sent_h_mapping).astype(jnp.bfloat16)          # [B*EL, B*L]
    tmap_bd = _blockdiag_mapping(sent_t_mapping).astype(jnp.bfloat16)

    out = pl.pallas_call(
        _make_fused_kernel(B, L, H, B2P),
        out_shape=jax.ShapeDtypeStruct((B * EL, 1), jnp.float32),
        in_specs=[VMEM, VMEM, VMEM, VMEM, SMEM] + [VMEM] * 8,
        out_specs=VMEM,
        scratch_shapes=[
            pltpu.VMEM((L * B2P, 4 * H), jnp.float32),   # xproj (time-major, stacked)
            pltpu.VMEM((L * B2P, 2 * H), jnp.float32),   # bi-LSTM outputs (time-major, stacked)
        ],
    )(
        sent_stacked,
        packed["wih"], packed["bias"], packed["whh"],
        context_lens.astype(jnp.int32),
        packed["cmb"], packed["wt"], packed["bt"],
        hmap_bd, tmap_bd, re_exp,
        packed["wre"], packed["bre"],
    )
    return out[:, 0].reshape(B, EL)                       # predict_sent: [B, EL]


# -------------------------------- pure-JAX reference -----------------------------
# Mirrors the kernel's mixed precision (bf16 matmul operands, f32 accumulation and
# f32 gate/elementwise math) so the comparison isolates kernel correctness.
def _lstm_dir_ref(xp_tm, whh_t, lens, reverse):
    Lx = xp_tm.shape[0]
    whh_bf = whh_t.astype(jnp.bfloat16)

    def step(s, state):
        h, c, out = state
        t = (Lx - 1 - s) if reverse else s
        gates = xp_tm[t] + jnp.dot(h.astype(jnp.bfloat16), whh_bf,
                                   preferred_element_type=jnp.float32)
        i = jax.nn.sigmoid(gates[:, :H])
        f = jax.nn.sigmoid(gates[:, H:2 * H])
        g = jnp.tanh(gates[:, 2 * H:3 * H])
        o = jax.nn.sigmoid(gates[:, 3 * H:])
        cn = f * c + i * g
        hn = o * jnp.tanh(cn)
        mask = (t < lens)[:, None]
        out = out.at[t].set(jnp.where(mask, hn, 0.0))
        return jnp.where(mask, hn, h), jnp.where(mask, cn, c), out

    state = (jnp.zeros((B, H), jnp.float32), jnp.zeros((B, H), jnp.float32),
             jnp.zeros((Lx, B, H), jnp.float32))
    _, _, out = lax.fori_loop(0, Lx, step, state)
    return out


def reference_forward(params, context_idxs, pos, context_ner, context_char_idxs,
                      context_lens, sent_h_mapping, sent_t_mapping, relation_label):
    word = jnp.take(params["word_emb"], context_idxs, axis=0)
    coref = jnp.take(params["coref_emb"], pos, axis=0)
    ner = jnp.take(params["ner_emb"], context_ner, axis=0)
    sent = jnp.concatenate([word, coref, ner], axis=-1)
    el = sent_h_mapping.shape[1]
    re_embed = jnp.take(params["rel_emb"], relation_label, axis=0)
    re_embed = jnp.broadcast_to(re_embed[:, None, :], (sent.shape[0], el, H))

    sent2d = sent.reshape(B * L, DIN).astype(jnp.bfloat16)
    outs = []
    for d, rev in (("fwd", False), ("bwd", True)):
        bias = params[f"b_ih_{d}"] + params[f"b_hh_{d}"]
        xp = (jnp.dot(sent2d, params[f"w_ih_{d}"].T.astype(jnp.bfloat16),
                      preferred_element_type=jnp.float32) + bias).reshape(B, L, 4 * H)
        out_tm = _lstm_dir_ref(xp.transpose(1, 0, 2), params[f"w_hh_{d}"].T,
                               context_lens, rev)
        outs.append(out_tm.transpose(1, 0, 2))
    ctx2h = jnp.concatenate(outs, axis=-1)                       # [B, L, 2H]

    ctx = jnp.maximum(
        jnp.einsum("blk,kh->blh", ctx2h.astype(jnp.bfloat16),
                   params["linear_t_w"].T.astype(jnp.bfloat16),
                   preferred_element_type=jnp.float32) + params["linear_t_b"], 0.0)
    start = jnp.einsum("bel,blh->beh", sent_h_mapping.astype(jnp.bfloat16),
                       ctx.astype(jnp.bfloat16), preferred_element_type=jnp.float32)
    end = jnp.einsum("bel,blh->beh", sent_t_mapping.astype(jnp.bfloat16),
                     ctx.astype(jnp.bfloat16), preferred_element_type=jnp.float32)
    sent_out = jnp.concatenate([start, end, re_embed], axis=-1)
    pred = jnp.einsum("bek,k->be", sent_out, params["linear_re_w"][0]) \
        + params["linear_re_b"][0]
    return pred


# --------------------------------- parameter init --------------------------------
def init_params(key):
    ks = jax.random.split(key, 16)

    def nrm(k, shape, scale=0.1):
        return scale * jax.random.normal(k, shape, dtype=jnp.float32)

    p = {}
    p["word_emb"] = nrm(ks[0], (VOCAB, WORD_DIM))
    p["coref_emb"] = nrm(ks[1], (L, COREF)).at[0].set(0.0)     # padding_idx=0
    p["ner_emb"] = nrm(ks[2], (7, NER)).at[0].set(0.0)         # padding_idx=0
    p["rel_emb"] = nrm(ks[3], (REL, H)).at[0].set(0.0)         # padding_idx=0
    p["w_ih_fwd"] = nrm(ks[4], (4 * H, DIN))
    p["w_hh_fwd"] = nrm(ks[5], (4 * H, H))
    p["b_ih_fwd"] = nrm(ks[6], (4 * H,))
    p["b_hh_fwd"] = nrm(ks[7], (4 * H,))
    p["w_ih_bwd"] = nrm(ks[8], (4 * H, DIN))
    p["w_hh_bwd"] = nrm(ks[9], (4 * H, H))
    p["b_ih_bwd"] = nrm(ks[10], (4 * H,))
    p["b_hh_bwd"] = nrm(ks[11], (4 * H,))
    p["linear_t_w"] = nrm(ks[12], (H, 2 * H))
    p["linear_t_b"] = nrm(ks[13], (H,))
    p["linear_re_w"] = nrm(ks[14], (1, 3 * H))
    p["linear_re_b"] = nrm(ks[15], (1,))
    return p


# -------------------------------------- main --------------------------------------
if __name__ == "__main__":
    root = jax.random.PRNGKey(0)
    kp, k1, k2, k3, k4, k5, k6 = jax.random.split(root, 7)

    params = init_params(kp)
    packed = pack_params(params)           # one-time weight repack (outside hot path)

    context_idxs = jax.random.randint(k1, (B, L), 0, VOCAB, dtype=jnp.int32)
    pos = jax.random.randint(k2, (B, L), 0, L, dtype=jnp.int32)
    context_ner = jax.random.randint(k3, (B, L), 0, 7, dtype=jnp.int32)
    context_char_idxs = jnp.zeros((B, L, 4), dtype=jnp.int32)   # unused in forward
    context_lens = jnp.array([L, L - 4], dtype=jnp.int32)
    sent_h_mapping = jax.random.uniform(k4, (B, EL, L), dtype=jnp.float32)
    sent_t_mapping = jax.random.uniform(k5, (B, EL, L), dtype=jnp.float32)
    relation_label = jax.random.randint(k6, (B,), 0, REL, dtype=jnp.int32)

    fwd = jax.jit(lstm_sp_forward)
    pred = fwd(packed, context_idxs, pos, context_ner, context_char_idxs,
               context_lens, sent_h_mapping, sent_t_mapping, relation_label)
    pred = jax.block_until_ready(pred)

    ref = reference_forward(params, context_idxs, pos, context_ner, context_char_idxs,
                            context_lens, sent_h_mapping, sent_t_mapping, relation_label)
    ref = jax.block_until_ready(ref)

    assert pred.shape == (B, EL), pred.shape
    err = float(jnp.max(jnp.abs(pred - ref)))
    assert err < 5e-3, f"mismatch vs reference, max abs err = {err}"

    print("KERNEL_OK")
</pallas_src>

<mosaic_0001>
module attributes {stable_mosaic.version = 11 : i64} {
  func.func @kernel(%arg0: memref<128x256xbf16, #tpu.memory_space<vmem>>, %arg1: memref<256x512xbf16, #tpu.memory_space<vmem>>, %arg2: memref<8x512xf32, #tpu.memory_space<vmem>>, %arg3: memref<256x512xbf16, #tpu.memory_space<vmem>>, %arg4: memref<2xi32, #tpu.memory_space<smem>>, %arg5: memref<32x128xbf16, #tpu.memory_space<vmem>>, %arg6: memref<256x128xbf16, #tpu.memory_space<vmem>>, %arg7: memref<1x128xf32, #tpu.memory_space<vmem>>, %arg8: memref<16x32xbf16, #tpu.memory_space<vmem>>, %arg9: memref<16x32xbf16, #tpu.memory_space<vmem>>, %arg10: memref<16x128xf32, #tpu.memory_space<vmem>>, %arg11: memref<3x128xf32, #tpu.memory_space<vmem>>, %arg12: memref<1x1xf32, #tpu.memory_space<vmem>>, %arg13: memref<16x1xf32, #tpu.memory_space<vmem>>, %arg14: memref<128x512xf32, #tpu.memory_space<vmem>>, %arg15: memref<128x256xf32, #tpu.memory_space<vmem>>) attributes {dimension_semantics = [], scalar_prefetch = 0 : i64, scratch_operands = 2 : i64, tpu.core_type = #tpu.core_type<tc>} {
    %c0 = arith.constant 0 : index
    %c0_0 = arith.constant 0 : index
    %0 = vector.load %arg0[%c0, %c0_0] : memref<128x256xbf16, #tpu.memory_space<vmem>>, vector<128x256xbf16>
    %c0_1 = arith.constant 0 : index
    %c0_2 = arith.constant 0 : index
    %1 = vector.load %arg1[%c0_1, %c0_2] : memref<256x512xbf16, #tpu.memory_space<vmem>>, vector<256x512xbf16>
    %cst = arith.constant dense<0.000000e+00> : vector<128x512xf32>
    %2 = tpu.matmul %0, %1, %cst {dimension_numbers = #tpu.dot_dimension_numbers<[1], [0], [0], [1], [0, 0, 1, 1], [], []>} : vector<128x256xbf16>, vector<256x512xbf16>, vector<128x512xf32> -> vector<128x512xf32>
    %c0_3 = arith.constant 0 : index
    %c0_4 = arith.constant 0 : index
    %3 = vector.load %arg14[%c0_3, %c0_4] : memref<128x512xf32, #tpu.memory_space<vmem>>, vector<128x512xf32>
    tpu.vector_store %arg14[%c0_3, %c0_4], %2 {strides = array<i32>} : memref<128x512xf32, #tpu.memory_space<vmem>>, vector<128x512xf32>,
    %4 = tpu.iota {dimensions = array<i32: 0>} : vector<8x1xi32>
    %c2_i32 = arith.constant 2 : i32
    %5 = vector.broadcast %c2_i32 : i32 to vector<8x1xi32>
    %6 = arith.cmpi slt, %4, %5 : vector<8x1xi32>
    %c4_i32 = arith.constant 4 : i32
    %7 = vector.broadcast %c4_i32 : i32 to vector<8x1xi32>
    %8 = arith.cmpi slt, %4, %7 : vector<8x1xi32>
    %9 = vector.shape_cast %6 : vector<8x1xi1> to vector<8x1xi1>
    %10 = vector.broadcast %9 : vector<8x1xi1> to vector<8x128xi1>
    %c0_i32 = arith.constant 0 : i32
    %11 = vector.broadcast %c0_i32 : i32 to vector<8x1xi32>
    %c2_i32_5 = arith.constant 2 : i32
    %c0_i32_6 = arith.constant 0 : i32
    %12 = arith.cmpi eq, %c2_i32_5, %c0_i32_6 : i32
    %c1_i32 = arith.constant 1 : i32
    %13 = arith.select %12, %c1_i32, %c2_i32_5 : i32
    %14 = vector.broadcast %13 : i32 to vector<8x1xi32>
    %15 = arith.remsi %4, %14 : vector<8x1xi32>
    %c0_i32_7 = arith.constant 0 : i32
    %16 = vector.broadcast %c0_i32_7 : i32 to vector<8x1xi32>
    %17 = arith.cmpi ne, %15, %16 : vector<8x1xi32>
    %c0_i32_8 = arith.constant 0 : i32
    %18 = vector.broadcast %c0_i32_8 : i32 to vector<8x1xi32>
    %19 = arith.cmpi slt, %15, %18 : vector<8x1xi32>
    %c0_i32_9 = arith.constant 0 : i32
    %20 = arith.cmpi slt, %13, %c0_i32_9 : i32
    %21 = vector.broadcast %20 : i1 to vector<8x1xi1>
    %22 = vector.broadcast %21 : vector<8x1xi1> to vector<8x1xi1>
    %23 = arith.xori %19, %22 : vector<8x1xi1>
    %24 = arith.andi %23, %17 : vector<8x1xi1>
    %25 = vector.broadcast %13 : i32 to vector<8x1xi32>
    %26 = arith.addi %15, %25 : vector<8x1xi32>
    %27 = arith.select %24, %26, %15 : vector<8x1xi1>, vector<8x1xi32>
    %c0_i32_10 = arith.constant 0 : i32
    %28 = vector.broadcast %c0_i32_10 : i32 to vector<8x1xi32>
    %29 = arith.cmpi eq, %27, %28 : vector<8x1xi32>
    %c0_11 = arith.constant 0 : index
    %30 = memref.load %arg4[%c0_11] : memref<2xi32, #tpu.memory_space<smem>>
    %31 = vector.broadcast %30 : i32 to vector<8x1xi32>
    %32 = arith.select %29, %31, %11 : vector<8x1xi1>, vector<8x1xi32>
    %c2_i32_12 = arith.constant 2 : i32
    %c0_i32_13 = arith.constant 0 : i32
    %33 = arith.cmpi eq, %c2_i32_12, %c0_i32_13 : i32
    %c1_i32_14 = arith.constant 1 : i32
    %34 = arith.select %33, %c1_i32_14, %c2_i32_12 : i32
    %35 = vector.broadcast %34 : i32 to vector<8x1xi32>
    %36 = arith.remsi %4, %35 : vector<8x1xi32>
    %c0_i32_15 = arith.constant 0 : i32
    %37 = vector.broadcast %c0_i32_15 : i32 to vector<8x1xi32>
    %38 = arith.cmpi ne, %36, %37 : vector<8x1xi32>
    %c0_i32_16 = arith.constant 0 : i32
    %39 = vector.broadcast %c0_i32_16 : i32 to vector<8x1xi32>
    %40 = arith.cmpi slt, %36, %39 : vector<8x1xi32>
    %c0_i32_17 = arith.constant 0 : i32
    %41 = arith.cmpi slt, %34, %c0_i32_17 : i32
    %42 = vector.broadcast %41 : i1 to vector<8x1xi1>
    %43 = vector.broadcast %42 : vector<8x1xi1> to vector<8x1xi1>
    %44 = arith.xori %40, %43 : vector<8x1xi1>
    %45 = arith.andi %44, %38 : vector<8x1xi1>
    %46 = vector.broadcast %34 : i32 to vector<8x1xi32>
    %47 = arith.addi %36, %46 : vector<8x1xi32>
    %48 = arith.select %45, %47, %36 : vector<8x1xi1>, vector<8x1xi32>
    %c1_i32_18 = arith.constant 1 : i32
    %49 = vector.broadcast %c1_i32_18 : i32 to vector<8x1xi32>
    %50 = arith.cmpi eq, %48, %49 : vector<8x1xi32>
    %c1 = arith.constant 1 : index
    %51 = memref.load %arg4[%c1] : memref<2xi32, #tpu.memory_space<smem>>
    %52 = vector.broadcast %51 : i32 to vector<8x1xi32>
    %53 = arith.select %50, %52, %32 : vector<8x1xi1>, vector<8x1xi32>
    %c16_i32 = arith.constant 16 : i32
    %54 = vector.broadcast %c16_i32 : i32 to vector<8x1xi32>
    %55 = arith.subi %54, %53 : vector<8x1xi32>
    %c0_i32_19 = arith.constant 0 : i32
    %56 = vector.broadcast %c0_i32_19 : i32 to vector<8x1xi32>
    %57 = arith.select %6, %56, %55 : vector<8x1xi1>, vector<8x1xi32>
    %c16_i32_20 = arith.constant 16 : i32
    %58 = vector.broadcast %c16_i32_20 : i32 to vector<8x1xi32>
    %59 = arith.select %8, %57, %58 : vector<8x1xi1>, vector<8x1xi32>
    %c16_i32_21 = arith.constant 16 : i32
    %60 = vector.broadcast %c16_i32_21 : i32 to vector<8x1xi32>
    %61 = arith.select %6, %53, %60 : vector<8x1xi1>, vector<8x1xi32>
    %c0_22 = arith.constant 0 : index
    %c0_23 = arith.constant 0 : index
    %62 = vector.load %arg2[%c0_22, %c0_23] : memref<8x512xf32, #tpu.memory_space<vmem>>, vector<8x512xf32>
    %cst_24 = arith.constant 0.000000e+00 : f32
    %63 = vector.broadcast %cst_24 : f32 to vector<8x256xf32>
    %cst_25 = arith.constant 0.000000e+00 : f32
    %64 = vector.broadcast %cst_25 : f32 to vector<8x128xf32>
    %c0_26 = arith.constant 0 : index
    %c0_27 = arith.constant 0 : index
    %65 = vector.load %arg14[%c0_26, %c0_27] : memref<128x512xf32, #tpu.memory_space<vmem>>, vector<8x512xf32>
    %66 = arith.truncf %63 : vector<8x256xf32> to vector<8x256xbf16>
    %c0_28 = arith.constant 0 : index
    %c0_29 = arith.constant 0 : index
    %67 = vector.load %arg3[%c0_28, %c0_29] : memref<256x512xbf16, #tpu.memory_space<vmem>>, vector<256x512xbf16>
    %cst_30 = arith.constant dense<0.000000e+00> : vector<8x512xf32>
    %68 = tpu.matmul %66, %67, %cst_30 {dimension_numbers = #tpu.dot_dimension_numbers<[1], [0], [0], [1], [0, 0, 1, 1], [], []>} : vector<8x256xbf16>, vector<256x512xbf16>, vector<8x512xf32> -> vector<8x512xf32>
    %69 = arith.addf %65, %62 : vector<8x512xf32>
    %70 = arith.addf %69, %68 : vector<8x512xf32>
    %71 = vector.extract_strided_slice %70 {offsets = [0, 0], sizes = [8, 384], strides = [1, 1]} : vector<8x512xf32> to vector<8x384xf32>
    %72 = arith.negf %71 : vector<8x384xf32>
    %73 = math.exp %72 : vector<8x384xf32>
    %cst_31 = arith.constant 1.000000e+00 : f32
    %74 = vector.broadcast %cst_31 : f32 to vector<8x384xf32>
    %75 = arith.addf %74, %73 : vector<8x384xf32>
    %76 = arith.divf %74, %75 : vector<8x384xf32>
    %77 = vector.extract_strided_slice %76 {offsets = [0, 0], sizes = [8, 128], strides = [1, 1]} : vector<8x384xf32> to vector<8x128xf32>
    %78 = vector.extract_strided_slice %76 {offsets = [0, 128], sizes = [8, 128], strides = [1, 1]} : vector<8x384xf32> to vector<8x128xf32>
    %79 = vector.extract_strided_slice %76 {offsets = [0, 256], sizes = [8, 128], strides = [1, 1]} : vector<8x384xf32> to vector<8x128xf32>
    %80 = vector.extract_strided_slice %70 {offsets = [0, 384], sizes = [8, 128], strides = [1, 1]} : vector<8x512xf32> to vector<8x128xf32>
    %81 = math.tanh %80 : vector<8x128xf32>
    %82 = arith.mulf %78, %64 : vector<8x128xf32>
    %83 = arith.mulf %77, %81 : vector<8x128xf32>
    %84 = arith.addf %82, %83 : vector<8x128xf32>
    %85 = math.tanh %84 : vector<8x128xf32>
    %86 = arith.mulf %79, %85 : vector<8x128xf32>
    %c0_i32_32 = arith.constant 0 : i32
    %87 = vector.broadcast %c0_i32_32 : i32 to vector<8x1xi32>
    %88 = arith.cmpi sle, %59, %87 : vector<8x1xi32>
    %c0_i32_33 = arith.constant 0 : i32
    %89 = vector.broadcast %c0_i32_33 : i32 to vector<8x1xi32>
    %90 = arith.cmpi sgt, %61, %89 : vector<8x1xi32>
    %91 = arith.andi %88, %90 : vector<8x1xi1>
    %92 = vector.shape_cast %91 : vector<8x1xi1> to vector<8x1xi1>
    %93 = vector.broadcast %92 : vector<8x1xi1> to vector<8x128xi1>
    %94 = arith.select %93, %84, %64 : vector<8x128xi1>, vector<8x128xf32>
    %cst_34 = arith.constant 0.000000e+00 : f32
    %95 = vector.broadcast %cst_34 : f32 to vector<8x128xf32>
    %96 = arith.select %10, %86, %95 : vector<8x128xi1>, vector<8x128xf32>
    %cst_35 = arith.constant 0.000000e+00 : f32
    %97 = vector.broadcast %cst_35 : f32 to vector<8x128xf32>
    %98 = arith.select %10, %97, %86 : vector<8x128xi1>, vector<8x128xf32>
    %99 = tpu.concatenate %96, %98 in 1 : vector<8x128xf32>, vector<8x128xf32> -> vector<8x256xf32>
    %cst_36 = arith.constant 0.000000e+00 : f32
    %100 = vector.shape_cast %91 : vector<8x1xi1> to vector<8x1xi1>
    %101 = vector.broadcast %100 : vector<8x1xi1> to vector<8x256xi1>
    %102 = vector.broadcast %cst_36 : f32 to vector<8x256xf32>
    %103 = arith.select %101, %99, %102 : vector<8x256xi1>, vector<8x256xf32>
    %104 = vector.shape_cast %91 : vector<8x1xi1> to vector<8x1xi1>
    %105 = vector.broadcast %104 : vector<8x1xi1> to vector<8x256xi1>
    %106 = arith.select %105, %99, %63 : vector<8x256xi1>, vector<8x256xf32>
    %c0_37 = arith.constant 0 : index
    %c0_38 = arith.constant 0 : index
    %107 = vector.load %arg15[%c0_37, %c0_38] : memref<128x256xf32, #tpu.memory_space<vmem>>, vector<8x256xf32>
    tpu.vector_store %arg15[%c0_37, %c0_38], %103 {strides = array<i32>} : memref<128x256xf32, #tpu.memory_space<vmem>>, vector<8x256xf32>,
    %c8 = arith.constant 8 : index
    %c0_39 = arith.constant 0 : index
    %108 = vector.load %arg14[%c8, %c0_39] : memref<128x512xf32, #tpu.memory_space<vmem>>, vector<8x512xf32>
    %109 = arith.truncf %106 : vector<8x256xf32> to vector<8x256xbf16>
    %c0_40 = arith.constant 0 : index
    %c0_41 = arith.constant 0 : index
    %110 = vector.load %arg3[%c0_40, %c0_41] : memref<256x512xbf16, #tpu.memory_space<vmem>>, vector<256x512xbf16>
    %cst_42 = arith.constant dense<0.000000e+00> : vector<8x512xf32>
    %111 = tpu.matmul %109, %110, %cst_42 {dimension_numbers = #tpu.dot_dimension_numbers<[1], [0], [0], [1], [0, 0, 1, 1], [], []>} : vector<8x256xbf16>, vector<256x512xbf16>, vector<8x512xf32> -> vector<8x512xf32>
    %112 = arith.addf %108, %62 : vector<8x512xf32>
    %113 = arith.addf %112, %111 : vector<8x512xf32>
    %114 = vector.extract_strided_slice %113 {offsets = [0, 0], sizes = [8, 384], strides = [1, 1]} : vector<8x512xf32> to vector<8x384xf32>
    %115 = arith.negf %114 : vector<8x384xf32>
    %116 = math.exp %115 : vector<8x384xf32>
    %cst_43 = arith.constant 1.000000e+00 : f32
    %117 = vector.broadcast %cst_43 : f32 to vector<8x384xf32>
    %118 = arith.addf %117, %116 : vector<8x384xf32>
    %119 = arith.divf %117, %118 : vector<8x384xf32>
    %120 = vector.extract_strided_slice %119 {offsets = [0, 0], sizes = [8, 128], strides = [1, 1]} : vector<8x384xf32> to vector<8x128xf32>
    %121 = vector.extract_strided_slice %119 {offsets = [0, 128], sizes = [8, 128], strides = [1, 1]} : vector<8x384xf32> to vector<8x128xf32>
    %122 = vector.extract_strided_slice %119 {offsets = [0, 256], sizes = [8, 128], strides = [1, 1]} : vector<8x384xf32> to vector<8x128xf32>
    %123 = vector.extract_strided_slice %113 {offsets = [0, 384], sizes = [8, 128], strides = [1, 1]} : vector<8x512xf32> to vector<8x128xf32>
    %124 = math.tanh %123 : vector<8x128xf32>
    %125 = arith.mulf %121, %94 : vector<8x128xf32>
    %126 = arith.mulf %120, %124 : vector<8x128xf32>
    %127 = arith.addf %125, %126 : vector<8x128xf32>
    %128 = math.tanh %127 : vector<8x128xf32>
    %129 = arith.mulf %122, %128 : vector<8x128xf32>
    %c1_i32_44 = arith.constant 1 : i32
    %130 = vector.broadcast %c1_i32_44 : i32 to vector<8x1xi32>
    %131 = arith.cmpi sle, %59, %130 : vector<8x1xi32>
    %c1_i32_45 = arith.constant 1 : i32
    %132 = vector.broadcast %c1_i32_45 : i32 to vector<8x1xi32>
    %133 = arith.cmpi sgt, %61, %132 : vector<8x1xi32>
    %134 = arith.andi %131, %133 : vector<8x1xi1>
    %135 = vector.shape_cast %134 : vector<8x1xi1> to vector<8x1xi1>
    %136 = vector.broadcast %135 : vector<8x1xi1> to vector<8x128xi1>
    %137 = arith.select %136, %127, %94 : vector<8x128xi1>, vector<8x128xf32>
    %cst_46 = arith.constant 0.000000e+00 : f32
    %138 = vector.broadcast %cst_46 : f32 to vector<8x128xf32>
    %139 = arith.select %10, %129, %138 : vector<8x128xi1>, vector<8x128xf32>
    %cst_47 = arith.constant 0.000000e+00 : f32
    %140 = vector.broadcast %cst_47 : f32 to vector<8x128xf32>
    %141 = arith.select %10, %140, %129 : vector<8x128xi1>, vector<8x128xf32>
    %142 = tpu.concatenate %139, %141 in 1 : vector<8x128xf32>, vector<8x128xf32> -> vector<8x256xf32>
    %cst_48 = arith.constant 0.000000e+00 : f32
    %143 = vector.shape_cast %134 : vector<8x1xi1> to vector<8x1xi1>
    %144 = vector.broadcast %143 : vector<8x1xi1> to vector<8x256xi1>
    %145 = vector.broadcast %cst_48 : f32 to vector<8x256xf32>
    %146 = arith.select %144, %142, %145 : vector<8x256xi1>, vector<8x256xf32>
    %147 = vector.shape_cast %134 : vector<8x1xi1> to vector<8x1xi1>
    %148 = vector.broadcast %147 : vector<8x1xi1> to vector<8x256xi1>
    %149 = arith.select %148, %142, %106 : vector<8x256xi1>, vector<8x256xf32>
    %c8_49 = arith.constant 8 : index
    %c0_50 = arith.constant 0 : index
    %150 = vector.load %arg15[%c8_49, %c0_50] : memref<128x256xf32, #tpu.memory_space<vmem>>, vector<8x256xf32>
    tpu.vector_store %arg15[%c8_49, %c0_50], %146 {strides = array<i32>} : memref<128x256xf32, #tpu.memory_space<vmem>>, vector<8x256xf32>,
    %c16 = arith.constant 16 : index
    %c0_51 = arith.constant 0 : index
    %151 = vector.load %arg14[%c16, %c0_51] : memref<128x512xf32, #tpu.memory_space<vmem>>, vector<8x512xf32>
    %152 = arith.truncf %149 : vector<8x256xf32> to vector<8x256xbf16>
    %c0_52 = arith.constant 0 : index
    %c0_53 = arith.constant 0 : index
    %153 = vector.load %arg3[%c0_52, %c0_53] : memref<256x512xbf16, #tpu.memory_space<vmem>>, vector<256x512xbf16>
    %cst_54 = arith.constant dense<0.000000e+00> : vector<8x512xf32>
    %154 = tpu.matmul %152, %153, %cst_54 {dimension_numbers = #tpu.dot_dimension_numbers<[1], [0], [0], [1], [0, 0, 1, 1], [], []>} : vector<8x256xbf16>, vector<256x512xbf16>, vector<8x512xf32> -> vector<8x512xf32>
    %155 = arith.addf %151, %62 : vector<8x512xf32>
    %156 = arith.addf %155, %154 : vector<8x512xf32>
    %157 = vector.extract_strided_slice %156 {offsets = [0, 0], sizes = [8, 384], strides = [1, 1]} : vector<8x512xf32> to vector<8x384xf32>
    %158 = arith.negf %157 : vector<8x384xf32>
    %159 = math.exp %158 : vector<8x384xf32>
    %cst_55 = arith.constant 1.000000e+00 : f32
    %160 = vector.broadcast %cst_55 : f32 to vector<8x384xf32>
    %161 = arith.addf %160, %159 : vector<8x384xf32>
    %162 = arith.divf %160, %161 : vector<8x384xf32>
    %163 = vector.extract_strided_slice %162 {offsets = [0, 0], sizes = [8, 128], strides = [1, 1]} : vector<8x384xf32> to vector<8x128xf32>
    %164 = vector.extract_strided_slice %162 {offsets = [0, 128], sizes = [8, 128], strides = [1, 1]} : vector<8x384xf32> to vector<8x128xf32>
    %165 = vector.extract_strided_slice %162 {offsets = [0, 256], sizes = [8, 128], strides = [1, 1]} : vector<8x384xf32> to vector<8x128xf32>
    %166 = vector.extract_strided_slice %156 {offsets = [0, 384], sizes = [8, 128], strides = [1, 1]} : vector<8x512xf32> to vector<8x128xf32>
    %167 = math.tanh %166 : vector<8x128xf32>
    %168 = arith.mulf %164, %137 : vector<8x128xf32>
    %169 = arith.mulf %163, %167 : vector<8x128xf32>
    %170 = arith.addf %168, %169 : vector<8x128xf32>
    %171 = math.tanh %170 : vector<8x128xf32>
    %172 = arith.mulf %165, %171 : vector<8x128xf32>
    %c2_i32_56 = arith.constant 2 : i32
    %173 = vector.broadcast %c2_i32_56 : i32 to vector<8x1xi32>
    %174 = arith.cmpi sle, %59, %173 : vector<8x1xi32>
    %c2_i32_57 = arith.constant 2 : i32
    %175 = vector.broadcast %c2_i32_57 : i32 to vector<8x1xi32>
    %176 = arith.cmpi sgt, %61, %175 : vector<8x1xi32>
    %177 = arith.andi %174, %176 : vector<8x1xi1>
    %178 = vector.shape_cast %177 : vector<8x1xi1> to vector<8x1xi1>
    %179 = vector.broadcast %178 : vector<8x1xi1> to vector<8x128xi1>
    %180 = arith.select %179, %170, %137 : vector<8x128xi1>, vector<8x128xf32>
    %cst_58 = arith.constant 0.000000e+00 : f32
    %181 = vector.broadcast %cst_58 : f32 to vector<8x128xf32>
    %182 = arith.select %10, %172, %181 : vector<8x128xi1>, vector<8x128xf32>
    %cst_59 = arith.constant 0.000000e+00 : f32
    %183 = vector.broadcast %cst_59 : f32 to vector<8x128xf32>
    %184 = arith.select %10, %183, %172 : vector<8x128xi1>, vector<8x128xf32>
    %185 = tpu.concatenate %182, %184 in 1 : vector<8x128xf32>, vector<8x128xf32> -> vector<8x256xf32>
    %cst_60 = arith.constant 0.000000e+00 : f32
    %186 = vector.shape_cast %177 : vector<8x1xi1> to vector<8x1xi1>
    %187 = vector.broadcast %186 : vector<8x1xi1> to vector<8x256xi1>
    %188 = vector.broadcast %cst_60 : f32 to vector<8x256xf32>
    %189 = arith.select %187, %185, %188 : vector<8x256xi1>, vector<8x256xf32>
    %190 = vector.shape_cast %177 : vector<8x1xi1> to vector<8x1xi1>
    %191 = vector.broadcast %190 : vector<8x1xi1> to vector<8x256xi1>
    %192 = arith.select %191, %185, %149 : vector<8x256xi1>, vector<8x256xf32>
    %c16_61 = arith.constant 16 : index
    %c0_62 = arith.constant 0 : index
    %193 = vector.load %arg15[%c16_61, %c0_62] : memref<128x256xf32, #tpu.memory_space<vmem>>, vector<8x256xf32>
    tpu.vector_store %arg15[%c16_61, %c0_62], %189 {strides = array<i32>} : memref<128x256xf32, #tpu.memory_space<vmem>>, vector<8x256xf32>,
    %c24 = arith.constant 24 : index
    %c0_63 = arith.constant 0 : index
    %194 = vector.load %arg14[%c24, %c0_63] : memref<128x512xf32, #tpu.memory_space<vmem>>, vector<8x512xf32>
    %195 = arith.truncf %192 : vector<8x256xf32> to vector<8x256xbf16>
    %c0_64 = arith.constant 0 : index
    %c0_65 = arith.constant 0 : index
    %196 = vector.load %arg3[%c0_64, %c0_65] : memref<256x512xbf16, #tpu.memory_space<vmem>>, vector<256x512xbf16>
    %cst_66 = arith.constant dense<0.000000e+00> : vector<8x512xf32>
    %197 = tpu.matmul %195, %196, %cst_66 {dimension_numbers = #tpu.dot_dimension_numbers<[1], [0], [0], [1], [0, 0, 1, 1], [], []>} : vector<8x256xbf16>, vector<256x512xbf16>, vector<8x512xf32> -> vector<8x512xf32>
    %198 = arith.addf %194, %62 : vector<8x512xf32>
    %199 = arith.addf %198, %197 : vector<8x512xf32>
    %200 = vector.extract_strided_slice %199 {offsets = [0, 0], sizes = [8, 384], strides = [1, 1]} : vector<8x512xf32> to vector<8x384xf32>
    %201 = arith.negf %200 : vector<8x384xf32>
    %202 = math.exp %201 : vector<8x384xf32>
    %cst_67 = arith.constant 1.000000e+00 : f32
    %203 = vector.broadcast %cst_67 : f32 to vector<8x384xf32>
    %204 = arith.addf %203, %202 : vector<8x384xf32>
    %205 = arith.divf %203, %204 : vector<8x384xf32>
    %206 = vector.extract_strided_slice %205 {offsets = [0, 0], sizes = [8, 128], strides = [1, 1]} : vector<8x384xf32> to vector<8x128xf32>
    %207 = vector.extract_strided_slice %205 {offsets = [0, 128], sizes = [8, 128], strides = [1, 1]} : vector<8x384xf32> to vector<8x128xf32>
    %208 = vector.extract_strided_slice %205 {offsets = [0, 256], sizes = [8, 128], strides = [1, 1]} : vector<8x384xf32> to vector<8x128xf32>
    %209 = vector.extract_strided_slice %199 {offsets = [0, 384], sizes = [8, 128], strides = [1, 1]} : vector<8x512xf32> to vector<8x128xf32>
    %210 = math.tanh %209 : vector<8x128xf32>
    %211 = arith.mulf %207, %180 : vector<8x128xf32>
    %212 = arith.mulf %206, %210 : vector<8x128xf32>
    %213 = arith.addf %211, %212 : vector<8x128xf32>
    %214 = math.tanh %213 : vector<8x128xf32>
    %215 = arith.mulf %208, %214 : vector<8x128xf32>
    %c3_i32 = arith.constant 3 : i32
    %216 = vector.broadcast %c3_i32 : i32 to vector<8x1xi32>
    %217 = arith.cmpi sle, %59, %216 : vector<8x1xi32>
    %c3_i32_68 = arith.constant 3 : i32
    %218 = vector.broadcast %c3_i32_68 : i32 to vector<8x1xi32>
    %219 = arith.cmpi sgt, %61, %218 : vector<8x1xi32>
    %220 = arith.andi %217, %219 : vector<8x1xi1>
    %221 = vector.shape_cast %220 : vector<8x1xi1> to vector<8x1xi1>
    %222 = vector.broadcast %221 : vector<8x1xi1> to vector<8x128xi1>
    %223 = arith.select %222, %213, %180 : vector<8x128xi1>, vector<8x128xf32>
    %cst_69 = arith.constant 0.000000e+00 : f32
    %224 = vector.broadcast %cst_69 : f32 to vector<8x128xf32>
    %225 = arith.select %10, %215, %224 : vector<8x128xi1>, vector<8x128xf32>
    %cst_70 = arith.constant 0.000000e+00 : f32
    %226 = vector.broadcast %cst_70 : f32 to vector<8x128xf32>
    %227 = arith.select %10, %226, %215 : vector<8x128xi1>, vector<8x128xf32>
    %228 = tpu.concatenate %225, %227 in 1 : vector<8x128xf32>, vector<8x128xf32> -> vector<8x256xf32>
    %cst_71 = arith.constant 0.000000e+00 : f32
    %229 = vector.shape_cast %220 : vector<8x1xi1> to vector<8x1xi1>
    %230 = vector.broadcast %229 : vector<8x1xi1> to vector<8x256xi1>
    %231 = vector.broadcast %cst_71 : f32 to vector<8x256xf32>
    %232 = arith.select %230, %228, %231 : vector<8x256xi1>, vector<8x256xf32>
    %233 = vector.shape_cast %220 : vector<8x1xi1> to vector<8x1xi1>
    %234 = vector.broadcast %233 : vector<8x1xi1> to vector<8x256xi1>
    %235 = arith.select %234, %228, %192 : vector<8x256xi1>, vector<8x256xf32>
    %c24_72 = arith.constant 24 : index
    %c0_73 = arith.constant 0 : index
    %236 = vector.load %arg15[%c24_72, %c0_73] : memref<128x256xf32, #tpu.memory_space<vmem>>, vector<8x256xf32>
    tpu.vector_store %arg15[%c24_72, %c0_73], %232 {strides = array<i32>} : memref<128x256xf32, #tpu.memory_space<vmem>>, vector<8x256xf32>,
    %c32 = arith.constant 32 : index
    %c0_74 = arith.constant 0 : index
    %237 = vector.load %arg14[%c32, %c0_74] : memref<128x512xf32, #tpu.memory_space<vmem>>, vector<8x512xf32>
    %238 = arith.truncf %235 : vector<8x256xf32> to vector<8x256xbf16>
    %c0_75 = arith.constant 0 : index
    %c0_76 = arith.constant 0 : index
    %239 = vector.load %arg3[%c0_75, %c0_76] : memref<256x512xbf16, #tpu.memory_space<vmem>>, vector<256x512xbf16>
    %cst_77 = arith.constant dense<0.000000e+00> : vector<8x512xf32>
    %240 = tpu.matmul %238, %239, %cst_77 {dimension_numbers = #tpu.dot_dimension_numbers<[1], [0], [0], [1], [0, 0, 1, 1], [], []>} : vector<8x256xbf16>, vector<256x512xbf16>, vector<8x512xf32> -> vector<8x512xf32>
    %241 = arith.addf %237, %62 : vector<8x512xf32>
    %242 = arith.addf %241, %240 : vector<8x512xf32>
    %243 = vector.extract_strided_slice %242 {offsets = [0, 0], sizes = [8, 384], strides = [1, 1]} : vector<8x512xf32> to vector<8x384xf32>
    %244 = arith.negf %243 : vector<8x384xf32>
    %245 = math.exp %244 : vector<8x384xf32>
    %cst_78 = arith.constant 1.000000e+00 : f32
    %246 = vector.broadcast %cst_78 : f32 to vector<8x384xf32>
    %247 = arith.addf %246, %245 : vector<8x384xf32>
    %248 = arith.divf %246, %247 : vector<8x384xf32>
    %249 = vector.extract_strided_slice %248 {offsets = [0, 0], sizes = [8, 128], strides = [1, 1]} : vector<8x384xf32> to vector<8x128xf32>
    %250 = vector.extract_strided_slice %248 {offsets = [0, 128], sizes = [8, 128], strides = [1, 1]} : vector<8x384xf32> to vector<8x128xf32>
    %251 = vector.extract_strided_slice %248 {offsets = [0, 256], sizes = [8, 128], strides = [1, 1]} : vector<8x384xf32> to vector<8x128xf32>
    %252 = vector.extract_strided_slice %242 {offsets = [0, 384], sizes = [8, 128], strides = [1, 1]} : vector<8x512xf32> to vector<8x128xf32>
    %253 = math.tanh %252 : vector<8x128xf32>
    %254 = arith.mulf %250, %223 : vector<8x128xf32>
    %255 = arith.mulf %249, %253 : vector<8x128xf32>
    %256 = arith.addf %254, %255 : vector<8x128xf32>
    %257 = math.tanh %256 : vector<8x128xf32>
    %258 = arith.mulf %251, %257 : vector<8x128xf32>
    %c4_i32_79 = arith.constant 4 : i32
    %259 = vector.broadcast %c4_i32_79 : i32 to vector<8x1xi32>
    %260 = arith.cmpi sle, %59, %259 : vector<8x1xi32>
    %c4_i32_80 = arith.constant 4 : i32
    %261 = vector.broadcast %c4_i32_80 : i32 to vector<8x1xi32>
    %262 = arith.cmpi sgt, %61, %261 : vector<8x1xi32>
    %263 = arith.andi %260, %262 : vector<8x1xi1>
    %264 = vector.shape_cast %263 : vector<8x1xi1> to vector<8x1xi1>
    %265 = vector.broadcast %264 : vector<8x1xi1> to vector<8x128xi1>
    %266 = arith.select %265, %256, %223 : vector<8x128xi1>, vector<8x128xf32>
    %cst_81 = arith.constant 0.000000e+00 : f32
    %267 = vector.broadcast %cst_81 : f32 to vector<8x128xf32>
    %268 = arith.select %10, %258, %267 : vector<8x128xi1>, vector<8x128xf32>
    %cst_82 = arith.constant 0.000000e+00 : f32
    %269 = vector.broadcast %cst_82 : f32 to vector<8x128xf32>
    %270 = arith.select %10, %269, %258 : vector<8x128xi1>, vector<8x128xf32>
    %271 = tpu.concatenate %268, %270 in 1 : vector<8x128xf32>, vector<8x128xf32> -> vector<8x256xf32>
    %cst_83 = arith.constant 0.000000e+00 : f32
    %272 = vector.shape_cast %263 : vector<8x1xi1> to vector<8x1xi1>
    %273 = vector.broadcast %272 : vector<8x1xi1> to vector<8x256xi1>
    %274 = vector.broadcast %cst_83 : f32 to vector<8x256xf32>
    %275 = arith.select %273, %271, %274 : vector<8x256xi1>, vector<8x256xf32>
    %276 = vector.shape_cast %263 : vector<8x1xi1> to vector<8x1xi1>
    %277 = vector.broadcast %276 : vector<8x1xi1> to vector<8x256xi1>
    %278 = arith.select %277, %271, %235 : vector<8x256xi1>, vector<8x256xf32>
    %c32_84 = arith.constant 32 : index
    %c0_85 = arith.constant 0 : index
    %279 = vector.load %arg15[%c32_84, %c0_85] : memref<128x256xf32, #tpu.memory_space<vmem>>, vector<8x256xf32>
    tpu.vector_store %arg15[%c32_84, %c0_85], %275 {strides = array<i32>} : memref<128x256xf32, #tpu.memory_space<vmem>>, vector<8x256xf32>,
    %c40 = arith.constant 40 : index
    %c0_86 = arith.constant 0 : index
    %280 = vector.load %arg14[%c40, %c0_86] : memref<128x512xf32, #tpu.memory_space<vmem>>, vector<8x512xf32>
    %281 = arith.truncf %278 : vector<8x256xf32> to vector<8x256xbf16>
    %c0_87 = arith.constant 0 : index
    %c0_88 = arith.constant 0 : index
    %282 = vector.load %arg3[%c0_87, %c0_88] : memref<256x512xbf16, #tpu.memory_space<vmem>>, vector<256x512xbf16>
    %cst_89 = arith.constant dense<0.000000e+00> : vector<8x512xf32>
    %283 = tpu.matmul %281, %282, %cst_89 {dimension_numbers = #tpu.dot_dimension_numbers<[1], [0], [0], [1], [0, 0, 1, 1], [], []>} : vector<8x256xbf16>, vector<256x512xbf16>, vector<8x512xf32> -> vector<8x512xf32>
    %284 = arith.addf %280, %62 : vector<8x512xf32>
    %285 = arith.addf %284, %283 : vector<8x512xf32>
    %286 = vector.extract_strided_slice %285 {offsets = [0, 0], sizes = [8, 384], strides = [1, 1]} : vector<8x512xf32> to vector<8x384xf32>
    %287 = arith.negf %286 : vector<8x384xf32>
    %288 = math.exp %287 : vector<8x384xf32>
    %cst_90 = arith.constant 1.000000e+00 : f32
    %289 = vector.broadcast %cst_90 : f32 to vector<8x384xf32>
    %290 = arith.addf %289, %288 : vector<8x384xf32>
    %291 = arith.divf %289, %290 : vector<8x384xf32>
    %292 = vector.extract_strided_slice %291 {offsets = [0, 0], sizes = [8, 128], strides = [1, 1]} : vector<8x384xf32> to vector<8x128xf32>
    %293 = vector.extract_strided_slice %291 {offsets = [0, 128], sizes = [8, 128], strides = [1, 1]} : vector<8x384xf32> to vector<8x128xf32>
    %294 = vector.extract_strided_slice %291 {offsets = [0, 256], sizes = [8, 128], strides = [1, 1]} : vector<8x384xf32> to vector<8x128xf32>
    %295 = vector.extract_strided_slice %285 {offsets = [0, 384], sizes = [8, 128], strides = [1, 1]} : vector<8x512xf32> to vector<8x128xf32>
    %296 = math.tanh %295 : vector<8x128xf32>
    %297 = arith.mulf %293, %266 : vector<8x128xf32>
    %298 = arith.mulf %292, %296 : vector<8x128xf32>
    %299 = arith.addf %297, %298 : vector<8x128xf32>
    %300 = math.tanh %299 : vector<8x128xf32>
    %301 = arith.mulf %294, %300 : vector<8x128xf32>
    %c5_i32 = arith.constant 5 : i32
    %302 = vector.broadcast %c5_i32 : i32 to vector<8x1xi32>
    %303 = arith.cmpi sle, %59, %302 : vector<8x1xi32>
    %c5_i32_91 = arith.constant 5 : i32
    %304 = vector.broadcast %c5_i32_91 : i32 to vector<8x1xi32>
    %305 = arith.cmpi sgt, %61, %304 : vector<8x1xi32>
    %306 = arith.andi %303, %305 : vector<8x1xi1>
    %307 = vector.shape_cast %306 : vector<8x1xi1> to vector<8x1xi1>
    %308 = vector.broadcast %307 : vector<8x1xi1> to vector<8x128xi1>
    %309 = arith.select %308, %299, %266 : vector<8x128xi1>, vector<8x128xf32>
    %cst_92 = arith.constant 0.000000e+00 : f32
    %310 = vector.broadcast %cst_92 : f32 to vector<8x128xf32>
    %311 = arith.select %10, %301, %310 : vector<8x128xi1>, vector<8x128xf32>
    %cst_93 = arith.constant 0.000000e+00 : f32
    %312 = vector.broadcast %cst_93 : f32 to vector<8x128xf32>
    %313 = arith.select %10, %312, %301 : vector<8x128xi1>, vector<8x128xf32>
    %314 = tpu.concatenate %311, %313 in 1 : vector<8x128xf32>, vector<8x128xf32> -> vector<8x256xf32>
    %cst_94 = arith.constant 0.000000e+00 : f32
    %315 = vector.shape_cast %306 : vector<8x1xi1> to vector<8x1xi1>
    %316 = vector.broadcast %315 : vector<8x1xi1> to vector<8x256xi1>
    %317 = vector.broadcast %cst_94 : f32 to vector<8x256xf32>
    %318 = arith.select %316, %314, %317 : vector<8x256xi1>, vector<8x256xf32>
    %319 = vector.shape_cast %306 : vector<8x1xi1> to vector<8x1xi1>
    %320 = vector.broadcast %319 : vector<8x1xi1> to vector<8x256xi1>
    %321 = arith.select %320, %314, %278 : vector<8x256xi1>, vector<8x256xf32>
    %c40_95 = arith.constant 40 : index
    %c0_96 = arith.constant 0 : index
    %322 = vector.load %arg15[%c40_95, %c0_96] : memref<128x256xf32, #tpu.memory_space<vmem>>, vector<8x256xf32>
    tpu.vector_store %arg15[%c40_95, %c0_96], %318 {strides = array<i32>} : memref<128x256xf32, #tpu.memory_space<vmem>>, vector<8x256xf32>,
    %c48 = arith.constant 48 : index
    %c0_97 = arith.constant 0 : index
    %323 = vector.load %arg14[%c48, %c0_97] : memref<128x512xf32, #tpu.memory_space<vmem>>, vector<8x512xf32>
    %324 = arith.truncf %321 : vector<8x256xf32> to vector<8x256xbf16>
    %c0_98 = arith.constant 0 : index
    %c0_99 = arith.constant 0 : index
    %325 = vector.load %arg3[%c0_98, %c0_99] : memref<256x512xbf16, #tpu.memory_space<vmem>>, vector<256x512xbf16>
    %cst_100 = arith.constant dense<0.000000e+00> : vector<8x512xf32>
    %326 = tpu.matmul %324, %325, %cst_100 {dimension_numbers = #tpu.dot_dimension_numbers<[1], [0], [0], [1], [0, 0, 1, 1], [], []>} : vector<8x256xbf16>, vector<256x512xbf16>, vector<8x512xf32> -> vector<8x512xf32>
    %327 = arith.addf %323, %62 : vector<8x512xf32>
    %328 = arith.addf %327, %326 : vector<8x512xf32>
    %329 = vector.extract_strided_slice %328 {offsets = [0, 0], sizes = [8, 384], strides = [1, 1]} : vector<8x512xf32> to vector<8x384xf32>
    %330 = arith.negf %329 : vector<8x384xf32>
    %331 = math.exp %330 : vector<8x384xf32>
    %cst_101 = arith.constant 1.000000e+00 : f32
    %332 = vector.broadcast %cst_101 : f32 to vector<8x384xf32>
    %333 = arith.addf %332, %331 : vector<8x384xf32>
    %334 = arith.divf %332, %333 : vector<8x384xf32>
    %335 = vector.extract_strided_slice %334 {offsets = [0, 0], sizes = [8, 128], strides = [1, 1]} : vector<8x384xf32> to vector<8x128xf32>
    %336 = vector.extract_strided_slice %334 {offsets = [0, 128], sizes = [8, 128], strides = [1, 1]} : vector<8x384xf32> to vector<8x128xf32>
    %337 = vector.extract_strided_slice %334 {offsets = [0, 256], sizes = [8, 128], strides = [1, 1]} : vector<8x384xf32> to vector<8x128xf32>
    %338 = vector.extract_strided_slice %328 {offsets = [0, 384], sizes = [8, 128], strides = [1, 1]} : vector<8x512xf32> to vector<8x128xf32>
    %339 = math.tanh %338 : vector<8x128xf32>
    %340 = arith.mulf %336, %309 : vector<8x128xf32>
    %341 = arith.mulf %335, %339 : vector<8x128xf32>
    %342 = arith.addf %340, %341 : vector<8x128xf32>
    %343 = math.tanh %342 : vector<8x128xf32>
    %344 = arith.mulf %337, %343 : vector<8x128xf32>
    %c6_i32 = arith.constant 6 : i32
    %345 = vector.broadcast %c6_i32 : i32 to vector<8x1xi32>
    %346 = arith.cmpi sle, %59, %345 : vector<8x1xi32>
    %c6_i32_102 = arith.constant 6 : i32
    %347 = vector.broadcast %c6_i32_102 : i32 to vector<8x1xi32>
    %348 = arith.cmpi sgt, %61, %347 : vector<8x1xi32>
    %349 = arith.andi %346, %348 : vector<8x1xi1>
    %350 = vector.shape_cast %349 : vector<8x1xi1> to vector<8x1xi1>
    %351 = vector.broadcast %350 : vector<8x1xi1> to vector<8x128xi1>
    %352 = arith.select %351, %342, %309 : vector<8x128xi1>, vector<8x128xf32>
    %cst_103 = arith.constant 0.000000e+00 : f32
    %353 = vector.broadcast %cst_103 : f32 to vector<8x128xf32>
    %354 = arith.select %10, %344, %353 : vector<8x128xi1>, vector<8x128xf32>
    %cst_104 = arith.constant 0.000000e+00 : f32
    %355 = vector.broadcast %cst_104 : f32 to vector<8x128xf32>
    %356 = arith.select %10, %355, %344 : vector<8x128xi1>, vector<8x128xf32>
    %357 = tpu.concatenate %354, %356 in 1 : vector<8x128xf32>, vector<8x128xf32> -> vector<8x256xf32>
    %cst_105 = arith.constant 0.000000e+00 : f32
    %358 = vector.shape_cast %349 : vector<8x1xi1> to vector<8x1xi1>
    %359 = vector.broadcast %358 : vector<8x1xi1> to vector<8x256xi1>
    %360 = vector.broadcast %cst_105 : f32 to vector<8x256xf32>
    %361 = arith.select %359, %357, %360 : vector<8x256xi1>, vector<8x256xf32>
    %362 = vector.shape_cast %349 : vector<8x1xi1> to vector<8x1xi1>
    %363 = vector.broadcast %362 : vector<8x1xi1> to vector<8x256xi1>
    %364 = arith.select %363, %357, %321 : vector<8x256xi1>, vector<8x256xf32>
    %c48_106 = arith.constant 48 : index
    %c0_107 = arith.constant 0 : index
    %365 = vector.load %arg15[%c48_106, %c0_107] : memref<128x256xf32, #tpu.memory_space<vmem>>, vector<8x256xf32>
    tpu.vector_store %arg15[%c48_106, %c0_107], %361 {strides = array<i32>} : memref<128x256xf32, #tpu.memory_space<vmem>>, vector<8x256xf32>,
    %c56 = arith.constant 56 : index
    %c0_108 = arith.constant 0 : index
    %366 = vector.load %arg14[%c56, %c0_108] : memref<128x512xf32, #tpu.memory_space<vmem>>, vector<8x512xf32>
    %367 = arith.truncf %364 : vector<8x256xf32> to vector<8x256xbf16>
    %c0_109 = arith.constant 0 : index
    %c0_110 = arith.constant 0 : index
    %368 = vector.load %arg3[%c0_109, %c0_110] : memref<256x512xbf16, #tpu.memory_space<vmem>>, vector<256x512xbf16>
    %cst_111 = arith.constant dense<0.000000e+00> : vector<8x512xf32>
    %369 = tpu.matmul %367, %368, %cst_111 {dimension_numbers = #tpu.dot_dimension_numbers<[1], [0], [0], [1], [0, 0, 1, 1], [], []>} : vector<8x256xbf16>, vector<256x512xbf16>, vector<8x512xf32> -> vector<8x512xf32>
    %370 = arith.addf %366, %62 : vector<8x512xf32>
    %371 = arith.addf %370, %369 : vector<8x512xf32>
    %372 = vector.extract_strided_slice %371 {offsets = [0, 0], sizes = [8, 384], strides = [1, 1]} : vector<8x512xf32> to vector<8x384xf32>
    %373 = arith.negf %372 : vector<8x384xf32>
    %374 = math.exp %373 : vector<8x384xf32>
    %cst_112 = arith.constant 1.000000e+00 : f32
    %375 = vector.broadcast %cst_112 : f32 to vector<8x384xf32>
    %376 = arith.addf %375, %374 : vector<8x384xf32>
    %377 = arith.divf %375, %376 : vector<8x384xf32>
    %378 = vector.extract_strided_slice %377 {offsets = [0, 0], sizes = [8, 128], strides = [1, 1]} : vector<8x384xf32> to vector<8x128xf32>
    %379 = vector.extract_strided_slice %377 {offsets = [0, 128], sizes = [8, 128], strides = [1, 1]} : vector<8x384xf32> to vector<8x128xf32>
    %380 = vector.extract_strided_slice %377 {offsets = [0, 256], sizes = [8, 128], strides = [1, 1]} : vector<8x384xf32> to vector<8x128xf32>
    %381 = vector.extract_strided_slice %371 {offsets = [0, 384], sizes = [8, 128], strides = [1, 1]} : vector<8x512xf32> to vector<8x128xf32>
    %382 = math.tanh %381 : vector<8x128xf32>
    %383 = arith.mulf %379, %352 : vector<8x128xf32>
    %384 = arith.mulf %378, %382 : vector<8x128xf32>
    %385 = arith.addf %383, %384 : vector<8x128xf32>
    %386 = math.tanh %385 : vector<8x128xf32>
    %387 = arith.mulf %380, %386 : vector<8x128xf32>
    %c7_i32 = arith.constant 7 : i32
    %388 = vector.broadcast %c7_i32 : i32 to vector<8x1xi32>
    %389 = arith.cmpi sle, %59, %388 : vector<8x1xi32>
    %c7_i32_113 = arith.constant 7 : i32
    %390 = vector.broadcast %c7_i32_113 : i32 to vector<8x1xi32>
    %391 = arith.cmpi sgt, %61, %390 : vector<8x1xi32>
    %392 = arith.andi %389, %391 : vector<8x1xi1>
    %393 = vector.shape_cast %392 : vector<8x1xi1> to vector<8x1xi1>
    %394 = vector.broadcast %393 : vector<8x1xi1> to vector<8x128xi1>
    %395 = arith.select %394, %385, %352 : vector<8x128xi1>, vector<8x128xf32>
    %cst_114 = arith.constant 0.000000e+00 : f32
    %396 = vector.broadcast %cst_114 : f32 to vector<8x128xf32>
    %397 = arith.select %10, %387, %396 : vector<8x128xi1>, vector<8x128xf32>
    %cst_115 = arith.constant 0.000000e+00 : f32
    %398 = vector.broadcast %cst_115 : f32 to vector<8x128xf32>
    %399 = arith.select %10, %398, %387 : vector<8x128xi1>, vector<8x128xf32>
    %400 = tpu.concatenate %397, %399 in 1 : vector<8x128xf32>, vector<8x128xf32> -> vector<8x256xf32>
    %cst_116 = arith.constant 0.000000e+00 : f32
    %401 = vector.shape_cast %392 : vector<8x1xi1> to vector<8x1xi1>
    %402 = vector.broadcast %401 : vector<8x1xi1> to vector<8x256xi1>
    %403 = vector.broadcast %cst_116 : f32 to vector<8x256xf32>
    %404 = arith.select %402, %400, %403 : vector<8x256xi1>, vector<8x256xf32>
    %405 = vector.shape_cast %392 : vector<8x1xi1> to vector<8x1xi1>
    %406 = vector.broadcast %405 : vector<8x1xi1> to vector<8x256xi1>
    %407 = arith.select %406, %400, %364 : vector<8x256xi1>, vector<8x256xf32>
    %c56_117 = arith.constant 56 : index
    %c0_118 = arith.constant 0 : index
    %408 = vector.load %arg15[%c56_117, %c0_118] : memref<128x256xf32, #tpu.memory_space<vmem>>, vector<8x256xf32>
    tpu.vector_store %arg15[%c56_117, %c0_118], %404 {strides = array<i32>} : memref<128x256xf32, #tpu.memory_space<vmem>>, vector<8x256xf32>,
    %c64 = arith.constant 64 : index
    %c0_119 = arith.constant 0 : index
    %409 = vector.load %arg14[%c64, %c0_119] : memref<128x512xf32, #tpu.memory_space<vmem>>, vector<8x512xf32>
    %410 = arith.truncf %407 : vector<8x256xf32> to vector<8x256xbf16>
    %c0_120 = arith.constant 0 : index
    %c0_121 = arith.constant 0 : index
    %411 = vector.load %arg3[%c0_120, %c0_121] : memref<256x512xbf16, #tpu.memory_space<vmem>>, vector<256x512xbf16>
    %cst_122 = arith.constant dense<0.000000e+00> : vector<8x512xf32>
    %412 = tpu.matmul %410, %411, %cst_122 {dimension_numbers = #tpu.dot_dimension_numbers<[1], [0], [0], [1], [0, 0, 1, 1], [], []>} : vector<8x256xbf16>, vector<256x512xbf16>, vector<8x512xf32> -> vector<8x512xf32>
    %413 = arith.addf %409, %62 : vector<8x512xf32>
    %414 = arith.addf %413, %412 : vector<8x512xf32>
    %415 = vector.extract_strided_slice %414 {offsets = [0, 0], sizes = [8, 384], strides = [1, 1]} : vector<8x512xf32> to vector<8x384xf32>
    %416 = arith.negf %415 : vector<8x384xf32>
    %417 = math.exp %416 : vector<8x384xf32>
    %cst_123 = arith.constant 1.000000e+00 : f32
    %418 = vector.broadcast %cst_123 : f32 to vector<8x384xf32>
    %419 = arith.addf %418, %417 : vector<8x384xf32>
    %420 = arith.divf %418, %419 : vector<8x384xf32>
    %421 = vector.extract_strided_slice %420 {offsets = [0, 0], sizes = [8, 128], strides = [1, 1]} : vector<8x384xf32> to vector<8x128xf32>
    %422 = vector.extract_strided_slice %420 {offsets = [0, 128], sizes = [8, 128], strides = [1, 1]} : vector<8x384xf32> to vector<8x128xf32>
    %423 = vector.extract_strided_slice %420 {offsets = [0, 256], sizes = [8, 128], strides = [1, 1]} : vector<8x384xf32> to vector<8x128xf32>
    %424 = vector.extract_strided_slice %414 {offsets = [0, 384], sizes = [8, 128], strides = [1, 1]} : vector<8x512xf32> to vector<8x128xf32>
    %425 = math.tanh %424 : vector<8x128xf32>
    %426 = arith.mulf %422, %395 : vector<8x128xf32>
    %427 = arith.mulf %421, %425 : vector<8x128xf32>
    %428 = arith.addf %426, %427 : vector<8x128xf32>
    %429 = math.tanh %428 : vector<8x128xf32>
    %430 = arith.mulf %423, %429 : vector<8x128xf32>
    %c8_i32 = arith.constant 8 : i32
    %431 = vector.broadcast %c8_i32 : i32 to vector<8x1xi32>
    %432 = arith.cmpi sle, %59, %431 : vector<8x1xi32>
    %c8_i32_124 = arith.constant 8 : i32
    %433 = vector.broadcast %c8_i32_124 : i32 to vector<8x1xi32>
    %434 = arith.cmpi sgt, %61, %433 : vector<8x1xi32>
    %435 = arith.andi %432, %434 : vector<8x1xi1>
    %436 = vector.shape_cast %435 : vector<8x1xi1> to vector<8x1xi1>
    %437 = vector.broadcast %436 : vector<8x1xi1> to vector<8x128xi1>
    %438 = arith.select %437, %428, %395 : vector<8x128xi1>, vector<8x128xf32>
    %cst_125 = arith.constant 0.000000e+00 : f32
    %439 = vector.broadcast %cst_125 : f32 to vector<8x128xf32>
    %440 = arith.select %10, %430, %439 : vector<8x128xi1>, vector<8x128xf32>
    %cst_126 = arith.constant 0.000000e+00 : f32
    %441 = vector.broadcast %cst_126 : f32 to vector<8x128xf32>
    %442 = arith.select %10, %441, %430 : vector<8x128xi1>, vector<8x128xf32>
    %443 = tpu.concatenate %440, %442 in 1 : vector<8x128xf32>, vector<8x128xf32> -> vector<8x256xf32>
    %cst_127 = arith.constant 0.000000e+00 : f32
    %444 = vector.shape_cast %435 : vector<8x1xi1> to vector<8x1xi1>
    %445 = vector.broadcast %444 : vector<8x1xi1> to vector<8x256xi1>
    %446 = vector.broadcast %cst_127 : f32 to vector<8x256xf32>
    %447 = arith.select %445, %443, %446 : vector<8x256xi1>, vector<8x256xf32>
    %448 = vector.shape_cast %435 : vector<8x1xi1> to vector<8x1xi1>
    %449 = vector.broadcast %448 : vector<8x1xi1> to vector<8x256xi1>
    %450 = arith.select %449, %443, %407 : vector<8x256xi1>, vector<8x256xf32>
    %c64_128 = arith.constant 64 : index
    %c0_129 = arith.constant 0 : index
    %451 = vector.load %arg15[%c64_128, %c0_129] : memref<128x256xf32, #tpu.memory_space<vmem>>, vector<8x256xf32>
    tpu.vector_store %arg15[%c64_128, %c0_129], %447 {strides = array<i32>} : memref<128x256xf32, #tpu.memory_space<vmem>>, vector<8x256xf32>,
    %c72 = arith.constant 72 : index
    %c0_130 = arith.constant 0 : index
    %452 = vector.load %arg14[%c72, %c0_130] : memref<128x512xf32, #tpu.memory_space<vmem>>, vector<8x512xf32>
    %453 = arith.truncf %450 : vector<8x256xf32> to vector<8x256xbf16>
    %c0_131 = arith.constant 0 : index
    %c0_132 = arith.constant 0 : index
    %454 = vector.load %arg3[%c0_131, %c0_132] : memref<256x512xbf16, #tpu.memory_space<vmem>>, vector<256x512xbf16>
    %cst_133 = arith.constant dense<0.000000e+00> : vector<8x512xf32>
    %455 = tpu.matmul %453, %454, %cst_133 {dimension_numbers = #tpu.dot_dimension_numbers<[1], [0], [0], [1], [0, 0, 1, 1], [], []>} : vector<8x256xbf16>, vector<256x512xbf16>, vector<8x512xf32> -> vector<8x512xf32>
    %456 = arith.addf %452, %62 : vector<8x512xf32>
    %457 = arith.addf %456, %455 : vector<8x512xf32>
    %458 = vector.extract_strided_slice %457 {offsets = [0, 0], sizes = [8, 384], strides = [1, 1]} : vector<8x512xf32> to vector<8x384xf32>
    %459 = arith.negf %458 : vector<8x384xf32>
    %460 = math.exp %459 : vector<8x384xf32>
    %cst_134 = arith.constant 1.000000e+00 : f32
    %461 = vector.broadcast %cst_134 : f32 to vector<8x384xf32>
    %462 = arith.addf %461, %460 : vector<8x384xf32>
    %463 = arith.divf %461, %462 : vector<8x384xf32>
    %464 = vector.extract_strided_slice %463 {offsets = [0, 0], sizes = [8, 128], strides = [1, 1]} : vector<8x384xf32> to vector<8x128xf32>
    %465 = vector.extract_strided_slice %463 {offsets = [0, 128], sizes = [8, 128], strides = [1, 1]} : vector<8x384xf32> to vector<8x128xf32>
    %466 = vector.extract_strided_slice %463 {offsets = [0, 256], sizes = [8, 128], strides = [1, 1]} : vector<8x384xf32> to vector<8x128xf32>
    %467 = vector.extract_strided_slice %457 {offsets = [0, 384], sizes = [8, 128], strides = [1, 1]} : vector<8x512xf32> to vector<8x128xf32>
    %468 = math.tanh %467 : vector<8x128xf32>
    %469 = arith.mulf %465, %438 : vector<8x128xf32>
    %470 = arith.mulf %464, %468 : vector<8x128xf32>
    %471 = arith.addf %469, %470 : vector<8x128xf32>
    %472 = math.tanh %471 : vector<8x128xf32>
    %473 = arith.mulf %466, %472 : vector<8x128xf32>
    %c9_i32 = arith.constant 9 : i32
    %474 = vector.broadcast %c9_i32 : i32 to vector<8x1xi32>
    %475 = arith.cmpi sle, %59, %474 : vector<8x1xi32>
    %c9_i32_135 = arith.constant 9 : i32
    %476 = vector.broadcast %c9_i32_135 : i32 to vector<8x1xi32>
    %477 = arith.cmpi sgt, %61, %476 : vector<8x1xi32>
    %478 = arith.andi %475, %477 : vector<8x1xi1>
    %479 = vector.shape_cast %478 : vector<8x1xi1> to vector<8x1xi1>
    %480 = vector.broadcast %479 : vector<8x1xi1> to vector<8x128xi1>
    %481 = arith.select %480, %471, %438 : vector<8x128xi1>, vector<8x128xf32>
    %cst_136 = arith.constant 0.000000e+00 : f32
    %482 = vector.broadcast %cst_136 : f32 to vector<8x128xf32>
    %483 = arith.select %10, %473, %482 : vector<8x128xi1>, vector<8x128xf32>
    %cst_137 = arith.constant 0.000000e+00 : f32
    %484 = vector.broadcast %cst_137 : f32 to vector<8x128xf32>
    %485 = arith.select %10, %484, %473 : vector<8x128xi1>, vector<8x128xf32>
    %486 = tpu.concatenate %483, %485 in 1 : vector<8x128xf32>, vector<8x128xf32> -> vector<8x256xf32>
    %cst_138 = arith.constant 0.000000e+00 : f32
    %487 = vector.shape_cast %478 : vector<8x1xi1> to vector<8x1xi1>
    %488 = vector.broadcast %487 : vector<8x1xi1> to vector<8x256xi1>
    %489 = vector.broadcast %cst_138 : f32 to vector<8x256xf32>
    %490 = arith.select %488, %486, %489 : vector<8x256xi1>, vector<8x256xf32>
    %491 = vector.shape_cast %478 : vector<8x1xi1> to vector<8x1xi1>
    %492 = vector.broadcast %491 : vector<8x1xi1> to vector<8x256xi1>
    %493 = arith.select %492, %486, %450 : vector<8x256xi1>, vector<8x256xf32>
    %c72_139 = arith.constant 72 : index
    %c0_140 = arith.constant 0 : index
    %494 = vector.load %arg15[%c72_139, %c0_140] : memref<128x256xf32, #tpu.memory_space<vmem>>, vector<8x256xf32>
    tpu.vector_store %arg15[%c72_139, %c0_140], %490 {strides = array<i32>} : memref<128x256xf32, #tpu.memory_space<vmem>>, vector<8x256xf32>,
    %c80 = arith.constant 80 : index
    %c0_141 = arith.constant 0 : index
    %495 = vector.load %arg14[%c80, %c0_141] : memref<128x512xf32, #tpu.memory_space<vmem>>, vector<8x512xf32>
    %496 = arith.truncf %493 : vector<8x256xf32> to vector<8x256xbf16>
    %c0_142 = arith.constant 0 : index
    %c0_143 = arith.constant 0 : index
    %497 = vector.load %arg3[%c0_142, %c0_143] : memref<256x512xbf16, #tpu.memory_space<vmem>>, vector<256x512xbf16>
    %cst_144 = arith.constant dense<0.000000e+00> : vector<8x512xf32>
    %498 = tpu.matmul %496, %497, %cst_144 {dimension_numbers = #tpu.dot_dimension_numbers<[1], [0], [0], [1], [0, 0, 1, 1], [], []>} : vector<8x256xbf16>, vector<256x512xbf16>, vector<8x512xf32> -> vector<8x512xf32>
    %499 = arith.addf %495, %62 : vector<8x512xf32>
    %500 = arith.addf %499, %498 : vector<8x512xf32>
    %501 = vector.extract_strided_slice %500 {offsets = [0, 0], sizes = [8, 384], strides = [1, 1]} : vector<8x512xf32> to vector<8x384xf32>
    %502 = arith.negf %501 : vector<8x384xf32>
    %503 = math.exp %502 : vector<8x384xf32>
    %cst_145 = arith.constant 1.000000e+00 : f32
    %504 = vector.broadcast %cst_145 : f32 to vector<8x384xf32>
    %505 = arith.addf %504, %503 : vector<8x384xf32>
    %506 = arith.divf %504, %505 : vector<8x384xf32>
    %507 = vector.extract_strided_slice %506 {offsets = [0, 0], sizes = [8, 128], strides = [1, 1]} : vector<8x384xf32> to vector<8x128xf32>
    %508 = vector.extract_strided_slice %506 {offsets = [0, 128], sizes = [8, 128], strides = [1, 1]} : vector<8x384xf32> to vector<8x128xf32>
    %509 = vector.extract_strided_slice %506 {offsets = [0, 256], sizes = [8, 128], strides = [1, 1]} : vector<8x384xf32> to vector<8x128xf32>
    %510 = vector.extract_strided_slice %500 {offsets = [0, 384], sizes = [8, 128], strides = [1, 1]} : vector<8x512xf32> to vector<8x128xf32>
    %511 = math.tanh %510 : vector<8x128xf32>
    %512 = arith.mulf %508, %481 : vector<8x128xf32>
    %513 = arith.mulf %507, %511 : vector<8x128xf32>
    %514 = arith.addf %512, %513 : vector<8x128xf32>
    %515 = math.tanh %514 : vector<8x128xf32>
    %516 = arith.mulf %509, %515 : vector<8x128xf32>
    %c10_i32 = arith.constant 10 : i32
    %517 = vector.broadcast %c10_i32 : i32 to vector<8x1xi32>
    %518 = arith.cmpi sle, %59, %517 : vector<8x1xi32>
    %c10_i32_146 = arith.constant 10 : i32
    %519 = vector.broadcast %c10_i32_146 : i32 to vector<8x1xi32>
    %520 = arith.cmpi sgt, %61, %519 : vector<8x1xi32>
    %521 = arith.andi %518, %520 : vector<8x1xi1>
    %522 = vector.shape_cast %521 : vector<8x1xi1> to vector<8x1xi1>
    %523 = vector.broadcast %522 : vector<8x1xi1> to vector<8x128xi1>
    %524 = arith.select %523, %514, %481 : vector<8x128xi1>, vector<8x128xf32>
    %cst_147 = arith.constant 0.000000e+00 : f32
    %525 = vector.broadcast %cst_147 : f32 to vector<8x128xf32>
    %526 = arith.select %10, %516, %525 : vector<8x128xi1>, vector<8x128xf32>
    %cst_148 = arith.constant 0.000000e+00 : f32
    %527 = vector.broadcast %cst_148 : f32 to vector<8x128xf32>
    %528 = arith.select %10, %527, %516 : vector<8x128xi1>, vector<8x128xf32>
    %529 = tpu.concatenate %526, %528 in 1 : vector<8x128xf32>, vector<8x128xf32> -> vector<8x256xf32>
    %cst_149 = arith.constant 0.000000e+00 : f32
    %530 = vector.shape_cast %521 : vector<8x1xi1> to vector<8x1xi1>
    %531 = vector.broadcast %530 : vector<8x1xi1> to vector<8x256xi1>
    %532 = vector.broadcast %cst_149 : f32 to vector<8x256xf32>
    %533 = arith.select %531, %529, %532 : vector<8x256xi1>, vector<8x256xf32>
    %534 = vector.shape_cast %521 : vector<8x1xi1> to vector<8x1xi1>
    %535 = vector.broadcast %534 : vector<8x1xi1> to vector<8x256xi1>
    %536 = arith.select %535, %529, %493 : vector<8x256xi1>, vector<8x256xf32>
    %c80_150 = arith.constant 80 : index
    %c0_151 = arith.constant 0 : index
    %537 = vector.load %arg15[%c80_150, %c0_151] : memref<128x256xf32, #tpu.memory_space<vmem>>, vector<8x256xf32>
    tpu.vector_store %arg15[%c80_150, %c0_151], %533 {strides = array<i32>} : memref<128x256xf32, #tpu.memory_space<vmem>>, vector<8x256xf32>,
    %c88 = arith.constant 88 : index
    %c0_152 = arith.constant 0 : index
    %538 = vector.load %arg14[%c88, %c0_152] : memref<128x512xf32, #tpu.memory_space<vmem>>, vector<8x512xf32>
    %539 = arith.truncf %536 : vector<8x256xf32> to vector<8x256xbf16>
    %c0_153 = arith.constant 0 : index
    %c0_154 = arith.constant 0 : index
    %540 = vector.load %arg3[%c0_153, %c0_154] : memref<256x512xbf16, #tpu.memory_space<vmem>>, vector<256x512xbf16>
    %cst_155 = arith.constant dense<0.000000e+00> : vector<8x512xf32>
    %541 = tpu.matmul %539, %540, %cst_155 {dimension_numbers = #tpu.dot_dimension_numbers<[1], [0], [0], [1], [0, 0, 1, 1], [], []>} : vector<8x256xbf16>, vector<256x512xbf16>, vector<8x512xf32> -> vector<8x512xf32>
    %542 = arith.addf %538, %62 : vector<8x512xf32>
    %543 = arith.addf %542, %541 : vector<8x512xf32>
    %544 = vector.extract_strided_slice %543 {offsets = [0, 0], sizes = [8, 384], strides = [1, 1]} : vector<8x512xf32> to vector<8x384xf32>
    %545 = arith.negf %544 : vector<8x384xf32>
    %546 = math.exp %545 : vector<8x384xf32>
    %cst_156 = arith.constant 1.000000e+00 : f32
    %547 = vector.broadcast %cst_156 : f32 to vector<8x384xf32>
    %548 = arith.addf %547, %546 : vector<8x384xf32>
    %549 = arith.divf %547, %548 : vector<8x384xf32>
    %550 = vector.extract_strided_slice %549 {offsets = [0, 0], sizes = [8, 128], strides = [1, 1]} : vector<8x384xf32> to vector<8x128xf32>
    %551 = vector.extract_strided_slice %549 {offsets = [0, 128], sizes = [8, 128], strides = [1, 1]} : vector<8x384xf32> to vector<8x128xf32>
    %552 = vector.extract_strided_slice %549 {offsets = [0, 256], sizes = [8, 128], strides = [1, 1]} : vector<8x384xf32> to vector<8x128xf32>
    %553 = vector.extract_strided_slice %543 {offsets = [0, 384], sizes = [8, 128], strides = [1, 1]} : vector<8x512xf32> to vector<8x128xf32>
    %554 = math.tanh %553 : vector<8x128xf32>
    %555 = arith.mulf %551, %524 : vector<8x128xf32>
    %556 = arith.mulf %550, %554 : vector<8x128xf32>
    %557 = arith.addf %555, %556 : vector<8x128xf32>
    %558 = math.tanh %557 : vector<8x128xf32>
    %559 = arith.mulf %552, %558 : vector<8x128xf32>
    %c11_i32 = arith.constant 11 : i32
    %560 = vector.broadcast %c11_i32 : i32 to vector<8x1xi32>
    %561 = arith.cmpi sle, %59, %560 : vector<8x1xi32>
    %c11_i32_157 = arith.constant 11 : i32
    %562 = vector.broadcast %c11_i32_157 : i32 to vector<8x1xi32>
    %563 = arith.cmpi sgt, %61, %562 : vector<8x1xi32>
    %564 = arith.andi %561, %563 : vector<8x1xi1>
    %565 = vector.shape_cast %564 : vector<8x1xi1> to vector<8x1xi1>
    %566 = vector.broadcast %565 : vector<8x1xi1> to vector<8x128xi1>
    %567 = arith.select %566, %557, %524 : vector<8x128xi1>, vector<8x128xf32>
    %cst_158 = arith.constant 0.000000e+00 : f32
    %568 = vector.broadcast %cst_158 : f32 to vector<8x128xf32>
    %569 = arith.select %10, %559, %568 : vector<8x128xi1>, vector<8x128xf32>
    %cst_159 = arith.constant 0.000000e+00 : f32
    %570 = vector.broadcast %cst_159 : f32 to vector<8x128xf32>
    %571 = arith.select %10, %570, %559 : vector<8x128xi1>, vector<8x128xf32>
    %572 = tpu.concatenate %569, %571 in 1 : vector<8x128xf32>, vector<8x128xf32> -> vector<8x256xf32>
    %cst_160 = arith.constant 0.000000e+00 : f32
    %573 = vector.shape_cast %564 : vector<8x1xi1> to vector<8x1xi1>
    %574 = vector.broadcast %573 : vector<8x1xi1> to vector<8x256xi1>
    %575 = vector.broadcast %cst_160 : f32 to vector<8x256xf32>
    %576 = arith.select %574, %572, %575 : vector<8x256xi1>, vector<8x256xf32>
    %577 = vector.shape_cast %564 : vector<8x1xi1> to vector<8x1xi1>
    %578 = vector.broadcast %577 : vector<8x1xi1> to vector<8x256xi1>
    %579 = arith.select %578, %572, %536 : vector<8x256xi1>, vector<8x256xf32>
    %c88_161 = arith.constant 88 : index
    %c0_162 = arith.constant 0 : index
    %580 = vector.load %arg15[%c88_161, %c0_162] : memref<128x256xf32, #tpu.memory_space<vmem>>, vector<8x256xf32>
    tpu.vector_store %arg15[%c88_161, %c0_162], %576 {strides = array<i32>} : memref<128x256xf32, #tpu.memory_space<vmem>>, vector<8x256xf32>,
    %c96 = arith.constant 96 : index
    %c0_163 = arith.constant 0 : index
    %581 = vector.load %arg14[%c96, %c0_163] : memref<128x512xf32, #tpu.memory_space<vmem>>, vector<8x512xf32>
    %582 = arith.truncf %579 : vector<8x256xf32> to vector<8x256xbf16>
    %c0_164 = arith.constant 0 : index
    %c0_165 = arith.constant 0 : index
    %583 = vector.load %arg3[%c0_164, %c0_165] : memref<256x512xbf16, #tpu.memory_space<vmem>>, vector<256x512xbf16>
    %cst_166 = arith.constant dense<0.000000e+00> : vector<8x512xf32>
    %584 = tpu.matmul %582, %583, %cst_166 {dimension_numbers = #tpu.dot_dimension_numbers<[1], [0], [0], [1], [0, 0, 1, 1], [], []>} : vector<8x256xbf16>, vector<256x512xbf16>, vector<8x512xf32> -> vector<8x512xf32>
    %585 = arith.addf %581, %62 : vector<8x512xf32>
    %586 = arith.addf %585, %584 : vector<8x512xf32>
    %587 = vector.extract_strided_slice %586 {offsets = [0, 0], sizes = [8, 384], strides = [1, 1]} : vector<8x512xf32> to vector<8x384xf32>
    %588 = arith.negf %587 : vector<8x384xf32>
    %589 = math.exp %588 : vector<8x384xf32>
    %cst_167 = arith.constant 1.000000e+00 : f32
    %590 = vector.broadcast %cst_167 : f32 to vector<8x384xf32>
    %591 = arith.addf %590, %589 : vector<8x384xf32>
    %592 = arith.divf %590, %591 : vector<8x384xf32>
    %593 = vector.extract_strided_slice %592 {offsets = [0, 0], sizes = [8, 128], strides = [1, 1]} : vector<8x384xf32> to vector<8x128xf32>
    %594 = vector.extract_strided_slice %592 {offsets = [0, 128], sizes = [8, 128], strides = [1, 1]} : vector<8x384xf32> to vector<8x128xf32>
    %595 = vector.extract_strided_slice %592 {offsets = [0, 256], sizes = [8, 128], strides = [1, 1]} : vector<8x384xf32> to vector<8x128xf32>
    %596 = vector.extract_strided_slice %586 {offsets = [0, 384], sizes = [8, 128], strides = [1, 1]} : vector<8x512xf32> to vector<8x128xf32>
    %597 = math.tanh %596 : vector<8x128xf32>
    %598 = arith.mulf %594, %567 : vector<8x128xf32>
    %599 = arith.mulf %593, %597 : vector<8x128xf32>
    %600 = arith.addf %598, %599 : vector<8x128xf32>
    %601 = math.tanh %600 : vector<8x128xf32>
    %602 = arith.mulf %595, %601 : vector<8x128xf32>
    %c12_i32 = arith.constant 12 : i32
    %603 = vector.broadcast %c12_i32 : i32 to vector<8x1xi32>
    %604 = arith.cmpi sle, %59, %603 : vector<8x1xi32>
    %c12_i32_168 = arith.constant 12 : i32
    %605 = vector.broadcast %c12_i32_168 : i32 to vector<8x1xi32>
    %606 = arith.cmpi sgt, %61, %605 : vector<8x1xi32>
    %607 = arith.andi %604, %606 : vector<8x1xi1>
    %608 = vector.shape_cast %607 : vector<8x1xi1> to vector<8x1xi1>
    %609 = vector.broadcast %608 : vector<8x1xi1> to vector<8x128xi1>
    %610 = arith.select %609, %600, %567 : vector<8x128xi1>, vector<8x128xf32>
    %cst_169 = arith.constant 0.000000e+00 : f32
    %611 = vector.broadcast %cst_169 : f32 to vector<8x128xf32>
    %612 = arith.select %10, %602, %611 : vector<8x128xi1>, vector<8x128xf32>
    %cst_170 = arith.constant 0.000000e+00 : f32
    %613 = vector.broadcast %cst_170 : f32 to vector<8x128xf32>
    %614 = arith.select %10, %613, %602 : vector<8x128xi1>, vector<8x128xf32>
    %615 = tpu.concatenate %612, %614 in 1 : vector<8x128xf32>, vector<8x128xf32> -> vector<8x256xf32>
    %cst_171 = arith.constant 0.000000e+00 : f32
    %616 = vector.shape_cast %607 : vector<8x1xi1> to vector<8x1xi1>
    %617 = vector.broadcast %616 : vector<8x1xi1> to vector<8x256xi1>
    %618 = vector.broadcast %cst_171 : f32 to vector<8x256xf32>
    %619 = arith.select %617, %615, %618 : vector<8x256xi1>, vector<8x256xf32>
    %620 = vector.shape_cast %607 : vector<8x1xi1> to vector<8x1xi1>
    %621 = vector.broadcast %620 : vector<8x1xi1> to vector<8x256xi1>
    %622 = arith.select %621, %615, %579 : vector<8x256xi1>, vector<8x256xf32>
    %c96_172 = arith.constant 96 : index
    %c0_173 = arith.constant 0 : index
    %623 = vector.load %arg15[%c96_172, %c0_173] : memref<128x256xf32, #tpu.memory_space<vmem>>, vector<8x256xf32>
    tpu.vector_store %arg15[%c96_172, %c0_173], %619 {strides = array<i32>} : memref<128x256xf32, #tpu.memory_space<vmem>>, vector<8x256xf32>,
    %c104 = arith.constant 104 : index
    %c0_174 = arith.constant 0 : index
    %624 = vector.load %arg14[%c104, %c0_174] : memref<128x512xf32, #tpu.memory_space<vmem>>, vector<8x512xf32>
    %625 = arith.truncf %622 : vector<8x256xf32> to vector<8x256xbf16>
    %c0_175 = arith.constant 0 : index
    %c0_176 = arith.constant 0 : index
    %626 = vector.load %arg3[%c0_175, %c0_176] : memref<256x512xbf16, #tpu.memory_space<vmem>>, vector<256x512xbf16>
    %cst_177 = arith.constant dense<0.000000e+00> : vector<8x512xf32>
    %627 = tpu.matmul %625, %626, %cst_177 {dimension_numbers = #tpu.dot_dimension_numbers<[1], [0], [0], [1], [0, 0, 1, 1], [], []>} : vector<8x256xbf16>, vector<256x512xbf16>, vector<8x512xf32> -> vector<8x512xf32>
    %628 = arith.addf %624, %62 : vector<8x512xf32>
    %629 = arith.addf %628, %627 : vector<8x512xf32>
    %630 = vector.extract_strided_slice %629 {offsets = [0, 0], sizes = [8, 384], strides = [1, 1]} : vector<8x512xf32> to vector<8x384xf32>
    %631 = arith.negf %630 : vector<8x384xf32>
    %632 = math.exp %631 : vector<8x384xf32>
    %cst_178 = arith.constant 1.000000e+00 : f32
    %633 = vector.broadcast %cst_178 : f32 to vector<8x384xf32>
    %634 = arith.addf %633, %632 : vector<8x384xf32>
    %635 = arith.divf %633, %634 : vector<8x384xf32>
    %636 = vector.extract_strided_slice %635 {offsets = [0, 0], sizes = [8, 128], strides = [1, 1]} : vector<8x384xf32> to vector<8x128xf32>
    %637 = vector.extract_strided_slice %635 {offsets = [0, 128], sizes = [8, 128], strides = [1, 1]} : vector<8x384xf32> to vector<8x128xf32>
    %638 = vector.extract_strided_slice %635 {offsets = [0, 256], sizes = [8, 128], strides = [1, 1]} : vector<8x384xf32> to vector<8x128xf32>
    %639 = vector.extract_strided_slice %629 {offsets = [0, 384], sizes = [8, 128], strides = [1, 1]} : vector<8x512xf32> to vector<8x128xf32>
    %640 = math.tanh %639 : vector<8x128xf32>
    %641 = arith.mulf %637, %610 : vector<8x128xf32>
    %642 = arith.mulf %636, %640 : vector<8x128xf32>
    %643 = arith.addf %641, %642 : vector<8x128xf32>
    %644 = math.tanh %643 : vector<8x128xf32>
    %645 = arith.mulf %638, %644 : vector<8x128xf32>
    %c13_i32 = arith.constant 13 : i32
    %646 = vector.broadcast %c13_i32 : i32 to vector<8x1xi32>
    %647 = arith.cmpi sle, %59, %646 : vector<8x1xi32>
    %c13_i32_179 = arith.constant 13 : i32
    %648 = vector.broadcast %c13_i32_179 : i32 to vector<8x1xi32>
    %649 = arith.cmpi sgt, %61, %648 : vector<8x1xi32>
    %650 = arith.andi %647, %649 : vector<8x1xi1>
    %651 = vector.shape_cast %650 : vector<8x1xi1> to vector<8x1xi1>
    %652 = vector.broadcast %651 : vector<8x1xi1> to vector<8x128xi1>
    %653 = arith.select %652, %643, %610 : vector<8x128xi1>, vector<8x128xf32>
    %cst_180 = arith.constant 0.000000e+00 : f32
    %654 = vector.broadcast %cst_180 : f32 to vector<8x128xf32>
    %655 = arith.select %10, %645, %654 : vector<8x128xi1>, vector<8x128xf32>
    %cst_181 = arith.constant 0.000000e+00 : f32
    %656 = vector.broadcast %cst_181 : f32 to vector<8x128xf32>
    %657 = arith.select %10, %656, %645 : vector<8x128xi1>, vector<8x128xf32>
    %658 = tpu.concatenate %655, %657 in 1 : vector<8x128xf32>, vector<8x128xf32> -> vector<8x256xf32>
    %cst_182 = arith.constant 0.000000e+00 : f32
    %659 = vector.shape_cast %650 : vector<8x1xi1> to vector<8x1xi1>
    %660 = vector.broadcast %659 : vector<8x1xi1> to vector<8x256xi1>
    %661 = vector.broadcast %cst_182 : f32 to vector<8x256xf32>
    %662 = arith.select %660, %658, %661 : vector<8x256xi1>, vector<8x256xf32>
    %663 = vector.shape_cast %650 : vector<8x1xi1> to vector<8x1xi1>
    %664 = vector.broadcast %663 : vector<8x1xi1> to vector<8x256xi1>
    %665 = arith.select %664, %658, %622 : vector<8x256xi1>, vector<8x256xf32>
    %c104_183 = arith.constant 104 : index
    %c0_184 = arith.constant 0 : index
    %666 = vector.load %arg15[%c104_183, %c0_184] : memref<128x256xf32, #tpu.memory_space<vmem>>, vector<8x256xf32>
    tpu.vector_store %arg15[%c104_183, %c0_184], %662 {strides = array<i32>} : memref<128x256xf32, #tpu.memory_space<vmem>>, vector<8x256xf32>,
    %c112 = arith.constant 112 : index
    %c0_185 = arith.constant 0 : index
    %667 = vector.load %arg14[%c112, %c0_185] : memref<128x512xf32, #tpu.memory_space<vmem>>, vector<8x512xf32>
    %668 = arith.truncf %665 : vector<8x256xf32> to vector<8x256xbf16>
    %c0_186 = arith.constant 0 : index
    %c0_187 = arith.constant 0 : index
    %669 = vector.load %arg3[%c0_186, %c0_187] : memref<256x512xbf16, #tpu.memory_space<vmem>>, vector<256x512xbf16>
    %cst_188 = arith.constant dense<0.000000e+00> : vector<8x512xf32>
    %670 = tpu.matmul %668, %669, %cst_188 {dimension_numbers = #tpu.dot_dimension_numbers<[1], [0], [0], [1], [0, 0, 1, 1], [], []>} : vector<8x256xbf16>, vector<256x512xbf16>, vector<8x512xf32> -> vector<8x512xf32>
    %671 = arith.addf %667, %62 : vector<8x512xf32>
    %672 = arith.addf %671, %670 : vector<8x512xf32>
    %673 = vector.extract_strided_slice %672 {offsets = [0, 0], sizes = [8, 384], strides = [1, 1]} : vector<8x512xf32> to vector<8x384xf32>
    %674 = arith.negf %673 : vector<8x384xf32>
    %675 = math.exp %674 : vector<8x384xf32>
    %cst_189 = arith.constant 1.000000e+00 : f32
    %676 = vector.broadcast %cst_189 : f32 to vector<8x384xf32>
    %677 = arith.addf %676, %675 : vector<8x384xf32>
    %678 = arith.divf %676, %677 : vector<8x384xf32>
    %679 = vector.extract_strided_slice %678 {offsets = [0, 0], sizes = [8, 128], strides = [1, 1]} : vector<8x384xf32> to vector<8x128xf32>
    %680 = vector.extract_strided_slice %678 {offsets = [0, 128], sizes = [8, 128], strides = [1, 1]} : vector<8x384xf32> to vector<8x128xf32>
    %681 = vector.extract_strided_slice %678 {offsets = [0, 256], sizes = [8, 128], strides = [1, 1]} : vector<8x384xf32> to vector<8x128xf32>
    %682 = vector.extract_strided_slice %672 {offsets = [0, 384], sizes = [8, 128], strides = [1, 1]} : vector<8x512xf32> to vector<8x128xf32>
    %683 = math.tanh %682 : vector<8x128xf32>
    %684 = arith.mulf %680, %653 : vector<8x128xf32>
    %685 = arith.mulf %679, %683 : vector<8x128xf32>
    %686 = arith.addf %684, %685 : vector<8x128xf32>
    %687 = math.tanh %686 : vector<8x128xf32>
    %688 = arith.mulf %681, %687 : vector<8x128xf32>
    %c14_i32 = arith.constant 14 : i32
    %689 = vector.broadcast %c14_i32 : i32 to vector<8x1xi32>
    %690 = arith.cmpi sle, %59, %689 : vector<8x1xi32>
    %c14_i32_190 = arith.constant 14 : i32
    %691 = vector.broadcast %c14_i32_190 : i32 to vector<8x1xi32>
    %692 = arith.cmpi sgt, %61, %691 : vector<8x1xi32>
    %693 = arith.andi %690, %692 : vector<8x1xi1>
    %694 = vector.shape_cast %693 : vector<8x1xi1> to vector<8x1xi1>
    %695 = vector.broadcast %694 : vector<8x1xi1> to vector<8x128xi1>
    %696 = arith.select %695, %686, %653 : vector<8x128xi1>, vector<8x128xf32>
    %cst_191 = arith.constant 0.000000e+00 : f32
    %697 = vector.broadcast %cst_191 : f32 to vector<8x128xf32>
    %698 = arith.select %10, %688, %697 : vector<8x128xi1>, vector<8x128xf32>
    %cst_192 = arith.constant 0.000000e+00 : f32
    %699 = vector.broadcast %cst_192 : f32 to vector<8x128xf32>
    %700 = arith.select %10, %699, %688 : vector<8x128xi1>, vector<8x128xf32>
    %701 = tpu.concatenate %698, %700 in 1 : vector<8x128xf32>, vector<8x128xf32> -> vector<8x256xf32>
    %cst_193 = arith.constant 0.000000e+00 : f32
    %702 = vector.shape_cast %693 : vector<8x1xi1> to vector<8x1xi1>
    %703 = vector.broadcast %702 : vector<8x1xi1> to vector<8x256xi1>
    %704 = vector.broadcast %cst_193 : f32 to vector<8x256xf32>
    %705 = arith.select %703, %701, %704 : vector<8x256xi1>, vector<8x256xf32>
    %706 = vector.shape_cast %693 : vector<8x1xi1> to vector<8x1xi1>
    %707 = vector.broadcast %706 : vector<8x1xi1> to vector<8x256xi1>
    %708 = arith.select %707, %701, %665 : vector<8x256xi1>, vector<8x256xf32>
    %c112_194 = arith.constant 112 : index
    %c0_195 = arith.constant 0 : index
    %709 = vector.load %arg15[%c112_194, %c0_195] : memref<128x256xf32, #tpu.memory_space<vmem>>, vector<8x256xf32>
    tpu.vector_store %arg15[%c112_194, %c0_195], %705 {strides = array<i32>} : memref<128x256xf32, #tpu.memory_space<vmem>>, vector<8x256xf32>,
    %c120 = arith.constant 120 : index
    %c0_196 = arith.constant 0 : index
    %710 = vector.load %arg14[%c120, %c0_196] : memref<128x512xf32, #tpu.memory_space<vmem>>, vector<8x512xf32>
    %711 = arith.truncf %708 : vector<8x256xf32> to vector<8x256xbf16>
    %c0_197 = arith.constant 0 : index
    %c0_198 = arith.constant 0 : index
    %712 = vector.load %arg3[%c0_197, %c0_198] : memref<256x512xbf16, #tpu.memory_space<vmem>>, vector<256x512xbf16>
    %cst_199 = arith.constant dense<0.000000e+00> : vector<8x512xf32>
    %713 = tpu.matmul %711, %712, %cst_199 {dimension_numbers = #tpu.dot_dimension_numbers<[1], [0], [0], [1], [0, 0, 1, 1], [], []>} : vector<8x256xbf16>, vector<256x512xbf16>, vector<8x512xf32> -> vector<8x512xf32>
    %714 = arith.addf %710, %62 : vector<8x512xf32>
    %715 = arith.addf %714, %713 : vector<8x512xf32>
    %716 = vector.extract_strided_slice %715 {offsets = [0, 0], sizes = [8, 384], strides = [1, 1]} : vector<8x512xf32> to vector<8x384xf32>
    %717 = arith.negf %716 : vector<8x384xf32>
    %718 = math.exp %717 : vector<8x384xf32>
    %cst_200 = arith.constant 1.000000e+00 : f32
    %719 = vector.broadcast %cst_200 : f32 to vector<8x384xf32>
    %720 = arith.addf %719, %718 : vector<8x384xf32>
    %721 = arith.divf %719, %720 : vector<8x384xf32>
    %722 = vector.extract_strided_slice %721 {offsets = [0, 0], sizes = [8, 128], strides = [1, 1]} : vector<8x384xf32> to vector<8x128xf32>
    %723 = vector.extract_strided_slice %721 {offsets = [0, 128], sizes = [8, 128], strides = [1, 1]} : vector<8x384xf32> to vector<8x128xf32>
    %724 = vector.extract_strided_slice %721 {offsets = [0, 256], sizes = [8, 128], strides = [1, 1]} : vector<8x384xf32> to vector<8x128xf32>
    %725 = vector.extract_strided_slice %715 {offsets = [0, 384], sizes = [8, 128], strides = [1, 1]} : vector<8x512xf32> to vector<8x128xf32>
    %726 = math.tanh %725 : vector<8x128xf32>
    %727 = arith.mulf %723, %696 : vector<8x128xf32>
    %728 = arith.mulf %722, %726 : vector<8x128xf32>
    %729 = arith.addf %727, %728 : vector<8x128xf32>
    %730 = math.tanh %729 : vector<8x128xf32>
    %731 = arith.mulf %724, %730 : vector<8x128xf32>
    %c15_i32 = arith.constant 15 : i32
    %732 = vector.broadcast %c15_i32 : i32 to vector<8x1xi32>
    %733 = arith.cmpi sle, %59, %732 : vector<8x1xi32>
    %c15_i32_201 = arith.constant 15 : i32
    %734 = vector.broadcast %c15_i32_201 : i32 to vector<8x1xi32>
    %735 = arith.cmpi sgt, %61, %734 : vector<8x1xi32>
    %736 = arith.andi %733, %735 : vector<8x1xi1>
    %cst_202 = arith.constant 0.000000e+00 : f32
    %737 = vector.broadcast %cst_202 : f32 to vector<8x128xf32>
    %738 = arith.select %10, %731, %737 : vector<8x128xi1>, vector<8x128xf32>
    %cst_203 = arith.constant 0.000000e+00 : f32
    %739 = vector.broadcast %cst_203 : f32 to vector<8x128xf32>
    %740 = arith.select %10, %739, %731 : vector<8x128xi1>, vector<8x128xf32>
    %741 = tpu.concatenate %738, %740 in 1 : vector<8x128xf32>, vector<8x128xf32> -> vector<8x256xf32>
    %cst_204 = arith.constant 0.000000e+00 : f32
    %742 = vector.shape_cast %736 : vector<8x1xi1> to vector<8x1xi1>
    %743 = vector.broadcast %742 : vector<8x1xi1> to vector<8x256xi1>
    %744 = vector.broadcast %cst_204 : f32 to vector<8x256xf32>
    %745 = arith.select %743, %741, %744 : vector<8x256xi1>, vector<8x256xf32>
    %c120_205 = arith.constant 120 : index
    %c0_206 = arith.constant 0 : index
    %746 = vector.load %arg15[%c120_205, %c0_206] : memref<128x256xf32, #tpu.memory_space<vmem>>, vector<8x256xf32>
    tpu.vector_store %arg15[%c120_205, %c0_206], %745 {strides = array<i32>} : memref<128x256xf32, #tpu.memory_space<vmem>>, vector<8x256xf32>,
    %c0_207 = arith.constant 0 : index
    %c0_208 = arith.constant 0 : index
    %747 = vector.load %arg15[%c0_207, %c0_208] : memref<128x256xf32, #tpu.memory_space<vmem>>, vector<128x256xf32>
    %748 = arith.truncf %747 : vector<128x256xf32> to vector<128x256xbf16>
    %c0_209 = arith.constant 0 : index
    %c0_210 = arith.constant 0 : index
    %749 = vector.load %arg5[%c0_209, %c0_210] : memref<32x128xbf16, #tpu.memory_space<vmem>>, vector<32x128xbf16>
    %cst_211 = arith.constant dense<0.000000e+00> : vector<32x256xf32>
    %750 = tpu.matmul %749, %748, %cst_211 {dimension_numbers = #tpu.dot_dimension_numbers<[1], [0], [0], [1], [0, 0, 1, 1], [], []>} : vector<32x128xbf16>, vector<128x256xbf16>, vector<32x256xf32> -> vector<32x256xf32>
    %751 = arith.truncf %750 : vector<32x256xf32> to vector<32x256xbf16>
    %c0_212 = arith.constant 0 : index
    %c0_213 = arith.constant 0 : index
    %752 = vector.load %arg6[%c0_212, %c0_213] : memref<256x128xbf16, #tpu.memory_space<vmem>>, vector<256x128xbf16>
    %cst_214 = arith.constant dense<0.000000e+00> : vector<32x128xf32>
    %753 = tpu.matmul %751, %752, %cst_214 {dimension_numbers = #tpu.dot_dimension_numbers<[1], [0], [0], [1], [0, 0, 1, 1], [], []>} : vector<32x256xbf16>, vector<256x128xbf16>, vector<32x128xf32> -> vector<32x128xf32>
    %c0_215 = arith.constant 0 : index
    %c0_216 = arith.constant 0 : index
    %754 = vector.load %arg7[%c0_215, %c0_216] : memref<1x128xf32, #tpu.memory_space<vmem>>, vector<1x128xf32>
    %755 = vector.broadcast %754 : vector<1x128xf32> to vector<32x128xf32>
    %756 = arith.addf %753, %755 : vector<32x128xf32>
    %cst_217 = arith.constant 0.000000e+00 : f32
    %757 = vector.broadcast %cst_217 : f32 to vector<32x128xf32>
    %758 = arith.maximumf %756, %757 : vector<32x128xf32>
    %759 = arith.truncf %758 : vector<32x128xf32> to vector<32x128xbf16>
    %c0_218 = arith.constant 0 : index
    %c0_219 = arith.constant 0 : index
    %760 = vector.load %arg8[%c0_218, %c0_219] : memref<16x32xbf16, #tpu.memory_space<vmem>>, vector<16x32xbf16>
    %cst_220 = arith.constant dense<0.000000e+00> : vector<16x128xf32>
    %761 = tpu.matmul %760, %759, %cst_220 {dimension_numbers = #tpu.dot_dimension_numbers<[1], [0], [0], [1], [0, 0, 1, 1], [], []>} : vector<16x32xbf16>, vector<32x128xbf16>, vector<16x128xf32> -> vector<16x128xf32>
    %c0_221 = arith.constant 0 : index
    %c0_222 = arith.constant 0 : index
    %762 = vector.load %arg9[%c0_221, %c0_222] : memref<16x32xbf16, #tpu.memory_space<vmem>>, vector<16x32xbf16>
    %cst_223 = arith.constant dense<0.000000e+00> : vector<16x128xf32>
    %763 = tpu.matmul %762, %759, %cst_223 {dimension_numbers = #tpu.dot_dimension_numbers<[1], [0], [0], [1], [0, 0, 1, 1], [], []>} : vector<16x32xbf16>, vector<32x128xbf16>, vector<16x128xf32> -> vector<16x128xf32>
    %c0_224 = arith.constant 0 : index
    %c0_225 = arith.constant 0 : index
    %764 = vector.load %arg11[%c0_224, %c0_225] : memref<3x128xf32, #tpu.memory_space<vmem>>, vector<1x128xf32>
    %765 = vector.broadcast %764 : vector<1x128xf32> to vector<16x128xf32>
    %766 = arith.mulf %761, %765 : vector<16x128xf32>
    %cst_226 = arith.constant dense<0.000000e+00> : vector<16xf32>
    %767 = vector.multi_reduction <add>, %766, %cst_226 [1] : vector<16x128xf32> to vector<16xf32>
    %768 = vector.shape_cast %767 : vector<16xf32> to vector<16x1xf32>
    %c1_227 = arith.constant 1 : index
    %c0_228 = arith.constant 0 : index
    %769 = vector.load %arg11[%c1_227, %c0_228] : memref<3x128xf32, #tpu.memory_space<vmem>>, vector<1x128xf32>
    %770 = vector.broadcast %769 : vector<1x128xf32> to vector<16x128xf32>
    %771 = arith.mulf %763, %770 : vector<16x128xf32>
    %cst_229 = arith.constant dense<0.000000e+00> : vector<16xf32>
    %772 = vector.multi_reduction <add>, %771, %cst_229 [1] : vector<16x128xf32> to vector<16xf32>
    %773 = vector.shape_cast %772 : vector<16xf32> to vector<16x1xf32>
    %774 = arith.addf %768, %773 : vector<16x1xf32>
    %c0_230 = arith.constant 0 : index
    %c0_231 = arith.constant 0 : index
    %775 = vector.load %arg10[%c0_230, %c0_231] : memref<16x128xf32, #tpu.memory_space<vmem>>, vector<16x128xf32>
    %c2 = arith.constant 2 : index
    %c0_232 = arith.constant 0 : index
    %776 = vector.load %arg11[%c2, %c0_232] : memref<3x128xf32, #tpu.memory_space<vmem>>, vector<1x128xf32>
    %777 = vector.broadcast %776 : vector<1x128xf32> to vector<16x128xf32>
    %778 = arith.mulf %775, %777 : vector<16x128xf32>
    %cst_233 = arith.constant dense<0.000000e+00> : vector<16xf32>
    %779 = vector.multi_reduction <add>, %778, %cst_233 [1] : vector<16x128xf32> to vector<16xf32>
    %780 = vector.shape_cast %779 : vector<16xf32> to vector<16x1xf32>
    %781 = arith.addf %774, %780 : vector<16x1xf32>
    %c0_234 = arith.constant 0 : index
    %c0_235 = arith.constant 0 : index
    %782 = vector.load %arg12[%c0_234, %c0_235] : memref<1x1xf32, #tpu.memory_space<vmem>>, vector<1x1xf32>
    %783 = vector.extract %782[0, 0] : f32 from vector<1x1xf32>
    %784 = vector.broadcast %783 : f32 to vector<16x1xf32>
    %785 = arith.addf %781, %784 : vector<16x1xf32>
    %c0_236 = arith.constant 0 : index
    %c0_237 = arith.constant 0 : index
    %786 = vector.load %arg13[%c0_236, %c0_237] : memref<16x1xf32, #tpu.memory_space<vmem>>, vector<16x1xf32>
    tpu.vector_store %arg13[%c0_236, %c0_237], %785 {strides = array<i32>} : memref<16x1xf32, #tpu.memory_space<vmem>>, vector<16x1xf32>,
    return
  }
}

</mosaic_0001>

<bundles_post_ra>
// kernel: squeeze.9
= control target key start
LH: loop header
LB: loop body
LE: loop exit
PB: predicated region body
PF: predicated region fallthrough
CT: control target
= control target key end

     0   :  { %s85_s0 = inlined_call_operand.vmem [shape: f32[16], index: 0, kind: input, shape index: {}]   ;;  %s86_s1 = inlined_call_operand.hbm [shape: f32[2,8], index: 1, kind: output, shape index: {}]  }
   0x1   :  { %v5_v0 = vld [vmem:[%s85_s0] sm:$0x1] }
   0x2   :  { %2 = vsyncpa [#allocation1], 0  ;;  %6 = vst [vmem:[#allocation3] sm:$0x1] %v5_v0  ;;  %vm8_vm0 = vcmask 64512   ;;  %s58_s0 = smov 120  }
   0x3   :  { %s59_s8 = smov [#allocation0]  }
   0x4   :  { %s26_s9 = sshll.u32 %s59_s8, 4  ;;  %s27_s9 = int_to_ptr.vmem [resolvable:$true] %s26_s9 }
   0x5   :  { %s34_s10 = scalar_lea.vmem %s27_s9, 32  ;;  %p39_p1 = scmp.lt.s32.totalorder %s27_s9, %s27_s9 }
   0x6   :  { %p35_p0 = scmp.ne.s32.totalorder %s27_s9, %s34_s10  ;;  %p40_p2 = scmp.lt.s32.totalorder %s34_s10, %s34_s10 }
   0x8   :  { %p41_p3 = por %p40_p2, %p39_p1 }
   0x9   :  { %v10_v1 = vld [vmem:[#allocation3] sm:$0x1]  }
   0xa   :  { %v7_v2 = vld [vmem:[#allocation3] sm:$0x1]   ;;  %11 = vrot.lane.b32.xlu0 %v10_v1, %s58_s0  ;;  %p42_p4 = pnand %p41_p3, %p35_p0 }
   0xb   :  { %9 = vst.msk [vmem:[#allocation2] sm:$0x1] %vm8_vm0, %v7_v2  }
  0x7c   :  { %v12_v3 = vpop.permute.xlu0 %11  }
  0x7d   :  { %15 = vst.msk [vmem:[#allocation2 + $0x1] sm:$0x1] %vm8_vm0, %v12_v3  }
  0x84   :  { %v19_v4 = vld [vmem:[#allocation2] sm:$0x3] }
  0x85   :  { %21 = vst [vmem:[#allocation0] sm:$0x3] %v19_v4 }
  0x86   :  { %45 = shalt.err (!%p42_p4)
}
  0x87   :  { %s46_s13 = scalar_lea.hbm %s86_s1, 32 }
  0x88   :  { %p47_p5 = scmp.ne.s32.totalorder %s86_s1, %s46_s13  ;;  %p50_p6 = scmp.lt.u32.totalorder %s46_s13, %s86_s1 }
  0x8a   :  { %p52_p7 = pnand %p50_p6, %p47_p5 }
  0x8c   :  { %55 = shalt.err (!%p52_p7)
}
  0x8d   :  { %29 = dma.vmem_to_hbm [thread:$0]  %s27_s9, 32, %s86_s1, [#allocation1]  }
  0x8e   :  { %56 = dma.done.wait [#allocation1], 32  }
  0x8f   :  { %57 = vsyncadd [#allocation1], 4294967264 }
  0x90   :  { %31 = vsyncpa [#allocation1], 1 }

// kernel: lstm_sp_forward.1
= control target key start
LH: loop header
LB: loop body
LE: loop exit
PB: predicated region body
PF: predicated region fallthrough
CT: control target
= control target key end

     0   :  { %s16143_s0 = inlined_call_operand.vmem [shape: bf16[128,256], index: 0, kind: input, shape index: {}]   ;;  %s16144_s1 = inlined_call_operand.vmem [shape: bf16[256,512], index: 1, kind: input, shape index: {}]   ;;  %s16145_s2 = inlined_call_operand.vmem [shape: f32[8,512], index: 2, kind: input, shape index: {}]   ;;  %s16146_s3 = inlined_call_operand.vmem [shape: bf16[256,512], index: 3, kind: input, shape index: {}]   ;;  %s16147_s4 = inlined_call_operand.vmem [shape: s32[2], index: 4, kind: input, shape index: {}]   ;;  %s16148_s5 = inlined_call_operand.vmem [shape: bf16[32,128], index: 5, kind: input, shape index: {}]   ;;  %s16149_s6 = inlined_call_operand.vmem [shape: bf16[256,128], index: 6, kind: input, shape index: {}]   ;;  %s16150_s7 = inlined_call_operand.vmem [shape: f32[1,128], index: 7, kind: input, shape index: {}]   ;;  %s16151_s8 = inlined_call_operand.vmem [shape: bf16[16,32], index: 8, kind: input, shape index: {}]   ;;  %s16152_s9 = inlined_call_operand.vmem [shape: bf16[16,32], index: 9, kind: input, shape index: {}]   ;;  %s16153_s10 = inlined_call_operand.vmem [shape: f32[16,128], index: 10, kind: input, shape index: {}]   ;;  %s16154_s11 = inlined_call_operand.vmem [shape: f32[3,128], index: 11, kind: input, shape index: {}]   ;;  %s16155_s12 = inlined_call_operand.<no memory space> [shape: f32[1,1], index: 12, kind: input, shape index: {}]   ;;  %s16156_s13 = inlined_call_operand.vmem [shape: f32[16,1], index: 13, kind: output, shape index: {}]  }
   0x1   :  { %v18_v0 = vstv %s16155_s12 }
   0x2   :  { %19 = vst [vmem:[#allocation4] sm:$0x1] %v18_v0 }
   0x3   :  { %20 = vsyncpa [#allocation6], 0  ;;  %s35_s29 = sshll.u32 %s16147_s4, 4  ;;  %s36_s29 = int_to_ptr.vmem [resolvable:$true] %s35_s29 }
   0x4   :  { %s11878_s30 = scalar_lea.vmem %s36_s29, 16  ;;  %p11883_p1 = scmp.lt.s32.totalorder %s36_s29, %s36_s29 }
   0x5   :  { %p11879_p0 = scmp.ne.s32.totalorder %s36_s29, %s11878_s30  ;;  %p11884_p2 = scmp.lt.s32.totalorder %s11878_s30, %s11878_s30 }
   0x7   :  { %p11885_p3 = por %p11884_p2, %p11883_p1 }
   0x9   :  { %p11886_p4 = pnand %p11885_p3, %p11879_p0 }
   0xb   :  { %11889 = shalt.err (!%p11886_p4)
}
   0xc   :  { %s11892_s14 = smov [#allocation5]  }
   0xd   :  { %38 = dma.vmem_to_smem %s36_s29, 16, %s11892_s14, [#allocation6]  }
   0xe   :  { %11890 = dma.done.wait [#allocation6], 16  }
   0xf   :  { %11891 = vsyncadd [#allocation6], 4294967280 }
  0x10   :  { %58 = sfence }
  0x11   :  { %v10906_v1 = vld [vmem:[%s16144_s1 + $0x4] ss:$16 sps:$4 sm:$0xff]   ;;  %v10908_v2 = vld [vmem:[%s16144_s1 + $0xc] ss:$16 sps:$4 sm:$0xff]   ;;  %v10910_v3 = vld [vmem:[%s16144_s1] ss:$16 sps:$4 sm:$0xff]  }
  0x12   :  { %540 = vmatprep.subr.bf16.mxu0 %v10906_v1  ;;  %v10911_v4 = vld [vmem:[%s16144_s1 + $0x8] ss:$16 sps:$4 sm:$0xff]   ;;  %653 = vmatprep.subr.bf16.mxu1 %v10908_v2  ;;  %v10912_v5 = vld [vmem:[%s16144_s1 + $0x24] ss:$16 sps:$4 sm:$0xff]   ;;  %v10914_v6 = vld [vmem:[%s16144_s1 + $0x2c] ss:$16 sps:$4 sm:$0xff]  }
  0x13   :  { %541 = vmatpush1.bf16.msra.mxu0 %v10910_v3  ;;  %654 = vmatpush1.bf16.msra.mxu1 %v10911_v4  ;;  %v10916_v7 = vld [vmem:[%s16144_s1 + $0x20] ss:$16 sps:$4 sm:$0xff]   ;;  %v10917_v8 = vld [vmem:[%s16144_s1 + $0x28] ss:$16 sps:$4 sm:$0xff]   ;;  %v10918_v9 = vld [vmem:[%s16144_s1 + $0x44] ss:$16 sps:$4 sm:$0xff]  }
  0x14   :  { %542 = vmatprep.subr.bf16.mxu0 %v10912_v5  ;;  %655 = vmatprep.subr.bf16.mxu1 %v10914_v6  ;;  %v10920_v10 = vld [vmem:[%s16144_s1 + $0x4c] ss:$16 sps:$4 sm:$0xff]   ;;  %v10922_v11 = vld [vmem:[%s16144_s1 + $0x40] ss:$16 sps:$4 sm:$0xff]   ;;  %v10923_v12 = vld [vmem:[%s16144_s1 + $0x48] ss:$16 sps:$4 sm:$0xff]  }
  0x15   :  { %v10924_v13 = vld [vmem:[%s16144_s1 + $0x64] ss:$16 sps:$4 sm:$0xff]   ;;  %v10926_v14 = vld [vmem:[%s16144_s1 + $0x6c] ss:$16 sps:$4 sm:$0xff]   ;;  %v10928_v15 = vld [vmem:[%s16144_s1 + $0x60] ss:$16 sps:$4 sm:$0xff]  }
  0x16   :  { %v10929_v16 = vld [vmem:[%s16144_s1 + $0x68] ss:$16 sps:$4 sm:$0xff]   ;;  %v10930_v17 = vld [vmem:[%s16144_s1 + $0x84] ss:$16 sps:$4 sm:$0xff]   ;;  %v10932_v18 = vld [vmem:[%s16144_s1 + $0x8c] ss:$16 sps:$4 sm:$0xff]  }
  0x17   :  { %543 = vmatpush1.bf16.msra.mxu0 %v10916_v7  ;;  %656 = vmatpush1.bf16.msra.mxu1 %v10917_v8  ;;  %v10934_v19 = vld [vmem:[%s16144_s1 + $0x80] ss:$16 sps:$4 sm:$0xff]   ;;  %v10935_v20 = vld [vmem:[%s16144_s1 + $0x88] ss:$16 sps:$4 sm:$0xff]   ;;  %v10936_v21 = vld [vmem:[%s16144_s1 + $0xa4] ss:$16 sps:$4 sm:$0xff]  }
  0x18   :  { %544 = vmatprep.subr.bf16.mxu0 %v10918_v9  ;;  %657 = vmatprep.subr.bf16.mxu1 %v10920_v10  ;;  %v10938_v22 = vld [vmem:[%s16144_s1 + $0xac] ss:$16 sps:$4 sm:$0xff]   ;;  %v10940_v23 = vld [vmem:[%s16144_s1 + $0xa0] ss:$16 sps:$4 sm:$0xff]   ;;  %v10941_v24 = vld [vmem:[%s16144_s1 + $0xa8] ss:$16 sps:$4 sm:$0xff]  }
  0x19   :  { %v10942_v25 = vld [vmem:[%s16144_s1 + $0xc4] ss:$16 sps:$4 sm:$0xff]   ;;  %v10944_v26 = vld [vmem:[%s16144_s1 + $0xcc] ss:$16 sps:$4 sm:$0xff]   ;;  %v10946_v27 = vld [vmem:[%s16144_s1 + $0xc0] ss:$16 sps:$4 sm:$0xff]  }
  0x1a   :  { %v10947_v28 = vld [vmem:[%s16144_s1 + $0xc8] ss:$16 sps:$4 sm:$0xff]   ;;  %v10948_v29 = vld [vmem:[%s16144_s1 + $0xe4] ss:$16 sps:$4 sm:$0xff]   ;;  %v10950_v30 = vld [vmem:[%s16144_s1 + $0xec] ss:$16 sps:$4 sm:$0xff]  }
  0x1b   :  { %545 = vmatpush1.bf16.msra.mxu0 %v10922_v11  ;;  %658 = vmatpush1.bf16.msra.mxu1 %v10923_v12  ;;  %v10952_v31 = vld [vmem:[%s16144_s1 + $0xe0] ss:$16 sps:$4 sm:$0xff]   ;;  %v10953_v32 = vld [vmem:[%s16144_s1 + $0xe8] ss:$16 sps:$4 sm:$0xff]   ;;  %v10954_v33 = vld [vmem:[%s16144_s1 + $0x104] ss:$16 sps:$4 sm:$0xff]  }
  0x1c   :  { %546 = vmatprep.subr.bf16.mxu0 %v10924_v13  ;;  %659 = vmatprep.subr.bf16.mxu1 %v10926_v14  ;;  %v10956_v34 = vld [vmem:[%s16144_s1 + $0x10c] ss:$16 sps:$4 sm:$0xff]   ;;  %v10958_v35 = vld [vmem:[%s16144_s1 + $0x100] ss:$16 sps:$4 sm:$0xff]   ;;  %v10959_v36 = vld [vmem:[%s16144_s1 + $0x108] ss:$16 sps:$4 sm:$0xff]  }
  0x1d   :  { %v10960_v37 = vld [vmem:[%s16144_s1 + $0x124] ss:$16 sps:$4 sm:$0xff]   ;;  %v10962_v38 = vld [vmem:[%s16144_s1 + $0x12c] ss:$16 sps:$4 sm:$0xff]   ;;  %v10964_v39 = vld [vmem:[%s16144_s1 + $0x120] ss:$16 sps:$4 sm:$0xff]  }
  0x1e   :  { %v10965_v40 = vld [vmem:[%s16144_s1 + $0x128] ss:$16 sps:$4 sm:$0xff]   ;;  %v10966_v41 = vld [vmem:[%s16144_s1 + $0x144] ss:$16 sps:$4 sm:$0xff]   ;;  %v10968_v42 = vld [vmem:[%s16144_s1 + $0x14c] ss:$16 sps:$4 sm:$0xff]  }
  0x1f   :  { %547 = vmatpush1.bf16.msra.mxu0 %v10928_v15  ;;  %660 = vmatpush1.bf16.msra.mxu1 %v10929_v16  ;;  %v10970_v43 = vld [vmem:[%s16144_s1 + $0x140] ss:$16 sps:$4 sm:$0xff]   ;;  %v10971_v44 = vld [vmem:[%s16144_s1 + $0x148] ss:$16 sps:$4 sm:$0xff]   ;;  %v10972_v45 = vld [vmem:[%s16144_s1 + $0x164] ss:$16 sps:$4 sm:$0xff]  }
  0x20   :  { %548 = vmatprep.subr.bf16.mxu0 %v10930_v17  ;;  %661 = vmatprep.subr.bf16.mxu1 %v10932_v18  ;;  %v10974_v46 = vld [vmem:[%s16144_s1 + $0x16c] ss:$16 sps:$4 sm:$0xff]   ;;  %v10976_v47 = vld [vmem:[%s16144_s1 + $0x160] ss:$16 sps:$4 sm:$0xff]   ;;  %v10977_v48 = vld [vmem:[%s16144_s1 + $0x168] ss:$16 sps:$4 sm:$0xff]  }
  0x21   :  { %v11004_v49 = vld [vmem:[%s16143_s0 + $0x4] ss:$8 sps:$4 sm:$0xff]   ;;  %v10982_v52 = vld [vmem:[%s16144_s1 + $0x180] ss:$16 sps:$4 sm:$0xff]   ;;  %v10983_v53 = vld [vmem:[%s16144_s1 + $0x188] ss:$16 sps:$4 sm:$0xff]  }
  0x22   :  { %v10978_v50 = vld [vmem:[%s16144_s1 + $0x184] ss:$16 sps:$4 sm:$0xff]   ;;  %v10980_v51 = vld [vmem:[%s16144_s1 + $0x18c] ss:$16 sps:$4 sm:$0xff]   ;;  %572 = vmatprep.mubr.bf16.mxu0 %v11004_v49  ;;  %685 = vmatprep.mubr.bf16.mxu1 %v11004_v49  ;;  %v10988_v56 = vld [vmem:[%s16144_s1 + $0x1a0] ss:$16 sps:$4 sm:$0xff]  }
  0x23   :  { %549 = vmatpush1.bf16.msra.mxu0 %v10934_v19  ;;  %662 = vmatpush1.bf16.msra.mxu1 %v10935_v20  ;;  %v10984_v54 = vld [vmem:[%s16144_s1 + $0x1a4] ss:$16 sps:$4 sm:$0xff]   ;;  %v10986_v55 = vld [vmem:[%s16144_s1 + $0x1ac] ss:$16 sps:$4 sm:$0xff]   ;;  %v10989_v57 = vld [vmem:[%s16144_s1 + $0x1a8] ss:$16 sps:$4 sm:$0xff]  }
  0x24   :  { %550 = vmatprep.subr.bf16.mxu0 %v10936_v21  ;;  %663 = vmatprep.subr.bf16.mxu1 %v10938_v22  ;;  %v10990_v58 = vld [vmem:[%s16144_s1 + $0x1c4] ss:$16 sps:$4 sm:$0xff]   ;;  %v10992_v59 = vld [vmem:[%s16144_s1 + $0x1cc] ss:$16 sps:$4 sm:$0xff]   ;;  %v10994_v60 = vld [vmem:[%s16144_s1 + $0x1c0] ss:$16 sps:$4 sm:$0xff]  }
  0x25   :  { %v10995_v61 = vld [vmem:[%s16144_s1 + $0x1c8] ss:$16 sps:$4 sm:$0xff]   ;;  %v10996_v62 = vld [vmem:[%s16144_s1 + $0x1e4] ss:$16 sps:$4 sm:$0xff]   ;;  %v10998_v63 = vld [vmem:[%s16144_s1 + $0x1ec] ss:$16 sps:$4 sm:$0xff]  }
  0x26   :  { %v11000_v0 = vld [vmem:[%s16144_s1 + $0x1e0] ss:$16 sps:$4 sm:$0xff]   ;;  %v11001_v1 = vld [vmem:[%s16144_s1 + $0x1e8] ss:$16 sps:$4 sm:$0xff]   ;;  %v12170_v2 = vld [vmem:[%s16146_s3 + $0x4] ss:$16 sps:$4 sm:$0xff]  }
  0x27   :  { %551 = vmatpush1.bf16.msra.mxu0 %v10940_v23  ;;  %664 = vmatpush1.bf16.msra.mxu1 %v10941_v24  ;;  %v12175_v3 = vld [vmem:[%s16146_s3 + $0xc] ss:$16 sps:$4 sm:$0xff]   ;;  %v11002_v4 = vld [vmem:[%s16143_s0] ss:$8 sps:$4 sm:$0xff]   ;;  %v12193_v7 = vld [vmem:[%s16146_s3 + $0x24] ss:$16 sps:$4 sm:$0xff]  }
  0x28   :  { %552 = vmatprep.subr.bf16.mxu0 %v10942_v25  ;;  %665 = vmatprep.subr.bf16.mxu1 %v10944_v26  ;;  %v12183_v5 = vld [vmem:[%s16146_s3] ss:$16 sps:$4 sm:$0xff]   ;;  %v12188_v6 = vld [vmem:[%s16146_s3 + $0x8] ss:$16 sps:$4 sm:$0xff]   ;;  %v12200_v8 = vld [vmem:[%s16146_s3 + $0x2c] ss:$16 sps:$4 sm:$0xff]  }
  0x29   :  { %v11017_v9 = vld [vmem:[%s16143_s0 + $0x14] ss:$8 sps:$4 sm:$0xff]   ;;  %v12208_v10 = vld [vmem:[%s16146_s3 + $0x20] ss:$16 sps:$4 sm:$0xff]   ;;  %v12213_v11 = vld [vmem:[%s16146_s3 + $0x28] ss:$16 sps:$4 sm:$0xff]  }
  0x2a   :  { %v12220_v12 = vld [vmem:[%s16146_s3 + $0x44] ss:$16 sps:$4 sm:$0xff]   ;;  %v12227_v13 = vld [vmem:[%s16146_s3 + $0x4c] ss:$16 sps:$4 sm:$0xff]   ;;  %v11019_v14 = vld [vmem:[%s16143_s0 + $0x10] ss:$8 sps:$4 sm:$0xff]  }
  0x2b   :  { %553 = vmatpush1.bf16.msra.mxu0 %v10946_v27  ;;  %666 = vmatpush1.bf16.msra.mxu1 %v10947_v28  ;;  %v12235_v15 = vld [vmem:[%s16146_s3 + $0x40] ss:$16 sps:$4 sm:$0xff]   ;;  %v12240_v16 = vld [vmem:[%s16146_s3 + $0x48] ss:$16 sps:$4 sm:$0xff]   ;;  %v12247_v17 = vld [vmem:[%s16146_s3 + $0x64] ss:$16 sps:$4 sm:$0xff]  }
  0x2c   :  { %554 = vmatprep.subr.bf16.mxu0 %v10948_v29  ;;  %667 = vmatprep.subr.bf16.mxu1 %v10950_v30  ;;  %v12254_v18 = vld [vmem:[%s16146_s3 + $0x6c] ss:$16 sps:$4 sm:$0xff]   ;;  %v12262_v20 = vld [vmem:[%s16146_s3 + $0x60] ss:$16 sps:$4 sm:$0xff]   ;;  %v12267_v21 = vld [vmem:[%s16146_s3 + $0x68] ss:$16 sps:$4 sm:$0xff]  }
  0x2d   :  { %v11032_v19 = vld [vmem:[%s16143_s0 + $0x24] ss:$8 sps:$4 sm:$0xff]   ;;  %v11034_v24 = vld [vmem:[%s16143_s0 + $0x20] ss:$8 sps:$4 sm:$0xff]   ;;  %v11047_v29 = vld [vmem:[%s16143_s0 + $0x34] ss:$8 sps:$4 sm:$0xff]  }
  0x2e   :  { %v12274_v22 = vld [vmem:[%s16146_s3 + $0x84] ss:$16 sps:$4 sm:$0xff]   ;;  %v12281_v23 = vld [vmem:[%s16146_s3 + $0x8c] ss:$16 sps:$4 sm:$0xff]   ;;  %v12289_v25 = vld [vmem:[%s16146_s3 + $0x80] ss:$16 sps:$4 sm:$0xff]  }
  0x2f   :  { %555 = vmatpush1.bf16.msra.mxu0 %v10952_v31  ;;  %668 = vmatpush1.bf16.msra.mxu1 %v10953_v32  ;;  %v12294_v26 = vld [vmem:[%s16146_s3 + $0x88] ss:$16 sps:$4 sm:$0xff]   ;;  %v12301_v27 = vld [vmem:[%s16146_s3 + $0xa4] ss:$16 sps:$4 sm:$0xff]   ;;  %v12308_v28 = vld [vmem:[%s16146_s3 + $0xac] ss:$16 sps:$4 sm:$0xff]  }
  0x30   :  { %556 = vmatprep.subr.bf16.mxu0 %v10954_v33  ;;  %669 = vmatprep.subr.bf16.mxu1 %v10956_v34  ;;  %v12316_v30 = vld [vmem:[%s16146_s3 + $0xa0] ss:$16 sps:$4 sm:$0xff]   ;;  %v12321_v31 = vld [vmem:[%s16146_s3 + $0xa8] ss:$16 sps:$4 sm:$0xff]   ;;  %v12328_v32 = vld [vmem:[%s16146_s3 + $0xc4] ss:$16 sps:$4 sm:$0xff]  }
  0x31   :  { %v12335_v33 = vld [vmem:[%s16146_s3 + $0xcc] ss:$16 sps:$4 sm:$0xff]   ;;  %v11049_v34 = vld [vmem:[%s16143_s0 + $0x30] ss:$8 sps:$4 sm:$0xff]   ;;  %s9691_s18 = sld [smem:[#allocation5 + $0x1]] }
  0x32   :  { %v11077_v49 = vld [vmem:[%s16143_s0 + $0x54] ss:$8 sps:$4 sm:$0xff]  }
  0x33   :  { %557 = vmatpush1.bf16.msra.mxu0 %v10958_v35  ;;  %670 = vmatpush1.bf16.msra.mxu1 %v10959_v36  ;;  %v12343_v35 = vld [vmem:[%s16146_s3 + $0xc0] ss:$16 sps:$4 sm:$0xff]   ;;  %v12348_v36 = vld [vmem:[%s16146_s3 + $0xc8] ss:$16 sps:$4 sm:$0xff]  }
  0x34   :  { %558 = vmatprep.subr.bf16.mxu0 %v10960_v37  ;;  %671 = vmatprep.subr.bf16.mxu1 %v10962_v38  ;;  %v12355_v37 = vld [vmem:[%s16146_s3 + $0xe4] ss:$16 sps:$4 sm:$0xff]   ;;  %v12362_v38 = vld [vmem:[%s16146_s3 + $0xec] ss:$16 sps:$4 sm:$0xff]  }
  0x37   :  { %559 = vmatpush1.bf16.msra.mxu0 %v10964_v39  ;;  %672 = vmatpush1.bf16.msra.mxu1 %v10965_v40  ;;  %v11062_v39 = vld [vmem:[%s16143_s0 + $0x44] ss:$8 sps:$4 sm:$0xff]   ;;  %v12370_v40 = vld [vmem:[%s16146_s3 + $0xe0] ss:$16 sps:$4 sm:$0xff]  }
  0x38   :  { %560 = vmatprep.subr.bf16.mxu0 %v10966_v41  ;;  %673 = vmatprep.subr.bf16.mxu1 %v10968_v42  ;;  %v12375_v41 = vld [vmem:[%s16146_s3 + $0xe8] ss:$16 sps:$4 sm:$0xff]   ;;  %v12382_v42 = vld [vmem:[%s16146_s3 + $0x104] ss:$16 sps:$4 sm:$0xff]  }
  0x3b   :  { %561 = vmatpush1.bf16.msra.mxu0 %v10970_v43  ;;  %674 = vmatpush1.bf16.msra.mxu1 %v10971_v44  ;;  %v11064_v43 = vld [vmem:[%s16143_s0 + $0x40] ss:$8 sps:$4 sm:$0xff]   ;;  %v12392_v44 = vld [vmem:[%s16146_s3 + $0x10c] ss:$16 sps:$4 sm:$0xff]  }
  0x3c   :  { %562 = vmatprep.subr.bf16.mxu0 %v10972_v45  ;;  %675 = vmatprep.subr.bf16.mxu1 %v10974_v46  ;;  %v12397_v45 = vld [vmem:[%s16146_s3 + $0x100] ss:$16 sps:$4 sm:$0xff]   ;;  %v12402_v46 = vld [vmem:[%s16146_s3 + $0x108] ss:$16 sps:$4 sm:$0xff]  }
  0x3f   :  { %563 = vmatpush1.bf16.msra.mxu0 %v10976_v47  ;;  %676 = vmatpush1.bf16.msra.mxu1 %v10977_v48  ;;  %v12407_v47 = vld [vmem:[%s16146_s3 + $0x124] ss:$16 sps:$4 sm:$0xff]   ;;  %v12412_v48 = vld [vmem:[%s16146_s3 + $0x12c] ss:$16 sps:$4 sm:$0xff]  }
  0x40   :  { %564 = vmatprep.subr.bf16.mxu0 %v10978_v50  ;;  %677 = vmatprep.subr.bf16.mxu1 %v10980_v51  ;;  %v12424_v50 = vld [vmem:[%s16146_s3 + $0x120] ss:$16 sps:$4 sm:$0xff]   ;;  %v12429_v51 = vld [vmem:[%s16146_s3 + $0x128] ss:$16 sps:$4 sm:$0xff]  }
  0x43   :  { %565 = vmatpush1.bf16.msra.mxu0 %v10982_v52  ;;  %678 = vmatpush1.bf16.msra.mxu1 %v10983_v53  ;;  %v12434_v52 = vld [vmem:[%s16146_s3 + $0x144] ss:$16 sps:$4 sm:$0xff]   ;;  %v12439_v53 = vld [vmem:[%s16146_s3 + $0x14c] ss:$16 sps:$4 sm:$0xff]  }
  0x44   :  { %566 = vmatprep.subr.bf16.mxu0 %v10984_v54  ;;  %679 = vmatprep.subr.bf16.mxu1 %v10986_v55  ;;  %v11079_v54 = vld [vmem:[%s16143_s0 + $0x50] ss:$8 sps:$4 sm:$0xff]  }
  0x45   :  { %v12451_v55 = vld [vmem:[%s16146_s3 + $0x140] ss:$16 sps:$4 sm:$0xff]  }
  0x47   :  { %567 = vmatpush1.bf16.msra.mxu0 %v10988_v56  ;;  %680 = vmatpush1.bf16.msra.mxu1 %v10989_v57  ;;  %v12456_v56 = vld [vmem:[%s16146_s3 + $0x148] ss:$16 sps:$4 sm:$0xff]   ;;  %v12461_v57 = vld [vmem:[%s16146_s3 + $0x164] ss:$16 sps:$4 sm:$0xff]  }
  0x48   :  { %568 = vmatprep.subr.bf16.mxu0 %v10990_v58  ;;  %681 = vmatprep.subr.bf16.mxu1 %v10992_v59  ;;  %v12466_v58 = vld [vmem:[%s16146_s3 + $0x16c] ss:$16 sps:$4 sm:$0xff]  }
  0x49   :  { %v11092_v59 = vld [vmem:[%s16143_s0 + $0x64] ss:$8 sps:$4 sm:$0xff]  }
  0x4b   :  { %569 = vmatpush1.bf16.msra.mxu0 %v10994_v60  ;;  %682 = vmatpush1.bf16.msra.mxu1 %v10995_v61  ;;  %v12478_v60 = vld [vmem:[%s16146_s3 + $0x160] ss:$16 sps:$4 sm:$0xff]   ;;  %v12483_v61 = vld [vmem:[%s16146_s3 + $0x168] ss:$16 sps:$4 sm:$0xff]  }
  0x4c   :  { %570 = vmatprep.subr.bf16.mxu0 %v10996_v62  ;;  %683 = vmatprep.subr.bf16.mxu1 %v10998_v63  ;;  %v12488_v62 = vld [vmem:[%s16146_s3 + $0x184] ss:$16 sps:$4 sm:$0xff]   ;;  %v12493_v63 = vld [vmem:[%s16146_s3 + $0x18c] ss:$16 sps:$4 sm:$0xff]  }
  0x4f   :  { %571 = vmatpush1.bf16.msra.mxu0 %v11000_v0  ;;  %684 = vmatpush1.bf16.msra.mxu1 %v11001_v1  ;;  %v11094_v0 = vld [vmem:[%s16143_s0 + $0x60] ss:$8 sps:$4 sm:$0xff]  }
  0x50   :  { %1252 = vmatprep.subr.bf16.mxu0 %v12170_v2  ;;  %1293 = vmatprep.subr.bf16.mxu1 %v12175_v3  ;;  %v12505_v1 = vld [vmem:[%s16146_s3 + $0x180] ss:$16 sps:$4 sm:$0xff]  }
  0x52   :  { %573 = vmatmul.mubr.bf16.vlgmr.msra.gmra.mrb[0].mxu0 %v11002_v4  ;;  %686 = vmatmul.mubr.bf16.vlgmr.msra.gmra.mrb[0].mxu1 %v11002_v4  ;;  %v12510_v4 = vld [vmem:[%s16146_s3 + $0x188] ss:$16 sps:$4 sm:$0xff]  }
  0x53   :  { %1253 = vmatpush1.bf16.msra.mxu0 %v12183_v5  ;;  %1294 = vmatpush1.bf16.msra.mxu1 %v12188_v6 }
  0x54   :  { %1254 = vmatprep.subr.bf16.mxu0 %v12193_v7  ;;  %1295 = vmatprep.subr.bf16.mxu1 %v12200_v8 }
  0x55   :  { %582 = vmatprep.mubr.bf16.mxu0 %v11017_v9  ;;  %695 = vmatprep.mubr.bf16.mxu1 %v11017_v9  ;;  %v12515_v9 = vld [vmem:[%s16146_s3 + $0x1a4] ss:$16 sps:$4 sm:$0xff]  }
  0x57   :  { %1255 = vmatpush1.bf16.msra.mxu0 %v12208_v10  ;;  %1296 = vmatpush1.bf16.msra.mxu1 %v12213_v11 }
  0x58   :  { %1256 = vmatprep.subr.bf16.mxu0 %v12220_v12  ;;  %1297 = vmatprep.subr.bf16.mxu1 %v12227_v13 }
  0x5a   :  { %583 = vmatmul.mubr.bf16.gmra.mrb[4].mxu0 %v11019_v14  ;;  %696 = vmatmul.mubr.bf16.gmra.mrb[4].mxu1 %v11019_v14  ;;  %v12520_v14 = vld [vmem:[%s16146_s3 + $0x1ac] ss:$16 sps:$4 sm:$0xff]  }
  0x5b   :  { %1257 = vmatpush1.bf16.msra.mxu0 %v12235_v15  ;;  %1298 = vmatpush1.bf16.msra.mxu1 %v12240_v16  ;;  %16441 = vst [vmem:[#allocation8_spill] sm:$0xff] %v12520_v14 }
  0x5c   :  { %1258 = vmatprep.subr.bf16.mxu0 %v12247_v17  ;;  %1299 = vmatprep.subr.bf16.mxu1 %v12254_v18 }
  0x5d   :  { %592 = vmatprep.mubr.bf16.mxu0 %v11032_v19  ;;  %705 = vmatprep.mubr.bf16.mxu1 %v11032_v19  ;;  %v11107_v19 = vld [vmem:[%s16143_s0 + $0x74] ss:$8 sps:$4 sm:$0xff]  }
  0x5f   :  { %1259 = vmatpush1.bf16.msra.mxu0 %v12262_v20  ;;  %1300 = vmatpush1.bf16.msra.mxu1 %v12267_v21 }
  0x60   :  { %1260 = vmatprep.subr.bf16.mxu0 %v12274_v22  ;;  %1301 = vmatprep.subr.bf16.mxu1 %v12281_v23 }
  0x62   :  { %593 = vmatmul.mubr.bf16.gmra.mrb[8].mxu0 %v11034_v24  ;;  %706 = vmatmul.mubr.bf16.gmra.mrb[8].mxu1 %v11034_v24  ;;  %v12532_v24 = vld [vmem:[%s16146_s3 + $0x1a0] ss:$16 sps:$4 sm:$0xff]  }
  0x63   :  { %1261 = vmatpush1.bf16.msra.mxu0 %v12289_v25  ;;  %1302 = vmatpush1.bf16.msra.mxu1 %v12294_v26 }
  0x64   :  { %1262 = vmatprep.subr.bf16.mxu0 %v12301_v27  ;;  %1303 = vmatprep.subr.bf16.mxu1 %v12308_v28 }
  0x65   :  { %602 = vmatprep.mubr.bf16.mxu0 %v11047_v29  ;;  %715 = vmatprep.mubr.bf16.mxu1 %v11047_v29  ;;  %v12537_v29 = vld [vmem:[%s16146_s3 + $0x1a8] ss:$16 sps:$4 sm:$0xff]  }
  0x67   :  { %1263 = vmatpush1.bf16.msra.mxu0 %v12316_v30  ;;  %1304 = vmatpush1.bf16.msra.mxu1 %v12321_v31 }
  0x68   :  { %1264 = vmatprep.subr.bf16.mxu0 %v12328_v32  ;;  %1305 = vmatprep.subr.bf16.mxu1 %v12335_v33 }
  0x6a   :  { %603 = vmatmul.mubr.bf16.gmra.mrb[12].mxu0 %v11049_v34  ;;  %716 = vmatmul.mubr.bf16.gmra.mrb[12].mxu1 %v11049_v34  ;;  %v12542_v34 = vld [vmem:[%s16146_s3 + $0x1c4] ss:$16 sps:$4 sm:$0xff]  }
  0x6b   :  { %1265 = vmatpush1.bf16.msra.mxu0 %v12343_v35  ;;  %1306 = vmatpush1.bf16.msra.mxu1 %v12348_v36 }
  0x6c   :  { %1266 = vmatprep.subr.bf16.mxu0 %v12355_v37  ;;  %1307 = vmatprep.subr.bf16.mxu1 %v12362_v38 }
  0x6d   :  { %612 = vmatprep.mubr.bf16.mxu0 %v11062_v39  ;;  %725 = vmatprep.mubr.bf16.mxu1 %v11062_v39  ;;  %v12547_v39 = vld [vmem:[%s16146_s3 + $0x1cc] ss:$16 sps:$4 sm:$0xff]  }
  0x6e   :  { %16442 = vst [vmem:[#allocation9_spill] sm:$0xff] %v12547_v39 }
  0x6f   :  { %1267 = vmatpush1.bf16.msra.mxu0 %v12370_v40  ;;  %1308 = vmatpush1.bf16.msra.mxu1 %v12375_v41 }
  0x70   :  { %1268 = vmatprep.subr.bf16.mxu0 %v12382_v42  ;;  %1309 = vmatprep.subr.bf16.mxu1 %v12392_v44 }
  0x72   :  { %613 = vmatmul.mubr.bf16.gmra.mrb[16].mxu0 %v11064_v43  ;;  %726 = vmatmul.mubr.bf16.gmra.mrb[16].mxu1 %v11064_v43  ;;  %v11109_v43 = vld [vmem:[%s16143_s0 + $0x70] ss:$8 sps:$4 sm:$0xff]  }
  0x73   :  { %1269 = vmatpush1.bf16.msra.mxu0 %v12397_v45  ;;  %1310 = vmatpush1.bf16.msra.mxu1 %v12402_v46 }
  0x74   :  { %1270 = vmatprep.subr.bf16.mxu0 %v12407_v47  ;;  %1311 = vmatprep.subr.bf16.mxu1 %v12412_v48 }
  0x75   :  { %622 = vmatprep.mubr.bf16.mxu0 %v11077_v49  ;;  %735 = vmatprep.mubr.bf16.mxu1 %v11077_v49  ;;  %v12559_v49 = vld [vmem:[%s16146_s3 + $0x1c0] ss:$16 sps:$4 sm:$0xff]  }
  0x77   :  { %1271 = vmatpush1.bf16.msra.mxu0 %v12424_v50  ;;  %1312 = vmatpush1.bf16.msra.mxu1 %v12429_v51 }
  0x78   :  { %1272 = vmatprep.subr.bf16.mxu0 %v12434_v52  ;;  %1313 = vmatprep.subr.bf16.mxu1 %v12439_v53 }
  0x7a   :  { %623 = vmatmul.mubr.bf16.gmra.mrb[20].mxu0 %v11079_v54  ;;  %736 = vmatmul.mubr.bf16.gmra.mrb[20].mxu1 %v11079_v54  ;;  %v12564_v54 = vld [vmem:[%s16146_s3 + $0x1c8] ss:$16 sps:$4 sm:$0xff]  }
  0x7b   :  { %1273 = vmatpush1.bf16.msra.mxu0 %v12451_v55  ;;  %1314 = vmatpush1.bf16.msra.mxu1 %v12456_v56 }
  0x7c   :  { %1274 = vmatprep.subr.bf16.mxu0 %v12461_v57  ;;  %1315 = vmatprep.subr.bf16.mxu1 %v12466_v58 }
  0x7d   :  { %632 = vmatprep.mubr.bf16.mxu0 %v11092_v59  ;;  %745 = vmatprep.mubr.bf16.mxu1 %v11092_v59  ;;  %v12569_v59 = vld [vmem:[%s16146_s3 + $0x1e4] ss:$16 sps:$4 sm:$0xff]  }
  0x7f   :  { %1275 = vmatpush1.bf16.msra.mxu0 %v12478_v60  ;;  %1316 = vmatpush1.bf16.msra.mxu1 %v12483_v61 }
  0x80   :  { %1276 = vmatprep.subr.bf16.mxu0 %v12488_v62  ;;  %1317 = vmatprep.subr.bf16.mxu1 %v12493_v63 }
  0x82   :  { %633 = vmatmul.mubr.bf16.gmra.mrb[24].mxu0 %v11094_v0  ;;  %746 = vmatmul.mubr.bf16.gmra.mrb[24].mxu1 %v11094_v0  ;;  %v12574_v0 = vld [vmem:[%s16146_s3 + $0x1ec] ss:$16 sps:$4 sm:$0xff]  }
  0x83   :  { %1277 = vmatpush1.bf16.msra.mxu0 %v12505_v1  ;;  %1318 = vmatpush1.bf16.msra.mxu1 %v12510_v4 }
  0x84   :  { %1278 = vmatprep.subr.bf16.mxu0 %v12515_v9  ;;  %1319 = vmatprep.subr.bf16.mxu1 %v12520_v14  ;;  %v12588_v14 = vld [vmem:[%s16146_s3 + $0x1e8] ss:$16 sps:$4 sm:$0xff]  }
  0x85   :  { %642 = vmatprep.mubr.bf16.mxu0 %v11107_v19  ;;  %755 = vmatprep.mubr.bf16.mxu1 %v11107_v19  ;;  %v12583_v19 = vld [vmem:[%s16146_s3 + $0x1e0] ss:$16 sps:$4 sm:$0xff]  }
  0x87   :  { %1279 = vmatpush1.bf16.msra.mxu0 %v12532_v24  ;;  %1320 = vmatpush1.bf16.msra.mxu1 %v12537_v29 }
  0x88   :  { %1280 = vmatprep.subr.bf16.mxu0 %v12542_v34  ;;  %1321 = vmatprep.subr.bf16.mxu1 %v12547_v39  ;;  %v16159_v39 = vmov 0  }
  0x8a   :  { %643 = vmatmul.mubr.bf16.gmra.mrb[28].mxu0 %v11109_v43  ;;  %756 = vmatmul.mubr.bf16.gmra.mrb[28].mxu1 %v11109_v43 }
  0x8b   :  { %1281 = vmatpush1.bf16.msra.mxu0 %v12559_v49  ;;  %1322 = vmatpush1.bf16.msra.mxu1 %v12564_v54 }
  0x8c   :  { %1282 = vmatprep.subr.bf16.mxu0 %v12569_v59  ;;  %1323 = vmatprep.subr.bf16.mxu1 %v12574_v0 }
  0x8d   :  { %1284 = vmatprep.mubr.bf16.mxu0 %v16159_v39  ;;  %1325 = vmatprep.mubr.bf16.mxu1 %v16159_v39 }
  0x8f   :  { %1283 = vmatpush1.bf16.msra.mxu0 %v12583_v19  ;;  %1324 = vmatpush1.bf16.msra.mxu1 %v12588_v14 }
  0x90   :  { %1768 = vmatprep.subr.bf16.mxu0 %v12170_v2  ;;  %1809 = vmatprep.subr.bf16.mxu1 %v12175_v3  ;;  %v16443_v2 = vld [vmem:[#allocation8_spill] sm:$0xff]  ;;  %v16444_v3 = vld [vmem:[#allocation9_spill] sm:$0xff] }
  0x92   :  { %1285 = vmatmul.mubr.bf16.vlgmr.msra.gmra.mrb[32].mxu0 %v16159_v39  ;;  %1326 = vmatmul.mubr.bf16.vlgmr.msra.gmra.mrb[32].mxu1 %v16159_v39 }
  0x93   :  { %1769 = vmatpush1.bf16.msra.mxu0 %v12183_v5  ;;  %1810 = vmatpush1.bf16.msra.mxu1 %v12188_v6  ;;  %v12667_v5 = vld [vmem:[%s16146_s3 + $0x4] ss:$16 sps:$4 sm:$0xff]   ;;  %v12672_v6 = vld [vmem:[%s16146_s3 + $0xc] ss:$16 sps:$4 sm:$0xff]  }
  0x94   :  { %1770 = vmatprep.subr.bf16.mxu0 %v12193_v7  ;;  %1811 = vmatprep.subr.bf16.mxu1 %v12200_v8  ;;  %16445 = vst [vmem:[#allocation8_spill] sm:$0xff] %v12667_v5  ;;  %16446 = vst [vmem:[#allocation9_spill] sm:$0xff] %v12672_v6 }
  0x97   :  { %1771 = vmatpush1.bf16.msra.mxu0 %v12208_v10  ;;  %1812 = vmatpush1.bf16.msra.mxu1 %v12213_v11  ;;  %v12683_v10 = vld [vmem:[%s16145_s2 + $0x10] sm:$0xff] }
  0x98   :  { %1772 = vmatprep.subr.bf16.mxu0 %v12220_v12  ;;  %1813 = vmatprep.subr.bf16.mxu1 %v12227_v13  ;;  %v12692_v13 = vld [vmem:[%s16145_s2 + $0x18] sm:$0xff] }
  0x9b   :  { %1773 = vmatpush1.bf16.msra.mxu0 %v12235_v15  ;;  %1814 = vmatpush1.bf16.msra.mxu1 %v12240_v16  ;;  %v12697_v15 = vld [vmem:[%s16145_s2] sm:$0xff] }
  0x9c   :  { %1774 = vmatprep.subr.bf16.mxu0 %v12247_v17  ;;  %1815 = vmatprep.subr.bf16.mxu1 %v12254_v18  ;;  %v12702_v18 = vld [vmem:[%s16145_s2 + $0x8] sm:$0xff]  ;;  %s849_s2 = sld [smem:[#allocation5]] }
  0x9f   :  { %1775 = vmatpush1.bf16.msra.mxu0 %v12262_v20  ;;  %1816 = vmatpush1.bf16.msra.mxu1 %v12267_v21 }
  0xa0   :  { %1776 = vmatprep.subr.bf16.mxu0 %v12274_v22  ;;  %1817 = vmatprep.subr.bf16.mxu1 %v12281_v23 }
  0xa3   :  { %1777 = vmatpush1.bf16.msra.mxu0 %v12289_v25  ;;  %1818 = vmatpush1.bf16.msra.mxu1 %v12294_v26 }
  0xa4   :  { %1778 = vmatprep.subr.bf16.mxu0 %v12301_v27  ;;  %1819 = vmatprep.subr.bf16.mxu1 %v12308_v28 }
  0xa7   :  { %1779 = vmatpush1.bf16.msra.mxu0 %v12316_v30  ;;  %1820 = vmatpush1.bf16.msra.mxu1 %v12321_v31 }
  0xa8   :  { %1780 = vmatprep.subr.bf16.mxu0 %v12328_v32  ;;  %1821 = vmatprep.subr.bf16.mxu1 %v12335_v33 }
  0xab   :  { %1781 = vmatpush1.bf16.msra.mxu0 %v12343_v35  ;;  %1822 = vmatpush1.bf16.msra.mxu1 %v12348_v36 }
  0xac   :  { %1782 = vmatprep.subr.bf16.mxu0 %v12355_v37  ;;  %1823 = vmatprep.subr.bf16.mxu1 %v12362_v38 }
  0xaf   :  { %1783 = vmatpush1.bf16.msra.mxu0 %v12370_v40  ;;  %1824 = vmatpush1.bf16.msra.mxu1 %v12375_v41 }
  0xb0   :  { %1784 = vmatprep.subr.bf16.mxu0 %v12382_v42  ;;  %1825 = vmatprep.subr.bf16.mxu1 %v12392_v44 }
  0xb3   :  { %1785 = vmatpush1.bf16.msra.mxu0 %v12397_v45  ;;  %1826 = vmatpush1.bf16.msra.mxu1 %v12402_v46 }
  0xb4   :  { %1786 = vmatprep.subr.bf16.mxu0 %v12407_v47  ;;  %1827 = vmatprep.subr.bf16.mxu1 %v12412_v48 }
  0xb7   :  { %1787 = vmatpush1.bf16.msra.mxu0 %v12424_v50  ;;  %1828 = vmatpush1.bf16.msra.mxu1 %v12429_v51 }
  0xb8   :  { %1788 = vmatprep.subr.bf16.mxu0 %v12434_v52  ;;  %1829 = vmatprep.subr.bf16.mxu1 %v12439_v53 }
  0xbb   :  { %1789 = vmatpush1.bf16.msra.mxu0 %v12451_v55  ;;  %1830 = vmatpush1.bf16.msra.mxu1 %v12456_v56 }
  0xbc   :  { %1790 = vmatprep.subr.bf16.mxu0 %v12461_v57  ;;  %1831 = vmatprep.subr.bf16.mxu1 %v12466_v58 }
  0xbf   :  { %1791 = vmatpush1.bf16.msra.mxu0 %v12478_v60  ;;  %1832 = vmatpush1.bf16.msra.mxu1 %v12483_v61 }
  0xc0   :  { %1792 = vmatprep.subr.bf16.mxu0 %v12488_v62  ;;  %1833 = vmatprep.subr.bf16.mxu1 %v12493_v63 }
  0xc3   :  { %1793 = vmatpush1.bf16.msra.mxu0 %v12505_v1  ;;  %1834 = vmatpush1.bf16.msra.mxu1 %v12510_v4 }
  0xc4   :  { %1794 = vmatprep.subr.bf16.mxu0 %v12515_v9  ;;  %1835 = vmatprep.subr.bf16.mxu1 %v16443_v2 }
  0xc7   :  { %1795 = vmatpush1.bf16.msra.mxu0 %v12532_v24  ;;  %1836 = vmatpush1.bf16.msra.mxu1 %v12537_v29 }
  0xc8   :  { %1796 = vmatprep.subr.bf16.mxu0 %v12542_v34  ;;  %1837 = vmatprep.subr.bf16.mxu1 %v16444_v3 }
  0xcb   :  { %1797 = vmatpush1.bf16.msra.mxu0 %v12559_v49  ;;  %1838 = vmatpush1.bf16.msra.mxu1 %v12564_v54 }
  0xcc   :  { %1798 = vmatprep.subr.bf16.mxu0 %v12569_v59  ;;  %1839 = vmatprep.subr.bf16.mxu1 %v12574_v0 }
  0xcf   :  { %1799 = vmatpush1.bf16.msra.mxu0 %v12583_v19  ;;  %1840 = vmatpush1.bf16.msra.mxu1 %v12588_v14 }
  0xd0   :  { %2286 = vmatprep.subr.bf16.mxu0 %v12667_v5  ;;  %2327 = vmatprep.subr.bf16.mxu1 %v12672_v6 }
 0x125   :  { %v12676_v7 = vpop.f32.mrb[0].mxu0  ;;  %v12678_v8 = vpop.f32.mrb[0].mxu1 }
 0x126   :  { %v12685_v11 = vpop.f32.mrb[1].mxu0  ;;  %v12687_v12 = vpop.f32.mrb[1].mxu1 }
 0x127   :  { %v578_v16 = vpop.f32.mrb[2].mxu0  ;;  %v691_v17 = vpop.f32.mrb[2].mxu1 }
 0x128   :  { %v12705_v20 = vadd.f32 %v12697_v15, %v578_v16  ;;  %v580_v21 = vpop.f32.mrb[3].mxu0  ;;  %v12708_v22 = vadd.f32 %v12683_v10, %v691_v17  ;;  %v693_v23 = vpop.f32.mrb[3].mxu1 }
 0x129   :  { %v12711_v25 = vadd.f32 %v12702_v18, %v580_v21  ;;  %v12714_v26 = vadd.f32 %v12692_v13, %v693_v23 }
 0x12d   :  { %v584_v27 = vpop.f32.mrb[4].mxu0  ;;  %v697_v28 = vpop.f32.mrb[4].mxu1 }
 0x12e   :  { %v12717_v30 = vadd.f32 %v12697_v15, %v584_v27  ;;  %v586_v31 = vpop.f32.mrb[5].mxu0  ;;  %v12720_v32 = vadd.f32 %v12683_v10, %v697_v28  ;;  %v699_v33 = vpop.f32.mrb[5].mxu1 }
 0x12f   :  { %v12723_v35 = vadd.f32 %v12702_v18, %v586_v31  ;;  %v588_v36 = vpop.f32.mrb[6].mxu0  ;;  %v12726_v37 = vadd.f32 %v12692_v13, %v699_v33  ;;  %v701_v38 = vpop.f32.mrb[6].mxu1 }
 0x130   :  { %16447 = vst [vmem:[#allocation10_spill] sm:$0xff] %v12717_v30  ;;  %16448 = vst [vmem:[#allocation11_spill] sm:$0xff] %v12720_v32  ;;  %v12729_v40 = vadd.f32 %v12697_v15, %v588_v36  ;;  %v590_v41 = vpop.f32.mrb[7].mxu0  ;;  %v12732_v42 = vadd.f32 %v12683_v10, %v701_v38  ;;  %v703_v44 = vpop.f32.mrb[7].mxu1  ;;  %v13223_v32 = vld [vmem:[%s16146_s3 + $0x18c] ss:$16 sps:$4 sm:$0xff]  }
 0x131   :  { %16449 = vst [vmem:[#allocation12_spill] sm:$0xff] %v12723_v35  ;;  %16450 = vst [vmem:[#allocation13_spill] sm:$0xff] %v12726_v37  ;;  %v12735_v45 = vadd.f32 %v12702_v18, %v590_v41  ;;  %v12738_v46 = vadd.f32 %v12692_v13, %v703_v44  ;;  %v13213_v37 = vld [vmem:[%s16146_s3 + $0x184] ss:$16 sps:$4 sm:$0xff]   ;;  %v13218_v35 = vld [vmem:[%s16146_s3 + $0x188] ss:$16 sps:$4 sm:$0xff]  }
 0x132   :  { %16451 = vst [vmem:[#allocation14_spill] sm:$0xff] %v12729_v40  ;;  %16452 = vst [vmem:[#allocation15_spill] sm:$0xff] %v12732_v42  ;;  %v13199_v42 = vld [vmem:[%s16146_s3 + $0x168] ss:$16 sps:$4 sm:$0xff]   ;;  %v13208_v40 = vld [vmem:[%s16146_s3 + $0x180] ss:$16 sps:$4 sm:$0xff]  }
 0x133   :  { %16453 = vst [vmem:[#allocation16_spill] sm:$0xff] %v12735_v45  ;;  %16454 = vst [vmem:[#allocation17_spill] sm:$0xff] %v12738_v46  ;;  %v13189_v46 = vld [vmem:[%s16146_s3 + $0x16c] ss:$16 sps:$4 sm:$0xff]   ;;  %v13194_v45 = vld [vmem:[%s16146_s3 + $0x160] ss:$16 sps:$4 sm:$0xff]  }
 0x134   :  { %16515 = vst [vmem:[#allocation76_spill] sm:$0xff] %v13189_v46  ;;  %16516 = vst [vmem:[#allocation77_spill] sm:$0xff] %v13194_v45  ;;  %v13228_v30 = vld [vmem:[%s16146_s3 + $0x1a4] ss:$16 sps:$4 sm:$0xff]  }
 0x135   :  { %v594_v47 = vpop.f32.mrb[8].mxu0  ;;  %v707_v48 = vpop.f32.mrb[8].mxu1  ;;  %16517 = vst [vmem:[#allocation78_spill] sm:$0xff] %v13199_v42  ;;  %16518 = vst [vmem:[#allocation79_spill] sm:$0xff] %v13208_v40 }
 0x136   :  { %v12741_v50 = vadd.f32 %v12697_v15, %v594_v47  ;;  %v596_v51 = vpop.f32.mrb[9].mxu0  ;;  %v12744_v52 = vadd.f32 %v12683_v10, %v707_v48  ;;  %v709_v53 = vpop.f32.mrb[9].mxu1  ;;  %16519 = vst [vmem:[#allocation80_spill] sm:$0xff] %v13213_v37  ;;  %16520 = vst [vmem:[#allocation81_spill] sm:$0xff] %v13218_v35 }
 0x137   :  { %v12747_v55 = vadd.f32 %v12702_v18, %v596_v51  ;;  %v598_v56 = vpop.f32.mrb[10].mxu0  ;;  %v12750_v57 = vadd.f32 %v12692_v13, %v709_v53  ;;  %v711_v58 = vpop.f32.mrb[10].mxu1  ;;  %16521 = vst [vmem:[#allocation82_spill] sm:$0xff] %v13223_v32  ;;  %16522 = vst [vmem:[#allocation83_spill] sm:$0xff] %v13228_v30 }
 0x138   :  { %16455 = vst [vmem:[#allocation18_spill] sm:$0xff] %v12741_v50  ;;  %16456 = vst [vmem:[#allocation19_spill] sm:$0xff] %v12744_v52  ;;  %v12753_v60 = vadd.f32 %v12697_v15, %v598_v56  ;;  %v600_v61 = vpop.f32.mrb[11].mxu0  ;;  %v12756_v62 = vadd.f32 %v12683_v10, %v711_v58  ;;  %v713_v63 = vpop.f32.mrb[11].mxu1  ;;  %v13175_v52 = vld [vmem:[%s16146_s3 + $0x148] ss:$16 sps:$4 sm:$0xff]  }
 0x139   :  { %16457 = vst [vmem:[#allocation20_spill] sm:$0xff] %v12747_v55  ;;  %16458 = vst [vmem:[#allocation21_spill] sm:$0xff] %v12750_v57  ;;  %v12759_v1 = vadd.f32 %v12702_v18, %v600_v61  ;;  %v12762_v4 = vadd.f32 %v12692_v13, %v713_v63  ;;  %v13165_v57 = vld [vmem:[%s16146_s3 + $0x14c] ss:$16 sps:$4 sm:$0xff]   ;;  %v13170_v55 = vld [vmem:[%s16146_s3 + $0x140] ss:$16 sps:$4 sm:$0xff]  }
 0x13a   :  { %16459 = vst [vmem:[#allocation22_spill] sm:$0xff] %v12753_v60  ;;  %16460 = vst [vmem:[#allocation23_spill] sm:$0xff] %v12756_v62  ;;  %v13151_v62 = vld [vmem:[%s16146_s3 + $0x128] ss:$16 sps:$4 sm:$0xff]   ;;  %v13160_v60 = vld [vmem:[%s16146_s3 + $0x144] ss:$16 sps:$4 sm:$0xff]  }
 0x13b   :  { %16461 = vst [vmem:[#allocation24_spill] sm:$0xff] %v12759_v1  ;;  %16462 = vst [vmem:[#allocation25_spill] sm:$0xff] %v12762_v4  ;;  %v13141_v4 = vld [vmem:[%s16146_s3 + $0x12c] ss:$16 sps:$4 sm:$0xff]   ;;  %v13146_v1 = vld [vmem:[%s16146_s3 + $0x120] ss:$16 sps:$4 sm:$0xff]  }
 0x13c   :  { %16508 = vst [vmem:[#allocation69_spill] sm:$0xff] %v13146_v1  ;;  %16509 = vst [vmem:[#allocation70_spill] sm:$0xff] %v13151_v62  ;;  %v13184_v50 = vld [vmem:[%s16146_s3 + $0x164] ss:$16 sps:$4 sm:$0xff]  }
 0x13d   :  { %v604_v9 = vpop.f32.mrb[12].mxu0  ;;  %v717_v14 = vpop.f32.mrb[12].mxu1  ;;  %16510 = vst [vmem:[#allocation71_spill] sm:$0xff] %v13160_v60  ;;  %16511 = vst [vmem:[#allocation72_spill] sm:$0xff] %v13165_v57 }
 0x13e   :  { %v12765_v24 = vadd.f32 %v12697_v15, %v604_v9  ;;  %v606_v29 = vpop.f32.mrb[13].mxu0  ;;  %v12768_v34 = vadd.f32 %v12683_v10, %v717_v14  ;;  %v719_v43 = vpop.f32.mrb[13].mxu1  ;;  %16512 = vst [vmem:[#allocation73_spill] sm:$0xff] %v13170_v55  ;;  %16513 = vst [vmem:[#allocation74_spill] sm:$0xff] %v13175_v52 }
 0x13f   :  { %v12771_v49 = vadd.f32 %v12702_v18, %v606_v29  ;;  %v608_v54 = vpop.f32.mrb[14].mxu0  ;;  %v12774_v59 = vadd.f32 %v12692_v13, %v719_v43  ;;  %v721_v0 = vpop.f32.mrb[14].mxu1  ;;  %16514 = vst [vmem:[#allocation75_spill] sm:$0xff] %v13184_v50 }
 0x140   :  { %16463 = vst [vmem:[#allocation26_spill] sm:$0xff] %v12765_v24  ;;  %16464 = vst [vmem:[#allocation27_spill] sm:$0xff] %v12768_v34  ;;  %v12777_v19 = vadd.f32 %v12697_v15, %v608_v54  ;;  %v610_v2 = vpop.f32.mrb[15].mxu0  ;;  %v12780_v3 = vadd.f32 %v12683_v10, %v721_v0  ;;  %v723_v16 = vpop.f32.mrb[15].mxu1  ;;  %v13127_v34 = vld [vmem:[%s16146_s3 + $0x108] ss:$16 sps:$4 sm:$0xff]  }
 0x141   :  { %16465 = vst [vmem:[#allocation28_spill] sm:$0xff] %v12771_v49  ;;  %16466 = vst [vmem:[#allocation29_spill] sm:$0xff] %v12774_v59  ;;  %v12783_v17 = vadd.f32 %v12702_v18, %v610_v2  ;;  %v12786_v21 = vadd.f32 %v12692_v13, %v723_v16  ;;  %v13117_v59 = vld [vmem:[%s16146_s3 + $0x10c] ss:$16 sps:$4 sm:$0xff]   ;;  %v13122_v49 = vld [vmem:[%s16146_s3 + $0x100] ss:$16 sps:$4 sm:$0xff]  }
 0x142   :  { %16467 = vst [vmem:[#allocation30_spill] sm:$0xff] %v12777_v19  ;;  %16468 = vst [vmem:[#allocation31_spill] sm:$0xff] %v12780_v3  ;;  %v13103_v3 = vld [vmem:[%s16146_s3 + $0xe8] ss:$16 sps:$4 sm:$0xff]   ;;  %v13112_v19 = vld [vmem:[%s16146_s3 + $0x104] ss:$16 sps:$4 sm:$0xff]  }
 0x143   :  { %16469 = vst [vmem:[#allocation32_spill] sm:$0xff] %v12783_v17  ;;  %16470 = vst [vmem:[#allocation33_spill] sm:$0xff] %v12786_v21  ;;  %v13093_v21 = vld [vmem:[%s16146_s3 + $0xec] ss:$16 sps:$4 sm:$0xff]   ;;  %v13098_v17 = vld [vmem:[%s16146_s3 + $0xe0] ss:$16 sps:$4 sm:$0xff]  }
 0x144   :  { %v13136_v24 = vld [vmem:[%s16146_s3 + $0x124] ss:$16 sps:$4 sm:$0xff]  }
 0x145   :  { %v614_v23 = vpop.f32.mrb[16].mxu0  ;;  %v727_v27 = vpop.f32.mrb[16].mxu1 }
 0x146   :  { %v12789_v28 = vadd.f32 %v12697_v15, %v614_v23  ;;  %v616_v31 = vpop.f32.mrb[17].mxu0  ;;  %v12792_v33 = vadd.f32 %v12683_v10, %v727_v27  ;;  %v729_v36 = vpop.f32.mrb[17].mxu1 }
 0x147   :  { %v12795_v38 = vadd.f32 %v12702_v18, %v616_v31  ;;  %v618_v41 = vpop.f32.mrb[18].mxu0  ;;  %v12798_v44 = vadd.f32 %v12692_v13, %v729_v36  ;;  %v731_v47 = vpop.f32.mrb[18].mxu1 }
 0x148   :  { %16471 = vst [vmem:[#allocation34_spill] sm:$0xff] %v12789_v28  ;;  %16472 = vst [vmem:[#allocation35_spill] sm:$0xff] %v12792_v33  ;;  %v12801_v48 = vadd.f32 %v12697_v15, %v618_v41  ;;  %v620_v51 = vpop.f32.mrb[19].mxu0  ;;  %v12804_v53 = vadd.f32 %v12683_v10, %v731_v47  ;;  %v733_v56 = vpop.f32.mrb[19].mxu1  ;;  %v13079_v33 = vld [vmem:[%s16146_s3 + $0xc8] ss:$16 sps:$4 sm:$0xff]  }
 0x149   :  { %16473 = vst [vmem:[#allocation36_spill] sm:$0xff] %v12795_v38  ;;  %16474 = vst [vmem:[#allocation37_spill] sm:$0xff] %v12798_v44  ;;  %v12807_v58 = vadd.f32 %v12702_v18, %v620_v51  ;;  %v12810_v61 = vadd.f32 %v12692_v13, %v733_v56  ;;  %v13069_v44 = vld [vmem:[%s16146_s3 + $0xcc] ss:$16 sps:$4 sm:$0xff]   ;;  %v13074_v38 = vld [vmem:[%s16146_s3 + $0xc0] ss:$16 sps:$4 sm:$0xff]  }
 0x14a   :  { %16475 = vst [vmem:[#allocation38_spill] sm:$0xff] %v12801_v48  ;;  %16476 = vst [vmem:[#allocation39_spill] sm:$0xff] %v12804_v53  ;;  %v13055_v53 = vld [vmem:[%s16146_s3 + $0xa8] ss:$16 sps:$4 sm:$0xff]   ;;  %v13064_v48 = vld [vmem:[%s16146_s3 + $0xc4] ss:$16 sps:$4 sm:$0xff]  }
 0x14b   :  { %16477 = vst [vmem:[#allocation40_spill] sm:$0xff] %v12807_v58  ;;  %16478 = vst [vmem:[#allocation41_spill] sm:$0xff] %v12810_v61  ;;  %v13045_v61 = vld [vmem:[%s16146_s3 + $0xac] ss:$16 sps:$4 sm:$0xff]   ;;  %v13050_v58 = vld [vmem:[%s16146_s3 + $0xa0] ss:$16 sps:$4 sm:$0xff]  }
 0x14c   :  { %v13088_v28 = vld [vmem:[%s16146_s3 + $0xe4] ss:$16 sps:$4 sm:$0xff]  }
 0x14d   :  { %v624_v63 = vpop.f32.mrb[20].mxu0  ;;  %v737_v9 = vpop.f32.mrb[20].mxu1 }
 0x14e   :  { %v12813_v14 = vadd.f32 %v12697_v15, %v624_v63  ;;  %v626_v29 = vpop.f32.mrb[21].mxu0  ;;  %v12816_v43 = vadd.f32 %v12683_v10, %v737_v9  ;;  %v739_v54 = vpop.f32.mrb[21].mxu1 }
 0x14f   :  { %v12819_v0 = vadd.f32 %v12702_v18, %v626_v29  ;;  %v628_v2 = vpop.f32.mrb[22].mxu0  ;;  %v12822_v16 = vadd.f32 %v12692_v13, %v739_v54  ;;  %v741_v23 = vpop.f32.mrb[22].mxu1 }
 0x150   :  { %16479 = vst [vmem:[#allocation42_spill] sm:$0xff] %v12813_v14  ;;  %16480 = vst [vmem:[#allocation43_spill] sm:$0xff] %v12816_v43  ;;  %v12825_v27 = vadd.f32 %v12697_v15, %v628_v2  ;;  %v630_v31 = vpop.f32.mrb[23].mxu0  ;;  %v12828_v36 = vadd.f32 %v12683_v10, %v741_v23  ;;  %v743_v41 = vpop.f32.mrb[23].mxu1  ;;  %v13031_v43 = vld [vmem:[%s16146_s3 + $0x88] ss:$16 sps:$4 sm:$0xff]  }
 0x151   :  { %16481 = vst [vmem:[#allocation44_spill] sm:$0xff] %v12819_v0  ;;  %16482 = vst [vmem:[#allocation45_spill] sm:$0xff] %v12822_v16  ;;  %v12831_v47 = vadd.f32 %v12702_v18, %v630_v31  ;;  %v12834_v51 = vadd.f32 %v12692_v13, %v743_v41  ;;  %v13026_v0 = vld [vmem:[%s16146_s3 + $0x80] ss:$16 sps:$4 sm:$0xff]   ;;  %v13040_v14 = vld [vmem:[%s16146_s3 + $0xa4] ss:$16 sps:$4 sm:$0xff]  }
 0x152   :  { %16483 = vst [vmem:[#allocation46_spill] sm:$0xff] %v12825_v27  ;;  %16484 = vst [vmem:[#allocation47_spill] sm:$0xff] %v12828_v36 }
 0x153   :  { %16485 = vst [vmem:[#allocation48_spill] sm:$0xff] %v12831_v47  ;;  %16486 = vst [vmem:[#allocation49_spill] sm:$0xff] %v12834_v51 }
 0x155   :  { %v634_v56 = vpop.f32.mrb[24].mxu0  ;;  %v747_v63 = vpop.f32.mrb[24].mxu1 }
 0x156   :  { %v12837_v9 = vadd.f32 %v12697_v15, %v634_v56  ;;  %v636_v29 = vpop.f32.mrb[25].mxu0  ;;  %v12840_v54 = vadd.f32 %v12683_v10, %v747_v63  ;;  %v749_v2 = vpop.f32.mrb[25].mxu1 }
 0x157   :  { %v12843_v23 = vadd.f32 %v12702_v18, %v636_v29  ;;  %v638_v39 = vpop.f32.mrb[26].mxu0  ;;  %v12846_v31 = vadd.f32 %v12692_v13, %v749_v2  ;;  %v751_v47 = vpop.f32.mrb[26].mxu1 }
 0x158   :  { %16487 = vst [vmem:[#allocation50_spill] sm:$0xff] %v12837_v9  ;;  %16488 = vst [vmem:[#allocation51_spill] sm:$0xff] %v12840_v54  ;;  %v12849_v41 = vadd.f32 %v12697_v15, %v638_v39  ;;  %v640_v51 = vpop.f32.mrb[27].mxu0  ;;  %v12852_v56 = vadd.f32 %v12683_v10, %v751_v47  ;;  %v753_v9 = vpop.f32.mrb[27].mxu1 }
 0x159   :  { %16489 = vst [vmem:[#allocation52_spill] sm:$0xff] %v12843_v23  ;;  %16490 = vst [vmem:[#allocation53_spill] sm:$0xff] %v12846_v31  ;;  %v12855_v63 = vadd.f32 %v12702_v18, %v640_v51  ;;  %v12858_v54 = vadd.f32 %v12692_v13, %v753_v9 }
 0x15a   :  { %16491 = vst [vmem:[#allocation54_spill] sm:$0xff] %v12849_v41  ;;  %16492 = vst [vmem:[#allocation55_spill] sm:$0xff] %v12852_v56 }
 0x15b   :  { %16493 = vst [vmem:[#allocation56_spill] sm:$0xff] %v12855_v63  ;;  %16494 = vst [vmem:[#allocation57_spill] sm:$0xff] %v12858_v54 }
 0x15d   :  { %v644_v29 = vpop.f32.mrb[28].mxu0  ;;  %v757_v23 = vpop.f32.mrb[28].mxu1 }
 0x15e   :  { %v12861_v2 = vadd.f32 %v12697_v15, %v644_v29  ;;  %v646_v31 = vpop.f32.mrb[29].mxu0  ;;  %v12864_v39 = vadd.f32 %v12683_v10, %v757_v23  ;;  %v759_v41 = vpop.f32.mrb[29].mxu1 }
 0x15f   :  { %v12867_v47 = vadd.f32 %v12702_v18, %v646_v31  ;;  %v648_v56 = vpop.f32.mrb[30].mxu0  ;;  %v12870_v51 = vadd.f32 %v12692_v13, %v759_v41  ;;  %v761_v63 = vpop.f32.mrb[30].mxu1  ;;  %v1334_v31 = vadd.f32 %v12697_v15, %v12676_v7  ;;  %v1336_v41 = vadd.f32 %v12683_v10, %v12678_v8 }
 0x160   :  { %16495 = vst [vmem:[#allocation58_spill] sm:$0xff] %v12861_v2  ;;  %16496 = vst [vmem:[#allocation59_spill] sm:$0xff] %v12864_v39  ;;  %v12873_v9 = vadd.f32 %v12697_v15, %v648_v56  ;;  %v650_v54 = vpop.f32.mrb[31].mxu0  ;;  %v12876_v29 = vadd.f32 %v12683_v10, %v761_v63  ;;  %v763_v2 = vpop.f32.mrb[31].mxu1  ;;  %v1335_v56 = vadd.f32 %v12702_v18, %v12685_v11  ;;  %v830_v11 = vlaneseq }
 0x161   :  { %16497 = vst [vmem:[#allocation60_spill] sm:$0xff] %v12867_v47  ;;  %16498 = vst [vmem:[#allocation61_spill] sm:$0xff] %v12870_v51  ;;  %v12879_v23 = vadd.f32 %v12702_v18, %v650_v54  ;;  %v12882_v39 = vadd.f32 %v12692_v13, %v763_v2  ;;  %v1337_v63 = vadd.f32 %v12692_v13, %v12687_v12 }
 0x162   :  { %16499 = vst [vmem:[#allocation62_spill] sm:$0xff] %v12873_v9  ;;  %16500 = vst [vmem:[#allocation63_spill] sm:$0xff] %v12876_v29 }
 0x163   :  { %16501 = vst [vmem:[#allocation64_spill] sm:$0xff] %v12879_v23  ;;  %16502 = vst [vmem:[#allocation65_spill] sm:$0xff] %v12882_v39 }
 0x165   :  { %v1286_v29 = vpop.f32.mrb[32].mxu0  ;;  %v1327_v9 = vpop.f32.mrb[32].mxu1 }
 0x166   :  { %v1338_v51 = vadd.f32 %v1334_v31, %v1286_v29  ;;  %v1340_v54 = vadd.f32 %v1336_v41, %v1327_v9  ;;  %v1288_v23 = vpop.f32.mrb[33].mxu0  ;;  %v1329_v47 = vpop.f32.mrb[33].mxu1  ;;  %v12892_v9 = vshrl.u32 %v830_v11, 7  ;;  %v854_v31 = vstv %s9691_s18 }
 0x167   :  { %v1339_v2 = vadd.f32 %v1335_v56, %v1288_v23  ;;  %v1341_v39 = vadd.f32 %v1337_v63, %v1329_v47  ;;  %v1290_v36 = vpop.f32.mrb[34].mxu0  ;;  %v1331_v27 = vpop.f32.mrb[34].mxu1 }
 0x168   :  { %v9756_v7 = vmul.f32 -1.442695, %v1338_v51  ;;  %v1291_v15 = vpop.f32.mrb[35].mxu0  ;;  %v1332_v16 = vpop.f32.mrb[35].mxu1  ;;  %v9758_v10 = vmul.f32 -1.442695, %v1340_v54 }
 0x169   :  { %v9757_v8 = vmul.f32 -1.442695, %v1339_v2  ;;  %v840_v27 = vand.u32 1, %v12892_v9  ;;  %v850_v16 = vstv %s849_s2  ;;  %vm16437_vm2 = vcmp.lt.s32.totalorder %v12892_v9, 2 }
 0x16a   :  { %11622 = vpow2.f32 %v9756_v7  ;;  %vm833_vm3 = vcmp.lt.s32.totalorder %v12892_v9, 4 }
 0x16b   :  { %11624 = vpow2.f32 %v9757_v8  ;;  %vm848_vm0 = vcmp.eq.s32.totalorder %v840_v27, 0  ;;  %vm852_vm1 = vcmp.eq.s32.totalorder %v840_v27, 1 }
 0x16c   :  { %11626 = vtanh.f32 %v1341_v39  ;;  %v851_v23 = vsel %vm848_vm0, %v850_v16, 0 }
 0x16d   :  { %11628 = vpow2.f32 %v9758_v10  ;;  %v855_v54 = vsel %vm852_vm1, %v854_v31, %v851_v23  ;;  %v12942_v23 = vld [vmem:[%s16146_s3 + $0x24] ss:$16 sps:$4 sm:$0xff]   ;;  %v12947_v31 = vld [vmem:[%s16146_s3 + $0x2c] ss:$16 sps:$4 sm:$0xff]  }
 0x16e   :  { %v856_v7 = vsub.s32 16, %v855_v54  ;;  %v12906_v10 = vsel %vm16437_vm2, %v855_v54, 16  ;;  %v12978_v54 = vld [vmem:[%s16146_s3 + $0x40] ss:$16 sps:$4 sm:$0xff]  }
 0x16f   :  { %vm1367_vm5 = vcmp.gt.s32.totalorder %v12906_v10, 0  ;;  %vm1883_vm9 = vcmp.gt.s32.totalorder %v12906_v10, 1  ;;  %vm2401_vm12 = vcmp.gt.s32.totalorder %v12906_v10, 2  ;;  %vm2919_vm15 = vcmp.gt.s32.totalorder %v12906_v10, 3 }
 0x170   :  { %v857_v15 = vsel %vm16437_vm2, 0, %v856_v7  ;;  %v12983_v7 = vld [vmem:[%s16146_s3 + $0x48] ss:$16 sps:$4 sm:$0xff]  }
 0x171   :  { %v12902_v8 = vsel %vm833_vm3, %v857_v15, 16  ;;  %v12992_v15 = vld [vmem:[%s16146_s3 + $0x64] ss:$16 sps:$4 sm:$0xff]   ;;  %vm3437_vm3 = vcmp.gt.s32.totalorder %v12906_v10, 4 }
 0x172   :  { %vm1366_vm4 = vcmp.le.s32.totalorder %v12902_v8, 0  ;;  %vm1882_vm8 = vcmp.le.s32.totalorder %v12902_v8, 1  ;;  %vm2400_vm11 = vcmp.le.s32.totalorder %v12902_v8, 2  ;;  %vm2918_vm14 = vcmp.le.s32.totalorder %v12902_v8, 3 }
 0x173   :  { %vm12910_vm6 = vmand %vm1366_vm4, %vm1367_vm5  ;;  %vm3436_vm1 = vcmp.le.s32.totalorder %v12902_v8, 4  ;;  %vm3954_vm5 = vcmp.le.s32.totalorder %v12902_v8, 5 }
 0x174   :  { %v11623_v18 = vpop.eup %11622  ;;  %vm9823_vm7 = vmpackc.low %vm12910_vm6, %vm12910_vm6 }
 0x175   :  { %v1351_v12 = vadd.f32 1.0, %v11623_v18  ;;  %v11625_v13 = vpop.eup %11624  ;;  %vm13312_vm10 = vmand %vm1882_vm8, %vm1883_vm9  ;;  %vm4472_vm9 = vcmp.le.s32.totalorder %v12902_v8, 6 }
 0x176   :  { %v1352_v47 = vadd.f32 1.0, %v11625_v13  ;;  %v11627_v36 = vpop.eup %11626  ;;  %v16503_v13 = vmov 0  ;;  %vm13419_vm13 = vmand %vm2400_vm11, %vm2401_vm12  ;;  %vm4473_vm11 = vcmp.gt.s32.totalorder %v12906_v10, 6 }
 0x177   :  { %11630 = vrcp.f32 %v1351_v12  ;;  %v11629_v51 = vpop.eup %11628  ;;  %v16504_v13 = vsel %vm12910_vm6, 4294967295, %v16503_v13  ;;  %vm13533_vm0 = vmand %vm2918_vm14, %vm2919_vm15  ;;  %vm4990_vm14 = vcmp.le.s32.totalorder %v12902_v8, 7  ;;  %vm4991_vm15 = vcmp.gt.s32.totalorder %v12906_v10, 7 }
 0x178   :  { %11632 = vrcp.f32 %v1352_v47  ;;  %v1353_v56 = vadd.f32 1.0, %v11629_v51  ;;  %16505 = vst [vmem:[#allocation66_spill] sm:$0xff] %v16504_v13  ;;  %v12932_v51 = vld [vmem:[%s16146_s3] ss:$16 sps:$4 sm:$0xff]   ;;  %vm13947_vm4 = vmand %vm3436_vm1, %vm3437_vm3  ;;  %vm5508_vm3 = vcmp.le.s32.totalorder %v12902_v8, 8 }
 0x179   :  { %vm14165_vm12 = vmand %vm4472_vm9, %vm4473_vm11  ;;  %vm6026_vm9 = vcmp.le.s32.totalorder %v12902_v8, 9  ;;  %vm6027_vm11 = vcmp.gt.s32.totalorder %v12906_v10, 9 }
 0x17a   :  { %11634 = vrcp.f32 %v1353_v56  ;;  %v12966_v56 = vld [vmem:[%s16146_s3 + $0x44] ss:$16 sps:$4 sm:$0xff]   ;;  %vm14579_vm1 = vmand %vm4990_vm14, %vm4991_vm15  ;;  %vm6544_vm15 = vcmp.le.s32.totalorder %v12902_v8, 10 }
 0x17b   :  { %vm14797_vm14 = vmand %vm6026_vm9, %vm6027_vm11  ;;  %vm7062_vm9 = vcmp.le.s32.totalorder %v12902_v8, 11  ;;  %vm7063_vm11 = vcmp.gt.s32.totalorder %v12906_v10, 11 }
 0x181   :  { %v11631_v29 = vpop.eup %11630 }
 0x182   :  { %v1362_v39 = vmul.f32 %v11631_v29, %v11627_v36  ;;  %v11633_v41 = vpop.eup %11632  ;;  %v12937_v29 = vld [vmem:[%s16146_s3 + $0x8] ss:$16 sps:$4 sm:$0xff]  }
 0x183   :  { %v1361_v63 = vmul.f32 0.0, %v11633_v41  ;;  %v12959_v41 = vld [vmem:[%s16146_s3 + $0x28] ss:$16 sps:$4 sm:$0xff]  }
 0x184   :  { %v11635_v11 = vpop.eup %11634 }
 0x185   :  { %v12895_v2 = vadd.f32 %v1362_v39, %v1361_v63  ;;  %v12954_v39 = vld [vmem:[%s16146_s3 + $0x20] ss:$16 sps:$4 sm:$0xff]   ;;  %v12971_v63 = vld [vmem:[%s16146_s3 + $0x4c] ss:$16 sps:$4 sm:$0xff]  }
 0x187   :  { %11636 = vtanh.f32 %v12895_v2 }
 0x191   :  { %v11637_v18 = vpop.eup %11636 }
 0x192   :  { %v1365_v12 = vmul.f32 %v11637_v18, %v11635_v11  ;;  %v12997_v11 = vld [vmem:[%s16146_s3 + $0x6c] ss:$16 sps:$4 sm:$0xff]   ;;  %v13002_v18 = vld [vmem:[%s16146_s3 + $0x60] ss:$16 sps:$4 sm:$0xff]  }
 0x194   :  { %v12916_v47 = vsel %vm16437_vm2, %v1365_v12, 0.0  ;;  %v12920_v27 = vsel %vm16437_vm2, 0.0, %v1365_v12  ;;  %v13007_v12 = vld [vmem:[%s16146_s3 + $0x68] ss:$16 sps:$4 sm:$0xff]  }
 0x195   :  { %16506 = vst [vmem:[#allocation67_spill] sm:$0xff] %v12916_v47  ;;  %16507 = vst [vmem:[#allocation68_spill] sm:$0xff] %v12920_v27  ;;  %v9824_v16 = vpack.c.bf16 %v12920_v27, %v12920_v27  ;;  %v9827_v36 = vpack.c.bf16 %v12916_v47, %v12916_v47 }
 0x197   :  { %9825 = vmatprep.mubr.msk.bf16.mxu0 %vm9823_vm7, %v9824_v16  ;;  %9831 = vmatprep.mubr.msk.bf16.mxu1 %vm9823_vm7, %v9824_v16  ;;  %v13016_v16 = vld [vmem:[%s16146_s3 + $0x84] ss:$16 sps:$4 sm:$0xff]  }
 0x198   :  { %9828 = vmatmul.mubr.msk.bf16.vlgmr.msra.gmra.mrb[36].mxu0 %vm9823_vm7, %v9827_v36  ;;  %9834 = vmatmul.mubr.msk.bf16.vlgmr.msra.gmra.mrb[36].mxu1 %vm9823_vm7, %v9827_v36  ;;  %v13021_v36 = vld [vmem:[%s16146_s3 + $0x8c] ss:$16 sps:$4 sm:$0xff]   ;;  %vm3955_vm7 = vcmp.gt.s32.totalorder %v12906_v10, 5 }
 0x199   :  { %2287 = vmatpush1.bf16.msra.mxu0 %v12932_v51  ;;  %2328 = vmatpush1.bf16.msra.mxu1 %v12937_v29  ;;  %vm14051_vm8 = vmand %vm3954_vm5, %vm3955_vm7  ;;  %vm5509_vm5 = vcmp.gt.s32.totalorder %v12906_v10, 8 }
 0x19a   :  { %2288 = vmatprep.subr.bf16.mxu0 %v12942_v23  ;;  %2329 = vmatprep.subr.bf16.mxu1 %v12947_v31  ;;  %vm14683_vm7 = vmand %vm5508_vm3, %vm5509_vm5  ;;  %vm6545_vm3 = vcmp.gt.s32.totalorder %v12906_v10, 10 }
 0x19b   :  { %vm15211_vm5 = vmand %vm6544_vm15, %vm6545_vm3  ;;  %vm7580_vm3 = vcmp.le.s32.totalorder %v12902_v8, 12 }
 0x19c   :  { %vm15315_vm15 = vmand %vm7062_vm9, %vm7063_vm11  ;;  %vm7581_vm9 = vcmp.gt.s32.totalorder %v12906_v10, 12 }
 0x19d   :  { %2289 = vmatpush1.bf16.msra.mxu0 %v12954_v39  ;;  %2330 = vmatpush1.bf16.msra.mxu1 %v12959_v41  ;;  %vm15429_vm11 = vmand %vm7580_vm3, %vm7581_vm9  ;;  %vm8098_vm3 = vcmp.le.s32.totalorder %v12902_v8, 13  ;;  %vm8099_vm9 = vcmp.gt.s32.totalorder %v12906_v10, 13 }
 0x19e   :  { %2290 = vmatprep.subr.bf16.mxu0 %v12966_v56  ;;  %2331 = vmatprep.subr.bf16.mxu1 %v12971_v63 }
 0x1a1   :  { %2291 = vmatpush1.bf16.msra.mxu0 %v12978_v54  ;;  %2332 = vmatpush1.bf16.msra.mxu1 %v12983_v7 }
 0x1a2   :  { %2292 = vmatprep.subr.bf16.mxu0 %v12992_v15  ;;  %2333 = vmatprep.subr.bf16.mxu1 %v12997_v11 }
 0x1a5   :  { %2293 = vmatpush1.bf16.msra.mxu0 %v13002_v18  ;;  %2334 = vmatpush1.bf16.msra.mxu1 %v13007_v12 }
 0x1a6   :  { %2294 = vmatprep.subr.bf16.mxu0 %v13016_v16  ;;  %2335 = vmatprep.subr.bf16.mxu1 %v13021_v36 }
 0x1a9   :  { %2295 = vmatpush1.bf16.msra.mxu0 %v13026_v0  ;;  %2336 = vmatpush1.bf16.msra.mxu1 %v13031_v43 }
 0x1aa   :  { %2296 = vmatprep.subr.bf16.mxu0 %v13040_v14  ;;  %2337 = vmatprep.subr.bf16.mxu1 %v13045_v61 }
 0x1ad   :  { %2297 = vmatpush1.bf16.msra.mxu0 %v13050_v58  ;;  %2338 = vmatpush1.bf16.msra.mxu1 %v13055_v53 }
 0x1ae   :  { %2298 = vmatprep.subr.bf16.mxu0 %v13064_v48  ;;  %2339 = vmatprep.subr.bf16.mxu1 %v13069_v44 }
 0x1b1   :  { %2299 = vmatpush1.bf16.msra.mxu0 %v13074_v38  ;;  %2340 = vmatpush1.bf16.msra.mxu1 %v13079_v33 }
 0x1b2   :  { %2300 = vmatprep.subr.bf16.mxu0 %v13088_v28  ;;  %2341 = vmatprep.subr.bf16.mxu1 %v13093_v21 }
 0x1b5   :  { %2301 = vmatpush1.bf16.msra.mxu0 %v13098_v17  ;;  %2342 = vmatpush1.bf16.msra.mxu1 %v13103_v3 }
 0x1b6   :  { %2302 = vmatprep.subr.bf16.mxu0 %v13112_v19  ;;  %2343 = vmatprep.subr.bf16.mxu1 %v13117_v59 }
 0x1b9   :  { %2303 = vmatpush1.bf16.msra.mxu0 %v13122_v49  ;;  %2344 = vmatpush1.bf16.msra.mxu1 %v13127_v34 }
 0x1ba   :  { %2304 = vmatprep.subr.bf16.mxu0 %v13136_v24  ;;  %2345 = vmatprep.subr.bf16.mxu1 %v13141_v4 }
 0x1bd   :  { %2305 = vmatpush1.bf16.msra.mxu0 %v13146_v1  ;;  %2346 = vmatpush1.bf16.msra.mxu1 %v13151_v62 }
 0x1be   :  { %2306 = vmatprep.subr.bf16.mxu0 %v13160_v60  ;;  %2347 = vmatprep.subr.bf16.mxu1 %v13165_v57 }
 0x1c1   :  { %2307 = vmatpush1.bf16.msra.mxu0 %v13170_v55  ;;  %2348 = vmatpush1.bf16.msra.mxu1 %v13175_v52 }
 0x1c2   :  { %2308 = vmatprep.subr.bf16.mxu0 %v13184_v50  ;;  %2349 = vmatprep.subr.bf16.mxu1 %v13189_v46 }
 0x1c5   :  { %2309 = vmatpush1.bf16.msra.mxu0 %v13194_v45  ;;  %2350 = vmatpush1.bf16.msra.mxu1 %v13199_v42  ;;  %v13234_v42 = vld [vmem:[%s16146_s3 + $0x1ac] ss:$16 sps:$4 sm:$0xff]   ;;  %v13241_v45 = vld [vmem:[%s16146_s3 + $0x1a0] ss:$16 sps:$4 sm:$0xff]  }
 0x1c6   :  { %2310 = vmatprep.subr.bf16.mxu0 %v13213_v37  ;;  %16523 = vst [vmem:[#allocation84_spill] sm:$0xff] %v13234_v42  ;;  %2351 = vmatprep.subr.bf16.mxu1 %v13223_v32  ;;  %16524 = vst [vmem:[#allocation85_spill] sm:$0xff] %v13241_v45  ;;  %v13248_v37 = vld [vmem:[%s16146_s3 + $0x1a8] ss:$16 sps:$4 sm:$0xff]   ;;  %v13253_v32 = vld [vmem:[%s16146_s3 + $0x1c4] ss:$16 sps:$4 sm:$0xff]  }
 0x1c7   :  { %16525 = vst [vmem:[#allocation86_spill] sm:$0xff] %v13248_v37  ;;  %16526 = vst [vmem:[#allocation87_spill] sm:$0xff] %v13253_v32 }
 0x1c9   :  { %2311 = vmatpush1.bf16.msra.mxu0 %v13208_v40  ;;  %2352 = vmatpush1.bf16.msra.mxu1 %v13218_v35  ;;  %v13259_v40 = vld [vmem:[%s16146_s3 + $0x1cc] ss:$16 sps:$4 sm:$0xff]   ;;  %v13277_v35 = vld [vmem:[%s16146_s3 + $0x1e4] ss:$16 sps:$4 sm:$0xff]  }
 0x1ca   :  { %2312 = vmatprep.subr.bf16.mxu0 %v13228_v30  ;;  %2353 = vmatprep.subr.bf16.mxu1 %v13234_v42  ;;  %16527 = vst [vmem:[#allocation88_spill] sm:$0xff] %v13259_v40  ;;  %v13265_v30 = vld [vmem:[%s16146_s3 + $0x1c0] ss:$16 sps:$4 sm:$0xff]   ;;  %v13272_v42 = vld [vmem:[%s16146_s3 + $0x1c8] ss:$16 sps:$4 sm:$0xff]   ;;  %16530 = vst [vmem:[#allocation91_spill] sm:$0xff] %v13277_v35 }
 0x1cb   :  { %16528 = vst [vmem:[#allocation89_spill] sm:$0xff] %v13265_v30  ;;  %16529 = vst [vmem:[#allocation90_spill] sm:$0xff] %v13272_v42 }
 0x1cd   :  { %2313 = vmatpush1.bf16.msra.mxu0 %v13241_v45  ;;  %2354 = vmatpush1.bf16.msra.mxu1 %v13248_v37  ;;  %v13283_v45 = vld [vmem:[%s16146_s3 + $0x1ec] ss:$16 sps:$4 sm:$0xff]  }
 0x1ce   :  { %2314 = vmatprep.subr.bf16.mxu0 %v13253_v32  ;;  %2355 = vmatprep.subr.bf16.mxu1 %v13259_v40  ;;  %16531 = vst [vmem:[#allocation92_spill] sm:$0xff] %v13283_v45  ;;  %v13289_v32 = vld [vmem:[%s16146_s3 + $0x1e0] ss:$16 sps:$4 sm:$0xff]   ;;  %v13296_v40 = vld [vmem:[%s16146_s3 + $0x1e8] ss:$16 sps:$4 sm:$0xff]  }
 0x1cf   :  { %16532 = vst [vmem:[#allocation93_spill] sm:$0xff] %v13289_v32  ;;  %16533 = vst [vmem:[#allocation94_spill] sm:$0xff] %v13296_v40 }
 0x1d1   :  { %2315 = vmatpush1.bf16.msra.mxu0 %v13265_v30  ;;  %2356 = vmatpush1.bf16.msra.mxu1 %v13272_v42 }
 0x1d2   :  { %2316 = vmatprep.subr.bf16.mxu0 %v13277_v35  ;;  %2357 = vmatprep.subr.bf16.mxu1 %v13283_v45  ;;  %v16560_v13 = vld [vmem:[#allocation90_spill] sm:$0xff] }
 0x1d5   :  { %2317 = vmatpush1.bf16.msra.mxu0 %v13289_v32  ;;  %2358 = vmatpush1.bf16.msra.mxu1 %v13296_v40 }
 0x1d6   :  { %2804 = vmatprep.subr.bf16.mxu0 %v12667_v5  ;;  %2845 = vmatprep.subr.bf16.mxu1 %v12672_v6 }
 0x26b   :  { %v1802_v30 = vpop.f32.mrb[36].mxu0  ;;  %v1843_v37 = vpop.f32.mrb[36].mxu1 }
 0x26c   :  { %v1854_v42 = vadd.f32 %v12705_v20, %v1802_v30  ;;  %v1856_v35 = vadd.f32 %v12708_v22, %v1843_v37  ;;  %v1804_v46 = vpop.f32.mrb[37].mxu0  ;;  %v1845_v50 = vpop.f32.mrb[37].mxu1 }
 0x26d   :  { %v1855_v52 = vadd.f32 %v12711_v25, %v1804_v46  ;;  %v1857_v45 = vadd.f32 %v12714_v26, %v1845_v50  ;;  %v1806_v55 = vpop.f32.mrb[38].mxu0  ;;  %v1847_v32 = vpop.f32.mrb[38].mxu1 }
 0x26e   :  { %v9835_v57 = vmul.f32 -1.442695, %v1854_v42  ;;  %v1807_v40 = vpop.f32.mrb[39].mxu0  ;;  %v1848_v60 = vpop.f32.mrb[39].mxu1  ;;  %v9837_v6 = vmul.f32 -1.442695, %v1856_v35 }
 0x26f   :  { %v9836_v5 = vmul.f32 -1.442695, %v1855_v52  ;;  %v1375_v55 = vsel %vm12910_vm6, %v12920_v27, 0.0  ;;  %v1374_v60 = vsel %vm12910_vm6, %v12916_v47, 0.0  ;;  %v16556_v47 = vld [vmem:[#allocation86_spill] sm:$0xff]  ;;  %v16558_v27 = vld [vmem:[#allocation88_spill] sm:$0xff] }
 0x270   :  { %11638 = vpow2.f32 %v9835_v57 }
 0x271   :  { %11640 = vpow2.f32 %v9836_v5  ;;  %v1371_v5 = vsel %vm12910_vm6, %v12895_v2, 0.0 }
 0x272   :  { %11642 = vtanh.f32 %v1857_v45 }
 0x273   :  { %11644 = vpow2.f32 %v9837_v6  ;;  %v16534_v6 = vmov 0 }
 0x274   :  { %v16535_v6 = vsel %vm13312_vm10, 4294967295, %v16534_v6 }
 0x275   :  { %16536 = vst [vmem:[#allocation95_spill] sm:$0xff] %v16535_v6  ;;  %v16559_v6 = vld [vmem:[#allocation89_spill] sm:$0xff] }
 0x27a   :  { %v11639_v62 = vpop.eup %11638 }
 0x27b   :  { %v1867_v1 = vadd.f32 1.0, %v11639_v62  ;;  %v11641_v20 = vpop.eup %11640 }
 0x27c   :  { %v1868_v22 = vadd.f32 1.0, %v11641_v20  ;;  %v11643_v25 = vpop.eup %11642 }
 0x27d   :  { %11646 = vrcp.f32 %v1867_v1  ;;  %v11645_v30 = vpop.eup %11644 }
 0x27e   :  { %11648 = vrcp.f32 %v1868_v22  ;;  %v1869_v35 = vadd.f32 1.0, %v11645_v30  ;;  %v16540_v30 = vld [vmem:[#allocation70_spill] sm:$0xff] }
 0x280   :  { %11650 = vrcp.f32 %v1869_v35  ;;  %v16545_v35 = vld [vmem:[#allocation75_spill] sm:$0xff] }
 0x287   :  { %v11647_v26 = vpop.eup %11646 }
 0x288   :  { %v1878_v37 = vmul.f32 %v11647_v26, %v11643_v25  ;;  %v11649_v32 = vpop.eup %11648  ;;  %v16539_v25 = vld [vmem:[#allocation69_spill] sm:$0xff]  ;;  %v16541_v26 = vld [vmem:[#allocation71_spill] sm:$0xff] }
 0x289   :  { %v1877_v40 = vmul.f32 %v11649_v32, %v1371_v5  ;;  %v16543_v32 = vld [vmem:[#allocation73_spill] sm:$0xff] }
 0x28a   :  { %v11651_v46 = vpop.eup %11650 }
 0x28b   :  { %v1879_v42 = vadd.f32 %v1878_v37, %v1877_v40  ;;  %v16542_v37 = vld [vmem:[#allocation72_spill] sm:$0xff] }
 0x28c   :  { %v16546_v40 = vld [vmem:[#allocation76_spill] sm:$0xff] }
 0x28d   :  { %11652 = vtanh.f32 %v1879_v42  ;;  %v13318_v45 = vsel %vm13312_vm10, %v1879_v42, %v1371_v5  ;;  %v16544_v5 = vld [vmem:[#allocation74_spill] sm:$0xff]  ;;  %v16547_v42 = vld [vmem:[#allocation77_spill] sm:$0xff] }
 0x297   :  { %v11653_v50 = vpop.eup %11652 }
 0x298   :  { %v1881_v52 = vmul.f32 %v11653_v50, %v11651_v46  ;;  %v16548_v46 = vld [vmem:[#allocation78_spill] sm:$0xff]  ;;  %v16549_v50 = vld [vmem:[#allocation80_spill] sm:$0xff] }
 0x29a   :  { %v13325_v57 = vsel %vm16437_vm2, 0.0, %v1881_v52  ;;  %v13332_v62 = vsel %vm16437_vm2, %v1881_v52, 0.0  ;;  %v16550_v52 = vld [vmem:[#allocation82_spill] sm:$0xff] }
 0x29b   :  { %16537 = vst [vmem:[#allocation96_spill] sm:$0xff] %v13325_v57  ;;  %16538 = vst [vmem:[#allocation97_spill] sm:$0xff] %v13332_v62  ;;  %v13337_v1 = vsel %vm13312_vm10, %v13325_v57, %v1375_v55  ;;  %v13342_v2 = vsel %vm13312_vm10, %v13332_v62, %v1374_v60  ;;  %v16551_v55 = vld [vmem:[#allocation79_spill] sm:$0xff]  ;;  %v16552_v60 = vld [vmem:[#allocation81_spill] sm:$0xff] }
 0x29c   :  { %v1901_v20 = vpack.c.bf16 %v13337_v1, %v13337_v1  ;;  %v1900_v22 = vpack.c.bf16 %v13342_v2, %v13342_v2  ;;  %v16555_v62 = vld [vmem:[#allocation85_spill] sm:$0xff]  ;;  %v16557_v57 = vld [vmem:[#allocation87_spill] sm:$0xff] }
 0x29e   :  { %2318 = vmatprep.mubr.bf16.mxu0 %v1901_v20  ;;  %2359 = vmatprep.mubr.bf16.mxu1 %v1901_v20  ;;  %v16553_v20 = vld [vmem:[#allocation83_spill] sm:$0xff] }
 0x29f   :  { %2319 = vmatmul.mubr.bf16.vlgmr.msra.gmra.mrb[40].mxu0 %v1900_v22  ;;  %2360 = vmatmul.mubr.bf16.vlgmr.msra.gmra.mrb[40].mxu1 %v1900_v22  ;;  %v16554_v22 = vld [vmem:[#allocation84_spill] sm:$0xff] }
 0x2a0   :  { %2805 = vmatpush1.bf16.msra.mxu0 %v12932_v51  ;;  %2846 = vmatpush1.bf16.msra.mxu1 %v12937_v29 }
 0x2a1   :  { %2806 = vmatprep.subr.bf16.mxu0 %v12942_v23  ;;  %2847 = vmatprep.subr.bf16.mxu1 %v12947_v31 }
 0x2a4   :  { %2807 = vmatpush1.bf16.msra.mxu0 %v12954_v39  ;;  %2848 = vmatpush1.bf16.msra.mxu1 %v12959_v41 }
 0x2a5   :  { %2808 = vmatprep.subr.bf16.mxu0 %v12966_v56  ;;  %2849 = vmatprep.subr.bf16.mxu1 %v12971_v63 }
 0x2a8   :  { %2809 = vmatpush1.bf16.msra.mxu0 %v12978_v54  ;;  %2850 = vmatpush1.bf16.msra.mxu1 %v12983_v7 }
 0x2a9   :  { %2810 = vmatprep.subr.bf16.mxu0 %v12992_v15  ;;  %2851 = vmatprep.subr.bf16.mxu1 %v12997_v11 }
 0x2ac   :  { %2811 = vmatpush1.bf16.msra.mxu0 %v13002_v18  ;;  %2852 = vmatpush1.bf16.msra.mxu1 %v13007_v12 }
 0x2ad   :  { %2812 = vmatprep.subr.bf16.mxu0 %v13016_v16  ;;  %2853 = vmatprep.subr.bf16.mxu1 %v13021_v36 }
 0x2b0   :  { %2813 = vmatpush1.bf16.msra.mxu0 %v13026_v0  ;;  %2854 = vmatpush1.bf16.msra.mxu1 %v13031_v43 }
 0x2b1   :  { %2814 = vmatprep.subr.bf16.mxu0 %v13040_v14  ;;  %2855 = vmatprep.subr.bf16.mxu1 %v13045_v61 }
 0x2b4   :  { %2815 = vmatpush1.bf16.msra.mxu0 %v13050_v58  ;;  %2856 = vmatpush1.bf16.msra.mxu1 %v13055_v53 }
 0x2b5   :  { %2816 = vmatprep.subr.bf16.mxu0 %v13064_v48  ;;  %2857 = vmatprep.subr.bf16.mxu1 %v13069_v44 }
 0x2b8   :  { %2817 = vmatpush1.bf16.msra.mxu0 %v13074_v38  ;;  %2858 = vmatpush1.bf16.msra.mxu1 %v13079_v33 }
 0x2b9   :  { %2818 = vmatprep.subr.bf16.mxu0 %v13088_v28  ;;  %2859 = vmatprep.subr.bf16.mxu1 %v13093_v21 }
 0x2bc   :  { %2819 = vmatpush1.bf16.msra.mxu0 %v13098_v17  ;;  %2860 = vmatpush1.bf16.msra.mxu1 %v13103_v3 }
 0x2bd   :  { %2820 = vmatprep.subr.bf16.mxu0 %v13112_v19  ;;  %2861 = vmatprep.subr.bf16.mxu1 %v13117_v59 }
 0x2c0   :  { %2821 = vmatpush1.bf16.msra.mxu0 %v13122_v49  ;;  %2862 = vmatpush1.bf16.msra.mxu1 %v13127_v34 }
 0x2c1   :  { %2822 = vmatprep.subr.bf16.mxu0 %v13136_v24  ;;  %2863 = vmatprep.subr.bf16.mxu1 %v13141_v4 }
 0x2c4   :  { %2823 = vmatpush1.bf16.msra.mxu0 %v16539_v25  ;;  %2864 = vmatpush1.bf16.msra.mxu1 %v16540_v30 }
 0x2c5   :  { %2824 = vmatprep.subr.bf16.mxu0 %v16541_v26  ;;  %2865 = vmatprep.subr.bf16.mxu1 %v16542_v37 }
 0x2c8   :  { %2825 = vmatpush1.bf16.msra.mxu0 %v16543_v32  ;;  %2866 = vmatpush1.bf16.msra.mxu1 %v16544_v5 }
 0x2c9   :  { %2826 = vmatprep.subr.bf16.mxu0 %v16545_v35  ;;  %2867 = vmatprep.subr.bf16.mxu1 %v16546_v40  ;;  %v16569_v40 = vld [vmem:[#allocation12_spill] sm:$0xff]  ;;  %v16570_v35 = vld [vmem:[#allocation13_spill] sm:$0xff] }
 0x2cc   :  { %2827 = vmatpush1.bf16.msra.mxu0 %v16547_v42  ;;  %2868 = vmatpush1.bf16.msra.mxu1 %v16548_v46  ;;  %v16568_v46 = vld [vmem:[#allocation11_spill] sm:$0xff] }
 0x2cd   :  { %2828 = vmatprep.subr.bf16.mxu0 %v16549_v50  ;;  %2869 = vmatprep.subr.bf16.mxu1 %v16550_v52  ;;  %v16561_v52 = vld [vmem:[#allocation91_spill] sm:$0xff]  ;;  %v16567_v50 = vld [vmem:[#allocation10_spill] sm:$0xff] }
 0x2d0   :  { %2829 = vmatpush1.bf16.msra.mxu0 %v16551_v55  ;;  %2870 = vmatpush1.bf16.msra.mxu1 %v16552_v60  ;;  %v16562_v55 = vld [vmem:[#allocation92_spill] sm:$0xff]  ;;  %v16563_v60 = vld [vmem:[#allocation93_spill] sm:$0xff] }
 0x2d1   :  { %2830 = vmatprep.subr.bf16.mxu0 %v16553_v20  ;;  %2871 = vmatprep.subr.bf16.mxu1 %v16554_v22  ;;  %v16564_v20 = vld [vmem:[#allocation94_spill] sm:$0xff]  ;;  %v16565_v22 = vld [vmem:[#allocation8_spill] sm:$0xff] }
 0x2d4   :  { %2831 = vmatpush1.bf16.msra.mxu0 %v16555_v62  ;;  %2872 = vmatpush1.bf16.msra.mxu1 %v16556_v47  ;;  %v16566_v62 = vld [vmem:[#allocation9_spill] sm:$0xff] }
 0x2d5   :  { %2832 = vmatprep.subr.bf16.mxu0 %v16557_v57  ;;  %2873 = vmatprep.subr.bf16.mxu1 %v16558_v27 }
 0x2d8   :  { %2833 = vmatpush1.bf16.msra.mxu0 %v16559_v6  ;;  %2874 = vmatpush1.bf16.msra.mxu1 %v16560_v13 }
 0x2d9   :  { %2834 = vmatprep.subr.bf16.mxu0 %v16561_v52  ;;  %2875 = vmatprep.subr.bf16.mxu1 %v16562_v55 }
 0x2dc   :  { %2835 = vmatpush1.bf16.msra.mxu0 %v16563_v60  ;;  %2876 = vmatpush1.bf16.msra.mxu1 %v16564_v20 }
 0x2dd   :  { %3322 = vmatprep.subr.bf16.mxu0 %v16565_v22  ;;  %3363 = vmatprep.subr.bf16.mxu1 %v16566_v62 }
 0x372   :  { %v2320_v47 = vpop.f32.mrb[40].mxu0  ;;  %v2361_v57 = vpop.f32.mrb[40].mxu1 }
 0x373   :  { %v2372_v27 = vadd.f32 %v16567_v50, %v2320_v47  ;;  %v2374_v6 = vadd.f32 %v16568_v46, %v2361_v57  ;;  %v2322_v42 = vpop.f32.mrb[41].mxu0  ;;  %v2363_v13 = vpop.f32.mrb[41].mxu1 }
 0x374   :  { %v2373_v52 = vadd.f32 %v16569_v40, %v2322_v42  ;;  %v2375_v55 = vadd.f32 %v16570_v35, %v2363_v13  ;;  %v2324_v5 = vpop.f32.mrb[42].mxu0  ;;  %v2365_v60 = vpop.f32.mrb[42].mxu1 }
 0x375   :  { %v9902_v32 = vmul.f32 -1.442695, %v2372_v27  ;;  %v2325_v20 = vpop.f32.mrb[43].mxu0  ;;  %v2366_v37 = vpop.f32.mrb[43].mxu1  ;;  %v9904_v62 = vmul.f32 -1.442695, %v2374_v6 }
 0x376   :  { %v9903_v22 = vmul.f32 -1.442695, %v2373_v52 }
 0x377   :  { %11654 = vpow2.f32 %v9902_v32 }
 0x378   :  { %11656 = vpow2.f32 %v9903_v22 }
 0x379   :  { %11658 = vtanh.f32 %v2375_v55 }
 0x37a   :  { %11660 = vpow2.f32 %v9904_v62 }
 0x381   :  { %v11655_v26 = vpop.eup %11654 }
 0x382   :  { %v2385_v30 = vadd.f32 1.0, %v11655_v26  ;;  %v11657_v47 = vpop.eup %11656  ;;  %v16571_v26 = vmov 0 }
 0x383   :  { %v2386_v57 = vadd.f32 1.0, %v11657_v47  ;;  %v11659_v40 = vpop.eup %11658  ;;  %v16572_v26 = vsel %vm13419_vm13, 4294967295, %v16571_v26 }
 0x384   :  { %11662 = vrcp.f32 %v2385_v30  ;;  %v11661_v42 = vpop.eup %11660  ;;  %16573 = vst [vmem:[#allocation69_spill] sm:$0xff] %v16572_v26  ;;  %v13896_v26 = vld [vmem:[%s16146_s3 + $0x1cc] ss:$16 sps:$4 sm:$0xff]  }
 0x385   :  { %11664 = vrcp.f32 %v2386_v57  ;;  %v2387_v37 = vadd.f32 1.0, %v11661_v42 }
 0x387   :  { %11666 = vrcp.f32 %v2387_v37 }
 0x38e   :  { %v11663_v13 = vpop.eup %11662 }
 0x38f   :  { %v2396_v5 = vmul.f32 %v11663_v13, %v11659_v40  ;;  %v11665_v27 = vpop.eup %11664 }
 0x390   :  { %v2395_v6 = vmul.f32 %v11665_v27, %v13318_v45 }
 0x391   :  { %v11667_v35 = vpop.eup %11666 }
 0x392   :  { %v2397_v32 = vadd.f32 %v2396_v5, %v2395_v6 }
 0x394   :  { %11668 = vtanh.f32 %v2397_v32  ;;  %v13426_v30 = vsel %vm13419_vm13, %v2397_v32, %v13318_v45 }
 0x39e   :  { %v11669_v46 = vpop.eup %11668 }
 0x39f   :  { %v2399_v50 = vmul.f32 %v11669_v46, %v11667_v35 }
 0x3a1   :  { %v13430_v52 = vsel %vm16437_vm2, 0.0, %v2399_v50  ;;  %v13434_v55 = vsel %vm16437_vm2, %v2399_v50, 0.0 }
 0x3a2   :  { %16574 = vst [vmem:[#allocation8_spill] sm:$0xff] %v13430_v52  ;;  %16575 = vst [vmem:[#allocation9_spill] sm:$0xff] %v13434_v55  ;;  %v13440_v60 = vsel %vm13419_vm13, %v13430_v52, %v13337_v1  ;;  %v13446_v45 = vsel %vm13419_vm13, %v13434_v55, %v13342_v2  ;;  %v16606_v2 = vld [vmem:[#allocation17_spill] sm:$0xff] }
 0x3a3   :  { %v2419_v20 = vpack.c.bf16 %v13440_v60, %v13440_v60  ;;  %v2418_v22 = vpack.c.bf16 %v13446_v45, %v13446_v45  ;;  %v13871_v55 = vld [vmem:[%s16146_s3 + $0x1ac] ss:$16 sps:$4 sm:$0xff]   ;;  %v13885_v52 = vld [vmem:[%s16146_s3 + $0x1a8] ss:$16 sps:$4 sm:$0xff]  }
 0x3a5   :  { %2836 = vmatprep.mubr.bf16.mxu0 %v2419_v20  ;;  %2877 = vmatprep.mubr.bf16.mxu1 %v2419_v20 }
 0x3a6   :  { %2837 = vmatmul.mubr.bf16.vlgmr.msra.gmra.mrb[44].mxu0 %v2418_v22  ;;  %2878 = vmatmul.mubr.bf16.vlgmr.msra.gmra.mrb[44].mxu1 %v2418_v22 }
 0x3a7   :  { %3323 = vmatpush1.bf16.msra.mxu0 %v12932_v51  ;;  %3364 = vmatpush1.bf16.msra.mxu1 %v12937_v29  ;;  %v16596_v51 = vld [vmem:[#allocation90_spill] sm:$0xff]  ;;  %v16597_v29 = vld [vmem:[#allocation91_spill] sm:$0xff] }
 0x3a8   :  { %3324 = vmatprep.subr.bf16.mxu0 %v12942_v23  ;;  %3365 = vmatprep.subr.bf16.mxu1 %v12947_v31  ;;  %v16598_v23 = vld [vmem:[#allocation92_spill] sm:$0xff]  ;;  %v16599_v31 = vld [vmem:[#allocation93_spill] sm:$0xff] }
 0x3ab   :  { %3325 = vmatpush1.bf16.msra.mxu0 %v12954_v39  ;;  %3366 = vmatpush1.bf16.msra.mxu1 %v12959_v41  ;;  %v16600_v39 = vld [vmem:[#allocation94_spill] sm:$0xff] }
 0x3ac   :  { %3326 = vmatprep.subr.bf16.mxu0 %v12966_v56  ;;  %3367 = vmatprep.subr.bf16.mxu1 %v12971_v63  ;;  %v13517_v41 = vld [vmem:[%s16146_s3 + $0x4] ss:$16 sps:$4 sm:$0xff]   ;;  %v13522_v56 = vld [vmem:[%s16146_s3 + $0xc] ss:$16 sps:$4 sm:$0xff]  }
 0x3ad   :  { %16601 = vst [vmem:[#allocation10_spill] sm:$0xff] %v13517_v41  ;;  %16602 = vst [vmem:[#allocation11_spill] sm:$0xff] %v13522_v56 }
 0x3af   :  { %3327 = vmatpush1.bf16.msra.mxu0 %v12978_v54  ;;  %3368 = vmatpush1.bf16.msra.mxu1 %v12983_v7  ;;  %v16603_v7 = vld [vmem:[#allocation14_spill] sm:$0xff] }
 0x3b0   :  { %3328 = vmatprep.subr.bf16.mxu0 %v12992_v15  ;;  %3369 = vmatprep.subr.bf16.mxu1 %v12997_v11  ;;  %v16604_v11 = vld [vmem:[#allocation15_spill] sm:$0xff] }
 0x3b3   :  { %3329 = vmatpush1.bf16.msra.mxu0 %v13002_v18  ;;  %3370 = vmatpush1.bf16.msra.mxu1 %v13007_v12 }
 0x3b4   :  { %3330 = vmatprep.subr.bf16.mxu0 %v13016_v16  ;;  %3371 = vmatprep.subr.bf16.mxu1 %v13021_v36  ;;  %v16605_v36 = vld [vmem:[#allocation16_spill] sm:$0xff] }
 0x3b7   :  { %3331 = vmatpush1.bf16.msra.mxu0 %v13026_v0  ;;  %3372 = vmatpush1.bf16.msra.mxu1 %v13031_v43  ;;  %v16594_v43 = vld [vmem:[#allocation88_spill] sm:$0xff]  ;;  %v16595_v0 = vld [vmem:[#allocation89_spill] sm:$0xff] }
 0x3b8   :  { %3332 = vmatprep.subr.bf16.mxu0 %v13040_v14  ;;  %3373 = vmatprep.subr.bf16.mxu1 %v13045_v61  ;;  %v16592_v61 = vld [vmem:[#allocation86_spill] sm:$0xff]  ;;  %v16593_v14 = vld [vmem:[#allocation87_spill] sm:$0xff]  ;;  %16630 = vst [vmem:[#allocation89_spill] sm:$0xff] %v13896_v26 }
 0x3b9   :  { %16628 = vst [vmem:[#allocation87_spill] sm:$0xff] %v13885_v52 }
 0x3bb   :  { %3333 = vmatpush1.bf16.msra.mxu0 %v13050_v58  ;;  %3374 = vmatpush1.bf16.msra.mxu1 %v13055_v53  ;;  %v16590_v53 = vld [vmem:[#allocation84_spill] sm:$0xff]  ;;  %v16591_v58 = vld [vmem:[#allocation85_spill] sm:$0xff] }
 0x3bc   :  { %3334 = vmatprep.subr.bf16.mxu0 %v13064_v48  ;;  %3375 = vmatprep.subr.bf16.mxu1 %v13069_v44  ;;  %v16588_v44 = vld [vmem:[#allocation81_spill] sm:$0xff]  ;;  %v16589_v48 = vld [vmem:[#allocation83_spill] sm:$0xff]  ;;  %16626 = vst [vmem:[#allocation85_spill] sm:$0xff] %v13871_v55 }
 0x3bf   :  { %3335 = vmatpush1.bf16.msra.mxu0 %v13074_v38  ;;  %3376 = vmatpush1.bf16.msra.mxu1 %v13079_v33  ;;  %v16586_v33 = vld [vmem:[#allocation82_spill] sm:$0xff]  ;;  %v16587_v38 = vld [vmem:[#allocation79_spill] sm:$0xff] }
 0x3c0   :  { %3336 = vmatprep.subr.bf16.mxu0 %v13088_v28  ;;  %3377 = vmatprep.subr.bf16.mxu1 %v13093_v21  ;;  %v16576_v28 = vld [vmem:[#allocation70_spill] sm:$0xff]  ;;  %v16577_v21 = vld [vmem:[#allocation71_spill] sm:$0xff] }
 0x3c3   :  { %3337 = vmatpush1.bf16.msra.mxu0 %v13098_v17  ;;  %3378 = vmatpush1.bf16.msra.mxu1 %v13103_v3  ;;  %v16578_v17 = vld [vmem:[#allocation72_spill] sm:$0xff]  ;;  %v16579_v3 = vld [vmem:[#allocation73_spill] sm:$0xff] }
 0x3c4   :  { %3338 = vmatprep.subr.bf16.mxu0 %v13112_v19  ;;  %3379 = vmatprep.subr.bf16.mxu1 %v13117_v59  ;;  %v16580_v19 = vld [vmem:[#allocation74_spill] sm:$0xff]  ;;  %v16581_v59 = vld [vmem:[#allocation75_spill] sm:$0xff] }
 0x3c7   :  { %3339 = vmatpush1.bf16.msra.mxu0 %v13122_v49  ;;  %3380 = vmatpush1.bf16.msra.mxu1 %v13127_v34  ;;  %v16582_v49 = vld [vmem:[#allocation76_spill] sm:$0xff]  ;;  %v16583_v34 = vld [vmem:[#allocation77_spill] sm:$0xff] }
 0x3c8   :  { %3340 = vmatprep.subr.bf16.mxu0 %v13136_v24  ;;  %3381 = vmatprep.subr.bf16.mxu1 %v13141_v4  ;;  %v16584_v24 = vld [vmem:[#allocation78_spill] sm:$0xff]  ;;  %v16585_v4 = vld [vmem:[#allocation80_spill] sm:$0xff] }
 0x3cb   :  { %3341 = vmatpush1.bf16.msra.mxu0 %v16539_v25  ;;  %3382 = vmatpush1.bf16.msra.mxu1 %v16576_v28 }
 0x3cc   :  { %3342 = vmatprep.subr.bf16.mxu0 %v16577_v21  ;;  %3383 = vmatprep.subr.bf16.mxu1 %v16578_v17  ;;  %v16607_v17 = vmov 0 }
 0x3cd   :  { %v16608_v17 = vsel %vm13533_vm0, 4294967295, %v16607_v17 }
 0x3ce   :  { %16609 = vst [vmem:[#allocation12_spill] sm:$0xff] %v16608_v17  ;;  %v13890_v17 = vld [vmem:[%s16146_s3 + $0x1c4] ss:$16 sps:$4 sm:$0xff]  }
 0x3cf   :  { %3343 = vmatpush1.bf16.msra.mxu0 %v16579_v3  ;;  %3384 = vmatpush1.bf16.msra.mxu1 %v16580_v19  ;;  %16629 = vst [vmem:[#allocation88_spill] sm:$0xff] %v13890_v17 }
 0x3d0   :  { %3344 = vmatprep.subr.bf16.mxu0 %v16581_v59  ;;  %3385 = vmatprep.subr.bf16.mxu1 %v16582_v49 }
 0x3d3   :  { %3345 = vmatpush1.bf16.msra.mxu0 %v16583_v34  ;;  %3386 = vmatpush1.bf16.msra.mxu1 %v16584_v24 }
 0x3d4   :  { %3346 = vmatprep.subr.bf16.mxu0 %v16585_v4  ;;  %3387 = vmatprep.subr.bf16.mxu1 %v16586_v33 }
 0x3d7   :  { %3347 = vmatpush1.bf16.msra.mxu0 %v16587_v38  ;;  %3388 = vmatpush1.bf16.msra.mxu1 %v16588_v44 }
 0x3d8   :  { %3348 = vmatprep.subr.bf16.mxu0 %v16589_v48  ;;  %3389 = vmatprep.subr.bf16.mxu1 %v16590_v53  ;;  %v13569_v48 = vld [vmem:[%s16146_s3] ss:$16 sps:$4 sm:$0xff]   ;;  %v13584_v53 = vld [vmem:[%s16146_s3 + $0x2c] ss:$16 sps:$4 sm:$0xff]  }
 0x3db   :  { %3349 = vmatpush1.bf16.msra.mxu0 %v16591_v58  ;;  %3390 = vmatpush1.bf16.msra.mxu1 %v16592_v61  ;;  %v13591_v58 = vld [vmem:[%s16146_s3 + $0x20] ss:$16 sps:$4 sm:$0xff]   ;;  %v13596_v61 = vld [vmem:[%s16146_s3 + $0x28] ss:$16 sps:$4 sm:$0xff]  }
 0x3dc   :  { %3350 = vmatprep.subr.bf16.mxu0 %v16593_v14  ;;  %3391 = vmatprep.subr.bf16.mxu1 %v16594_v43  ;;  %v13603_v14 = vld [vmem:[%s16146_s3 + $0x44] ss:$16 sps:$4 sm:$0xff]   ;;  %v13608_v43 = vld [vmem:[%s16146_s3 + $0x4c] ss:$16 sps:$4 sm:$0xff]  }
 0x3df   :  { %3351 = vmatpush1.bf16.msra.mxu0 %v16595_v0  ;;  %3392 = vmatpush1.bf16.msra.mxu1 %v16596_v51  ;;  %v13615_v0 = vld [vmem:[%s16146_s3 + $0x40] ss:$16 sps:$4 sm:$0xff]   ;;  %v13620_v51 = vld [vmem:[%s16146_s3 + $0x48] ss:$16 sps:$4 sm:$0xff]  }
 0x3e0   :  { %3352 = vmatprep.subr.bf16.mxu0 %v16597_v29  ;;  %3393 = vmatprep.subr.bf16.mxu1 %v16598_v23  ;;  %v13629_v29 = vld [vmem:[%s16146_s3 + $0x64] ss:$16 sps:$4 sm:$0xff]   ;;  %v13634_v23 = vld [vmem:[%s16146_s3 + $0x6c] ss:$16 sps:$4 sm:$0xff]  }
 0x3e3   :  { %3353 = vmatpush1.bf16.msra.mxu0 %v16599_v31  ;;  %3394 = vmatpush1.bf16.msra.mxu1 %v16600_v39  ;;  %v13639_v31 = vld [vmem:[%s16146_s3 + $0x60] ss:$16 sps:$4 sm:$0xff]   ;;  %v13644_v39 = vld [vmem:[%s16146_s3 + $0x68] ss:$16 sps:$4 sm:$0xff]  }
 0x3e4   :  { %3840 = vmatprep.subr.bf16.mxu0 %v13517_v41  ;;  %3881 = vmatprep.subr.bf16.mxu1 %v13522_v56 }
 0x479   :  { %v2838_v63 = vpop.f32.mrb[44].mxu0  ;;  %v2879_v54 = vpop.f32.mrb[44].mxu1 }
 0x47a   :  { %v2890_v15 = vadd.f32 %v16603_v7, %v2838_v63  ;;  %v2892_v18 = vadd.f32 %v16604_v11, %v2879_v54  ;;  %v2840_v12 = vpop.f32.mrb[45].mxu0  ;;  %v2881_v16 = vpop.f32.mrb[45].mxu1  ;;  %v13653_v63 = vld [vmem:[%s16146_s3 + $0x84] ss:$16 sps:$4 sm:$0xff]   ;;  %v13658_v54 = vld [vmem:[%s16146_s3 + $0x8c] ss:$16 sps:$4 sm:$0xff]  }
 0x47b   :  { %v2891_v1 = vadd.f32 %v16605_v36, %v2840_v12  ;;  %v2893_v25 = vadd.f32 %v16606_v2, %v2881_v16  ;;  %v2842_v62 = vpop.f32.mrb[46].mxu0  ;;  %v2883_v47 = vpop.f32.mrb[46].mxu1  ;;  %v13663_v7 = vld [vmem:[%s16146_s3 + $0x80] ss:$16 sps:$4 sm:$0xff]   ;;  %v13677_v11 = vld [vmem:[%s16146_s3 + $0xa4] ss:$16 sps:$4 sm:$0xff]  }
 0x47c   :  { %v9969_v57 = vmul.f32 -1.442695, %v2890_v15  ;;  %v2843_v40 = vpop.f32.mrb[47].mxu0  ;;  %v2884_v42 = vpop.f32.mrb[47].mxu1  ;;  %v9971_v5 = vmul.f32 -1.442695, %v2892_v18 }
 0x47d   :  { %v9970_v13 = vmul.f32 -1.442695, %v2891_v1  ;;  %v13668_v15 = vld [vmem:[%s16146_s3 + $0x88] ss:$16 sps:$4 sm:$0xff]   ;;  %v13682_v18 = vld [vmem:[%s16146_s3 + $0xac] ss:$16 sps:$4 sm:$0xff]  }
 0x47e   :  { %11670 = vpow2.f32 %v9969_v57  ;;  %v13687_v12 = vld [vmem:[%s16146_s3 + $0xa0] ss:$16 sps:$4 sm:$0xff]   ;;  %v13692_v16 = vld [vmem:[%s16146_s3 + $0xa8] ss:$16 sps:$4 sm:$0xff]   ;;  %v13701_v36 = vld [vmem:[%s16146_s3 + $0xc4] ss:$16 sps:$4 sm:$0xff]  }
 0x47f   :  { %11672 = vpow2.f32 %v9970_v13  ;;  %v13706_v1 = vld [vmem:[%s16146_s3 + $0xcc] ss:$16 sps:$4 sm:$0xff]   ;;  %v13711_v2 = vld [vmem:[%s16146_s3 + $0xc0] ss:$16 sps:$4 sm:$0xff]   ;;  %v13725_v62 = vld [vmem:[%s16146_s3 + $0xe4] ss:$16 sps:$4 sm:$0xff]  }
 0x480   :  { %11674 = vtanh.f32 %v2893_v25  ;;  %v13716_v25 = vld [vmem:[%s16146_s3 + $0xc8] ss:$16 sps:$4 sm:$0xff]   ;;  %v13730_v47 = vld [vmem:[%s16146_s3 + $0xec] ss:$16 sps:$4 sm:$0xff]   ;;  %v13735_v57 = vld [vmem:[%s16146_s3 + $0xe0] ss:$16 sps:$4 sm:$0xff]  }
 0x481   :  { %11676 = vpow2.f32 %v9971_v5  ;;  %v13740_v40 = vld [vmem:[%s16146_s3 + $0xe8] ss:$16 sps:$4 sm:$0xff]   ;;  %v13749_v42 = vld [vmem:[%s16146_s3 + $0x104] ss:$16 sps:$4 sm:$0xff]   ;;  %v13754_v13 = vld [vmem:[%s16146_s3 + $0x10c] ss:$16 sps:$4 sm:$0xff]  }
 0x482   :  { %v13759_v5 = vld [vmem:[%s16146_s3 + $0x100] ss:$16 sps:$4 sm:$0xff]  }
 0x488   :  { %v11671_v27 = vpop.eup %11670 }
 0x489   :  { %v2903_v37 = vadd.f32 1.0, %v11671_v27  ;;  %v11673_v6 = vpop.eup %11672  ;;  %v13764_v27 = vld [vmem:[%s16146_s3 + $0x108] ss:$16 sps:$4 sm:$0xff]  }
 0x48a   :  { %v2904_v32 = vadd.f32 1.0, %v11673_v6  ;;  %v11675_v35 = vpop.eup %11674  ;;  %v13778_v6 = vld [vmem:[%s16146_s3 + $0x12c] ss:$16 sps:$4 sm:$0xff]  }
 0x48b   :  { %11678 = vrcp.f32 %v2903_v37  ;;  %v11677_v46 = vpop.eup %11676  ;;  %v13773_v37 = vld [vmem:[%s16146_s3 + $0x124] ss:$16 sps:$4 sm:$0xff]  }
 0x48c   :  { %11680 = vrcp.f32 %v2904_v32  ;;  %v2905_v28 = vadd.f32 1.0, %v11677_v46  ;;  %v13783_v32 = vld [vmem:[%s16146_s3 + $0x120] ss:$16 sps:$4 sm:$0xff]   ;;  %v13797_v46 = vld [vmem:[%s16146_s3 + $0x144] ss:$16 sps:$4 sm:$0xff]  }
 0x48d   :  { %16613 = vst [vmem:[#allocation72_spill] sm:$0xff] %v13797_v46 }
 0x48e   :  { %11682 = vrcp.f32 %v2905_v28  ;;  %v13821_v28 = vld [vmem:[%s16146_s3 + $0x164] ss:$16 sps:$4 sm:$0xff]  }
 0x48f   :  { %16617 = vst [vmem:[#allocation76_spill] sm:$0xff] %v13821_v28 }
 0x495   :  { %v11679_v50 = vpop.eup %11678 }
 0x496   :  { %v2914_v20 = vmul.f32 %v11679_v50, %v11675_v35  ;;  %v11681_v22 = vpop.eup %11680  ;;  %v13788_v35 = vld [vmem:[%s16146_s3 + $0x128] ss:$16 sps:$4 sm:$0xff]   ;;  %v13802_v50 = vld [vmem:[%s16146_s3 + $0x14c] ss:$16 sps:$4 sm:$0xff]  }
 0x497   :  { %v2913_v21 = vmul.f32 %v11681_v22, %v13426_v30  ;;  %16612 = vst [vmem:[#allocation71_spill] sm:$0xff] %v13788_v35  ;;  %16614 = vst [vmem:[#allocation73_spill] sm:$0xff] %v13802_v50  ;;  %v13812_v22 = vld [vmem:[%s16146_s3 + $0x148] ss:$16 sps:$4 sm:$0xff]  }
 0x498   :  { %v11683_v59 = vpop.eup %11682  ;;  %16616 = vst [vmem:[#allocation75_spill] sm:$0xff] %v13812_v22 }
 0x499   :  { %v2915_v3 = vadd.f32 %v2914_v20, %v2913_v21  ;;  %v13807_v20 = vld [vmem:[%s16146_s3 + $0x140] ss:$16 sps:$4 sm:$0xff]   ;;  %v13826_v21 = vld [vmem:[%s16146_s3 + $0x16c] ss:$16 sps:$4 sm:$0xff]  }
 0x49a   :  { %16615 = vst [vmem:[#allocation74_spill] sm:$0xff] %v13807_v20  ;;  %16618 = vst [vmem:[#allocation77_spill] sm:$0xff] %v13826_v21 }
 0x49b   :  { %11684 = vtanh.f32 %v2915_v3  ;;  %v13540_v19 = vsel %vm13533_vm0, %v2915_v3, %v13426_v30  ;;  %v13831_v3 = vld [vmem:[%s16146_s3 + $0x160] ss:$16 sps:$4 sm:$0xff]  }
 0x49c   :  { %16619 = vst [vmem:[#allocation78_spill] sm:$0xff] %v13831_v3 }
 0x4a5   :  { %v11685_v49 = vpop.eup %11684 }
 0x4a6   :  { %v2917_v34 = vmul.f32 %v11685_v49, %v11683_v59  ;;  %v13836_v59 = vld [vmem:[%s16146_s3 + $0x168] ss:$16 sps:$4 sm:$0xff]   ;;  %v13845_v49 = vld [vmem:[%s16146_s3 + $0x180] ss:$16 sps:$4 sm:$0xff]  }
 0x4a7   :  { %16620 = vst [vmem:[#allocation80_spill] sm:$0xff] %v13836_v59  ;;  %16621 = vst [vmem:[#allocation82_spill] sm:$0xff] %v13845_v49 }
 0x4a8   :  { %v13544_v24 = vsel %vm16437_vm2, 0.0, %v2917_v34  ;;  %v13548_v4 = vsel %vm16437_vm2, %v2917_v34, 0.0  ;;  %v13850_v34 = vld [vmem:[%s16146_s3 + $0x184] ss:$16 sps:$4 sm:$0xff]  }
 0x4a9   :  { %16610 = vst [vmem:[#allocation13_spill] sm:$0xff] %v13544_v24  ;;  %16611 = vst [vmem:[#allocation70_spill] sm:$0xff] %v13548_v4  ;;  %v13554_v33 = vsel %vm13533_vm0, %v13544_v24, %v13440_v60  ;;  %v13560_v30 = vsel %vm13533_vm0, %v13548_v4, %v13446_v45  ;;  %v13574_v60 = vld [vmem:[%s16146_s3 + $0x8] ss:$16 sps:$4 sm:$0xff]   ;;  %v13579_v45 = vld [vmem:[%s16146_s3 + $0x24] ss:$16 sps:$4 sm:$0xff]  }
 0x4aa   :  { %v2937_v38 = vpack.c.bf16 %v13554_v33, %v13554_v33  ;;  %v2936_v44 = vpack.c.bf16 %v13560_v30, %v13560_v30  ;;  %16622 = vst [vmem:[#allocation79_spill] sm:$0xff] %v13850_v34  ;;  %v13865_v4 = vld [vmem:[%s16146_s3 + $0x1a4] ss:$16 sps:$4 sm:$0xff]   ;;  %v13878_v24 = vld [vmem:[%s16146_s3 + $0x1a0] ss:$16 sps:$4 sm:$0xff]  }
 0x4ab   :  { %16625 = vst [vmem:[#allocation84_spill] sm:$0xff] %v13865_v4  ;;  %16627 = vst [vmem:[#allocation86_spill] sm:$0xff] %v13878_v24 }
 0x4ac   :  { %3354 = vmatprep.mubr.bf16.mxu0 %v2937_v38  ;;  %3395 = vmatprep.mubr.bf16.mxu1 %v2937_v38  ;;  %v13855_v38 = vld [vmem:[%s16146_s3 + $0x188] ss:$16 sps:$4 sm:$0xff]  }
 0x4ad   :  { %3355 = vmatmul.mubr.bf16.vlgmr.msra.gmra.mrb[48].mxu0 %v2936_v44  ;;  %3396 = vmatmul.mubr.bf16.vlgmr.msra.gmra.mrb[48].mxu1 %v2936_v44  ;;  %16623 = vst [vmem:[#allocation81_spill] sm:$0xff] %v13855_v38  ;;  %v13860_v44 = vld [vmem:[%s16146_s3 + $0x18c] ss:$16 sps:$4 sm:$0xff]  }
 0x4ae   :  { %3841 = vmatpush1.bf16.msra.mxu0 %v13569_v48  ;;  %3882 = vmatpush1.bf16.msra.mxu1 %v13574_v60  ;;  %16624 = vst [vmem:[#allocation83_spill] sm:$0xff] %v13860_v44 }
 0x4af   :  { %3842 = vmatprep.subr.bf16.mxu0 %v13579_v45  ;;  %3883 = vmatprep.subr.bf16.mxu1 %v13584_v53 }
 0x4b2   :  { %3843 = vmatpush1.bf16.msra.mxu0 %v13591_v58  ;;  %3884 = vmatpush1.bf16.msra.mxu1 %v13596_v61 }
 0x4b3   :  { %3844 = vmatprep.subr.bf16.mxu0 %v13603_v14  ;;  %3885 = vmatprep.subr.bf16.mxu1 %v13608_v43 }
 0x4b6   :  { %3845 = vmatpush1.bf16.msra.mxu0 %v13615_v0  ;;  %3886 = vmatpush1.bf16.msra.mxu1 %v13620_v51 }
 0x4b7   :  { %3846 = vmatprep.subr.bf16.mxu0 %v13629_v29  ;;  %3887 = vmatprep.subr.bf16.mxu1 %v13634_v23 }
 0x4ba   :  { %3847 = vmatpush1.bf16.msra.mxu0 %v13639_v31  ;;  %3888 = vmatpush1.bf16.msra.mxu1 %v13644_v39 }
 0x4bb   :  { %3848 = vmatprep.subr.bf16.mxu0 %v13653_v63  ;;  %3889 = vmatprep.subr.bf16.mxu1 %v13658_v54 }
 0x4be   :  { %3849 = vmatpush1.bf16.msra.mxu0 %v13663_v7  ;;  %3890 = vmatpush1.bf16.msra.mxu1 %v13668_v15 }
 0x4bf   :  { %3850 = vmatprep.subr.bf16.mxu0 %v13677_v11  ;;  %3891 = vmatprep.subr.bf16.mxu1 %v13682_v18 }
 0x4c2   :  { %3851 = vmatpush1.bf16.msra.mxu0 %v13687_v12  ;;  %3892 = vmatpush1.bf16.msra.mxu1 %v13692_v16 }
 0x4c3   :  { %3852 = vmatprep.subr.bf16.mxu0 %v13701_v36  ;;  %3893 = vmatprep.subr.bf16.mxu1 %v13706_v1 }
 0x4c6   :  { %3853 = vmatpush1.bf16.msra.mxu0 %v13711_v2  ;;  %3894 = vmatpush1.bf16.msra.mxu1 %v13716_v25 }
 0x4c7   :  { %3854 = vmatprep.subr.bf16.mxu0 %v13725_v62  ;;  %3895 = vmatprep.subr.bf16.mxu1 %v13730_v47 }
 0x4ca   :  { %3855 = vmatpush1.bf16.msra.mxu0 %v13735_v57  ;;  %3896 = vmatpush1.bf16.msra.mxu1 %v13740_v40 }
 0x4cb   :  { %3856 = vmatprep.subr.bf16.mxu0 %v13749_v42  ;;  %3897 = vmatprep.subr.bf16.mxu1 %v13754_v13 }
 0x4ce   :  { %3857 = vmatpush1.bf16.msra.mxu0 %v13759_v5  ;;  %3898 = vmatpush1.bf16.msra.mxu1 %v13764_v27 }
 0x4cf   :  { %3858 = vmatprep.subr.bf16.mxu0 %v13773_v37  ;;  %3899 = vmatprep.subr.bf16.mxu1 %v13778_v6 }
 0x4d2   :  { %3859 = vmatpush1.bf16.msra.mxu0 %v13783_v32  ;;  %3900 = vmatpush1.bf16.msra.mxu1 %v13788_v35 }
 0x4d3   :  { %3860 = vmatprep.subr.bf16.mxu0 %v13797_v46  ;;  %3901 = vmatprep.subr.bf16.mxu1 %v13802_v50 }
 0x4d6   :  { %3861 = vmatpush1.bf16.msra.mxu0 %v13807_v20  ;;  %3902 = vmatpush1.bf16.msra.mxu1 %v13812_v22 }
 0x4d7   :  { %3862 = vmatprep.subr.bf16.mxu0 %v13821_v28  ;;  %3903 = vmatprep.subr.bf16.mxu1 %v13826_v21  ;;  %v16640_v28 = vld [vmem:[#allocation21_spill] sm:$0xff] }
 0x4da   :  { %3863 = vmatpush1.bf16.msra.mxu0 %v13831_v3  ;;  %3904 = vmatpush1.bf16.msra.mxu1 %v13836_v59  ;;  %v16639_v3 = vld [vmem:[#allocation20_spill] sm:$0xff] }
 0x4db   :  { %3864 = vmatprep.subr.bf16.mxu0 %v13850_v34  ;;  %3905 = vmatprep.subr.bf16.mxu1 %v13860_v44 }
 0x4de   :  { %3865 = vmatpush1.bf16.msra.mxu0 %v13845_v49  ;;  %3906 = vmatpush1.bf16.msra.mxu1 %v13855_v38  ;;  %v13914_v38 = vld [vmem:[%s16146_s3 + $0x1e4] ss:$16 sps:$4 sm:$0xff]  }
 0x4df   :  { %3866 = vmatprep.subr.bf16.mxu0 %v13865_v4  ;;  %3907 = vmatprep.subr.bf16.mxu1 %v13871_v55  ;;  %v13902_v4 = vld [vmem:[%s16146_s3 + $0x1c0] ss:$16 sps:$4 sm:$0xff]   ;;  %v13909_v55 = vld [vmem:[%s16146_s3 + $0x1c8] ss:$16 sps:$4 sm:$0xff]   ;;  %16633 = vst [vmem:[#allocation92_spill] sm:$0xff] %v13914_v38 }
 0x4e0   :  { %16631 = vst [vmem:[#allocation90_spill] sm:$0xff] %v13902_v4  ;;  %16632 = vst [vmem:[#allocation91_spill] sm:$0xff] %v13909_v55 }
 0x4e2   :  { %3867 = vmatpush1.bf16.msra.mxu0 %v13878_v24  ;;  %3908 = vmatpush1.bf16.msra.mxu1 %v13885_v52  ;;  %v13920_v24 = vld [vmem:[%s16146_s3 + $0x1ec] ss:$16 sps:$4 sm:$0xff]  }
 0x4e3   :  { %3868 = vmatprep.subr.bf16.mxu0 %v13890_v17  ;;  %3909 = vmatprep.subr.bf16.mxu1 %v13896_v26  ;;  %16634 = vst [vmem:[#allocation93_spill] sm:$0xff] %v13920_v24  ;;  %v13926_v17 = vld [vmem:[%s16146_s3 + $0x1e0] ss:$16 sps:$4 sm:$0xff]   ;;  %v13933_v26 = vld [vmem:[%s16146_s3 + $0x1e8] ss:$16 sps:$4 sm:$0xff]  }
 0x4e4   :  { %16635 = vst [vmem:[#allocation94_spill] sm:$0xff] %v13926_v17  ;;  %16636 = vst [vmem:[#allocation14_spill] sm:$0xff] %v13933_v26 }
 0x4e6   :  { %3869 = vmatpush1.bf16.msra.mxu0 %v13902_v4  ;;  %3910 = vmatpush1.bf16.msra.mxu1 %v13909_v55  ;;  %v16637_v55 = vld [vmem:[#allocation18_spill] sm:$0xff] }
 0x4e7   :  { %3870 = vmatprep.subr.bf16.mxu0 %v13914_v38  ;;  %3911 = vmatprep.subr.bf16.mxu1 %v13920_v24  ;;  %v16638_v38 = vld [vmem:[#allocation19_spill] sm:$0xff] }
 0x4ea   :  { %3871 = vmatpush1.bf16.msra.mxu0 %v13926_v17  ;;  %3912 = vmatpush1.bf16.msra.mxu1 %v13933_v26 }
 0x4eb   :  { %4358 = vmatprep.subr.bf16.mxu0 %v13517_v41  ;;  %4399 = vmatprep.subr.bf16.mxu1 %v13522_v56 }
 0x580   :  { %v3356_v4 = vpop.f32.mrb[48].mxu0  ;;  %v3397_v52 = vpop.f32.mrb[48].mxu1 }
 0x581   :  { %v3408_v49 = vadd.f32 %v16637_v55, %v3356_v4  ;;  %v3410_v44 = vadd.f32 %v16638_v38, %v3397_v52  ;;  %v3358_v34 = vpop.f32.mrb[49].mxu0  ;;  %v3399_v59 = vpop.f32.mrb[49].mxu1 }
 0x582   :  { %v3409_v21 = vadd.f32 %v16639_v3, %v3358_v34  ;;  %v3411_v24 = vadd.f32 %v16640_v28, %v3399_v59  ;;  %v3360_v22 = vpop.f32.mrb[50].mxu0  ;;  %v3401_v17 = vpop.f32.mrb[50].mxu1 }
 0x583   :  { %v10036_v20 = vmul.f32 -1.442695, %v3408_v49  ;;  %v3361_v26 = vpop.f32.mrb[51].mxu0  ;;  %v3402_v50 = vpop.f32.mrb[51].mxu1  ;;  %v10038_v56 = vmul.f32 -1.442695, %v3410_v44 }
 0x584   :  { %v10037_v41 = vmul.f32 -1.442695, %v3409_v21  ;;  %v16648_v44 = vld [vmem:[#allocation73_spill] sm:$0xff] }
 0x585   :  { %11686 = vpow2.f32 %v10036_v20 }
 0x586   :  { %11688 = vpow2.f32 %v10037_v41 }
 0x587   :  { %11690 = vtanh.f32 %v3411_v24 }
 0x588   :  { %11692 = vpow2.f32 %v10038_v56 }
 0x58f   :  { %v11687_v46 = vpop.eup %11686 }
 0x590   :  { %v3421_v35 = vadd.f32 1.0, %v11687_v46  ;;  %v11689_v55 = vpop.eup %11688  ;;  %v16641_v46 = vmov 0 }
 0x591   :  { %v3422_v52 = vadd.f32 1.0, %v11689_v55  ;;  %v11691_v4 = vpop.eup %11690  ;;  %v16642_v46 = vsel %vm13947_vm4, 4294967295, %v16641_v46  ;;  %v16649_v55 = vld [vmem:[#allocation74_spill] sm:$0xff] }
 0x592   :  { %11694 = vrcp.f32 %v3421_v35  ;;  %v11693_v3 = vpop.eup %11692  ;;  %16643 = vst [vmem:[#allocation15_spill] sm:$0xff] %v16642_v46  ;;  %v16666_v46 = vld [vmem:[#allocation91_spill] sm:$0xff] }
 0x593   :  { %11696 = vrcp.f32 %v3422_v52  ;;  %v3423_v17 = vadd.f32 1.0, %v11693_v3  ;;  %v16650_v52 = vld [vmem:[#allocation75_spill] sm:$0xff]  ;;  %v16652_v3 = vld [vmem:[#allocation77_spill] sm:$0xff] }
 0x595   :  { %11698 = vrcp.f32 %v3423_v17  ;;  %v16656_v17 = vld [vmem:[#allocation83_spill] sm:$0xff] }
 0x59c   :  { %v11695_v28 = vpop.eup %11694 }
 0x59d   :  { %v3432_v22 = vmul.f32 %v11695_v28, %v11691_v4  ;;  %v11697_v26 = vpop.eup %11696  ;;  %v16651_v4 = vld [vmem:[#allocation76_spill] sm:$0xff]  ;;  %v16653_v28 = vld [vmem:[#allocation78_spill] sm:$0xff] }
 0x59e   :  { %v3431_v41 = vmul.f32 %v11697_v26, %v13540_v19  ;;  %v16655_v26 = vld [vmem:[#allocation79_spill] sm:$0xff] }
 0x59f   :  { %v11699_v35 = vpop.eup %11698 }
 0x5a0   :  { %v3433_v56 = vadd.f32 %v3432_v22, %v3431_v41  ;;  %v16654_v22 = vld [vmem:[#allocation80_spill] sm:$0xff]  ;;  %v16657_v41 = vld [vmem:[#allocation82_spill] sm:$0xff] }
 0x5a2   :  { %11700 = vtanh.f32 %v3433_v56  ;;  %v13954_v24 = vsel %vm13947_vm4, %v3433_v56, %v13540_v19  ;;  %v16658_v56 = vld [vmem:[#allocation81_spill] sm:$0xff] }
 0x5ac   :  { %v11701_v50 = vpop.eup %11700 }
 0x5ad   :  { %v3435_v20 = vmul.f32 %v11701_v50, %v11699_v35  ;;  %v16659_v35 = vld [vmem:[#allocation84_spill] sm:$0xff]  ;;  %v16660_v50 = vld [vmem:[#allocation85_spill] sm:$0xff] }
 0x5af   :  { %v13958_v21 = vsel %vm16437_vm2, 0.0, %v3435_v20  ;;  %v13962_v59 = vsel %vm16437_vm2, %v3435_v20, 0.0  ;;  %v16661_v20 = vld [vmem:[#allocation86_spill] sm:$0xff] }
 0x5b0   :  { %16644 = vst [vmem:[#allocation16_spill] sm:$0xff] %v13958_v21  ;;  %16645 = vst [vmem:[#allocation17_spill] sm:$0xff] %v13962_v59  ;;  %v13968_v49 = vsel %vm13947_vm4, %v13958_v21, %v13554_v33  ;;  %v13974_v19 = vsel %vm13947_vm4, %v13962_v59, %v13560_v30  ;;  %v16646_v33 = vld [vmem:[#allocation71_spill] sm:$0xff]  ;;  %v16647_v30 = vld [vmem:[#allocation72_spill] sm:$0xff] }
 0x5b1   :  { %v3455_v34 = vpack.c.bf16 %v13968_v49, %v13968_v49  ;;  %v3454_v38 = vpack.c.bf16 %v13974_v19, %v13974_v19  ;;  %v16664_v59 = vld [vmem:[#allocation89_spill] sm:$0xff]  ;;  %v16665_v21 = vld [vmem:[#allocation90_spill] sm:$0xff] }
 0x5b3   :  { %3872 = vmatprep.mubr.bf16.mxu0 %v3455_v34  ;;  %3913 = vmatprep.mubr.bf16.mxu1 %v3455_v34  ;;  %v16662_v34 = vld [vmem:[#allocation87_spill] sm:$0xff] }
 0x5b4   :  { %3873 = vmatmul.mubr.bf16.vlgmr.msra.gmra.mrb[52].mxu0 %v3454_v38  ;;  %3914 = vmatmul.mubr.bf16.vlgmr.msra.gmra.mrb[52].mxu1 %v3454_v38  ;;  %v16663_v38 = vld [vmem:[#allocation88_spill] sm:$0xff] }
 0x5b5   :  { %4359 = vmatpush1.bf16.msra.mxu0 %v13569_v48  ;;  %4400 = vmatpush1.bf16.msra.mxu1 %v13574_v60 }
 0x5b6   :  { %4360 = vmatprep.subr.bf16.mxu0 %v13579_v45  ;;  %4401 = vmatprep.subr.bf16.mxu1 %v13584_v53 }
 0x5b9   :  { %4361 = vmatpush1.bf16.msra.mxu0 %v13591_v58  ;;  %4402 = vmatpush1.bf16.msra.mxu1 %v13596_v61 }
 0x5ba   :  { %4362 = vmatprep.subr.bf16.mxu0 %v13603_v14  ;;  %4403 = vmatprep.subr.bf16.mxu1 %v13608_v43 }
 0x5bd   :  { %4363 = vmatpush1.bf16.msra.mxu0 %v13615_v0  ;;  %4404 = vmatpush1.bf16.msra.mxu1 %v13620_v51 }
 0x5be   :  { %4364 = vmatprep.subr.bf16.mxu0 %v13629_v29  ;;  %4405 = vmatprep.subr.bf16.mxu1 %v13634_v23 }
 0x5c1   :  { %4365 = vmatpush1.bf16.msra.mxu0 %v13639_v31  ;;  %4406 = vmatpush1.bf16.msra.mxu1 %v13644_v39 }
 0x5c2   :  { %4366 = vmatprep.subr.bf16.mxu0 %v13653_v63  ;;  %4407 = vmatprep.subr.bf16.mxu1 %v13658_v54 }
 0x5c5   :  { %4367 = vmatpush1.bf16.msra.mxu0 %v13663_v7  ;;  %4408 = vmatpush1.bf16.msra.mxu1 %v13668_v15 }
 0x5c6   :  { %4368 = vmatprep.subr.bf16.mxu0 %v13677_v11  ;;  %4409 = vmatprep.subr.bf16.mxu1 %v13682_v18 }
 0x5c9   :  { %4369 = vmatpush1.bf16.msra.mxu0 %v13687_v12  ;;  %4410 = vmatpush1.bf16.msra.mxu1 %v13692_v16 }
 0x5ca   :  { %4370 = vmatprep.subr.bf16.mxu0 %v13701_v36  ;;  %4411 = vmatprep.subr.bf16.mxu1 %v13706_v1 }
 0x5cd   :  { %4371 = vmatpush1.bf16.msra.mxu0 %v13711_v2  ;;  %4412 = vmatpush1.bf16.msra.mxu1 %v13716_v25 }
 0x5ce   :  { %4372 = vmatprep.subr.bf16.mxu0 %v13725_v62  ;;  %4413 = vmatprep.subr.bf16.mxu1 %v13730_v47 }
 0x5d1   :  { %4373 = vmatpush1.bf16.msra.mxu0 %v13735_v57  ;;  %4414 = vmatpush1.bf16.msra.mxu1 %v13740_v40 }
 0x5d2   :  { %4374 = vmatprep.subr.bf16.mxu0 %v13749_v42  ;;  %4415 = vmatprep.subr.bf16.mxu1 %v13754_v13 }
 0x5d5   :  { %4375 = vmatpush1.bf16.msra.mxu0 %v13759_v5  ;;  %4416 = vmatpush1.bf16.msra.mxu1 %v13764_v27 }
 0x5d6   :  { %4376 = vmatprep.subr.bf16.mxu0 %v13773_v37  ;;  %4417 = vmatprep.subr.bf16.mxu1 %v13778_v6 }
 0x5d9   :  { %4377 = vmatpush1.bf16.msra.mxu0 %v13783_v32  ;;  %4418 = vmatpush1.bf16.msra.mxu1 %v16646_v33 }
 0x5da   :  { %4378 = vmatprep.subr.bf16.mxu0 %v16647_v30  ;;  %4419 = vmatprep.subr.bf16.mxu1 %v16648_v44 }
 0x5dd   :  { %4379 = vmatpush1.bf16.msra.mxu0 %v16649_v55  ;;  %4420 = vmatpush1.bf16.msra.mxu1 %v16650_v52 }
 0x5de   :  { %4380 = vmatprep.subr.bf16.mxu0 %v16651_v4  ;;  %4421 = vmatprep.subr.bf16.mxu1 %v16652_v3  ;;  %v16675_v3 = vld [vmem:[#allocation24_spill] sm:$0xff]  ;;  %v16676_v4 = vld [vmem:[#allocation25_spill] sm:$0xff] }
 0x5e1   :  { %4381 = vmatpush1.bf16.msra.mxu0 %v16653_v28  ;;  %4422 = vmatpush1.bf16.msra.mxu1 %v16654_v22  ;;  %v16674_v22 = vld [vmem:[#allocation23_spill] sm:$0xff] }
 0x5e2   :  { %4382 = vmatprep.subr.bf16.mxu0 %v16655_v26  ;;  %4423 = vmatprep.subr.bf16.mxu1 %v16656_v17  ;;  %v16667_v17 = vld [vmem:[#allocation92_spill] sm:$0xff]  ;;  %v16673_v26 = vld [vmem:[#allocation22_spill] sm:$0xff] }
 0x5e5   :  { %4383 = vmatpush1.bf16.msra.mxu0 %v16657_v41  ;;  %4424 = vmatpush1.bf16.msra.mxu1 %v16658_v56  ;;  %v16668_v41 = vld [vmem:[#allocation93_spill] sm:$0xff]  ;;  %v16669_v56 = vld [vmem:[#allocation94_spill] sm:$0xff] }
 0x5e6   :  { %4384 = vmatprep.subr.bf16.mxu0 %v16659_v35  ;;  %4425 = vmatprep.subr.bf16.mxu1 %v16660_v50  ;;  %v16670_v35 = vld [vmem:[#allocation14_spill] sm:$0xff] }
 0x5e7   :  { %v16671_v50 = vld [vmem:[#allocation10_spill] sm:$0xff] }
 0x5e9   :  { %4385 = vmatpush1.bf16.msra.mxu0 %v16661_v20  ;;  %4426 = vmatpush1.bf16.msra.mxu1 %v16662_v34  ;;  %v16672_v20 = vld [vmem:[#allocation11_spill] sm:$0xff] }
 0x5ea   :  { %4386 = vmatprep.subr.bf16.mxu0 %v16663_v38  ;;  %4427 = vmatprep.subr.bf16.mxu1 %v16664_v59 }
 0x5ed   :  { %4387 = vmatpush1.bf16.msra.mxu0 %v16665_v21  ;;  %4428 = vmatpush1.bf16.msra.mxu1 %v16666_v46 }
 0x5ee   :  { %4388 = vmatprep.subr.bf16.mxu0 %v16667_v17  ;;  %4429 = vmatprep.subr.bf16.mxu1 %v16668_v41 }
 0x5f1   :  { %4389 = vmatpush1.bf16.msra.mxu0 %v16669_v56  ;;  %4430 = vmatpush1.bf16.msra.mxu1 %v16670_v35 }
 0x5f2   :  { %4876 = vmatprep.subr.bf16.mxu0 %v16671_v50  ;;  %4917 = vmatprep.subr.bf16.mxu1 %v16672_v20 }
 0x687   :  { %v3874_v34 = vpop.f32.mrb[52].mxu0  ;;  %v3915_v38 = vpop.f32.mrb[52].mxu1 }
 0x688   :  { %v3926_v59 = vadd.f32 %v16673_v26, %v3874_v34  ;;  %v3928_v21 = vadd.f32 %v16674_v22, %v3915_v38  ;;  %v3876_v28 = vpop.f32.mrb[53].mxu0  ;;  %v3917_v46 = vpop.f32.mrb[53].mxu1 }
 0x689   :  { %v3927_v17 = vadd.f32 %v16675_v3, %v3876_v28  ;;  %v3929_v41 = vadd.f32 %v16676_v4, %v3917_v46  ;;  %v3878_v52 = vpop.f32.mrb[54].mxu0  ;;  %v3919_v56 = vpop.f32.mrb[54].mxu1 }
 0x68a   :  { %v10103_v55 = vmul.f32 -1.442695, %v3926_v59  ;;  %v3879_v35 = vpop.f32.mrb[55].mxu0  ;;  %v3920_v44 = vpop.f32.mrb[55].mxu1  ;;  %v10105_v20 = vmul.f32 -1.442695, %v3928_v21 }
 0x68b   :  { %v10104_v50 = vmul.f32 -1.442695, %v3927_v17 }
 0x68c   :  { %11702 = vpow2.f32 %v10103_v55 }
 0x68d   :  { %11704 = vpow2.f32 %v10104_v50 }
 0x68e   :  { %11706 = vtanh.f32 %v3929_v41 }
 0x68f   :  { %11708 = vpow2.f32 %v10105_v20 }
 0x696   :  { %v11703_v30 = vpop.eup %11702 }
 0x697   :  { %v3939_v33 = vadd.f32 1.0, %v11703_v30  ;;  %v11705_v26 = vpop.eup %11704  ;;  %v16677_v30 = vmov 0 }
 0x698   :  { %v3940_v22 = vadd.f32 1.0, %v11705_v26  ;;  %v11707_v3 = vpop.eup %11706  ;;  %v16678_v30 = vsel %vm14051_vm8, 4294967295, %v16677_v30 }
 0x699   :  { %11710 = vrcp.f32 %v3939_v33  ;;  %v11709_v28 = vpop.eup %11708  ;;  %16679 = vst [vmem:[#allocation18_spill] sm:$0xff] %v16678_v30  ;;  %v14528_v30 = vld [vmem:[%s16146_s3 + $0x1cc] ss:$16 sps:$4 sm:$0xff]  }
 0x69a   :  { %11712 = vrcp.f32 %v3940_v22  ;;  %v3941_v44 = vadd.f32 1.0, %v11709_v28 }
 0x69c   :  { %11714 = vrcp.f32 %v3941_v44 }
 0x6a3   :  { %v11711_v46 = vpop.eup %11710 }
 0x6a4   :  { %v3950_v52 = vmul.f32 %v11711_v46, %v11707_v3  ;;  %v11713_v59 = vpop.eup %11712 }
 0x6a5   :  { %v3949_v21 = vmul.f32 %v11713_v59, %v13954_v24 }
 0x6a6   :  { %v11715_v4 = vpop.eup %11714 }
 0x6a7   :  { %v3951_v55 = vadd.f32 %v3950_v52, %v3949_v21 }
 0x6a9   :  { %11716 = vtanh.f32 %v3951_v55  ;;  %v14058_v33 = vsel %vm14051_vm8, %v3951_v55, %v13954_v24 }
 0x6b3   :  { %v11717_v17 = vpop.eup %11716 }
 0x6b4   :  { %v3953_v41 = vmul.f32 %v11717_v17, %v11715_v4 }
 0x6b6   :  { %v14062_v56 = vsel %vm16437_vm2, 0.0, %v3953_v41  ;;  %v14066_v35 = vsel %vm16437_vm2, %v3953_v41, 0.0 }
 0x6b7   :  { %16680 = vst [vmem:[#allocation19_spill] sm:$0xff] %v14062_v56  ;;  %16681 = vst [vmem:[#allocation20_spill] sm:$0xff] %v14066_v35  ;;  %v14072_v34 = vsel %vm14051_vm8, %v14062_v56, %v13968_v49  ;;  %v14078_v24 = vsel %vm14051_vm8, %v14066_v35, %v13974_v19  ;;  %v16712_v49 = vld [vmem:[#allocation29_spill] sm:$0xff]  ;;  %v14522_v56 = vld [vmem:[%s16146_s3 + $0x1c4] ss:$16 sps:$4 sm:$0xff]  }
 0x6b8   :  { %v3973_v38 = vpack.c.bf16 %v14072_v34, %v14072_v34  ;;  %v3972_v50 = vpack.c.bf16 %v14078_v24, %v14078_v24  ;;  %v14517_v35 = vld [vmem:[%s16146_s3 + $0x1a8] ss:$16 sps:$4 sm:$0xff]  }
 0x6ba   :  { %4390 = vmatprep.mubr.bf16.mxu0 %v3973_v38  ;;  %4431 = vmatprep.mubr.bf16.mxu1 %v3973_v38 }
 0x6bb   :  { %4391 = vmatmul.mubr.bf16.vlgmr.msra.gmra.mrb[56].mxu0 %v3972_v50  ;;  %4432 = vmatmul.mubr.bf16.vlgmr.msra.gmra.mrb[56].mxu1 %v3972_v50 }
 0x6bc   :  { %4877 = vmatpush1.bf16.msra.mxu0 %v13569_v48  ;;  %4918 = vmatpush1.bf16.msra.mxu1 %v13574_v60  ;;  %v16682_v48 = vld [vmem:[#allocation71_spill] sm:$0xff]  ;;  %v16683_v60 = vld [vmem:[#allocation72_spill] sm:$0xff] }
 0x6bd   :  { %4878 = vmatprep.subr.bf16.mxu0 %v13579_v45  ;;  %4919 = vmatprep.subr.bf16.mxu1 %v13584_v53  ;;  %v16684_v45 = vld [vmem:[#allocation73_spill] sm:$0xff]  ;;  %v16685_v53 = vld [vmem:[#allocation74_spill] sm:$0xff] }
 0x6c0   :  { %4879 = vmatpush1.bf16.msra.mxu0 %v13591_v58  ;;  %4920 = vmatpush1.bf16.msra.mxu1 %v13596_v61  ;;  %v16686_v58 = vld [vmem:[#allocation75_spill] sm:$0xff]  ;;  %v16687_v61 = vld [vmem:[#allocation76_spill] sm:$0xff] }
 0x6c1   :  { %4880 = vmatprep.subr.bf16.mxu0 %v13603_v14  ;;  %4921 = vmatprep.subr.bf16.mxu1 %v13608_v43  ;;  %v16688_v14 = vld [vmem:[#allocation77_spill] sm:$0xff]  ;;  %v16689_v43 = vld [vmem:[#allocation78_spill] sm:$0xff] }
 0x6c4   :  { %4881 = vmatpush1.bf16.msra.mxu0 %v13615_v0  ;;  %4922 = vmatpush1.bf16.msra.mxu1 %v13620_v51  ;;  %v16690_v0 = vld [vmem:[#allocation80_spill] sm:$0xff]  ;;  %v16691_v51 = vld [vmem:[#allocation79_spill] sm:$0xff] }
 0x6c5   :  { %4882 = vmatprep.subr.bf16.mxu0 %v13629_v29  ;;  %4923 = vmatprep.subr.bf16.mxu1 %v13634_v23  ;;  %v16692_v29 = vld [vmem:[#allocation83_spill] sm:$0xff]  ;;  %v16693_v23 = vld [vmem:[#allocation82_spill] sm:$0xff] }
 0x6c8   :  { %4883 = vmatpush1.bf16.msra.mxu0 %v13639_v31  ;;  %4924 = vmatpush1.bf16.msra.mxu1 %v13644_v39  ;;  %v16694_v31 = vld [vmem:[#allocation81_spill] sm:$0xff]  ;;  %v16695_v39 = vld [vmem:[#allocation84_spill] sm:$0xff] }
 0x6c9   :  { %4884 = vmatprep.subr.bf16.mxu0 %v13653_v63  ;;  %4925 = vmatprep.subr.bf16.mxu1 %v13658_v54  ;;  %v16696_v63 = vld [vmem:[#allocation85_spill] sm:$0xff]  ;;  %v16697_v54 = vld [vmem:[#allocation86_spill] sm:$0xff] }
 0x6ca   :  { %16734 = vst [vmem:[#allocation85_spill] sm:$0xff] %v14517_v35  ;;  %16735 = vst [vmem:[#allocation86_spill] sm:$0xff] %v14522_v56 }
 0x6cc   :  { %4885 = vmatpush1.bf16.msra.mxu0 %v13663_v7  ;;  %4926 = vmatpush1.bf16.msra.mxu1 %v13668_v15  ;;  %v16698_v7 = vld [vmem:[#allocation87_spill] sm:$0xff]  ;;  %v16699_v15 = vld [vmem:[#allocation88_spill] sm:$0xff] }
 0x6cd   :  { %4886 = vmatprep.subr.bf16.mxu0 %v13677_v11  ;;  %4927 = vmatprep.subr.bf16.mxu1 %v13682_v18  ;;  %v16700_v11 = vld [vmem:[#allocation89_spill] sm:$0xff]  ;;  %v16701_v18 = vld [vmem:[#allocation90_spill] sm:$0xff]  ;;  %16736 = vst [vmem:[#allocation87_spill] sm:$0xff] %v14528_v30 }
 0x6d0   :  { %4887 = vmatpush1.bf16.msra.mxu0 %v13687_v12  ;;  %4928 = vmatpush1.bf16.msra.mxu1 %v13692_v16  ;;  %v16702_v12 = vld [vmem:[#allocation91_spill] sm:$0xff]  ;;  %v16703_v16 = vld [vmem:[#allocation92_spill] sm:$0xff] }
 0x6d1   :  { %4888 = vmatprep.subr.bf16.mxu0 %v13701_v36  ;;  %4929 = vmatprep.subr.bf16.mxu1 %v13706_v1  ;;  %v16704_v36 = vld [vmem:[#allocation93_spill] sm:$0xff]  ;;  %v16705_v1 = vld [vmem:[#allocation94_spill] sm:$0xff] }
 0x6d4   :  { %4889 = vmatpush1.bf16.msra.mxu0 %v13711_v2  ;;  %4930 = vmatpush1.bf16.msra.mxu1 %v13716_v25  ;;  %v16706_v2 = vld [vmem:[#allocation14_spill] sm:$0xff] }
 0x6d5   :  { %4890 = vmatprep.subr.bf16.mxu0 %v13725_v62  ;;  %4931 = vmatprep.subr.bf16.mxu1 %v13730_v47  ;;  %v14149_v25 = vld [vmem:[%s16146_s3 + $0x4] ss:$16 sps:$4 sm:$0xff]   ;;  %v14154_v62 = vld [vmem:[%s16146_s3 + $0xc] ss:$16 sps:$4 sm:$0xff]  }
 0x6d6   :  { %16707 = vst [vmem:[#allocation21_spill] sm:$0xff] %v14149_v25  ;;  %16708 = vst [vmem:[#allocation10_spill] sm:$0xff] %v14154_v62 }
 0x6d8   :  { %4891 = vmatpush1.bf16.msra.mxu0 %v13735_v57  ;;  %4932 = vmatpush1.bf16.msra.mxu1 %v13740_v40  ;;  %v16709_v40 = vld [vmem:[#allocation26_spill] sm:$0xff] }
 0x6d9   :  { %4892 = vmatprep.subr.bf16.mxu0 %v13749_v42  ;;  %4933 = vmatprep.subr.bf16.mxu1 %v13754_v13  ;;  %v16710_v13 = vld [vmem:[#allocation27_spill] sm:$0xff] }
 0x6dc   :  { %4893 = vmatpush1.bf16.msra.mxu0 %v13759_v5  ;;  %4934 = vmatpush1.bf16.msra.mxu1 %v13764_v27 }
 0x6dd   :  { %4894 = vmatprep.subr.bf16.mxu0 %v13773_v37  ;;  %4935 = vmatprep.subr.bf16.mxu1 %v13778_v6  ;;  %v16711_v6 = vld [vmem:[#allocation28_spill] sm:$0xff] }
 0x6e0   :  { %4895 = vmatpush1.bf16.msra.mxu0 %v13783_v32  ;;  %4936 = vmatpush1.bf16.msra.mxu1 %v16682_v48 }
 0x6e1   :  { %4896 = vmatprep.subr.bf16.mxu0 %v16683_v60  ;;  %4937 = vmatprep.subr.bf16.mxu1 %v16684_v45  ;;  %v16713_v45 = vmov 0 }
 0x6e2   :  { %v16714_v45 = vsel %vm14165_vm12, 4294967295, %v16713_v45 }
 0x6e3   :  { %16715 = vst [vmem:[#allocation11_spill] sm:$0xff] %v16714_v45  ;;  %v14510_v45 = vld [vmem:[%s16146_s3 + $0x1a0] ss:$16 sps:$4 sm:$0xff]  }
 0x6e4   :  { %4897 = vmatpush1.bf16.msra.mxu0 %v16685_v53  ;;  %4938 = vmatpush1.bf16.msra.mxu1 %v16686_v58  ;;  %16733 = vst [vmem:[#allocation84_spill] sm:$0xff] %v14510_v45 }
 0x6e5   :  { %4898 = vmatprep.subr.bf16.mxu0 %v16687_v61  ;;  %4939 = vmatprep.subr.bf16.mxu1 %v16688_v14 }
 0x6e8   :  { %4899 = vmatpush1.bf16.msra.mxu0 %v16689_v43  ;;  %4940 = vmatpush1.bf16.msra.mxu1 %v16690_v0 }
 0x6e9   :  { %4900 = vmatprep.subr.bf16.mxu0 %v16691_v51  ;;  %4941 = vmatprep.subr.bf16.mxu1 %v16692_v29 }
 0x6ec   :  { %4901 = vmatpush1.bf16.msra.mxu0 %v16693_v23  ;;  %4942 = vmatpush1.bf16.msra.mxu1 %v16694_v31 }
 0x6ed   :  { %4902 = vmatprep.subr.bf16.mxu0 %v16695_v39  ;;  %4943 = vmatprep.subr.bf16.mxu1 %v16696_v63  ;;  %v14201_v39 = vld [vmem:[%s16146_s3] ss:$16 sps:$4 sm:$0xff]   ;;  %v14216_v63 = vld [vmem:[%s16146_s3 + $0x2c] ss:$16 sps:$4 sm:$0xff]  }
 0x6f0   :  { %4903 = vmatpush1.bf16.msra.mxu0 %v16697_v54  ;;  %4944 = vmatpush1.bf16.msra.mxu1 %v16698_v7  ;;  %v14223_v54 = vld [vmem:[%s16146_s3 + $0x20] ss:$16 sps:$4 sm:$0xff]   ;;  %v14228_v7 = vld [vmem:[%s16146_s3 + $0x28] ss:$16 sps:$4 sm:$0xff]  }
 0x6f1   :  { %4904 = vmatprep.subr.bf16.mxu0 %v16699_v15  ;;  %4945 = vmatprep.subr.bf16.mxu1 %v16700_v11  ;;  %v14235_v15 = vld [vmem:[%s16146_s3 + $0x44] ss:$16 sps:$4 sm:$0xff]   ;;  %v14240_v11 = vld [vmem:[%s16146_s3 + $0x4c] ss:$16 sps:$4 sm:$0xff]  }
 0x6f4   :  { %4905 = vmatpush1.bf16.msra.mxu0 %v16701_v18  ;;  %4946 = vmatpush1.bf16.msra.mxu1 %v16702_v12  ;;  %v14247_v18 = vld [vmem:[%s16146_s3 + $0x40] ss:$16 sps:$4 sm:$0xff]   ;;  %v14252_v12 = vld [vmem:[%s16146_s3 + $0x48] ss:$16 sps:$4 sm:$0xff]  }
 0x6f5   :  { %4906 = vmatprep.subr.bf16.mxu0 %v16703_v16  ;;  %4947 = vmatprep.subr.bf16.mxu1 %v16704_v36  ;;  %v14261_v16 = vld [vmem:[%s16146_s3 + $0x64] ss:$16 sps:$4 sm:$0xff]   ;;  %v14266_v36 = vld [vmem:[%s16146_s3 + $0x6c] ss:$16 sps:$4 sm:$0xff]  }
 0x6f8   :  { %4907 = vmatpush1.bf16.msra.mxu0 %v16705_v1  ;;  %4948 = vmatpush1.bf16.msra.mxu1 %v16706_v2  ;;  %v14271_v1 = vld [vmem:[%s16146_s3 + $0x60] ss:$16 sps:$4 sm:$0xff]   ;;  %v14276_v2 = vld [vmem:[%s16146_s3 + $0x68] ss:$16 sps:$4 sm:$0xff]  }
 0x6f9   :  { %5394 = vmatprep.subr.bf16.mxu0 %v14149_v25  ;;  %5435 = vmatprep.subr.bf16.mxu1 %v14154_v62 }
 0x78e   :  { %v4392_v47 = vpop.f32.mrb[56].mxu0  ;;  %v4433_v57 = vpop.f32.mrb[56].mxu1 }
 0x78f   :  { %v4444_v42 = vadd.f32 %v16709_v40, %v4392_v47  ;;  %v4446_v5 = vadd.f32 %v16710_v13, %v4433_v57  ;;  %v4394_v27 = vpop.f32.mrb[57].mxu0  ;;  %v4435_v37 = vpop.f32.mrb[57].mxu1  ;;  %v14285_v47 = vld [vmem:[%s16146_s3 + $0x84] ss:$16 sps:$4 sm:$0xff]   ;;  %v14290_v57 = vld [vmem:[%s16146_s3 + $0x8c] ss:$16 sps:$4 sm:$0xff]  }
 0x790   :  { %v4445_v32 = vadd.f32 %v16711_v6, %v4394_v27  ;;  %v4447_v19 = vadd.f32 %v16712_v49, %v4435_v37  ;;  %v4396_v20 = vpop.f32.mrb[58].mxu0  ;;  %v4437_v26 = vpop.f32.mrb[58].mxu1  ;;  %v14295_v40 = vld [vmem:[%s16146_s3 + $0x80] ss:$16 sps:$4 sm:$0xff]   ;;  %v14309_v13 = vld [vmem:[%s16146_s3 + $0xa4] ss:$16 sps:$4 sm:$0xff]  }
 0x791   :  { %v10170_v22 = vmul.f32 -1.442695, %v4444_v42  ;;  %v4397_v3 = vpop.f32.mrb[59].mxu0  ;;  %v4438_v28 = vpop.f32.mrb[59].mxu1  ;;  %v10172_v52 = vmul.f32 -1.442695, %v4446_v5 }
 0x792   :  { %v10171_v46 = vmul.f32 -1.442695, %v4445_v32  ;;  %v14300_v42 = vld [vmem:[%s16146_s3 + $0x88] ss:$16 sps:$4 sm:$0xff]   ;;  %v14314_v5 = vld [vmem:[%s16146_s3 + $0xac] ss:$16 sps:$4 sm:$0xff]  }
 0x793   :  { %11718 = vpow2.f32 %v10170_v22  ;;  %v14319_v27 = vld [vmem:[%s16146_s3 + $0xa0] ss:$16 sps:$4 sm:$0xff]   ;;  %v14324_v37 = vld [vmem:[%s16146_s3 + $0xa8] ss:$16 sps:$4 sm:$0xff]   ;;  %v14333_v6 = vld [vmem:[%s16146_s3 + $0xc4] ss:$16 sps:$4 sm:$0xff]  }
 0x794   :  { %11720 = vpow2.f32 %v10171_v46  ;;  %v14338_v32 = vld [vmem:[%s16146_s3 + $0xcc] ss:$16 sps:$4 sm:$0xff]   ;;  %v14343_v49 = vld [vmem:[%s16146_s3 + $0xc0] ss:$16 sps:$4 sm:$0xff]   ;;  %v14357_v20 = vld [vmem:[%s16146_s3 + $0xe4] ss:$16 sps:$4 sm:$0xff]  }
 0x795   :  { %11722 = vtanh.f32 %v4447_v19  ;;  %v14348_v19 = vld [vmem:[%s16146_s3 + $0xc8] ss:$16 sps:$4 sm:$0xff]   ;;  %v14362_v26 = vld [vmem:[%s16146_s3 + $0xec] ss:$16 sps:$4 sm:$0xff]   ;;  %v14367_v22 = vld [vmem:[%s16146_s3 + $0xe0] ss:$16 sps:$4 sm:$0xff]  }
 0x796   :  { %11724 = vpow2.f32 %v10172_v52  ;;  %v14372_v3 = vld [vmem:[%s16146_s3 + $0xe8] ss:$16 sps:$4 sm:$0xff]   ;;  %v14381_v28 = vld [vmem:[%s16146_s3 + $0x104] ss:$16 sps:$4 sm:$0xff]   ;;  %v14386_v46 = vld [vmem:[%s16146_s3 + $0x10c] ss:$16 sps:$4 sm:$0xff]  }
 0x797   :  { %v14391_v52 = vld [vmem:[%s16146_s3 + $0x100] ss:$16 sps:$4 sm:$0xff]  }
 0x79d   :  { %v11719_v59 = vpop.eup %11718 }
 0x79e   :  { %v4457_v44 = vadd.f32 1.0, %v11719_v59  ;;  %v11721_v21 = vpop.eup %11720  ;;  %v14396_v59 = vld [vmem:[%s16146_s3 + $0x108] ss:$16 sps:$4 sm:$0xff]  }
 0x79f   :  { %v4458_v55 = vadd.f32 1.0, %v11721_v21  ;;  %v11723_v4 = vpop.eup %11722  ;;  %v14410_v21 = vld [vmem:[%s16146_s3 + $0x12c] ss:$16 sps:$4 sm:$0xff]  }
 0x7a0   :  { %11726 = vrcp.f32 %v4457_v44  ;;  %v11725_v17 = vpop.eup %11724  ;;  %v14405_v44 = vld [vmem:[%s16146_s3 + $0x124] ss:$16 sps:$4 sm:$0xff]  }
 0x7a1   :  { %11728 = vrcp.f32 %v4458_v55  ;;  %v4459_v48 = vadd.f32 1.0, %v11725_v17  ;;  %v14415_v55 = vld [vmem:[%s16146_s3 + $0x120] ss:$16 sps:$4 sm:$0xff]   ;;  %v14429_v17 = vld [vmem:[%s16146_s3 + $0x144] ss:$16 sps:$4 sm:$0xff]  }
 0x7a2   :  { %16719 = vst [vmem:[#allocation25_spill] sm:$0xff] %v14429_v17 }
 0x7a3   :  { %11730 = vrcp.f32 %v4459_v48  ;;  %v14453_v48 = vld [vmem:[%s16146_s3 + $0x164] ss:$16 sps:$4 sm:$0xff]  }
 0x7a4   :  { %16723 = vst [vmem:[#allocation74_spill] sm:$0xff] %v14453_v48 }
 0x7aa   :  { %v11727_v41 = vpop.eup %11726 }
 0x7ab   :  { %v4468_v38 = vmul.f32 %v11727_v41, %v11723_v4  ;;  %v11729_v50 = vpop.eup %11728  ;;  %v14420_v4 = vld [vmem:[%s16146_s3 + $0x128] ss:$16 sps:$4 sm:$0xff]   ;;  %v14434_v41 = vld [vmem:[%s16146_s3 + $0x14c] ss:$16 sps:$4 sm:$0xff]  }
 0x7ac   :  { %v4467_v60 = vmul.f32 %v11729_v50, %v14058_v33  ;;  %16718 = vst [vmem:[#allocation24_spill] sm:$0xff] %v14420_v4  ;;  %16720 = vst [vmem:[#allocation71_spill] sm:$0xff] %v14434_v41  ;;  %v14444_v50 = vld [vmem:[%s16146_s3 + $0x148] ss:$16 sps:$4 sm:$0xff]  }
 0x7ad   :  { %v11731_v61 = vpop.eup %11730  ;;  %16722 = vst [vmem:[#allocation73_spill] sm:$0xff] %v14444_v50 }
 0x7ae   :  { %v4469_v53 = vadd.f32 %v4468_v38, %v4467_v60  ;;  %v14439_v38 = vld [vmem:[%s16146_s3 + $0x140] ss:$16 sps:$4 sm:$0xff]   ;;  %v14458_v60 = vld [vmem:[%s16146_s3 + $0x16c] ss:$16 sps:$4 sm:$0xff]  }
 0x7af   :  { %16721 = vst [vmem:[#allocation72_spill] sm:$0xff] %v14439_v38  ;;  %16724 = vst [vmem:[#allocation75_spill] sm:$0xff] %v14458_v60 }
 0x7b0   :  { %11732 = vtanh.f32 %v4469_v53  ;;  %v14172_v58 = vsel %vm14165_vm12, %v4469_v53, %v14058_v33  ;;  %v14463_v53 = vld [vmem:[%s16146_s3 + $0x160] ss:$16 sps:$4 sm:$0xff]  }
 0x7b1   :  { %16725 = vst [vmem:[#allocation76_spill] sm:$0xff] %v14463_v53 }
 0x7ba   :  { %v11733_v14 = vpop.eup %11732 }
 0x7bb   :  { %v4471_v43 = vmul.f32 %v11733_v14, %v11731_v61  ;;  %v14468_v61 = vld [vmem:[%s16146_s3 + $0x168] ss:$16 sps:$4 sm:$0xff]   ;;  %v14477_v14 = vld [vmem:[%s16146_s3 + $0x180] ss:$16 sps:$4 sm:$0xff]  }
 0x7bc   :  { %16726 = vst [vmem:[#allocation77_spill] sm:$0xff] %v14468_v61  ;;  %16727 = vst [vmem:[#allocation78_spill] sm:$0xff] %v14477_v14 }
 0x7bd   :  { %v14176_v0 = vsel %vm16437_vm2, 0.0, %v4471_v43  ;;  %v14180_v51 = vsel %vm16437_vm2, %v4471_v43, 0.0  ;;  %v14482_v43 = vld [vmem:[%s16146_s3 + $0x184] ss:$16 sps:$4 sm:$0xff]  }
 0x7be   :  { %16716 = vst [vmem:[#allocation22_spill] sm:$0xff] %v14176_v0  ;;  %16717 = vst [vmem:[#allocation23_spill] sm:$0xff] %v14180_v51  ;;  %v14186_v29 = vsel %vm14165_vm12, %v14176_v0, %v14072_v34  ;;  %v14192_v33 = vsel %vm14165_vm12, %v14180_v51, %v14078_v24  ;;  %v14206_v34 = vld [vmem:[%s16146_s3 + $0x8] ss:$16 sps:$4 sm:$0xff]   ;;  %v14211_v24 = vld [vmem:[%s16146_s3 + $0x24] ss:$16 sps:$4 sm:$0xff]  }
 0x7bf   :  { %v4491_v23 = vpack.c.bf16 %v14186_v29, %v14186_v29  ;;  %v4490_v31 = vpack.c.bf16 %v14192_v33, %v14192_v33  ;;  %16728 = vst [vmem:[#allocation80_spill] sm:$0xff] %v14482_v43  ;;  %v14497_v51 = vld [vmem:[%s16146_s3 + $0x1a4] ss:$16 sps:$4 sm:$0xff]   ;;  %v14503_v0 = vld [vmem:[%s16146_s3 + $0x1ac] ss:$16 sps:$4 sm:$0xff]  }
 0x7c0   :  { %16731 = vst [vmem:[#allocation82_spill] sm:$0xff] %v14497_v51  ;;  %16732 = vst [vmem:[#allocation81_spill] sm:$0xff] %v14503_v0 }
 0x7c1   :  { %4908 = vmatprep.mubr.bf16.mxu0 %v4491_v23  ;;  %4949 = vmatprep.mubr.bf16.mxu1 %v4491_v23  ;;  %v14487_v23 = vld [vmem:[%s16146_s3 + $0x188] ss:$16 sps:$4 sm:$0xff]  }
 0x7c2   :  { %4909 = vmatmul.mubr.bf16.vlgmr.msra.gmra.mrb[60].mxu0 %v4490_v31  ;;  %4950 = vmatmul.mubr.bf16.vlgmr.msra.gmra.mrb[60].mxu1 %v4490_v31  ;;  %16729 = vst [vmem:[#allocation79_spill] sm:$0xff] %v14487_v23  ;;  %v14492_v31 = vld [vmem:[%s16146_s3 + $0x18c] ss:$16 sps:$4 sm:$0xff]  }
 0x7c3   :  { %5395 = vmatpush1.bf16.msra.mxu0 %v14201_v39  ;;  %5436 = vmatpush1.bf16.msra.mxu1 %v14206_v34  ;;  %16730 = vst [vmem:[#allocation83_spill] sm:$0xff] %v14492_v31 }
 0x7c4   :  { %5396 = vmatprep.subr.bf16.mxu0 %v14211_v24  ;;  %5437 = vmatprep.subr.bf16.mxu1 %v14216_v63 }
 0x7c7   :  { %5397 = vmatpush1.bf16.msra.mxu0 %v14223_v54  ;;  %5438 = vmatpush1.bf16.msra.mxu1 %v14228_v7 }
 0x7c8   :  { %5398 = vmatprep.subr.bf16.mxu0 %v14235_v15  ;;  %5439 = vmatprep.subr.bf16.mxu1 %v14240_v11 }
 0x7cb   :  { %5399 = vmatpush1.bf16.msra.mxu0 %v14247_v18  ;;  %5440 = vmatpush1.bf16.msra.mxu1 %v14252_v12 }
 0x7cc   :  { %5400 = vmatprep.subr.bf16.mxu0 %v14261_v16  ;;  %5441 = vmatprep.subr.bf16.mxu1 %v14266_v36 }
 0x7cf   :  { %5401 = vmatpush1.bf16.msra.mxu0 %v14271_v1  ;;  %5442 = vmatpush1.bf16.msra.mxu1 %v14276_v2 }
 0x7d0   :  { %5402 = vmatprep.subr.bf16.mxu0 %v14285_v47  ;;  %5443 = vmatprep.subr.bf16.mxu1 %v14290_v57 }
 0x7d3   :  { %5403 = vmatpush1.bf16.msra.mxu0 %v14295_v40  ;;  %5444 = vmatpush1.bf16.msra.mxu1 %v14300_v42 }
 0x7d4   :  { %5404 = vmatprep.subr.bf16.mxu0 %v14309_v13  ;;  %5445 = vmatprep.subr.bf16.mxu1 %v14314_v5 }
 0x7d7   :  { %5405 = vmatpush1.bf16.msra.mxu0 %v14319_v27  ;;  %5446 = vmatpush1.bf16.msra.mxu1 %v14324_v37 }
 0x7d8   :  { %5406 = vmatprep.subr.bf16.mxu0 %v14333_v6  ;;  %5447 = vmatprep.subr.bf16.mxu1 %v14338_v32 }
 0x7db   :  { %5407 = vmatpush1.bf16.msra.mxu0 %v14343_v49  ;;  %5448 = vmatpush1.bf16.msra.mxu1 %v14348_v19 }
 0x7dc   :  { %5408 = vmatprep.subr.bf16.mxu0 %v14357_v20  ;;  %5449 = vmatprep.subr.bf16.mxu1 %v14362_v26 }
 0x7df   :  { %5409 = vmatpush1.bf16.msra.mxu0 %v14367_v22  ;;  %5450 = vmatpush1.bf16.msra.mxu1 %v14372_v3 }
 0x7e0   :  { %5410 = vmatprep.subr.bf16.mxu0 %v14381_v28  ;;  %5451 = vmatprep.subr.bf16.mxu1 %v14386_v46 }
 0x7e3   :  { %5411 = vmatpush1.bf16.msra.mxu0 %v14391_v52  ;;  %5452 = vmatpush1.bf16.msra.mxu1 %v14396_v59 }
 0x7e4   :  { %5412 = vmatprep.subr.bf16.mxu0 %v14405_v44  ;;  %5453 = vmatprep.subr.bf16.mxu1 %v14410_v21 }
 0x7e7   :  { %5413 = vmatpush1.bf16.msra.mxu0 %v14415_v55  ;;  %5454 = vmatpush1.bf16.msra.mxu1 %v14420_v4 }
 0x7e8   :  { %5414 = vmatprep.subr.bf16.mxu0 %v14429_v17  ;;  %5455 = vmatprep.subr.bf16.mxu1 %v14434_v41 }
 0x7eb   :  { %5415 = vmatpush1.bf16.msra.mxu0 %v14439_v38  ;;  %5456 = vmatpush1.bf16.msra.mxu1 %v14444_v50 }
 0x7ec   :  { %5416 = vmatprep.subr.bf16.mxu0 %v14453_v48  ;;  %5457 = vmatprep.subr.bf16.mxu1 %v14458_v60  ;;  %v16746_v48 = vld [vmem:[#allocation33_spill] sm:$0xff] }
 0x7ef   :  { %5417 = vmatpush1.bf16.msra.mxu0 %v14463_v53  ;;  %5458 = vmatpush1.bf16.msra.mxu1 %v14468_v61  ;;  %v16745_v53 = vld [vmem:[#allocation32_spill] sm:$0xff] }
 0x7f0   :  { %5418 = vmatprep.subr.bf16.mxu0 %v14482_v43  ;;  %5459 = vmatprep.subr.bf16.mxu1 %v14492_v31 }
 0x7f3   :  { %5419 = vmatpush1.bf16.msra.mxu0 %v14477_v14  ;;  %5460 = vmatpush1.bf16.msra.mxu1 %v14487_v23  ;;  %v14546_v23 = vld [vmem:[%s16146_s3 + $0x1e4] ss:$16 sps:$4 sm:$0xff]  }
 0x7f4   :  { %5420 = vmatprep.subr.bf16.mxu0 %v14497_v51  ;;  %5461 = vmatprep.subr.bf16.mxu1 %v14503_v0  ;;  %v14534_v51 = vld [vmem:[%s16146_s3 + $0x1c0] ss:$16 sps:$4 sm:$0xff]   ;;  %v14541_v0 = vld [vmem:[%s16146_s3 + $0x1c8] ss:$16 sps:$4 sm:$0xff]   ;;  %16739 = vst [vmem:[#allocation90_spill] sm:$0xff] %v14546_v23 }
 0x7f5   :  { %16737 = vst [vmem:[#allocation88_spill] sm:$0xff] %v14534_v51  ;;  %16738 = vst [vmem:[#allocation89_spill] sm:$0xff] %v14541_v0 }
 0x7f7   :  { %5421 = vmatpush1.bf16.msra.mxu0 %v14510_v45  ;;  %5462 = vmatpush1.bf16.msra.mxu1 %v14517_v35  ;;  %v14552_v45 = vld [vmem:[%s16146_s3 + $0x1ec] ss:$16 sps:$4 sm:$0xff]  }
 0x7f8   :  { %5422 = vmatprep.subr.bf16.mxu0 %v14522_v56  ;;  %5463 = vmatprep.subr.bf16.mxu1 %v14528_v30  ;;  %16740 = vst [vmem:[#allocation91_spill] sm:$0xff] %v14552_v45  ;;  %v14558_v56 = vld [vmem:[%s16146_s3 + $0x1e0] ss:$16 sps:$4 sm:$0xff]   ;;  %v14565_v30 = vld [vmem:[%s16146_s3 + $0x1e8] ss:$16 sps:$4 sm:$0xff]  }
 0x7f9   :  { %16741 = vst [vmem:[#allocation92_spill] sm:$0xff] %v14558_v56  ;;  %16742 = vst [vmem:[#allocation93_spill] sm:$0xff] %v14565_v30 }
 0x7fb   :  { %5423 = vmatpush1.bf16.msra.mxu0 %v14534_v51  ;;  %5464 = vmatpush1.bf16.msra.mxu1 %v14541_v0  ;;  %v16743_v0 = vld [vmem:[#allocation30_spill] sm:$0xff] }
 0x7fc   :  { %5424 = vmatprep.subr.bf16.mxu0 %v14546_v23  ;;  %5465 = vmatprep.subr.bf16.mxu1 %v14552_v45  ;;  %v16744_v23 = vld [vmem:[#allocation31_spill] sm:$0xff] }
 0x7ff   :  { %5425 = vmatpush1.bf16.msra.mxu0 %v14558_v56  ;;  %5466 = vmatpush1.bf16.msra.mxu1 %v14565_v30 }
 0x800   :  { %5912 = vmatprep.subr.bf16.mxu0 %v14149_v25  ;;  %5953 = vmatprep.subr.bf16.mxu1 %v14154_v62 }
 0x895   :  { %v4910_v51 = vpop.f32.mrb[60].mxu0  ;;  %v4951_v35 = vpop.f32.mrb[60].mxu1 }
 0x896   :  { %v4962_v14 = vadd.f32 %v16743_v0, %v4910_v51  ;;  %v4964_v31 = vadd.f32 %v16744_v23, %v4951_v35  ;;  %v4912_v43 = vpop.f32.mrb[61].mxu0  ;;  %v4953_v61 = vpop.f32.mrb[61].mxu1 }
 0x897   :  { %v4963_v60 = vadd.f32 %v16745_v53, %v4912_v43  ;;  %v4965_v45 = vadd.f32 %v16746_v48, %v4953_v61  ;;  %v4914_v50 = vpop.f32.mrb[62].mxu0  ;;  %v4955_v56 = vpop.f32.mrb[62].mxu1 }
 0x898   :  { %v10237_v38 = vmul.f32 -1.442695, %v4962_v14  ;;  %v4915_v30 = vpop.f32.mrb[63].mxu0  ;;  %v4956_v41 = vpop.f32.mrb[63].mxu1  ;;  %v10239_v62 = vmul.f32 -1.442695, %v4964_v31 }
 0x899   :  { %v10238_v25 = vmul.f32 -1.442695, %v4963_v60  ;;  %v16754_v31 = vld [vmem:[#allocation71_spill] sm:$0xff] }
 0x89a   :  { %11734 = vpow2.f32 %v10237_v38 }
 0x89b   :  { %11736 = vpow2.f32 %v10238_v25 }
 0x89c   :  { %11738 = vtanh.f32 %v4965_v45 }
 0x89d   :  { %11740 = vpow2.f32 %v10239_v62 }
 0x8a4   :  { %v11735_v17 = vpop.eup %11734 }
 0x8a5   :  { %v4975_v4 = vadd.f32 1.0, %v11735_v17  ;;  %v11737_v0 = vpop.eup %11736  ;;  %v16747_v17 = vmov 0 }
 0x8a6   :  { %v4976_v35 = vadd.f32 1.0, %v11737_v0  ;;  %v11739_v51 = vpop.eup %11738  ;;  %v16748_v17 = vsel %vm14579_vm1, 4294967295, %v16747_v17  ;;  %v16755_v0 = vld [vmem:[#allocation72_spill] sm:$0xff] }
 0x8a7   :  { %11742 = vrcp.f32 %v4975_v4  ;;  %v11741_v53 = vpop.eup %11740  ;;  %16749 = vst [vmem:[#allocation94_spill] sm:$0xff] %v16748_v17  ;;  %v16772_v17 = vld [vmem:[#allocation89_spill] sm:$0xff] }
 0x8a8   :  { %11744 = vrcp.f32 %v4976_v35  ;;  %v4977_v56 = vadd.f32 1.0, %v11741_v53  ;;  %v16756_v35 = vld [vmem:[#allocation73_spill] sm:$0xff]  ;;  %v16758_v53 = vld [vmem:[#allocation75_spill] sm:$0xff] }
 0x8aa   :  { %11746 = vrcp.f32 %v4977_v56  ;;  %v16762_v56 = vld [vmem:[#allocation83_spill] sm:$0xff] }
 0x8b1   :  { %v11743_v48 = vpop.eup %11742 }
 0x8b2   :  { %v4986_v50 = vmul.f32 %v11743_v48, %v11739_v51  ;;  %v11745_v30 = vpop.eup %11744  ;;  %v16757_v51 = vld [vmem:[#allocation74_spill] sm:$0xff]  ;;  %v16759_v48 = vld [vmem:[#allocation76_spill] sm:$0xff] }
 0x8b3   :  { %v4985_v25 = vmul.f32 %v11745_v30, %v14172_v58  ;;  %v16761_v30 = vld [vmem:[#allocation80_spill] sm:$0xff] }
 0x8b4   :  { %v11747_v4 = vpop.eup %11746 }
 0x8b5   :  { %v4987_v62 = vadd.f32 %v4986_v50, %v4985_v25  ;;  %v16760_v50 = vld [vmem:[#allocation77_spill] sm:$0xff]  ;;  %v16763_v25 = vld [vmem:[#allocation78_spill] sm:$0xff] }
 0x8b7   :  { %11748 = vtanh.f32 %v4987_v62  ;;  %v14586_v45 = vsel %vm14579_vm1, %v4987_v62, %v14172_v58  ;;  %v16764_v62 = vld [vmem:[#allocation79_spill] sm:$0xff] }
 0x8c1   :  { %v11749_v41 = vpop.eup %11748 }
 0x8c2   :  { %v4989_v38 = vmul.f32 %v11749_v41, %v11747_v4  ;;  %v16765_v4 = vld [vmem:[#allocation82_spill] sm:$0xff]  ;;  %v16766_v41 = vld [vmem:[#allocation81_spill] sm:$0xff] }
 0x8c4   :  { %v14590_v60 = vsel %vm16437_vm2, 0.0, %v4989_v38  ;;  %v14594_v61 = vsel %vm16437_vm2, %v4989_v38, 0.0  ;;  %v16767_v38 = vld [vmem:[#allocation84_spill] sm:$0xff] }
 0x8c5   :  { %16750 = vst [vmem:[#allocation14_spill] sm:$0xff] %v14590_v60  ;;  %16751 = vst [vmem:[#allocation26_spill] sm:$0xff] %v14594_v61  ;;  %v14600_v14 = vsel %vm14579_vm1, %v14590_v60, %v14186_v29  ;;  %v14606_v58 = vsel %vm14579_vm1, %v14594_v61, %v14192_v33  ;;  %v16752_v29 = vld [vmem:[#allocation24_spill] sm:$0xff]  ;;  %v16753_v33 = vld [vmem:[#allocation25_spill] sm:$0xff] }
 0x8c6   :  { %v5009_v43 = vpack.c.bf16 %v14600_v14, %v14600_v14  ;;  %v5008_v23 = vpack.c.bf16 %v14606_v58, %v14606_v58  ;;  %v16770_v61 = vld [vmem:[#allocation87_spill] sm:$0xff]  ;;  %v16771_v60 = vld [vmem:[#allocation88_spill] sm:$0xff] }
 0x8c8   :  { %5426 = vmatprep.mubr.bf16.mxu0 %v5009_v43  ;;  %5467 = vmatprep.mubr.bf16.mxu1 %v5009_v43  ;;  %v16768_v43 = vld [vmem:[#allocation85_spill] sm:$0xff] }
 0x8c9   :  { %5427 = vmatmul.mubr.bf16.vlgmr.msra.gmra.mrb[64].mxu0 %v5008_v23  ;;  %5468 = vmatmul.mubr.bf16.vlgmr.msra.gmra.mrb[64].mxu1 %v5008_v23  ;;  %v16769_v23 = vld [vmem:[#allocation86_spill] sm:$0xff] }
 0x8ca   :  { %5913 = vmatpush1.bf16.msra.mxu0 %v14201_v39  ;;  %5954 = vmatpush1.bf16.msra.mxu1 %v14206_v34 }
 0x8cb   :  { %5914 = vmatprep.subr.bf16.mxu0 %v14211_v24  ;;  %5955 = vmatprep.subr.bf16.mxu1 %v14216_v63 }
 0x8ce   :  { %5915 = vmatpush1.bf16.msra.mxu0 %v14223_v54  ;;  %5956 = vmatpush1.bf16.msra.mxu1 %v14228_v7 }
 0x8cf   :  { %5916 = vmatprep.subr.bf16.mxu0 %v14235_v15  ;;  %5957 = vmatprep.subr.bf16.mxu1 %v14240_v11 }
 0x8d2   :  { %5917 = vmatpush1.bf16.msra.mxu0 %v14247_v18  ;;  %5958 = vmatpush1.bf16.msra.mxu1 %v14252_v12 }
 0x8d3   :  { %5918 = vmatprep.subr.bf16.mxu0 %v14261_v16  ;;  %5959 = vmatprep.subr.bf16.mxu1 %v14266_v36 }
 0x8d6   :  { %5919 = vmatpush1.bf16.msra.mxu0 %v14271_v1  ;;  %5960 = vmatpush1.bf16.msra.mxu1 %v14276_v2 }
 0x8d7   :  { %5920 = vmatprep.subr.bf16.mxu0 %v14285_v47  ;;  %5961 = vmatprep.subr.bf16.mxu1 %v14290_v57 }
 0x8da   :  { %5921 = vmatpush1.bf16.msra.mxu0 %v14295_v40  ;;  %5962 = vmatpush1.bf16.msra.mxu1 %v14300_v42 }
 0x8db   :  { %5922 = vmatprep.subr.bf16.mxu0 %v14309_v13  ;;  %5963 = vmatprep.subr.bf16.mxu1 %v14314_v5 }
 0x8de   :  { %5923 = vmatpush1.bf16.msra.mxu0 %v14319_v27  ;;  %5964 = vmatpush1.bf16.msra.mxu1 %v14324_v37 }
 0x8df   :  { %5924 = vmatprep.subr.bf16.mxu0 %v14333_v6  ;;  %5965 = vmatprep.subr.bf16.mxu1 %v14338_v32 }
 0x8e2   :  { %5925 = vmatpush1.bf16.msra.mxu0 %v14343_v49  ;;  %5966 = vmatpush1.bf16.msra.mxu1 %v14348_v19 }
 0x8e3   :  { %5926 = vmatprep.subr.bf16.mxu0 %v14357_v20  ;;  %5967 = vmatprep.subr.bf16.mxu1 %v14362_v26 }
 0x8e6   :  { %5927 = vmatpush1.bf16.msra.mxu0 %v14367_v22  ;;  %5968 = vmatpush1.bf16.msra.mxu1 %v14372_v3 }
 0x8e7   :  { %5928 = vmatprep.subr.bf16.mxu0 %v14381_v28  ;;  %5969 = vmatprep.subr.bf16.mxu1 %v14386_v46 }
 0x8ea   :  { %5929 = vmatpush1.bf16.msra.mxu0 %v14391_v52  ;;  %5970 = vmatpush1.bf16.msra.mxu1 %v14396_v59 }
 0x8eb   :  { %5930 = vmatprep.subr.bf16.mxu0 %v14405_v44  ;;  %5971 = vmatprep.subr.bf16.mxu1 %v14410_v21 }
 0x8ee   :  { %5931 = vmatpush1.bf16.msra.mxu0 %v14415_v55  ;;  %5972 = vmatpush1.bf16.msra.mxu1 %v16752_v29 }
 0x8ef   :  { %5932 = vmatprep.subr.bf16.mxu0 %v16753_v33  ;;  %5973 = vmatprep.subr.bf16.mxu1 %v16754_v31 }
 0x8f2   :  { %5933 = vmatpush1.bf16.msra.mxu0 %v16755_v0  ;;  %5974 = vmatpush1.bf16.msra.mxu1 %v16756_v35 }
 0x8f3   :  { %5934 = vmatprep.subr.bf16.mxu0 %v16757_v51  ;;  %5975 = vmatprep.subr.bf16.mxu1 %v16758_v53  ;;  %v16781_v53 = vld [vmem:[#allocation36_spill] sm:$0xff]  ;;  %v16782_v51 = vld [vmem:[#allocation37_spill] sm:$0xff] }
 0x8f6   :  { %5935 = vmatpush1.bf16.msra.mxu0 %v16759_v48  ;;  %5976 = vmatpush1.bf16.msra.mxu1 %v16760_v50  ;;  %v16780_v50 = vld [vmem:[#allocation35_spill] sm:$0xff] }
 0x8f7   :  { %5936 = vmatprep.subr.bf16.mxu0 %v16761_v30  ;;  %5977 = vmatprep.subr.bf16.mxu1 %v16762_v56  ;;  %v16773_v56 = vld [vmem:[#allocation90_spill] sm:$0xff] }
 0x8f8   :  { %v16779_v30 = vld [vmem:[#allocation34_spill] sm:$0xff] }
 0x8fa   :  { %5937 = vmatpush1.bf16.msra.mxu0 %v16763_v25  ;;  %5978 = vmatpush1.bf16.msra.mxu1 %v16764_v62  ;;  %v16774_v25 = vld [vmem:[#allocation91_spill] sm:$0xff]  ;;  %v16775_v62 = vld [vmem:[#allocation92_spill] sm:$0xff] }
 0x8fb   :  { %5938 = vmatprep.subr.bf16.mxu0 %v16765_v4  ;;  %5979 = vmatprep.subr.bf16.mxu1 %v16766_v41  ;;  %v16776_v4 = vld [vmem:[#allocation93_spill] sm:$0xff] }
 0x8fc   :  { %v16777_v41 = vld [vmem:[#allocation21_spill] sm:$0xff] }
 0x8fe   :  { %5939 = vmatpush1.bf16.msra.mxu0 %v16767_v38  ;;  %5980 = vmatpush1.bf16.msra.mxu1 %v16768_v43  ;;  %v16778_v38 = vld [vmem:[#allocation10_spill] sm:$0xff] }
 0x8ff   :  { %5940 = vmatprep.subr.bf16.mxu0 %v16769_v23  ;;  %5981 = vmatprep.subr.bf16.mxu1 %v16770_v61 }
 0x902   :  { %5941 = vmatpush1.bf16.msra.mxu0 %v16771_v60  ;;  %5982 = vmatpush1.bf16.msra.mxu1 %v16772_v17 }
 0x903   :  { %5942 = vmatprep.subr.bf16.mxu0 %v16773_v56  ;;  %5983 = vmatprep.subr.bf16.mxu1 %v16774_v25 }
 0x906   :  { %5943 = vmatpush1.bf16.msra.mxu0 %v16775_v62  ;;  %5984 = vmatpush1.bf16.msra.mxu1 %v16776_v4 }
 0x907   :  { %6430 = vmatprep.subr.bf16.mxu0 %v16777_v41  ;;  %6471 = vmatprep.subr.bf16.mxu1 %v16778_v38 }
 0x99c   :  { %v5428_v43 = vpop.f32.mrb[64].mxu0  ;;  %v5469_v23 = vpop.f32.mrb[64].mxu1 }
 0x99d   :  { %v5480_v61 = vadd.f32 %v16779_v30, %v5428_v43  ;;  %v5482_v60 = vadd.f32 %v16780_v50, %v5469_v23  ;;  %v5430_v48 = vpop.f32.mrb[65].mxu0  ;;  %v5471_v17 = vpop.f32.mrb[65].mxu1 }
 0x99e   :  { %v5481_v56 = vadd.f32 %v16781_v53, %v5430_v48  ;;  %v5483_v25 = vadd.f32 %v16782_v51, %v5471_v17  ;;  %v5432_v35 = vpop.f32.mrb[66].mxu0  ;;  %v5473_v62 = vpop.f32.mrb[66].mxu1 }
 0x99f   :  { %v10304_v0 = vmul.f32 -1.442695, %v5480_v61  ;;  %v5433_v4 = vpop.f32.mrb[67].mxu0  ;;  %v5474_v31 = vpop.f32.mrb[67].mxu1  ;;  %v10306_v38 = vmul.f32 -1.442695, %v5482_v60 }
 0x9a0   :  { %v10305_v41 = vmul.f32 -1.442695, %v5481_v56 }
 0x9a1   :  { %11750 = vpow2.f32 %v10304_v0 }
 0x9a2   :  { %11752 = vpow2.f32 %v10305_v41 }
 0x9a3   :  { %11754 = vtanh.f32 %v5483_v25 }
 0x9a4   :  { %11756 = vpow2.f32 %v10306_v38 }
 0x9ab   :  { %v11751_v33 = vpop.eup %11750 }
 0x9ac   :  { %v5493_v29 = vadd.f32 1.0, %v11751_v33  ;;  %v11753_v30 = vpop.eup %11752  ;;  %v16783_v33 = vmov 0 }
 0x9ad   :  { %v5494_v50 = vadd.f32 1.0, %v11753_v30  ;;  %v11755_v53 = vpop.eup %11754  ;;  %v16784_v33 = vsel %vm14683_vm7, 4294967295, %v16783_v33 }
 0x9ae   :  { %11758 = vrcp.f32 %v5493_v29  ;;  %v11757_v48 = vpop.eup %11756  ;;  %16785 = vst [vmem:[#allocation27_spill] sm:$0xff] %v16784_v33  ;;  %v15160_v33 = vld [vmem:[%s16146_s3 + $0x1cc] ss:$16 sps:$4 sm:$0xff]  }
 0x9af   :  { %11760 = vrcp.f32 %v5494_v50  ;;  %v5495_v31 = vadd.f32 1.0, %v11757_v48 }
 0x9b1   :  { %11762 = vrcp.f32 %v5495_v31 }
 0x9b8   :  { %v11759_v17 = vpop.eup %11758 }
 0x9b9   :  { %v5504_v35 = vmul.f32 %v11759_v17, %v11755_v53  ;;  %v11761_v61 = vpop.eup %11760 }
 0x9ba   :  { %v5503_v60 = vmul.f32 %v11761_v61, %v14586_v45 }
 0x9bb   :  { %v11763_v51 = vpop.eup %11762 }
 0x9bc   :  { %v5505_v0 = vadd.f32 %v5504_v35, %v5503_v60 }
 0x9be   :  { %11764 = vtanh.f32 %v5505_v0  ;;  %v14690_v29 = vsel %vm14683_vm7, %v5505_v0, %v14586_v45 }
 0x9c8   :  { %v11765_v56 = vpop.eup %11764 }
 0x9c9   :  { %v5507_v25 = vmul.f32 %v11765_v56, %v11763_v51 }
 0x9cb   :  { %v14694_v62 = vsel %vm16437_vm2, 0.0, %v5507_v25  ;;  %v14698_v4 = vsel %vm16437_vm2, %v5507_v25, 0.0 }
 0x9cc   :  { %16786 = vst [vmem:[#allocation28_spill] sm:$0xff] %v14694_v62  ;;  %16787 = vst [vmem:[#allocation29_spill] sm:$0xff] %v14698_v4  ;;  %v14704_v43 = vsel %vm14683_vm7, %v14694_v62, %v14600_v14  ;;  %v14710_v45 = vsel %vm14683_vm7, %v14698_v4, %v14606_v58  ;;  %v16818_v14 = vld [vmem:[#allocation41_spill] sm:$0xff] }
 0x9cd   :  { %v5527_v23 = vpack.c.bf16 %v14704_v43, %v14704_v43  ;;  %v5526_v41 = vpack.c.bf16 %v14710_v45, %v14710_v45  ;;  %v15135_v4 = vld [vmem:[%s16146_s3 + $0x1ac] ss:$16 sps:$4 sm:$0xff]   ;;  %v15149_v62 = vld [vmem:[%s16146_s3 + $0x1a8] ss:$16 sps:$4 sm:$0xff]  }
 0x9cf   :  { %5944 = vmatprep.mubr.bf16.mxu0 %v5527_v23  ;;  %5985 = vmatprep.mubr.bf16.mxu1 %v5527_v23 }
 0x9d0   :  { %5945 = vmatmul.mubr.bf16.vlgmr.msra.gmra.mrb[68].mxu0 %v5526_v41  ;;  %5986 = vmatmul.mubr.bf16.vlgmr.msra.gmra.mrb[68].mxu1 %v5526_v41 }
 0x9d1   :  { %6431 = vmatpush1.bf16.msra.mxu0 %v14201_v39  ;;  %6472 = vmatpush1.bf16.msra.mxu1 %v14206_v34  ;;  %v16788_v39 = vld [vmem:[#allocation24_spill] sm:$0xff]  ;;  %v16789_v34 = vld [vmem:[#allocation25_spill] sm:$0xff] }
 0x9d2   :  { %6432 = vmatprep.subr.bf16.mxu0 %v14211_v24  ;;  %6473 = vmatprep.subr.bf16.mxu1 %v14216_v63  ;;  %v16790_v24 = vld [vmem:[#allocation71_spill] sm:$0xff]  ;;  %v16791_v63 = vld [vmem:[#allocation72_spill] sm:$0xff] }
 0x9d5   :  { %6433 = vmatpush1.bf16.msra.mxu0 %v14223_v54  ;;  %6474 = vmatpush1.bf16.msra.mxu1 %v14228_v7  ;;  %v16792_v54 = vld [vmem:[#allocation73_spill] sm:$0xff]  ;;  %v16793_v7 = vld [vmem:[#allocation74_spill] sm:$0xff] }
 0x9d6   :  { %6434 = vmatprep.subr.bf16.mxu0 %v14235_v15  ;;  %6475 = vmatprep.subr.bf16.mxu1 %v14240_v11  ;;  %v16794_v15 = vld [vmem:[#allocation75_spill] sm:$0xff]  ;;  %v16795_v11 = vld [vmem:[#allocation76_spill] sm:$0xff] }
 0x9d9   :  { %6435 = vmatpush1.bf16.msra.mxu0 %v14247_v18  ;;  %6476 = vmatpush1.bf16.msra.mxu1 %v14252_v12  ;;  %v16796_v18 = vld [vmem:[#allocation77_spill] sm:$0xff]  ;;  %v16797_v12 = vld [vmem:[#allocation80_spill] sm:$0xff] }
 0x9da   :  { %6436 = vmatprep.subr.bf16.mxu0 %v14261_v16  ;;  %6477 = vmatprep.subr.bf16.mxu1 %v14266_v36  ;;  %v16798_v16 = vld [vmem:[#allocation83_spill] sm:$0xff]  ;;  %v16799_v36 = vld [vmem:[#allocation78_spill] sm:$0xff]  ;;  %16838 = vst [vmem:[#allocation80_spill] sm:$0xff] %v15135_v4 }
 0x9db   :  { %16840 = vst [vmem:[#allocation78_spill] sm:$0xff] %v15149_v62 }
 0x9dd   :  { %6437 = vmatpush1.bf16.msra.mxu0 %v14271_v1  ;;  %6478 = vmatpush1.bf16.msra.mxu1 %v14276_v2  ;;  %v16800_v1 = vld [vmem:[#allocation79_spill] sm:$0xff]  ;;  %v16801_v2 = vld [vmem:[#allocation82_spill] sm:$0xff] }
 0x9de   :  { %6438 = vmatprep.subr.bf16.mxu0 %v14285_v47  ;;  %6479 = vmatprep.subr.bf16.mxu1 %v14290_v57  ;;  %v16802_v47 = vld [vmem:[#allocation81_spill] sm:$0xff]  ;;  %v16803_v57 = vld [vmem:[#allocation84_spill] sm:$0xff]  ;;  %16842 = vst [vmem:[#allocation82_spill] sm:$0xff] %v15160_v33 }
 0x9e1   :  { %6439 = vmatpush1.bf16.msra.mxu0 %v14295_v40  ;;  %6480 = vmatpush1.bf16.msra.mxu1 %v14300_v42  ;;  %v16804_v40 = vld [vmem:[#allocation85_spill] sm:$0xff]  ;;  %v16805_v42 = vld [vmem:[#allocation86_spill] sm:$0xff] }
 0x9e2   :  { %6440 = vmatprep.subr.bf16.mxu0 %v14309_v13  ;;  %6481 = vmatprep.subr.bf16.mxu1 %v14314_v5  ;;  %v16806_v13 = vld [vmem:[#allocation87_spill] sm:$0xff]  ;;  %v16807_v5 = vld [vmem:[#allocation88_spill] sm:$0xff] }
 0x9e5   :  { %6441 = vmatpush1.bf16.msra.mxu0 %v14319_v27  ;;  %6482 = vmatpush1.bf16.msra.mxu1 %v14324_v37  ;;  %v16808_v27 = vld [vmem:[#allocation89_spill] sm:$0xff]  ;;  %v16809_v37 = vld [vmem:[#allocation90_spill] sm:$0xff] }
 0x9e6   :  { %6442 = vmatprep.subr.bf16.mxu0 %v14333_v6  ;;  %6483 = vmatprep.subr.bf16.mxu1 %v14338_v32  ;;  %v16810_v6 = vld [vmem:[#allocation91_spill] sm:$0xff]  ;;  %v16811_v32 = vld [vmem:[#allocation92_spill] sm:$0xff] }
 0x9e9   :  { %6443 = vmatpush1.bf16.msra.mxu0 %v14343_v49  ;;  %6484 = vmatpush1.bf16.msra.mxu1 %v14348_v19  ;;  %v16812_v49 = vld [vmem:[#allocation93_spill] sm:$0xff]  ;;  %v14781_v19 = vld [vmem:[%s16146_s3 + $0x4] ss:$16 sps:$4 sm:$0xff]  }
 0x9ea   :  { %6444 = vmatprep.subr.bf16.mxu0 %v14357_v20  ;;  %6485 = vmatprep.subr.bf16.mxu1 %v14362_v26  ;;  %16813 = vst [vmem:[#allocation30_spill] sm:$0xff] %v14781_v19  ;;  %v14786_v20 = vld [vmem:[%s16146_s3 + $0xc] ss:$16 sps:$4 sm:$0xff]  }
 0x9eb   :  { %16814 = vst [vmem:[#allocation31_spill] sm:$0xff] %v14786_v20 }
 0x9ed   :  { %6445 = vmatpush1.bf16.msra.mxu0 %v14367_v22  ;;  %6486 = vmatpush1.bf16.msra.mxu1 %v14372_v3  ;;  %v16815_v3 = vld [vmem:[#allocation38_spill] sm:$0xff] }
 0x9ee   :  { %6446 = vmatprep.subr.bf16.mxu0 %v14381_v28  ;;  %6487 = vmatprep.subr.bf16.mxu1 %v14386_v46  ;;  %v16816_v46 = vld [vmem:[#allocation39_spill] sm:$0xff] }
 0x9f1   :  { %6447 = vmatpush1.bf16.msra.mxu0 %v14391_v52  ;;  %6488 = vmatpush1.bf16.msra.mxu1 %v14396_v59 }
 0x9f2   :  { %6448 = vmatprep.subr.bf16.mxu0 %v14405_v44  ;;  %6489 = vmatprep.subr.bf16.mxu1 %v14410_v21  ;;  %v16817_v21 = vld [vmem:[#allocation40_spill] sm:$0xff] }
 0x9f5   :  { %6449 = vmatpush1.bf16.msra.mxu0 %v14415_v55  ;;  %6490 = vmatpush1.bf16.msra.mxu1 %v16788_v39 }
 0x9f6   :  { %6450 = vmatprep.subr.bf16.mxu0 %v16789_v34  ;;  %6491 = vmatprep.subr.bf16.mxu1 %v16790_v24  ;;  %v16819_v24 = vmov 0 }
 0x9f7   :  { %v16820_v24 = vsel %vm14797_vm14, 4294967295, %v16819_v24 }
 0x9f8   :  { %16821 = vst [vmem:[#allocation32_spill] sm:$0xff] %v16820_v24  ;;  %v15154_v24 = vld [vmem:[%s16146_s3 + $0x1c4] ss:$16 sps:$4 sm:$0xff]  }
 0x9f9   :  { %6451 = vmatpush1.bf16.msra.mxu0 %v16791_v63  ;;  %6492 = vmatpush1.bf16.msra.mxu1 %v16792_v54  ;;  %16841 = vst [vmem:[#allocation79_spill] sm:$0xff] %v15154_v24 }
 0x9fa   :  { %6452 = vmatprep.subr.bf16.mxu0 %v16793_v7  ;;  %6493 = vmatprep.subr.bf16.mxu1 %v16794_v15 }
 0x9fd   :  { %6453 = vmatpush1.bf16.msra.mxu0 %v16795_v11  ;;  %6494 = vmatpush1.bf16.msra.mxu1 %v16796_v18 }
 0x9fe   :  { %6454 = vmatprep.subr.bf16.mxu0 %v16797_v12  ;;  %6495 = vmatprep.subr.bf16.mxu1 %v16798_v16 }
 0xa01   :  { %6455 = vmatpush1.bf16.msra.mxu0 %v16799_v36  ;;  %6496 = vmatpush1.bf16.msra.mxu1 %v16800_v1 }
 0xa02   :  { %6456 = vmatprep.subr.bf16.mxu0 %v16801_v2  ;;  %6497 = vmatprep.subr.bf16.mxu1 %v16802_v47  ;;  %v14833_v2 = vld [vmem:[%s16146_s3] ss:$16 sps:$4 sm:$0xff]   ;;  %v14848_v47 = vld [vmem:[%s16146_s3 + $0x2c] ss:$16 sps:$4 sm:$0xff]  }
 0xa05   :  { %6457 = vmatpush1.bf16.msra.mxu0 %v16803_v57  ;;  %6498 = vmatpush1.bf16.msra.mxu1 %v16804_v40  ;;  %v14855_v57 = vld [vmem:[%s16146_s3 + $0x20] ss:$16 sps:$4 sm:$0xff]   ;;  %v14860_v40 = vld [vmem:[%s16146_s3 + $0x28] ss:$16 sps:$4 sm:$0xff]  }
 0xa06   :  { %6458 = vmatprep.subr.bf16.mxu0 %v16805_v42  ;;  %6499 = vmatprep.subr.bf16.mxu1 %v16806_v13  ;;  %v14867_v42 = vld [vmem:[%s16146_s3 + $0x44] ss:$16 sps:$4 sm:$0xff]   ;;  %v14872_v13 = vld [vmem:[%s16146_s3 + $0x4c] ss:$16 sps:$4 sm:$0xff]  }
 0xa09   :  { %6459 = vmatpush1.bf16.msra.mxu0 %v16807_v5  ;;  %6500 = vmatpush1.bf16.msra.mxu1 %v16808_v27  ;;  %v14879_v5 = vld [vmem:[%s16146_s3 + $0x40] ss:$16 sps:$4 sm:$0xff]   ;;  %v14884_v27 = vld [vmem:[%s16146_s3 + $0x48] ss:$16 sps:$4 sm:$0xff]  }
 0xa0a   :  { %6460 = vmatprep.subr.bf16.mxu0 %v16809_v37  ;;  %6501 = vmatprep.subr.bf16.mxu1 %v16810_v6  ;;  %v14893_v37 = vld [vmem:[%s16146_s3 + $0x64] ss:$16 sps:$4 sm:$0xff]   ;;  %v14898_v6 = vld [vmem:[%s16146_s3 + $0x6c] ss:$16 sps:$4 sm:$0xff]  }
 0xa0d   :  { %6461 = vmatpush1.bf16.msra.mxu0 %v16811_v32  ;;  %6502 = vmatpush1.bf16.msra.mxu1 %v16812_v49  ;;  %v14903_v32 = vld [vmem:[%s16146_s3 + $0x60] ss:$16 sps:$4 sm:$0xff]   ;;  %v14908_v49 = vld [vmem:[%s16146_s3 + $0x68] ss:$16 sps:$4 sm:$0xff]  }
 0xa0e   :  { %6948 = vmatprep.subr.bf16.mxu0 %v14781_v19  ;;  %6989 = vmatprep.subr.bf16.mxu1 %v14786_v20 }
 0xaa3   :  { %v5946_v26 = vpop.f32.mrb[68].mxu0  ;;  %v5987_v22 = vpop.f32.mrb[68].mxu1 }
 0xaa4   :  { %v5998_v28 = vadd.f32 %v16815_v3, %v5946_v26  ;;  %v6000_v52 = vadd.f32 %v16816_v46, %v5987_v22  ;;  %v5948_v59 = vpop.f32.mrb[69].mxu0  ;;  %v5989_v44 = vpop.f32.mrb[69].mxu1  ;;  %v14917_v26 = vld [vmem:[%s16146_s3 + $0x84] ss:$16 sps:$4 sm:$0xff]   ;;  %v14922_v22 = vld [vmem:[%s16146_s3 + $0x8c] ss:$16 sps:$4 sm:$0xff]  }
 0xaa5   :  { %v5999_v55 = vadd.f32 %v16817_v21, %v5948_v59  ;;  %v6001_v58 = vadd.f32 %v16818_v14, %v5989_v44  ;;  %v5950_v38 = vpop.f32.mrb[70].mxu0  ;;  %v5991_v30 = vpop.f32.mrb[70].mxu1  ;;  %v14927_v3 = vld [vmem:[%s16146_s3 + $0x80] ss:$16 sps:$4 sm:$0xff]   ;;  %v14941_v46 = vld [vmem:[%s16146_s3 + $0xa4] ss:$16 sps:$4 sm:$0xff]  }
 0xaa6   :  { %v10371_v50 = vmul.f32 -1.442695, %v5998_v28  ;;  %v5951_v53 = vpop.f32.mrb[71].mxu0  ;;  %v5992_v48 = vpop.f32.mrb[71].mxu1  ;;  %v10373_v35 = vmul.f32 -1.442695, %v6000_v52 }
 0xaa7   :  { %v10372_v17 = vmul.f32 -1.442695, %v5999_v55  ;;  %v14932_v28 = vld [vmem:[%s16146_s3 + $0x88] ss:$16 sps:$4 sm:$0xff]   ;;  %v14946_v52 = vld [vmem:[%s16146_s3 + $0xac] ss:$16 sps:$4 sm:$0xff]  }
 0xaa8   :  { %11766 = vpow2.f32 %v10371_v50  ;;  %v14951_v59 = vld [vmem:[%s16146_s3 + $0xa0] ss:$16 sps:$4 sm:$0xff]   ;;  %v14956_v44 = vld [vmem:[%s16146_s3 + $0xa8] ss:$16 sps:$4 sm:$0xff]   ;;  %v14965_v21 = vld [vmem:[%s16146_s3 + $0xc4] ss:$16 sps:$4 sm:$0xff]  }
 0xaa9   :  { %11768 = vpow2.f32 %v10372_v17  ;;  %v14970_v55 = vld [vmem:[%s16146_s3 + $0xcc] ss:$16 sps:$4 sm:$0xff]   ;;  %v14975_v14 = vld [vmem:[%s16146_s3 + $0xc0] ss:$16 sps:$4 sm:$0xff]   ;;  %v14989_v38 = vld [vmem:[%s16146_s3 + $0xe4] ss:$16 sps:$4 sm:$0xff]  }
 0xaaa   :  { %11770 = vtanh.f32 %v6001_v58  ;;  %v14980_v58 = vld [vmem:[%s16146_s3 + $0xc8] ss:$16 sps:$4 sm:$0xff]   ;;  %v14994_v30 = vld [vmem:[%s16146_s3 + $0xec] ss:$16 sps:$4 sm:$0xff]   ;;  %v14999_v50 = vld [vmem:[%s16146_s3 + $0xe0] ss:$16 sps:$4 sm:$0xff]  }
 0xaab   :  { %11772 = vpow2.f32 %v10373_v35  ;;  %v15004_v53 = vld [vmem:[%s16146_s3 + $0xe8] ss:$16 sps:$4 sm:$0xff]   ;;  %v15013_v48 = vld [vmem:[%s16146_s3 + $0x104] ss:$16 sps:$4 sm:$0xff]   ;;  %v15018_v17 = vld [vmem:[%s16146_s3 + $0x10c] ss:$16 sps:$4 sm:$0xff]  }
 0xaac   :  { %v15023_v35 = vld [vmem:[%s16146_s3 + $0x100] ss:$16 sps:$4 sm:$0xff]  }
 0xab2   :  { %v11767_v61 = vpop.eup %11766 }
 0xab3   :  { %v6011_v31 = vadd.f32 1.0, %v11767_v61  ;;  %v11769_v60 = vpop.eup %11768  ;;  %v15028_v61 = vld [vmem:[%s16146_s3 + $0x108] ss:$16 sps:$4 sm:$0xff]  }
 0xab4   :  { %v6012_v0 = vadd.f32 1.0, %v11769_v60  ;;  %v11771_v51 = vpop.eup %11770  ;;  %v15042_v60 = vld [vmem:[%s16146_s3 + $0x12c] ss:$16 sps:$4 sm:$0xff]  }
 0xab5   :  { %11774 = vrcp.f32 %v6011_v31  ;;  %v11773_v56 = vpop.eup %11772  ;;  %v15037_v31 = vld [vmem:[%s16146_s3 + $0x124] ss:$16 sps:$4 sm:$0xff]  }
 0xab6   :  { %11776 = vrcp.f32 %v6012_v0  ;;  %v6013_v39 = vadd.f32 1.0, %v11773_v56  ;;  %v15047_v0 = vld [vmem:[%s16146_s3 + $0x120] ss:$16 sps:$4 sm:$0xff]   ;;  %v15061_v56 = vld [vmem:[%s16146_s3 + $0x144] ss:$16 sps:$4 sm:$0xff]  }
 0xab7   :  { %16825 = vst [vmem:[#allocation34_spill] sm:$0xff] %v15061_v56 }
 0xab8   :  { %11778 = vrcp.f32 %v6013_v39  ;;  %v15085_v39 = vld [vmem:[%s16146_s3 + $0x164] ss:$16 sps:$4 sm:$0xff]  }
 0xab9   :  { %16829 = vst [vmem:[#allocation24_spill] sm:$0xff] %v15085_v39 }
 0xabf   :  { %v11775_v25 = vpop.eup %11774 }
 0xac0   :  { %v6022_v23 = vmul.f32 %v11775_v25, %v11771_v51  ;;  %v11777_v41 = vpop.eup %11776  ;;  %v15052_v51 = vld [vmem:[%s16146_s3 + $0x128] ss:$16 sps:$4 sm:$0xff]   ;;  %v15066_v25 = vld [vmem:[%s16146_s3 + $0x14c] ss:$16 sps:$4 sm:$0xff]  }
 0xac1   :  { %v6021_v34 = vmul.f32 %v11777_v41, %v14690_v29  ;;  %16824 = vst [vmem:[#allocation10_spill] sm:$0xff] %v15052_v51  ;;  %16826 = vst [vmem:[#allocation35_spill] sm:$0xff] %v15066_v25  ;;  %v15076_v41 = vld [vmem:[%s16146_s3 + $0x148] ss:$16 sps:$4 sm:$0xff]  }
 0xac2   :  { %v11779_v7 = vpop.eup %11778  ;;  %16828 = vst [vmem:[#allocation37_spill] sm:$0xff] %v15076_v41 }
 0xac3   :  { %v6023_v63 = vadd.f32 %v6022_v23, %v6021_v34  ;;  %v15071_v23 = vld [vmem:[%s16146_s3 + $0x140] ss:$16 sps:$4 sm:$0xff]   ;;  %v15090_v34 = vld [vmem:[%s16146_s3 + $0x16c] ss:$16 sps:$4 sm:$0xff]  }
 0xac4   :  { %16827 = vst [vmem:[#allocation36_spill] sm:$0xff] %v15071_v23  ;;  %16830 = vst [vmem:[#allocation25_spill] sm:$0xff] %v15090_v34 }
 0xac5   :  { %11780 = vtanh.f32 %v6023_v63  ;;  %v14804_v54 = vsel %vm14797_vm14, %v6023_v63, %v14690_v29  ;;  %v15095_v63 = vld [vmem:[%s16146_s3 + $0x160] ss:$16 sps:$4 sm:$0xff]  }
 0xac6   :  { %16831 = vst [vmem:[#allocation71_spill] sm:$0xff] %v15095_v63 }
 0xacf   :  { %v11781_v15 = vpop.eup %11780 }
 0xad0   :  { %v6025_v11 = vmul.f32 %v11781_v15, %v11779_v7  ;;  %v15100_v7 = vld [vmem:[%s16146_s3 + $0x168] ss:$16 sps:$4 sm:$0xff]   ;;  %v15109_v15 = vld [vmem:[%s16146_s3 + $0x180] ss:$16 sps:$4 sm:$0xff]  }
 0xad1   :  { %16832 = vst [vmem:[#allocation72_spill] sm:$0xff] %v15100_v7  ;;  %16833 = vst [vmem:[#allocation73_spill] sm:$0xff] %v15109_v15 }
 0xad2   :  { %v14808_v18 = vsel %vm16437_vm2, 0.0, %v6025_v11  ;;  %v14812_v12 = vsel %vm16437_vm2, %v6025_v11, 0.0  ;;  %v15114_v11 = vld [vmem:[%s16146_s3 + $0x184] ss:$16 sps:$4 sm:$0xff]  }
 0xad3   :  { %16822 = vst [vmem:[#allocation33_spill] sm:$0xff] %v14808_v18  ;;  %16823 = vst [vmem:[#allocation21_spill] sm:$0xff] %v14812_v12  ;;  %v14818_v16 = vsel %vm14797_vm14, %v14808_v18, %v14704_v43  ;;  %v14824_v29 = vsel %vm14797_vm14, %v14812_v12, %v14710_v45  ;;  %v14838_v43 = vld [vmem:[%s16146_s3 + $0x8] ss:$16 sps:$4 sm:$0xff]   ;;  %v14843_v45 = vld [vmem:[%s16146_s3 + $0x24] ss:$16 sps:$4 sm:$0xff]  }
 0xad4   :  { %v6045_v36 = vpack.c.bf16 %v14818_v16, %v14818_v16  ;;  %v6044_v1 = vpack.c.bf16 %v14824_v29, %v14824_v29  ;;  %16834 = vst [vmem:[#allocation74_spill] sm:$0xff] %v15114_v11  ;;  %v15129_v12 = vld [vmem:[%s16146_s3 + $0x1a4] ss:$16 sps:$4 sm:$0xff]   ;;  %v15142_v18 = vld [vmem:[%s16146_s3 + $0x1a0] ss:$16 sps:$4 sm:$0xff]  }
 0xad5   :  { %16837 = vst [vmem:[#allocation77_spill] sm:$0xff] %v15129_v12  ;;  %16839 = vst [vmem:[#allocation83_spill] sm:$0xff] %v15142_v18 }
 0xad6   :  { %6462 = vmatprep.mubr.bf16.mxu0 %v6045_v36  ;;  %6503 = vmatprep.mubr.bf16.mxu1 %v6045_v36  ;;  %v15119_v36 = vld [vmem:[%s16146_s3 + $0x188] ss:$16 sps:$4 sm:$0xff]  }
 0xad7   :  { %6463 = vmatmul.mubr.bf16.vlgmr.msra.gmra.mrb[72].mxu0 %v6044_v1  ;;  %6504 = vmatmul.mubr.bf16.vlgmr.msra.gmra.mrb[72].mxu1 %v6044_v1  ;;  %16835 = vst [vmem:[#allocation75_spill] sm:$0xff] %v15119_v36  ;;  %v15124_v1 = vld [vmem:[%s16146_s3 + $0x18c] ss:$16 sps:$4 sm:$0xff]  }
 0xad8   :  { %6949 = vmatpush1.bf16.msra.mxu0 %v14833_v2  ;;  %6990 = vmatpush1.bf16.msra.mxu1 %v14838_v43  ;;  %16836 = vst [vmem:[#allocation76_spill] sm:$0xff] %v15124_v1 }
 0xad9   :  { %6950 = vmatprep.subr.bf16.mxu0 %v14843_v45  ;;  %6991 = vmatprep.subr.bf16.mxu1 %v14848_v47 }
 0xadc   :  { %6951 = vmatpush1.bf16.msra.mxu0 %v14855_v57  ;;  %6992 = vmatpush1.bf16.msra.mxu1 %v14860_v40 }
 0xadd   :  { %6952 = vmatprep.subr.bf16.mxu0 %v14867_v42  ;;  %6993 = vmatprep.subr.bf16.mxu1 %v14872_v13 }
 0xae0   :  { %6953 = vmatpush1.bf16.msra.mxu0 %v14879_v5  ;;  %6994 = vmatpush1.bf16.msra.mxu1 %v14884_v27 }
 0xae1   :  { %6954 = vmatprep.subr.bf16.mxu0 %v14893_v37  ;;  %6995 = vmatprep.subr.bf16.mxu1 %v14898_v6 }
 0xae4   :  { %6955 = vmatpush1.bf16.msra.mxu0 %v14903_v32  ;;  %6996 = vmatpush1.bf16.msra.mxu1 %v14908_v49 }
 0xae5   :  { %6956 = vmatprep.subr.bf16.mxu0 %v14917_v26  ;;  %6997 = vmatprep.subr.bf16.mxu1 %v14922_v22 }
 0xae8   :  { %6957 = vmatpush1.bf16.msra.mxu0 %v14927_v3  ;;  %6998 = vmatpush1.bf16.msra.mxu1 %v14932_v28 }
 0xae9   :  { %6958 = vmatprep.subr.bf16.mxu0 %v14941_v46  ;;  %6999 = vmatprep.subr.bf16.mxu1 %v14946_v52 }
 0xaec   :  { %6959 = vmatpush1.bf16.msra.mxu0 %v14951_v59  ;;  %7000 = vmatpush1.bf16.msra.mxu1 %v14956_v44 }
 0xaed   :  { %6960 = vmatprep.subr.bf16.mxu0 %v14965_v21  ;;  %7001 = vmatprep.subr.bf16.mxu1 %v14970_v55 }
 0xaf0   :  { %6961 = vmatpush1.bf16.msra.mxu0 %v14975_v14  ;;  %7002 = vmatpush1.bf16.msra.mxu1 %v14980_v58 }
 0xaf1   :  { %6962 = vmatprep.subr.bf16.mxu0 %v14989_v38  ;;  %7003 = vmatprep.subr.bf16.mxu1 %v14994_v30 }
 0xaf4   :  { %6963 = vmatpush1.bf16.msra.mxu0 %v14999_v50  ;;  %7004 = vmatpush1.bf16.msra.mxu1 %v15004_v53 }
 0xaf5   :  { %6964 = vmatprep.subr.bf16.mxu0 %v15013_v48  ;;  %7005 = vmatprep.subr.bf16.mxu1 %v15018_v17 }
 0xaf8   :  { %6965 = vmatpush1.bf16.msra.mxu0 %v15023_v35  ;;  %7006 = vmatpush1.bf16.msra.mxu1 %v15028_v61 }
 0xaf9   :  { %6966 = vmatprep.subr.bf16.mxu0 %v15037_v31  ;;  %7007 = vmatprep.subr.bf16.mxu1 %v15042_v60 }
 0xafc   :  { %6967 = vmatpush1.bf16.msra.mxu0 %v15047_v0  ;;  %7008 = vmatpush1.bf16.msra.mxu1 %v15052_v51 }
 0xafd   :  { %6968 = vmatprep.subr.bf16.mxu0 %v15061_v56  ;;  %7009 = vmatprep.subr.bf16.mxu1 %v15066_v25 }
 0xb00   :  { %6969 = vmatpush1.bf16.msra.mxu0 %v15071_v23  ;;  %7010 = vmatpush1.bf16.msra.mxu1 %v15076_v41 }
 0xb01   :  { %6970 = vmatprep.subr.bf16.mxu0 %v15085_v39  ;;  %7011 = vmatprep.subr.bf16.mxu1 %v15090_v34  ;;  %v16852_v39 = vld [vmem:[#allocation45_spill] sm:$0xff] }
 0xb04   :  { %6971 = vmatpush1.bf16.msra.mxu0 %v15095_v63  ;;  %7012 = vmatpush1.bf16.msra.mxu1 %v15100_v7  ;;  %v16851_v63 = vld [vmem:[#allocation44_spill] sm:$0xff] }
 0xb05   :  { %6972 = vmatprep.subr.bf16.mxu0 %v15114_v11  ;;  %7013 = vmatprep.subr.bf16.mxu1 %v15124_v1 }
 0xb08   :  { %6973 = vmatpush1.bf16.msra.mxu0 %v15109_v15  ;;  %7014 = vmatpush1.bf16.msra.mxu1 %v15119_v36  ;;  %v15178_v36 = vld [vmem:[%s16146_s3 + $0x1e4] ss:$16 sps:$4 sm:$0xff]  }
 0xb09   :  { %6974 = vmatprep.subr.bf16.mxu0 %v15129_v12  ;;  %7015 = vmatprep.subr.bf16.mxu1 %v15135_v4  ;;  %v15166_v12 = vld [vmem:[%s16146_s3 + $0x1c0] ss:$16 sps:$4 sm:$0xff]   ;;  %v15173_v4 = vld [vmem:[%s16146_s3 + $0x1c8] ss:$16 sps:$4 sm:$0xff]   ;;  %16845 = vst [vmem:[#allocation85_spill] sm:$0xff] %v15178_v36 }
 0xb0a   :  { %16843 = vst [vmem:[#allocation81_spill] sm:$0xff] %v15166_v12  ;;  %16844 = vst [vmem:[#allocation84_spill] sm:$0xff] %v15173_v4 }
 0xb0c   :  { %6975 = vmatpush1.bf16.msra.mxu0 %v15142_v18  ;;  %7016 = vmatpush1.bf16.msra.mxu1 %v15149_v62  ;;  %v15184_v18 = vld [vmem:[%s16146_s3 + $0x1ec] ss:$16 sps:$4 sm:$0xff]  }
 0xb0d   :  { %6976 = vmatprep.subr.bf16.mxu0 %v15154_v24  ;;  %7017 = vmatprep.subr.bf16.mxu1 %v15160_v33  ;;  %16846 = vst [vmem:[#allocation86_spill] sm:$0xff] %v15184_v18  ;;  %v15190_v24 = vld [vmem:[%s16146_s3 + $0x1e0] ss:$16 sps:$4 sm:$0xff]   ;;  %v15197_v33 = vld [vmem:[%s16146_s3 + $0x1e8] ss:$16 sps:$4 sm:$0xff]  }
 0xb0e   :  { %16847 = vst [vmem:[#allocation87_spill] sm:$0xff] %v15190_v24  ;;  %16848 = vst [vmem:[#allocation88_spill] sm:$0xff] %v15197_v33 }
 0xb10   :  { %6977 = vmatpush1.bf16.msra.mxu0 %v15166_v12  ;;  %7018 = vmatpush1.bf16.msra.mxu1 %v15173_v4  ;;  %v16849_v4 = vld [vmem:[#allocation42_spill] sm:$0xff] }
 0xb11   :  { %6978 = vmatprep.subr.bf16.mxu0 %v15178_v36  ;;  %7019 = vmatprep.subr.bf16.mxu1 %v15184_v18  ;;  %v16850_v36 = vld [vmem:[#allocation43_spill] sm:$0xff] }
 0xb14   :  { %6979 = vmatpush1.bf16.msra.mxu0 %v15190_v24  ;;  %7020 = vmatpush1.bf16.msra.mxu1 %v15197_v33 }
 0xb15   :  { %7466 = vmatprep.subr.bf16.mxu0 %v14781_v19  ;;  %7507 = vmatprep.subr.bf16.mxu1 %v14786_v20 }
 0xbaa   :  { %v6464_v12 = vpop.f32.mrb[72].mxu0  ;;  %v6505_v62 = vpop.f32.mrb[72].mxu1 }
 0xbab   :  { %v6516_v15 = vadd.f32 %v16849_v4, %v6464_v12  ;;  %v6518_v1 = vadd.f32 %v16850_v36, %v6505_v62  ;;  %v6466_v11 = vpop.f32.mrb[73].mxu0  ;;  %v6507_v7 = vpop.f32.mrb[73].mxu1 }
 0xbac   :  { %v6517_v34 = vadd.f32 %v16851_v63, %v6466_v11  ;;  %v6519_v18 = vadd.f32 %v16852_v39, %v6507_v7  ;;  %v6468_v41 = vpop.f32.mrb[74].mxu0  ;;  %v6509_v24 = vpop.f32.mrb[74].mxu1 }
 0xbad   :  { %v10438_v23 = vmul.f32 -1.442695, %v6516_v15  ;;  %v6469_v33 = vpop.f32.mrb[75].mxu0  ;;  %v6510_v25 = vpop.f32.mrb[75].mxu1  ;;  %v10440_v20 = vmul.f32 -1.442695, %v6518_v1 }
 0xbae   :  { %v10439_v19 = vmul.f32 -1.442695, %v6517_v34  ;;  %v16860_v1 = vld [vmem:[#allocation35_spill] sm:$0xff] }
 0xbaf   :  { %11782 = vpow2.f32 %v10438_v23 }
 0xbb0   :  { %11784 = vpow2.f32 %v10439_v19 }
 0xbb1   :  { %11786 = vtanh.f32 %v6519_v18 }
 0xbb2   :  { %11788 = vpow2.f32 %v10440_v20 }
 0xbb9   :  { %v11783_v56 = vpop.eup %11782 }
 0xbba   :  { %v6529_v51 = vadd.f32 1.0, %v11783_v56  ;;  %v11785_v4 = vpop.eup %11784  ;;  %v16853_v56 = vmov 0 }
 0xbbb   :  { %v6530_v62 = vadd.f32 1.0, %v11785_v4  ;;  %v11787_v12 = vpop.eup %11786  ;;  %v16854_v56 = vsel %vm15211_vm5, 4294967295, %v16853_v56  ;;  %v16861_v4 = vld [vmem:[#allocation36_spill] sm:$0xff] }
 0xbbc   :  { %11790 = vrcp.f32 %v6529_v51  ;;  %v11789_v63 = vpop.eup %11788  ;;  %16855 = vst [vmem:[#allocation89_spill] sm:$0xff] %v16854_v56  ;;  %v16878_v56 = vld [vmem:[#allocation84_spill] sm:$0xff] }
 0xbbd   :  { %11792 = vrcp.f32 %v6530_v62  ;;  %v6531_v24 = vadd.f32 1.0, %v11789_v63  ;;  %v16862_v62 = vld [vmem:[#allocation37_spill] sm:$0xff] }
 0xbbe   :  { %v16864_v63 = vld [vmem:[#allocation25_spill] sm:$0xff] }
 0xbbf   :  { %11794 = vrcp.f32 %v6531_v24  ;;  %v16868_v24 = vld [vmem:[#allocation76_spill] sm:$0xff] }
 0xbc6   :  { %v11791_v39 = vpop.eup %11790 }
 0xbc7   :  { %v6540_v41 = vmul.f32 %v11791_v39, %v11787_v12  ;;  %v11793_v33 = vpop.eup %11792  ;;  %v16863_v12 = vld [vmem:[#allocation24_spill] sm:$0xff]  ;;  %v16865_v39 = vld [vmem:[#allocation71_spill] sm:$0xff] }
 0xbc8   :  { %v6539_v19 = vmul.f32 %v11793_v33, %v14804_v54  ;;  %v16867_v33 = vld [vmem:[#allocation74_spill] sm:$0xff] }
 0xbc9   :  { %v11795_v51 = vpop.eup %11794 }
 0xbca   :  { %v6541_v20 = vadd.f32 %v6540_v41, %v6539_v19  ;;  %v16866_v41 = vld [vmem:[#allocation72_spill] sm:$0xff]  ;;  %v16869_v19 = vld [vmem:[#allocation73_spill] sm:$0xff] }
 0xbcc   :  { %11796 = vtanh.f32 %v6541_v20  ;;  %v15218_v18 = vsel %vm15211_vm5, %v6541_v20, %v14804_v54  ;;  %v16870_v20 = vld [vmem:[#allocation75_spill] sm:$0xff] }
 0xbd6   :  { %v11797_v25 = vpop.eup %11796 }
 0xbd7   :  { %v6543_v23 = vmul.f32 %v11797_v25, %v11795_v51  ;;  %v16871_v51 = vld [vmem:[#allocation77_spill] sm:$0xff]  ;;  %v16872_v25 = vld [vmem:[#allocation80_spill] sm:$0xff] }
 0xbd9   :  { %v15222_v34 = vsel %vm16437_vm2, 0.0, %v6543_v23  ;;  %v15226_v7 = vsel %vm16437_vm2, %v6543_v23, 0.0  ;;  %v16873_v23 = vld [vmem:[#allocation83_spill] sm:$0xff] }
 0xbda   :  { %16856 = vst [vmem:[#allocation90_spill] sm:$0xff] %v15222_v34  ;;  %16857 = vst [vmem:[#allocation91_spill] sm:$0xff] %v15226_v7  ;;  %v15232_v15 = vsel %vm15211_vm5, %v15222_v34, %v14818_v16  ;;  %v15238_v54 = vsel %vm15211_vm5, %v15226_v7, %v14824_v29  ;;  %v16858_v16 = vld [vmem:[#allocation10_spill] sm:$0xff]  ;;  %v16877_v34 = vld [vmem:[#allocation81_spill] sm:$0xff] }
 0xbdb   :  { %v6563_v11 = vpack.c.bf16 %v15232_v15, %v15232_v15  ;;  %v6562_v36 = vpack.c.bf16 %v15238_v54, %v15238_v54  ;;  %v16859_v29 = vld [vmem:[#allocation34_spill] sm:$0xff] }
 0xbdc   :  { %v16876_v7 = vld [vmem:[#allocation82_spill] sm:$0xff] }
 0xbdd   :  { %6980 = vmatprep.mubr.bf16.mxu0 %v6563_v11  ;;  %7021 = vmatprep.mubr.bf16.mxu1 %v6563_v11  ;;  %v16874_v11 = vld [vmem:[#allocation78_spill] sm:$0xff] }
 0xbde   :  { %6981 = vmatmul.mubr.bf16.vlgmr.msra.gmra.mrb[76].mxu0 %v6562_v36  ;;  %7022 = vmatmul.mubr.bf16.vlgmr.msra.gmra.mrb[76].mxu1 %v6562_v36  ;;  %v16875_v36 = vld [vmem:[#allocation79_spill] sm:$0xff] }
 0xbdf   :  { %7467 = vmatpush1.bf16.msra.mxu0 %v14833_v2  ;;  %7508 = vmatpush1.bf16.msra.mxu1 %v14838_v43 }
 0xbe0   :  { %7468 = vmatprep.subr.bf16.mxu0 %v14843_v45  ;;  %7509 = vmatprep.subr.bf16.mxu1 %v14848_v47 }
 0xbe3   :  { %7469 = vmatpush1.bf16.msra.mxu0 %v14855_v57  ;;  %7510 = vmatpush1.bf16.msra.mxu1 %v14860_v40 }
 0xbe4   :  { %7470 = vmatprep.subr.bf16.mxu0 %v14867_v42  ;;  %7511 = vmatprep.subr.bf16.mxu1 %v14872_v13 }
 0xbe7   :  { %7471 = vmatpush1.bf16.msra.mxu0 %v14879_v5  ;;  %7512 = vmatpush1.bf16.msra.mxu1 %v14884_v27 }
 0xbe8   :  { %7472 = vmatprep.subr.bf16.mxu0 %v14893_v37  ;;  %7513 = vmatprep.subr.bf16.mxu1 %v14898_v6 }
 0xbeb   :  { %7473 = vmatpush1.bf16.msra.mxu0 %v14903_v32  ;;  %7514 = vmatpush1.bf16.msra.mxu1 %v14908_v49 }
 0xbec   :  { %7474 = vmatprep.subr.bf16.mxu0 %v14917_v26  ;;  %7515 = vmatprep.subr.bf16.mxu1 %v14922_v22 }
 0xbef   :  { %7475 = vmatpush1.bf16.msra.mxu0 %v14927_v3  ;;  %7516 = vmatpush1.bf16.msra.mxu1 %v14932_v28 }
 0xbf0   :  { %7476 = vmatprep.subr.bf16.mxu0 %v14941_v46  ;;  %7517 = vmatprep.subr.bf16.mxu1 %v14946_v52 }
 0xbf3   :  { %7477 = vmatpush1.bf16.msra.mxu0 %v14951_v59  ;;  %7518 = vmatpush1.bf16.msra.mxu1 %v14956_v44 }
 0xbf4   :  { %7478 = vmatprep.subr.bf16.mxu0 %v14965_v21  ;;  %7519 = vmatprep.subr.bf16.mxu1 %v14970_v55 }
 0xbf7   :  { %7479 = vmatpush1.bf16.msra.mxu0 %v14975_v14  ;;  %7520 = vmatpush1.bf16.msra.mxu1 %v14980_v58 }
 0xbf8   :  { %7480 = vmatprep.subr.bf16.mxu0 %v14989_v38  ;;  %7521 = vmatprep.subr.bf16.mxu1 %v14994_v30 }
 0xbfb   :  { %7481 = vmatpush1.bf16.msra.mxu0 %v14999_v50  ;;  %7522 = vmatpush1.bf16.msra.mxu1 %v15004_v53 }
 0xbfc   :  { %7482 = vmatprep.subr.bf16.mxu0 %v15013_v48  ;;  %7523 = vmatprep.subr.bf16.mxu1 %v15018_v17 }
 0xbff   :  { %7483 = vmatpush1.bf16.msra.mxu0 %v15023_v35  ;;  %7524 = vmatpush1.bf16.msra.mxu1 %v15028_v61 }
 0xc00   :  { %7484 = vmatprep.subr.bf16.mxu0 %v15037_v31  ;;  %7525 = vmatprep.subr.bf16.mxu1 %v15042_v60 }
 0xc03   :  { %7485 = vmatpush1.bf16.msra.mxu0 %v15047_v0  ;;  %7526 = vmatpush1.bf16.msra.mxu1 %v16858_v16 }
 0xc04   :  { %7486 = vmatprep.subr.bf16.mxu0 %v16859_v29  ;;  %7527 = vmatprep.subr.bf16.mxu1 %v16860_v1 }
 0xc07   :  { %7487 = vmatpush1.bf16.msra.mxu0 %v16861_v4  ;;  %7528 = vmatpush1.bf16.msra.mxu1 %v16862_v62 }
 0xc08   :  { %7488 = vmatprep.subr.bf16.mxu0 %v16863_v12  ;;  %7529 = vmatprep.subr.bf16.mxu1 %v16864_v63  ;;  %v16887_v63 = vld [vmem:[#allocation48_spill] sm:$0xff]  ;;  %v16888_v12 = vld [vmem:[#allocation49_spill] sm:$0xff] }
 0xc0b   :  { %7489 = vmatpush1.bf16.msra.mxu0 %v16865_v39  ;;  %7530 = vmatpush1.bf16.msra.mxu1 %v16866_v41  ;;  %v16886_v41 = vld [vmem:[#allocation47_spill] sm:$0xff] }
 0xc0c   :  { %7490 = vmatprep.subr.bf16.mxu0 %v16867_v33  ;;  %7531 = vmatprep.subr.bf16.mxu1 %v16868_v24  ;;  %v16879_v24 = vld [vmem:[#allocation85_spill] sm:$0xff]  ;;  %v16885_v33 = vld [vmem:[#allocation46_spill] sm:$0xff] }
 0xc0f   :  { %7491 = vmatpush1.bf16.msra.mxu0 %v16869_v19  ;;  %7532 = vmatpush1.bf16.msra.mxu1 %v16870_v20  ;;  %v16880_v19 = vld [vmem:[#allocation86_spill] sm:$0xff]  ;;  %v16881_v20 = vld [vmem:[#allocation87_spill] sm:$0xff] }
 0xc10   :  { %7492 = vmatprep.subr.bf16.mxu0 %v16871_v51  ;;  %7533 = vmatprep.subr.bf16.mxu1 %v16872_v25  ;;  %v16882_v51 = vld [vmem:[#allocation88_spill] sm:$0xff]  ;;  %v16883_v25 = vld [vmem:[#allocation30_spill] sm:$0xff] }
 0xc13   :  { %7493 = vmatpush1.bf16.msra.mxu0 %v16873_v23  ;;  %7534 = vmatpush1.bf16.msra.mxu1 %v16874_v11  ;;  %v16884_v23 = vld [vmem:[#allocation31_spill] sm:$0xff] }
 0xc14   :  { %7494 = vmatprep.subr.bf16.mxu0 %v16875_v36  ;;  %7535 = vmatprep.subr.bf16.mxu1 %v16876_v7 }
 0xc17   :  { %7495 = vmatpush1.bf16.msra.mxu0 %v16877_v34  ;;  %7536 = vmatpush1.bf16.msra.mxu1 %v16878_v56 }
 0xc18   :  { %7496 = vmatprep.subr.bf16.mxu0 %v16879_v24  ;;  %7537 = vmatprep.subr.bf16.mxu1 %v16880_v19 }
 0xc1b   :  { %7497 = vmatpush1.bf16.msra.mxu0 %v16881_v20  ;;  %7538 = vmatpush1.bf16.msra.mxu1 %v16882_v51 }
 0xc1c   :  { %7984 = vmatprep.subr.bf16.mxu0 %v16883_v25  ;;  %8025 = vmatprep.subr.bf16.mxu1 %v16884_v23 }
 0xcb1   :  { %v6982_v11 = vpop.f32.mrb[76].mxu0  ;;  %v7023_v36 = vpop.f32.mrb[76].mxu1 }
 0xcb2   :  { %v7034_v7 = vadd.f32 %v16885_v33, %v6982_v11  ;;  %v7036_v34 = vadd.f32 %v16886_v41, %v7023_v36  ;;  %v6984_v39 = vpop.f32.mrb[77].mxu0  ;;  %v7025_v56 = vpop.f32.mrb[77].mxu1 }
 0xcb3   :  { %v7035_v24 = vadd.f32 %v16887_v63, %v6984_v39  ;;  %v7037_v19 = vadd.f32 %v16888_v12, %v7025_v56  ;;  %v6986_v62 = vpop.f32.mrb[78].mxu0  ;;  %v7027_v20 = vpop.f32.mrb[78].mxu1 }
 0xcb4   :  { %v10505_v4 = vmul.f32 -1.442695, %v7034_v7  ;;  %v6987_v51 = vpop.f32.mrb[79].mxu0  ;;  %v7028_v1 = vpop.f32.mrb[79].mxu1  ;;  %v10507_v23 = vmul.f32 -1.442695, %v7036_v34 }
 0xcb5   :  { %v10506_v25 = vmul.f32 -1.442695, %v7035_v24 }
 0xcb6   :  { %11798 = vpow2.f32 %v10505_v4 }
 0xcb7   :  { %11800 = vpow2.f32 %v10506_v25 }
 0xcb8   :  { %11802 = vtanh.f32 %v7037_v19 }
 0xcb9   :  { %11804 = vpow2.f32 %v10507_v23 }
 0xcc0   :  { %v11799_v29 = vpop.eup %11798 }
 0xcc1   :  { %v7047_v16 = vadd.f32 1.0, %v11799_v29  ;;  %v11801_v33 = vpop.eup %11800  ;;  %v16889_v29 = vmov 0 }
 0xcc2   :  { %v7048_v41 = vadd.f32 1.0, %v11801_v33  ;;  %v11803_v63 = vpop.eup %11802  ;;  %v16890_v29 = vsel %vm15315_vm15, 4294967295, %v16889_v29 }
 0xcc3   :  { %11806 = vrcp.f32 %v7047_v16  ;;  %v11805_v39 = vpop.eup %11804  ;;  %16891 = vst [vmem:[#allocation92_spill] sm:$0xff] %v16890_v29  ;;  %v15792_v29 = vld [vmem:[%s16146_s3 + $0x1cc] ss:$16 sps:$4 sm:$0xff]  }
 0xcc4   :  { %11808 = vrcp.f32 %v7048_v41  ;;  %v7049_v1 = vadd.f32 1.0, %v11805_v39 }
 0xcc6   :  { %11810 = vrcp.f32 %v7049_v1 }
 0xccd   :  { %v11807_v56 = vpop.eup %11806 }
 0xcce   :  { %v7058_v62 = vmul.f32 %v11807_v56, %v11803_v63  ;;  %v11809_v7 = vpop.eup %11808 }
 0xccf   :  { %v7057_v34 = vmul.f32 %v11809_v7, %v15218_v18 }
 0xcd0   :  { %v11811_v12 = vpop.eup %11810 }
 0xcd1   :  { %v7059_v4 = vadd.f32 %v7058_v62, %v7057_v34 }
 0xcd3   :  { %11812 = vtanh.f32 %v7059_v4  ;;  %v15322_v16 = vsel %vm15315_vm15, %v7059_v4, %v15218_v18 }
 0xcdd   :  { %v11813_v24 = vpop.eup %11812 }
 0xcde   :  { %v7061_v19 = vmul.f32 %v11813_v24, %v11811_v12 }
 0xce0   :  { %v15326_v20 = vsel %vm16437_vm2, 0.0, %v7061_v19  ;;  %v15330_v51 = vsel %vm16437_vm2, %v7061_v19, 0.0 }
 0xce1   :  { %16892 = vst [vmem:[#allocation93_spill] sm:$0xff] %v15326_v20  ;;  %16893 = vst [vmem:[#allocation38_spill] sm:$0xff] %v15330_v51  ;;  %v15336_v11 = vsel %vm15315_vm15, %v15326_v20, %v15232_v15  ;;  %v15342_v18 = vsel %vm15315_vm15, %v15330_v51, %v15238_v54  ;;  %v16922_v15 = vld [vmem:[#allocation53_spill] sm:$0xff]  ;;  %v15786_v20 = vld [vmem:[%s16146_s3 + $0x1c4] ss:$16 sps:$4 sm:$0xff]  }
 0xce2   :  { %v7081_v36 = vpack.c.bf16 %v15336_v11, %v15336_v11  ;;  %v7080_v25 = vpack.c.bf16 %v15342_v18, %v15342_v18  ;;  %v15781_v51 = vld [vmem:[%s16146_s3 + $0x1a8] ss:$16 sps:$4 sm:$0xff]  }
 0xce4   :  { %7498 = vmatprep.mubr.bf16.mxu0 %v7081_v36  ;;  %7539 = vmatprep.mubr.bf16.mxu1 %v7081_v36 }
 0xce5   :  { %7499 = vmatmul.mubr.bf16.vlgmr.msra.gmra.mrb[80].mxu0 %v7080_v25  ;;  %7540 = vmatmul.mubr.bf16.vlgmr.msra.gmra.mrb[80].mxu1 %v7080_v25 }
 0xce6   :  { %7985 = vmatpush1.bf16.msra.mxu0 %v14833_v2  ;;  %8026 = vmatpush1.bf16.msra.mxu1 %v14838_v43  ;;  %v16894_v2 = vld [vmem:[#allocation10_spill] sm:$0xff] }
 0xce7   :  { %7986 = vmatprep.subr.bf16.mxu0 %v14843_v45  ;;  %8027 = vmatprep.subr.bf16.mxu1 %v14848_v47  ;;  %v16895_v43 = vld [vmem:[#allocation34_spill] sm:$0xff]  ;;  %v16896_v45 = vld [vmem:[#allocation35_spill] sm:$0xff]  ;;  %v16897_v47 = vld [vmem:[#allocation36_spill] sm:$0xff] }
 0xcea   :  { %7987 = vmatpush1.bf16.msra.mxu0 %v14855_v57  ;;  %8028 = vmatpush1.bf16.msra.mxu1 %v14860_v40  ;;  %v16898_v57 = vld [vmem:[#allocation37_spill] sm:$0xff]  ;;  %v16899_v40 = vld [vmem:[#allocation24_spill] sm:$0xff] }
 0xceb   :  { %7988 = vmatprep.subr.bf16.mxu0 %v14867_v42  ;;  %8029 = vmatprep.subr.bf16.mxu1 %v14872_v13  ;;  %v16900_v42 = vld [vmem:[#allocation25_spill] sm:$0xff]  ;;  %v16901_v13 = vld [vmem:[#allocation71_spill] sm:$0xff] }
 0xcec   :  { %16944 = vst [vmem:[#allocation25_spill] sm:$0xff] %v15781_v51  ;;  %16945 = vst [vmem:[#allocation71_spill] sm:$0xff] %v15786_v20 }
 0xcee   :  { %7989 = vmatpush1.bf16.msra.mxu0 %v14879_v5  ;;  %8030 = vmatpush1.bf16.msra.mxu1 %v14884_v27  ;;  %v16902_v5 = vld [vmem:[#allocation72_spill] sm:$0xff]  ;;  %v16903_v27 = vld [vmem:[#allocation74_spill] sm:$0xff] }
 0xcef   :  { %7990 = vmatprep.subr.bf16.mxu0 %v14893_v37  ;;  %8031 = vmatprep.subr.bf16.mxu1 %v14898_v6  ;;  %v16904_v37 = vld [vmem:[#allocation76_spill] sm:$0xff]  ;;  %v16905_v6 = vld [vmem:[#allocation73_spill] sm:$0xff]  ;;  %16946 = vst [vmem:[#allocation72_spill] sm:$0xff] %v15792_v29 }
 0xcf2   :  { %7991 = vmatpush1.bf16.msra.mxu0 %v14903_v32  ;;  %8032 = vmatpush1.bf16.msra.mxu1 %v14908_v49  ;;  %v16906_v32 = vld [vmem:[#allocation75_spill] sm:$0xff]  ;;  %v16907_v49 = vld [vmem:[#allocation77_spill] sm:$0xff] }
 0xcf3   :  { %7992 = vmatprep.subr.bf16.mxu0 %v14917_v26  ;;  %8033 = vmatprep.subr.bf16.mxu1 %v14922_v22  ;;  %v16908_v26 = vld [vmem:[#allocation80_spill] sm:$0xff]  ;;  %v16909_v22 = vld [vmem:[#allocation83_spill] sm:$0xff] }
 0xcf6   :  { %7993 = vmatpush1.bf16.msra.mxu0 %v14927_v3  ;;  %8034 = vmatpush1.bf16.msra.mxu1 %v14932_v28  ;;  %v16910_v3 = vld [vmem:[#allocation78_spill] sm:$0xff]  ;;  %v16911_v28 = vld [vmem:[#allocation79_spill] sm:$0xff] }
 0xcf7   :  { %7994 = vmatprep.subr.bf16.mxu0 %v14941_v46  ;;  %8035 = vmatprep.subr.bf16.mxu1 %v14946_v52  ;;  %v16912_v46 = vld [vmem:[#allocation82_spill] sm:$0xff]  ;;  %v16913_v52 = vld [vmem:[#allocation81_spill] sm:$0xff] }
 0xcfa   :  { %7995 = vmatpush1.bf16.msra.mxu0 %v14951_v59  ;;  %8036 = vmatpush1.bf16.msra.mxu1 %v14956_v44  ;;  %v16914_v59 = vld [vmem:[#allocation84_spill] sm:$0xff]  ;;  %v16915_v44 = vld [vmem:[#allocation85_spill] sm:$0xff] }
 0xcfb   :  { %7996 = vmatprep.subr.bf16.mxu0 %v14965_v21  ;;  %8037 = vmatprep.subr.bf16.mxu1 %v14970_v55  ;;  %v16916_v21 = vld [vmem:[#allocation86_spill] sm:$0xff]  ;;  %v16917_v55 = vld [vmem:[#allocation87_spill] sm:$0xff] }
 0xcfe   :  { %7997 = vmatpush1.bf16.msra.mxu0 %v14975_v14  ;;  %8038 = vmatpush1.bf16.msra.mxu1 %v14980_v58  ;;  %v16918_v14 = vld [vmem:[#allocation88_spill] sm:$0xff] }
 0xcff   :  { %7998 = vmatprep.subr.bf16.mxu0 %v14989_v38  ;;  %8039 = vmatprep.subr.bf16.mxu1 %v14994_v30  ;;  %v15413_v58 = vld [vmem:[%s16146_s3 + $0x4] ss:$16 sps:$4 sm:$0xff]   ;;  %v15418_v38 = vld [vmem:[%s16146_s3 + $0xc] ss:$16 sps:$4 sm:$0xff]  }
 0xd02   :  { %7999 = vmatpush1.bf16.msra.mxu0 %v14999_v50  ;;  %8040 = vmatpush1.bf16.msra.mxu1 %v15004_v53  ;;  %v16919_v53 = vld [vmem:[#allocation50_spill] sm:$0xff] }
 0xd03   :  { %8000 = vmatprep.subr.bf16.mxu0 %v15013_v48  ;;  %8041 = vmatprep.subr.bf16.mxu1 %v15018_v17  ;;  %v16920_v17 = vld [vmem:[#allocation51_spill] sm:$0xff] }
 0xd06   :  { %8001 = vmatpush1.bf16.msra.mxu0 %v15023_v35  ;;  %8042 = vmatpush1.bf16.msra.mxu1 %v15028_v61 }
 0xd07   :  { %8002 = vmatprep.subr.bf16.mxu0 %v15037_v31  ;;  %8043 = vmatprep.subr.bf16.mxu1 %v15042_v60  ;;  %v16921_v60 = vld [vmem:[#allocation52_spill] sm:$0xff] }
 0xd0a   :  { %8003 = vmatpush1.bf16.msra.mxu0 %v15047_v0  ;;  %8044 = vmatpush1.bf16.msra.mxu1 %v16894_v2 }
 0xd0b   :  { %8004 = vmatprep.subr.bf16.mxu0 %v16895_v43  ;;  %8045 = vmatprep.subr.bf16.mxu1 %v16896_v45  ;;  %v16923_v45 = vmov 0 }
 0xd0c   :  { %v16924_v45 = vsel %vm15429_vm11, 4294967295, %v16923_v45 }
 0xd0d   :  { %16925 = vst [vmem:[#allocation39_spill] sm:$0xff] %v16924_v45  ;;  %v15774_v45 = vld [vmem:[%s16146_s3 + $0x1ac] ss:$16 sps:$4 sm:$0xff]  }
 0xd0e   :  { %8005 = vmatpush1.bf16.msra.mxu0 %v16897_v47  ;;  %8046 = vmatpush1.bf16.msra.mxu1 %v16898_v57  ;;  %16943 = vst [vmem:[#allocation24_spill] sm:$0xff] %v15774_v45 }
 0xd0f   :  { %8006 = vmatprep.subr.bf16.mxu0 %v16899_v40  ;;  %8047 = vmatprep.subr.bf16.mxu1 %v16900_v42 }
 0xd12   :  { %8007 = vmatpush1.bf16.msra.mxu0 %v16901_v13  ;;  %8048 = vmatpush1.bf16.msra.mxu1 %v16902_v5 }
 0xd13   :  { %8008 = vmatprep.subr.bf16.mxu0 %v16903_v27  ;;  %8049 = vmatprep.subr.bf16.mxu1 %v16904_v37 }
 0xd16   :  { %8009 = vmatpush1.bf16.msra.mxu0 %v16905_v6  ;;  %8050 = vmatpush1.bf16.msra.mxu1 %v16906_v32 }
 0xd17   :  { %8010 = vmatprep.subr.bf16.mxu0 %v16907_v49  ;;  %8051 = vmatprep.subr.bf16.mxu1 %v16908_v26  ;;  %v15465_v49 = vld [vmem:[%s16146_s3] ss:$16 sps:$4 sm:$0xff]   ;;  %v15480_v26 = vld [vmem:[%s16146_s3 + $0x2c] ss:$16 sps:$4 sm:$0xff]  }
 0xd1a   :  { %8011 = vmatpush1.bf16.msra.mxu0 %v16909_v22  ;;  %8052 = vmatpush1.bf16.msra.mxu1 %v16910_v3  ;;  %v15487_v22 = vld [vmem:[%s16146_s3 + $0x20] ss:$16 sps:$4 sm:$0xff]   ;;  %v15492_v3 = vld [vmem:[%s16146_s3 + $0x28] ss:$16 sps:$4 sm:$0xff]  }
 0xd1b   :  { %8012 = vmatprep.subr.bf16.mxu0 %v16911_v28  ;;  %8053 = vmatprep.subr.bf16.mxu1 %v16912_v46  ;;  %v15499_v28 = vld [vmem:[%s16146_s3 + $0x44] ss:$16 sps:$4 sm:$0xff]   ;;  %v15504_v46 = vld [vmem:[%s16146_s3 + $0x4c] ss:$16 sps:$4 sm:$0xff]  }
 0xd1e   :  { %8013 = vmatpush1.bf16.msra.mxu0 %v16913_v52  ;;  %8054 = vmatpush1.bf16.msra.mxu1 %v16914_v59  ;;  %v15511_v52 = vld [vmem:[%s16146_s3 + $0x40] ss:$16 sps:$4 sm:$0xff]   ;;  %v15516_v59 = vld [vmem:[%s16146_s3 + $0x48] ss:$16 sps:$4 sm:$0xff]  }
 0xd1f   :  { %8014 = vmatprep.subr.bf16.mxu0 %v16915_v44  ;;  %8055 = vmatprep.subr.bf16.mxu1 %v16916_v21  ;;  %v15523_v44 = vld [vmem:[%s16146_s3 + $0x64] ss:$16 sps:$4 sm:$0xff]   ;;  %v15530_v21 = vld [vmem:[%s16146_s3 + $0x60] ss:$16 sps:$4 sm:$0xff]  }
 0xd22   :  { %8015 = vmatpush1.bf16.msra.mxu0 %v16917_v55  ;;  %8056 = vmatpush1.bf16.msra.mxu1 %v16918_v14  ;;  %v15537_v55 = vld [vmem:[%s16146_s3 + $0x6c] ss:$16 sps:$4 sm:$0xff]   ;;  %v15542_v14 = vld [vmem:[%s16146_s3 + $0x68] ss:$16 sps:$4 sm:$0xff]  }
 0xd23   :  { %8502 = vmatprep.subr.bf16.mxu0 %v15413_v58  ;;  %8543 = vmatprep.subr.bf16.mxu1 %v15418_v38 }
 0xdb8   :  { %v7500_v30 = vpop.f32.mrb[80].mxu0  ;;  %v7541_v50 = vpop.f32.mrb[80].mxu1 }
 0xdb9   :  { %v7552_v48 = vadd.f32 %v16919_v53, %v7500_v30  ;;  %v7554_v35 = vadd.f32 %v16920_v17, %v7541_v50  ;;  %v7502_v61 = vpop.f32.mrb[81].mxu0  ;;  %v7543_v31 = vpop.f32.mrb[81].mxu1  ;;  %v15549_v30 = vld [vmem:[%s16146_s3 + $0x84] ss:$16 sps:$4 sm:$0xff]   ;;  %v15554_v50 = vld [vmem:[%s16146_s3 + $0x80] ss:$16 sps:$4 sm:$0xff]  }
 0xdba   :  { %v7553_v0 = vadd.f32 %v16921_v60, %v7502_v61  ;;  %v7555_v54 = vadd.f32 %v16922_v15, %v7543_v31  ;;  %v7504_v23 = vpop.f32.mrb[82].mxu0  ;;  %v7545_v33 = vpop.f32.mrb[82].mxu1  ;;  %v15559_v53 = vld [vmem:[%s16146_s3 + $0x8c] ss:$16 sps:$4 sm:$0xff]   ;;  %v15573_v17 = vld [vmem:[%s16146_s3 + $0xa4] ss:$16 sps:$4 sm:$0xff]  }
 0xdbb   :  { %v10572_v41 = vmul.f32 -1.442695, %v7552_v48  ;;  %v7505_v63 = vpop.f32.mrb[83].mxu0  ;;  %v7546_v39 = vpop.f32.mrb[83].mxu1  ;;  %v10574_v62 = vmul.f32 -1.442695, %v7554_v35 }
 0xdbc   :  { %v10573_v56 = vmul.f32 -1.442695, %v7553_v0  ;;  %v15565_v48 = vld [vmem:[%s16146_s3 + $0x88] ss:$16 sps:$4 sm:$0xff]   ;;  %v15578_v35 = vld [vmem:[%s16146_s3 + $0xa0] ss:$16 sps:$4 sm:$0xff]  }
 0xdbd   :  { %11814 = vpow2.f32 %v10572_v41  ;;  %v15583_v61 = vld [vmem:[%s16146_s3 + $0xac] ss:$16 sps:$4 sm:$0xff]   ;;  %v15589_v31 = vld [vmem:[%s16146_s3 + $0xa8] ss:$16 sps:$4 sm:$0xff]   ;;  %v15597_v60 = vld [vmem:[%s16146_s3 + $0xc4] ss:$16 sps:$4 sm:$0xff]  }
 0xdbe   :  { %11816 = vpow2.f32 %v10573_v56  ;;  %v15602_v0 = vld [vmem:[%s16146_s3 + $0xc0] ss:$16 sps:$4 sm:$0xff]   ;;  %v15607_v15 = vld [vmem:[%s16146_s3 + $0xcc] ss:$16 sps:$4 sm:$0xff]   ;;  %v15621_v23 = vld [vmem:[%s16146_s3 + $0xe4] ss:$16 sps:$4 sm:$0xff]  }
 0xdbf   :  { %11818 = vtanh.f32 %v7555_v54  ;;  %v15613_v54 = vld [vmem:[%s16146_s3 + $0xc8] ss:$16 sps:$4 sm:$0xff]   ;;  %v15626_v33 = vld [vmem:[%s16146_s3 + $0xe0] ss:$16 sps:$4 sm:$0xff]   ;;  %v15631_v41 = vld [vmem:[%s16146_s3 + $0xec] ss:$16 sps:$4 sm:$0xff]  }
 0xdc0   :  { %11820 = vpow2.f32 %v10574_v62  ;;  %v15637_v63 = vld [vmem:[%s16146_s3 + $0xe8] ss:$16 sps:$4 sm:$0xff]   ;;  %v15645_v39 = vld [vmem:[%s16146_s3 + $0x104] ss:$16 sps:$4 sm:$0xff]   ;;  %v15650_v56 = vld [vmem:[%s16146_s3 + $0x100] ss:$16 sps:$4 sm:$0xff]  }
 0xdc1   :  { %v15655_v62 = vld [vmem:[%s16146_s3 + $0x10c] ss:$16 sps:$4 sm:$0xff]  }
 0xdc7   :  { %v11815_v7 = vpop.eup %11814 }
 0xdc8   :  { %v7565_v1 = vadd.f32 1.0, %v11815_v7  ;;  %v11817_v34 = vpop.eup %11816  ;;  %v15661_v7 = vld [vmem:[%s16146_s3 + $0x108] ss:$16 sps:$4 sm:$0xff]  }
 0xdc9   :  { %v7566_v4 = vadd.f32 1.0, %v11817_v34  ;;  %v11819_v12 = vpop.eup %11818  ;;  %v15674_v34 = vld [vmem:[%s16146_s3 + $0x120] ss:$16 sps:$4 sm:$0xff]  }
 0xdca   :  { %11822 = vrcp.f32 %v7565_v1  ;;  %v11821_v24 = vpop.eup %11820  ;;  %v15669_v1 = vld [vmem:[%s16146_s3 + $0x124] ss:$16 sps:$4 sm:$0xff]  }
 0xdcb   :  { %11824 = vrcp.f32 %v7566_v4  ;;  %v7567_v2 = vadd.f32 1.0, %v11821_v24  ;;  %v15679_v4 = vld [vmem:[%s16146_s3 + $0x12c] ss:$16 sps:$4 sm:$0xff]   ;;  %v15693_v24 = vld [vmem:[%s16146_s3 + $0x144] ss:$16 sps:$4 sm:$0xff]  }
 0xdcc   :  { %16929 = vst [vmem:[#allocation43_spill] sm:$0xff] %v15693_v24 }
 0xdcd   :  { %11826 = vrcp.f32 %v7567_v2  ;;  %v15717_v2 = vld [vmem:[%s16146_s3 + $0x164] ss:$16 sps:$4 sm:$0xff]  }
 0xdce   :  { %16933 = vst [vmem:[#allocation31_spill] sm:$0xff] %v15717_v2 }
 0xdd4   :  { %v11823_v19 = vpop.eup %11822 }
 0xdd5   :  { %v7576_v36 = vmul.f32 %v11823_v19, %v11819_v12  ;;  %v11825_v25 = vpop.eup %11824  ;;  %v15685_v12 = vld [vmem:[%s16146_s3 + $0x128] ss:$16 sps:$4 sm:$0xff]   ;;  %v15698_v19 = vld [vmem:[%s16146_s3 + $0x140] ss:$16 sps:$4 sm:$0xff]  }
 0xdd6   :  { %v7575_v43 = vmul.f32 %v11825_v25, %v15322_v16  ;;  %16928 = vst [vmem:[#allocation42_spill] sm:$0xff] %v15685_v12  ;;  %16930 = vst [vmem:[#allocation44_spill] sm:$0xff] %v15698_v19  ;;  %v15709_v25 = vld [vmem:[%s16146_s3 + $0x148] ss:$16 sps:$4 sm:$0xff]  }
 0xdd7   :  { %v11827_v40 = vpop.eup %11826  ;;  %16932 = vst [vmem:[#allocation30_spill] sm:$0xff] %v15709_v25 }
 0xdd8   :  { %v7577_v47 = vadd.f32 %v7576_v36, %v7575_v43  ;;  %v15703_v36 = vld [vmem:[%s16146_s3 + $0x14c] ss:$16 sps:$4 sm:$0xff]   ;;  %v15722_v43 = vld [vmem:[%s16146_s3 + $0x160] ss:$16 sps:$4 sm:$0xff]  }
 0xdd9   :  { %16931 = vst [vmem:[#allocation45_spill] sm:$0xff] %v15703_v36  ;;  %16934 = vst [vmem:[#allocation46_spill] sm:$0xff] %v15722_v43 }
 0xdda   :  { %11828 = vtanh.f32 %v7577_v47  ;;  %v15436_v57 = vsel %vm15429_vm11, %v7577_v47, %v15322_v16  ;;  %v15727_v47 = vld [vmem:[%s16146_s3 + $0x16c] ss:$16 sps:$4 sm:$0xff]  }
 0xddb   :  { %16935 = vst [vmem:[#allocation47_spill] sm:$0xff] %v15727_v47 }
 0xde4   :  { %v11829_v42 = vpop.eup %11828 }
 0xde5   :  { %v7579_v13 = vmul.f32 %v11829_v42, %v11827_v40  ;;  %v15733_v40 = vld [vmem:[%s16146_s3 + $0x168] ss:$16 sps:$4 sm:$0xff]   ;;  %v15741_v42 = vld [vmem:[%s16146_s3 + $0x184] ss:$16 sps:$4 sm:$0xff]  }
 0xde6   :  { %16936 = vst [vmem:[#allocation48_spill] sm:$0xff] %v15733_v40  ;;  %16937 = vst [vmem:[#allocation49_spill] sm:$0xff] %v15741_v42 }
 0xde7   :  { %v15440_v5 = vsel %vm16437_vm2, 0.0, %v7579_v13  ;;  %v15444_v27 = vsel %vm16437_vm2, %v7579_v13, 0.0  ;;  %v15746_v13 = vld [vmem:[%s16146_s3 + $0x180] ss:$16 sps:$4 sm:$0xff]   ;;  %vm15843_vm2 = vmand %vm8098_vm3, %vm8099_vm9  ;;  %vm8616_vm9 = vcmp.le.s32.totalorder %v12902_v8, 14 }
 0xde8   :  { %16926 = vst [vmem:[#allocation40_spill] sm:$0xff] %v15440_v5  ;;  %16927 = vst [vmem:[#allocation41_spill] sm:$0xff] %v15444_v27  ;;  %v15450_v37 = vsel %vm15429_vm11, %v15440_v5, %v15336_v11  ;;  %v15456_v16 = vsel %vm15429_vm11, %v15444_v27, %v15342_v18  ;;  %v15470_v11 = vld [vmem:[%s16146_s3 + $0x8] ss:$16 sps:$4 sm:$0xff]   ;;  %v15475_v18 = vld [vmem:[%s16146_s3 + $0x24] ss:$16 sps:$4 sm:$0xff]  }
 0xde9   :  { %v7599_v6 = vpack.c.bf16 %v15450_v37, %v15450_v37  ;;  %v7598_v32 = vpack.c.bf16 %v15456_v16, %v15456_v16  ;;  %16938 = vst [vmem:[#allocation10_spill] sm:$0xff] %v15746_v13  ;;  %v15762_v27 = vld [vmem:[%s16146_s3 + $0x1a4] ss:$16 sps:$4 sm:$0xff]   ;;  %v15769_v5 = vld [vmem:[%s16146_s3 + $0x1a0] ss:$16 sps:$4 sm:$0xff]   ;;  %vm16959_vm11 = vcmp.lt.s32.totalorder %v12892_v9, 2 }
 0xdea   :  { %16941 = vst [vmem:[#allocation36_spill] sm:$0xff] %v15762_v27  ;;  %16942 = vst [vmem:[#allocation37_spill] sm:$0xff] %v15769_v5 }
 0xdeb   :  { %8016 = vmatprep.mubr.bf16.mxu0 %v7599_v6  ;;  %8057 = vmatprep.mubr.bf16.mxu1 %v7599_v6  ;;  %v15751_v6 = vld [vmem:[%s16146_s3 + $0x188] ss:$16 sps:$4 sm:$0xff]   ;;  %vm16960_vm3 = vmmov %vm16959_vm11 }
 0xdec   :  { %8017 = vmatmul.mubr.bf16.vlgmr.msra.gmra.mrb[84].mxu0 %v7598_v32  ;;  %8058 = vmatmul.mubr.bf16.vlgmr.msra.gmra.mrb[84].mxu1 %v7598_v32  ;;  %16939 = vst [vmem:[#allocation34_spill] sm:$0xff] %v15751_v6  ;;  %v15756_v32 = vld [vmem:[%s16146_s3 + $0x18c] ss:$16 sps:$4 sm:$0xff]  }
 0xded   :  { %8503 = vmatpush1.bf16.msra.mxu0 %v15465_v49  ;;  %8544 = vmatpush1.bf16.msra.mxu1 %v15470_v11  ;;  %16940 = vst [vmem:[#allocation35_spill] sm:$0xff] %v15756_v32 }
 0xdee   :  { %8504 = vmatprep.subr.bf16.mxu0 %v15475_v18  ;;  %8545 = vmatprep.subr.bf16.mxu1 %v15480_v26 }
 0xdf1   :  { %8505 = vmatpush1.bf16.msra.mxu0 %v15487_v22  ;;  %8546 = vmatpush1.bf16.msra.mxu1 %v15492_v3 }
 0xdf2   :  { %8506 = vmatprep.subr.bf16.mxu0 %v15499_v28  ;;  %8547 = vmatprep.subr.bf16.mxu1 %v15504_v46 }
 0xdf5   :  { %8507 = vmatpush1.bf16.msra.mxu0 %v15511_v52  ;;  %8548 = vmatpush1.bf16.msra.mxu1 %v15516_v59 }
 0xdf6   :  { %8508 = vmatprep.subr.bf16.mxu0 %v15523_v44  ;;  %8549 = vmatprep.subr.bf16.mxu1 %v15537_v55 }
 0xdf9   :  { %8509 = vmatpush1.bf16.msra.mxu0 %v15530_v21  ;;  %8550 = vmatpush1.bf16.msra.mxu1 %v15542_v14 }
 0xdfa   :  { %8510 = vmatprep.subr.bf16.mxu0 %v15549_v30  ;;  %8551 = vmatprep.subr.bf16.mxu1 %v15559_v53 }
 0xdfd   :  { %8511 = vmatpush1.bf16.msra.mxu0 %v15554_v50  ;;  %8552 = vmatpush1.bf16.msra.mxu1 %v15565_v48 }
 0xdfe   :  { %8512 = vmatprep.subr.bf16.mxu0 %v15573_v17  ;;  %8553 = vmatprep.subr.bf16.mxu1 %v15583_v61 }
 0xe01   :  { %8513 = vmatpush1.bf16.msra.mxu0 %v15578_v35  ;;  %8554 = vmatpush1.bf16.msra.mxu1 %v15589_v31 }
 0xe02   :  { %8514 = vmatprep.subr.bf16.mxu0 %v15597_v60  ;;  %8555 = vmatprep.subr.bf16.mxu1 %v15607_v15 }
 0xe05   :  { %8515 = vmatpush1.bf16.msra.mxu0 %v15602_v0  ;;  %8556 = vmatpush1.bf16.msra.mxu1 %v15613_v54 }
 0xe06   :  { %8516 = vmatprep.subr.bf16.mxu0 %v15621_v23  ;;  %8557 = vmatprep.subr.bf16.mxu1 %v15631_v41 }
 0xe09   :  { %8517 = vmatpush1.bf16.msra.mxu0 %v15626_v33  ;;  %8558 = vmatpush1.bf16.msra.mxu1 %v15637_v63 }
 0xe0a   :  { %8518 = vmatprep.subr.bf16.mxu0 %v15645_v39  ;;  %8559 = vmatprep.subr.bf16.mxu1 %v15655_v62 }
 0xe0d   :  { %8519 = vmatpush1.bf16.msra.mxu0 %v15650_v56  ;;  %8560 = vmatpush1.bf16.msra.mxu1 %v15661_v7 }
 0xe0e   :  { %8520 = vmatprep.subr.bf16.mxu0 %v15669_v1  ;;  %8561 = vmatprep.subr.bf16.mxu1 %v15679_v4 }
 0xe11   :  { %8521 = vmatpush1.bf16.msra.mxu0 %v15674_v34  ;;  %8562 = vmatpush1.bf16.msra.mxu1 %v15685_v12 }
 0xe12   :  { %8522 = vmatprep.subr.bf16.mxu0 %v15693_v24  ;;  %8563 = vmatprep.subr.bf16.mxu1 %v15703_v36 }
 0xe15   :  { %8523 = vmatpush1.bf16.msra.mxu0 %v15698_v19  ;;  %8564 = vmatpush1.bf16.msra.mxu1 %v15709_v25 }
 0xe16   :  { %8524 = vmatprep.subr.bf16.mxu0 %v15717_v2  ;;  %8565 = vmatprep.subr.bf16.mxu1 %v15727_v47  ;;  %v16956_v2 = vld [vmem:[#allocation57_spill] sm:$0xff] }
 0xe19   :  { %8525 = vmatpush1.bf16.msra.mxu0 %v15722_v43  ;;  %8566 = vmatpush1.bf16.msra.mxu1 %v15733_v40  ;;  %v16955_v43 = vld [vmem:[#allocation56_spill] sm:$0xff] }
 0xe1a   :  { %8526 = vmatprep.subr.bf16.mxu0 %v15741_v42  ;;  %8567 = vmatprep.subr.bf16.mxu1 %v15756_v32 }
 0xe1d   :  { %8527 = vmatpush1.bf16.msra.mxu0 %v15746_v13  ;;  %8568 = vmatpush1.bf16.msra.mxu1 %v15751_v6  ;;  %v15810_v6 = vld [vmem:[%s16146_s3 + $0x1e4] ss:$16 sps:$4 sm:$0xff]  }
 0xe1e   :  { %8528 = vmatprep.subr.bf16.mxu0 %v15762_v27  ;;  %8569 = vmatprep.subr.bf16.mxu1 %v15774_v45  ;;  %v15798_v27 = vld [vmem:[%s16146_s3 + $0x1c0] ss:$16 sps:$4 sm:$0xff]   ;;  %v15805_v45 = vld [vmem:[%s16146_s3 + $0x1c8] ss:$16 sps:$4 sm:$0xff]   ;;  %16949 = vst [vmem:[#allocation73_spill] sm:$0xff] %v15810_v6 }
 0xe1f   :  { %16947 = vst [vmem:[#allocation74_spill] sm:$0xff] %v15798_v27  ;;  %16948 = vst [vmem:[#allocation76_spill] sm:$0xff] %v15805_v45 }
 0xe21   :  { %8529 = vmatpush1.bf16.msra.mxu0 %v15769_v5  ;;  %8570 = vmatpush1.bf16.msra.mxu1 %v15781_v51  ;;  %v15816_v5 = vld [vmem:[%s16146_s3 + $0x1ec] ss:$16 sps:$4 sm:$0xff]  }
 0xe22   :  { %8530 = vmatprep.subr.bf16.mxu0 %v15786_v20  ;;  %8571 = vmatprep.subr.bf16.mxu1 %v15792_v29  ;;  %16950 = vst [vmem:[#allocation75_spill] sm:$0xff] %v15816_v5  ;;  %v15822_v20 = vld [vmem:[%s16146_s3 + $0x1e0] ss:$16 sps:$4 sm:$0xff]   ;;  %v15829_v29 = vld [vmem:[%s16146_s3 + $0x1e8] ss:$16 sps:$4 sm:$0xff]  }
 0xe23   :  { %16951 = vst [vmem:[#allocation77_spill] sm:$0xff] %v15822_v20  ;;  %16952 = vst [vmem:[#allocation80_spill] sm:$0xff] %v15829_v29 }
 0xe25   :  { %8531 = vmatpush1.bf16.msra.mxu0 %v15798_v27  ;;  %8572 = vmatpush1.bf16.msra.mxu1 %v15805_v45  ;;  %v16953_v45 = vld [vmem:[#allocation54_spill] sm:$0xff] }
 0xe26   :  { %8532 = vmatprep.subr.bf16.mxu0 %v15810_v6  ;;  %8573 = vmatprep.subr.bf16.mxu1 %v15816_v5  ;;  %v16954_v6 = vld [vmem:[#allocation55_spill] sm:$0xff] }
 0xe29   :  { %8533 = vmatpush1.bf16.msra.mxu0 %v15822_v20  ;;  %8574 = vmatpush1.bf16.msra.mxu1 %v15829_v29 }
 0xe2a   :  { %9020 = vmatprep.subr.bf16.mxu0 %v15413_v58  ;;  %9061 = vmatprep.subr.bf16.mxu1 %v15418_v38 }
 0xebf   :  { %v8018_v27 = vpop.f32.mrb[84].mxu0  ;;  %v8059_v51 = vpop.f32.mrb[84].mxu1 }
 0xec0   :  { %v8070_v13 = vadd.f32 %v16953_v45, %v8018_v27  ;;  %v8072_v32 = vadd.f32 %v16954_v6, %v8059_v51  ;;  %v8020_v42 = vpop.f32.mrb[85].mxu0  ;;  %v8061_v40 = vpop.f32.mrb[85].mxu1 }
 0xec1   :  { %v8071_v47 = vadd.f32 %v16955_v43, %v8020_v42  ;;  %v8073_v5 = vadd.f32 %v16956_v2, %v8061_v40  ;;  %v8022_v25 = vpop.f32.mrb[86].mxu0  ;;  %v8063_v20 = vpop.f32.mrb[86].mxu1 }
 0xec2   :  { %v10639_v19 = vmul.f32 -1.442695, %v8070_v13  ;;  %v8023_v29 = vpop.f32.mrb[87].mxu0  ;;  %v8064_v36 = vpop.f32.mrb[87].mxu1  ;;  %v10641_v38 = vmul.f32 -1.442695, %v8072_v32 }
 0xec3   :  { %v10640_v58 = vmul.f32 -1.442695, %v8071_v47 }
 0xec4   :  { %11830 = vpow2.f32 %v10639_v19 }
 0xec5   :  { %11832 = vpow2.f32 %v10640_v58 }
 0xec6   :  { %11834 = vtanh.f32 %v8073_v5 }
 0xec7   :  { %11836 = vpow2.f32 %v10641_v38 }
 0xece   :  { %v11831_v24 = vpop.eup %11830 }
 0xecf   :  { %v8083_v12 = vadd.f32 1.0, %v11831_v24  ;;  %v11833_v45 = vpop.eup %11832  ;;  %v16957_v24 = vmov 0 }
 0xed0   :  { %v8084_v51 = vadd.f32 1.0, %v11833_v45  ;;  %v11835_v27 = vpop.eup %11834  ;;  %v16958_v24 = vsel %vm15843_vm2, 4294967295, %v16957_v24  ;;  %v16993_v45 = vld [vmem:[#allocation61_spill] sm:$0xff] }
 0xed1   :  { %11838 = vrcp.f32 %v8083_v12  ;;  %v11837_v43 = vpop.eup %11836 }
 0xed2   :  { %11840 = vrcp.f32 %v8084_v51  ;;  %v8085_v20 = vadd.f32 1.0, %v11837_v43 }
 0xed4   :  { %11842 = vrcp.f32 %v8085_v20 }
 0xedb   :  { %v11839_v2 = vpop.eup %11838 }
 0xedc   :  { %v8094_v25 = vmul.f32 %v11839_v2, %v11835_v27  ;;  %v11841_v29 = vpop.eup %11840 }
 0xedd   :  { %v8093_v19 = vmul.f32 %v11841_v29, %v15436_v57 }
 0xede   :  { %v11843_v36 = vpop.eup %11842 }
 0xedf   :  { %v8095_v5 = vadd.f32 %v8094_v25, %v8093_v19 }
 0xee1   :  { %11844 = vtanh.f32 %v8095_v5  ;;  %v15850_v12 = vsel %vm15843_vm2, %v8095_v5, %v15436_v57 }
 0xeeb   :  { %v11845_v47 = vpop.eup %11844 }
 0xeec   :  { %v8097_v40 = vmul.f32 %v11845_v47, %v11843_v36 }
 0xeee   :  { %v15854_v42 = vsel %vm16959_vm11, 0.0, %v8097_v40  ;;  %v15858_v13 = vsel %vm16960_vm3, %v8097_v40, 0.0  ;;  %vm16439_vm11 = vmpackc.low %vm13312_vm10, %vm12910_vm6  ;;  %vm8617_vm3 = vcmp.gt.s32.totalorder %v12906_v10, 14 }
 0xeef   :  { %v15864_v6 = vsel %vm15843_vm2, %v15854_v42, %v15450_v37  ;;  %v15870_v57 = vsel %vm15843_vm2, %v15858_v13, %v15456_v16  ;;  %v16961_v37 = vld [vmem:[#allocation42_spill] sm:$0xff]  ;;  %v16962_v16 = vld [vmem:[#allocation43_spill] sm:$0xff]  ;;  %vm16996_vm2 = vcmp.lt.s32.totalorder %v12892_v9, 2  ;;  %v11603_v9 = vld [vmem:[%s16148_s5 + $0x8] sm:$0xff]  }
 0xef0   :  { %v8117_v32 = vpack.c.bf16 %v15864_v6, %v15864_v6  ;;  %v8116_v58 = vpack.c.bf16 %v15870_v57, %v15870_v57 }
 0xef2   :  { %8534 = vmatprep.mubr.bf16.mxu0 %v8117_v32  ;;  %8575 = vmatprep.mubr.bf16.mxu1 %v8117_v32 }
 0xef3   :  { %8535 = vmatmul.mubr.bf16.vlgmr.msra.gmra.mrb[88].mxu0 %v8116_v58  ;;  %8576 = vmatmul.mubr.bf16.vlgmr.msra.gmra.mrb[88].mxu1 %v8116_v58 }
 0xef4   :  { %9021 = vmatpush1.bf16.msra.mxu0 %v15465_v49  ;;  %9062 = vmatpush1.bf16.msra.mxu1 %v15470_v11  ;;  %v16963_v49 = vld [vmem:[#allocation45_spill] sm:$0xff]  ;;  %v16964_v11 = vld [vmem:[#allocation44_spill] sm:$0xff] }
 0xef5   :  { %9022 = vmatprep.subr.bf16.mxu0 %v15475_v18  ;;  %9063 = vmatprep.subr.bf16.mxu1 %v15480_v26  ;;  %v16965_v18 = vld [vmem:[#allocation30_spill] sm:$0xff]  ;;  %v16966_v26 = vld [vmem:[#allocation31_spill] sm:$0xff] }
 0xef8   :  { %9023 = vmatpush1.bf16.msra.mxu0 %v15487_v22  ;;  %9064 = vmatpush1.bf16.msra.mxu1 %v15492_v3  ;;  %v16967_v22 = vld [vmem:[#allocation47_spill] sm:$0xff]  ;;  %v16968_v3 = vld [vmem:[#allocation46_spill] sm:$0xff] }
 0xef9   :  { %9024 = vmatprep.subr.bf16.mxu0 %v15499_v28  ;;  %9065 = vmatprep.subr.bf16.mxu1 %v15504_v46  ;;  %v16969_v28 = vld [vmem:[#allocation48_spill] sm:$0xff]  ;;  %v16970_v46 = vld [vmem:[#allocation49_spill] sm:$0xff] }
 0xefc   :  { %9025 = vmatpush1.bf16.msra.mxu0 %v15511_v52  ;;  %9066 = vmatpush1.bf16.msra.mxu1 %v15516_v59  ;;  %v16971_v52 = vld [vmem:[#allocation35_spill] sm:$0xff]  ;;  %v16972_v59 = vld [vmem:[#allocation10_spill] sm:$0xff] }
 0xefd   :  { %9026 = vmatprep.subr.bf16.mxu0 %v15523_v44  ;;  %9067 = vmatprep.subr.bf16.mxu1 %v15537_v55  ;;  %v16973_v44 = vld [vmem:[#allocation34_spill] sm:$0xff]  ;;  %v16975_v55 = vld [vmem:[#allocation24_spill] sm:$0xff] }
 0xf00   :  { %9027 = vmatpush1.bf16.msra.mxu0 %v15530_v21  ;;  %9068 = vmatpush1.bf16.msra.mxu1 %v15542_v14  ;;  %v16974_v21 = vld [vmem:[#allocation36_spill] sm:$0xff]  ;;  %v16976_v14 = vld [vmem:[#allocation37_spill] sm:$0xff] }
 0xf01   :  { %9028 = vmatprep.subr.bf16.mxu0 %v15549_v30  ;;  %9069 = vmatprep.subr.bf16.mxu1 %v15559_v53  ;;  %v16977_v30 = vld [vmem:[#allocation25_spill] sm:$0xff]  ;;  %v16979_v53 = vld [vmem:[#allocation72_spill] sm:$0xff] }
 0xf04   :  { %9029 = vmatpush1.bf16.msra.mxu0 %v15554_v50  ;;  %9070 = vmatpush1.bf16.msra.mxu1 %v15565_v48  ;;  %v16978_v50 = vld [vmem:[#allocation71_spill] sm:$0xff]  ;;  %v16980_v48 = vld [vmem:[#allocation74_spill] sm:$0xff] }
 0xf05   :  { %9030 = vmatprep.subr.bf16.mxu0 %v15573_v17  ;;  %9071 = vmatprep.subr.bf16.mxu1 %v15583_v61  ;;  %v16981_v17 = vld [vmem:[#allocation76_spill] sm:$0xff]  ;;  %v16983_v61 = vld [vmem:[#allocation75_spill] sm:$0xff] }
 0xf08   :  { %9031 = vmatpush1.bf16.msra.mxu0 %v15578_v35  ;;  %9072 = vmatpush1.bf16.msra.mxu1 %v15589_v31  ;;  %v16982_v35 = vld [vmem:[#allocation73_spill] sm:$0xff]  ;;  %v17013_v31 = vld [vmem:[#allocation20_spill] sm:$0xff] }
 0xf09   :  { %9032 = vmatprep.subr.bf16.mxu0 %v15597_v60  ;;  %9073 = vmatprep.subr.bf16.mxu1 %v15607_v15  ;;  %v16987_v15 = vld [vmem:[#allocation96_spill] sm:$0xff]  ;;  %v17012_v60 = vld [vmem:[#allocation17_spill] sm:$0xff] }
 0xf0c   :  { %9033 = vmatpush1.bf16.msra.mxu0 %v15602_v0  ;;  %9074 = vmatpush1.bf16.msra.mxu1 %v15613_v54  ;;  %v16986_v0 = vld [vmem:[#allocation68_spill] sm:$0xff] }
 0xf0d   :  { %9034 = vmatprep.subr.bf16.mxu0 %v15621_v23  ;;  %9075 = vmatprep.subr.bf16.mxu1 %v15631_v41  ;;  %v10803_v54 = vpack.c.bf16 %v16987_v15, %v16986_v0  ;;  %v16988_v23 = vld [vmem:[#allocation77_spill] sm:$0xff] }
 0xf0e   :  { %v17006_v15 = vld [vmem:[#allocation9_spill] sm:$0xff] }
 0xf10   :  { %9035 = vmatpush1.bf16.msra.mxu0 %v15626_v33  ;;  %9076 = vmatpush1.bf16.msra.mxu1 %v15637_v63  ;;  %v16989_v33 = vld [vmem:[#allocation80_spill] sm:$0xff] }
 0xf11   :  { %9036 = vmatprep.subr.bf16.mxu0 %v15645_v39  ;;  %9077 = vmatprep.subr.bf16.mxu1 %v15655_v62  ;;  %v16990_v39 = vld [vmem:[#allocation58_spill] sm:$0xff]  ;;  %v16991_v62 = vld [vmem:[#allocation59_spill] sm:$0xff] }
 0xf14   :  { %9037 = vmatpush1.bf16.msra.mxu0 %v15650_v56  ;;  %9078 = vmatpush1.bf16.msra.mxu1 %v15661_v7 }
 0xf15   :  { %9038 = vmatprep.subr.bf16.mxu0 %v15669_v1  ;;  %9079 = vmatprep.subr.bf16.mxu1 %v15679_v4  ;;  %v16992_v4 = vld [vmem:[#allocation60_spill] sm:$0xff] }
 0xf18   :  { %9039 = vmatpush1.bf16.msra.mxu0 %v15674_v34  ;;  %9080 = vmatpush1.bf16.msra.mxu1 %v16961_v37 }
 0xf19   :  { %9040 = vmatprep.subr.bf16.mxu0 %v16962_v16  ;;  %9081 = vmatprep.subr.bf16.mxu1 %v16963_v49 }
 0xf1c   :  { %9041 = vmatpush1.bf16.msra.mxu0 %v16964_v11  ;;  %9082 = vmatpush1.bf16.msra.mxu1 %v16965_v18 }
 0xf1d   :  { %9042 = vmatprep.subr.bf16.mxu0 %v16966_v26  ;;  %9083 = vmatprep.subr.bf16.mxu1 %v16967_v22  ;;  %v11618_v26 = vld [vmem:[%s16149_s6 + $0x78] sm:$0xff]  }
 0xf20   :  { %9043 = vmatpush1.bf16.msra.mxu0 %v16968_v3  ;;  %9084 = vmatpush1.bf16.msra.mxu1 %v16969_v28 }
 0xf21   :  { %9044 = vmatprep.subr.bf16.mxu0 %v16970_v46  ;;  %9085 = vmatprep.subr.bf16.mxu1 %v16971_v52 }
 0xf24   :  { %9045 = vmatpush1.bf16.msra.mxu0 %v16972_v59  ;;  %9086 = vmatpush1.bf16.msra.mxu1 %v16973_v44 }
 0xf25   :  { %9046 = vmatprep.subr.bf16.mxu0 %v16974_v21  ;;  %9087 = vmatprep.subr.bf16.mxu1 %v16975_v55 }
 0xf28   :  { %9047 = vmatpush1.bf16.msra.mxu0 %v16976_v14  ;;  %9088 = vmatpush1.bf16.msra.mxu1 %v16977_v30 }
 0xf29   :  { %9048 = vmatprep.subr.bf16.mxu0 %v16978_v50  ;;  %9089 = vmatprep.subr.bf16.mxu1 %v16979_v53  ;;  %v16998_v50 = vld [vmem:[#allocation67_spill] sm:$0xff]  ;;  %v16999_v53 = vld [vmem:[#allocation97_spill] sm:$0xff] }
 0xf2c   :  { %9049 = vmatpush1.bf16.msra.mxu0 %v16980_v48  ;;  %9090 = vmatpush1.bf16.msra.mxu1 %v16981_v17  ;;  %v10806_v48 = vpack.c.bf16 %v16999_v53, %v16998_v50  ;;  %v11610_v50 = vld [vmem:[%s16149_s6 + $0x58] sm:$0xff]   ;;  %v11613_v17 = vld [vmem:[%s16149_s6 + $0x20] sm:$0xff]  }
 0xf2d   :  { %9050 = vmatprep.subr.bf16.mxu0 %v16982_v35  ;;  %9091 = vmatprep.subr.bf16.mxu1 %v16983_v61  ;;  %v17003_v61 = vld [vmem:[#allocation13_spill] sm:$0xff]  ;;  %v11611_v53 = vld [vmem:[%s16149_s6 + $0x18] sm:$0xff]  }
 0xf2e   :  { %v11614_v35 = vld [vmem:[%s16149_s6 + $0x68] sm:$0xff]  }
 0xf30   :  { %9051 = vmatpush1.bf16.msra.mxu0 %v16988_v23  ;;  %9092 = vmatpush1.bf16.msra.mxu1 %v16989_v33  ;;  %v17038_v33 = vld [vmem:[#allocation63_spill] sm:$0xff] }
 0xf31   :  { %10804 = vmatprep.subr.msk.bf16.mxu0 %vm16439_vm11, %v10803_v54  ;;  %vm15956_vm11 = vmand %vm8616_vm9, %vm8617_vm3  ;;  %v17007_v54 = vld [vmem:[#allocation70_spill] sm:$0xff] }
 0xf32   :  { %vm16997_vm9 = vmmov %vm16996_vm2  ;;  %v10812_v23 = vpack.c.bf16 %v17007_v54, %v17006_v15  ;;  %v17037_v54 = vld [vmem:[#allocation62_spill] sm:$0xff] }
 0xf33   :  { %vm17004_vm3 = vmpackc.low %vm13312_vm10, %vm12910_vm6 }
 0xf34   :  { %vm10820_vm6 = vmpackc.low %vm14579_vm1, %vm14165_vm12  ;;  %vm9134_vm1 = vcmp.le.s32.totalorder %v12902_v8, 15  ;;  %v11602_v8 = vld [vmem:[%s16148_s5] sm:$0xff]  }
 0xf35   :  { %vm10826_vm10 = vmpackc.low %vm14797_vm14, %vm14683_vm7  ;;  %vm9135_vm7 = vcmp.gt.s32.totalorder %v12906_v10, 15  ;;  %v11617_v10 = vld [vmem:[%s16149_s6 + $0x30] sm:$0xff]  }
 0xf36   :  { %vm9136_vm14 = vmand %vm9134_vm1, %vm9135_vm7 }
 0xfc6   :  { %v8536_v41 = vpop.f32.mrb[88].mxu0  ;;  %v8577_v63 = vpop.f32.mrb[88].mxu1 }
 0xfc7   :  { %v8588_v56 = vadd.f32 %v16990_v39, %v8536_v41  ;;  %v8590_v7 = vadd.f32 %v16991_v62, %v8577_v63  ;;  %v8538_v1 = vpop.f32.mrb[89].mxu0  ;;  %v8579_v34 = vpop.f32.mrb[89].mxu1  ;;  %v17010_v63 = vld [vmem:[#allocation16_spill] sm:$0xff]  ;;  %v17011_v39 = vld [vmem:[#allocation19_spill] sm:$0xff]  ;;  %v10818_v62 = vpack.c.bf16 %v17013_v31, %v17012_v60  ;;  %v17040_v31 = vld [vmem:[#allocation65_spill] sm:$0xff] }
 0xfc8   :  { %v8589_v38 = vadd.f32 %v16992_v4, %v8538_v1  ;;  %v8591_v51 = vadd.f32 %v16993_v45, %v8579_v34  ;;  %v8540_v27 = vpop.f32.mrb[90].mxu0  ;;  %v8581_v43 = vpop.f32.mrb[90].mxu1  ;;  %v17016_v34 = vld [vmem:[#allocation22_spill] sm:$0xff]  ;;  %v17018_v45 = vld [vmem:[#allocation23_spill] sm:$0xff] }
 0xfc9   :  { %v10706_v2 = vmul.f32 -1.442695, %v8588_v56  ;;  %v8541_v25 = vpop.f32.mrb[91].mxu0  ;;  %v8582_v29 = vpop.f32.mrb[91].mxu1  ;;  %v10708_v19 = vmul.f32 -1.442695, %v8590_v7  ;;  %v10815_v56 = vpack.c.bf16 %v17011_v39, %v17010_v63 }
 0xfca   :  { %v10707_v20 = vmul.f32 -1.442695, %v8589_v38  ;;  %v17017_v4 = vld [vmem:[#allocation14_spill] sm:$0xff]  ;;  %v17022_v25 = vld [vmem:[#allocation28_spill] sm:$0xff]  ;;  %v17023_v29 = vld [vmem:[#allocation33_spill] sm:$0xff] }
 0xfcb   :  { %11846 = vpow2.f32 %v10706_v2  ;;  %v10821_v38 = vpack.c.bf16 %v17017_v4, %v17016_v34 }
 0xfcc   :  { %11848 = vpow2.f32 %v10707_v20  ;;  %v10827_v20 = vpack.c.bf16 %v17023_v29, %v17022_v25 }
 0xfcd   :  { %11850 = vtanh.f32 %v8591_v51  ;;  %v17019_v51 = vld [vmem:[#allocation26_spill] sm:$0xff] }
 0xfce   :  { %11852 = vpow2.f32 %v10708_v19  ;;  %v10824_v27 = vpack.c.bf16 %v17019_v51, %v17018_v45  ;;  %v17024_v19 = vld [vmem:[#allocation29_spill] sm:$0xff] }
 0xfd5   :  { %v11847_v5 = vpop.eup %11846 }
 0xfd6   :  { %v8601_v36 = vadd.f32 1.0, %v11847_v5  ;;  %v11849_v47 = vpop.eup %11848  ;;  %v17025_v5 = vld [vmem:[#allocation21_spill] sm:$0xff] }
 0xfd7   :  { %v8602_v40 = vadd.f32 1.0, %v11849_v47  ;;  %v11851_v32 = vpop.eup %11850 }
 0xfd8   :  { %11854 = vrcp.f32 %v8601_v36  ;;  %v11853_v58 = vpop.eup %11852  ;;  %v10830_v36 = vpack.c.bf16 %v17025_v5, %v17024_v19 }
 0xfd9   :  { %11856 = vrcp.f32 %v8602_v40  ;;  %v8603_v11 = vadd.f32 1.0, %v11853_v58  ;;  %v17029_v58 = vld [vmem:[#allocation93_spill] sm:$0xff] }
 0xfdb   :  { %11858 = vrcp.f32 %v8603_v11 }
 0xfe2   :  { %v11855_v37 = vpop.eup %11854 }
 0xfe3   :  { %v8612_v16 = vmul.f32 %v11855_v37, %v11851_v32  ;;  %v11857_v49 = vpop.eup %11856  ;;  %v17028_v32 = vld [vmem:[#allocation90_spill] sm:$0xff] }
 0xfe4   :  { %v8611_v18 = vmul.f32 %v11857_v49, %v15850_v12  ;;  %v10833_v37 = vpack.c.bf16 %v17029_v58, %v17028_v32  ;;  %v17031_v49 = vld [vmem:[#allocation38_spill] sm:$0xff] }
 0xfe5   :  { %v11859_v28 = vpop.eup %11858 }
 0xfe6   :  { %v15960_v22 = vadd.f32 %v8612_v16, %v8611_v18  ;;  %v17030_v16 = vld [vmem:[#allocation91_spill] sm:$0xff] }
 0xfe7   :  { %v10836_v11 = vpack.c.bf16 %v17031_v49, %v17030_v16  ;;  %v17032_v18 = vld [vmem:[#allocation39_spill] sm:$0xff] }
 0xfe8   :  { %11860 = vtanh.f32 %v15960_v22  ;;  %v8621_v3 = vsel %vm15956_vm11, %v15960_v22, %v15850_v12 }
 0xff2   :  { %v11861_v46 = vpop.eup %11860 }
 0xff3   :  { %v8615_v52 = vmul.f32 %v11861_v46, %v11859_v28  ;;  %v17035_v28 = vld [vmem:[#allocation40_spill] sm:$0xff] }
 0xff4   :  { %v10839_v46 = vpack.c.bf16 %v15854_v42, %v17035_v28  ;;  %v11607_v42 = vld [vmem:[%s16149_s6 + $0x8] sm:$0xff]  }
 0xff5   :  { %v15969_v59 = vsel %vm16996_vm2, 0.0, %v8615_v52  ;;  %v15973_v44 = vsel %vm16997_vm9, %v8615_v52, 0.0  ;;  %vm10808_vm2 = vmpackc.low %vm13533_vm0, %vm13419_vm13  ;;  %v17036_v52 = vld [vmem:[#allocation41_spill] sm:$0xff] }
 0xff6   :  { %v8627_v21 = vsel %vm15956_vm11, %v15969_v59, %v15864_v6  ;;  %v8626_v55 = vsel %vm15956_vm11, %v15973_v44, %v15870_v57  ;;  %v17002_v6 = vld [vmem:[#allocation8_spill] sm:$0xff]  ;;  %v17005_v57 = vmov 0   ;;  %vm10814_vm13 = vmpackc.low %vm14051_vm8, %vm13947_vm4  ;;  %vm17033_vm4 = vnez %v17032_v18 }
 0xff7   :  { %v8635_v14 = vpack.c.bf16 %v8627_v21, %v8627_v21  ;;  %v8634_v30 = vpack.c.bf16 %v8626_v55, %v8626_v55  ;;  %v10809_v0 = vpack.c.bf16 %v17003_v61, %v17002_v6  ;;  %vm10832_vm0 = vmpackc.low %vm15315_vm15, %vm15211_vm5  ;;  %vm17034_vm8 = vnez %v16958_v24  ;;  %v11604_v55 = vld [vmem:[%s16149_s6 + $0x40] sm:$0xff]   ;;  %v11606_v24 = vld [vmem:[%s16149_s6 + $0x48] sm:$0xff]  }
 0xff8   :  { %vm10838_vm12 = vmpackc.low %vm17034_vm8, %vm17033_vm4  ;;  %v10842_v21 = vpack.c.bf16 %v15858_v13, %v17036_v52  ;;  %10850 = vmatprep.subr.bf16.mxu1 %v11604_v55  ;;  %v11608_v13 = vld [vmem:[%s16149_s6 + $0x50] sm:$0xff]   ;;  %v11615_v6 = vld [vmem:[%s16149_s6 + $0x28] sm:$0xff]  }
 0xff9   :  { %9052 = vmatprep.mubr.bf16.mxu0 %v8635_v14  ;;  %9093 = vmatprep.mubr.bf16.mxu1 %v8635_v14  ;;  %v11605_v14 = vld [vmem:[%s16149_s6] sm:$0xff]   ;;  %v11616_v61 = vld [vmem:[%s16149_s6 + $0x70] sm:$0xff]   ;;  %vm17041_vm5 = vmmov %vm16997_vm9 }
 0xffa   :  { %9053 = vmatmul.mubr.bf16.vlgmr.msra.gmra.mrb[92].mxu0 %v8634_v30  ;;  %9094 = vmatmul.mubr.bf16.vlgmr.msra.gmra.mrb[92].mxu1 %v8634_v30  ;;  %v11609_v30 = vld [vmem:[%s16149_s6 + $0x10] sm:$0xff]   ;;  %vm17042_vm15 = vmmov %vm17041_vm5 }
 0xffb   :  { %10807 = vmatpush1.bf16.msk.msra.mxu0 %vm17004_vm3, %v10806_v48  ;;  %9241 = vmatprep.mubr.bf16.mxu0 %v17005_v57  ;;  %v11612_v48 = vld [vmem:[%s16149_s6 + $0x60] sm:$0xff]   ;;  %vm10844_vm9 = vmpackc.low %vm9136_vm14, %vm15956_vm11  ;;  %vm11895_vm11 = vmmov 0   ;;  %vm9603_vm3 = vcmask 7168  }
 0xffc   :  { %10810 = vmatprep.subr.msk.bf16.mxu0 %vm10808_vm2, %v10809_v0  ;;  %10851 = vmatpush3.bf16.msra.mxu1 %v11605_v14 }
 0xffd   :  { %10852 = vmatprep.subr.bf16.mxu1 %v11606_v24 }
 0xfff   :  { %10813 = vmatpush1.bf16.msk.msra.mxu0 %vm10808_vm2, %v10812_v23  ;;  %vm9463_vm2 = vcmask 261120  }
0x1000   :  { %10816 = vmatprep.subr.msk.bf16.mxu0 %vm10814_vm13, %v10815_v56  ;;  %10853 = vmatpush3.bf16.msra.mxu1 %v11607_v42  ;;  %v17039_v56 = vld [vmem:[#allocation64_spill] sm:$0xff] }
0x1001   :  { %10854 = vmatprep.subr.bf16.mxu1 %v11608_v13  ;;  %v11894_v13 = vmov 0.0  }
0x1003   :  { %10819 = vmatpush1.bf16.msk.msra.mxu0 %vm10814_vm13, %v10818_v62 }
0x1004   :  { %10822 = vmatprep.subr.msk.bf16.mxu0 %vm10820_vm6, %v10821_v38  ;;  %10855 = vmatpush3.bf16.msra.mxu1 %v11609_v30 }
0x1005   :  { %10856 = vmatprep.subr.bf16.mxu1 %v11610_v50  ;;  %v10778_v50 = vld [vmem:[%s16150_s7] ss:$0 sm:$0xff] }
0x1007   :  { %10825 = vmatpush1.bf16.msk.msra.mxu0 %vm10820_vm6, %v10824_v27 }
0x1008   :  { %10828 = vmatprep.subr.msk.bf16.mxu0 %vm10826_vm10, %v10827_v20  ;;  %10857 = vmatpush3.bf16.msra.mxu1 %v11611_v53 }
0x1009   :  { %10858 = vmatprep.subr.bf16.mxu1 %v11612_v48 }
0x100b   :  { %10831 = vmatpush1.bf16.msk.msra.mxu0 %vm10826_vm10, %v10830_v36 }
0x100c   :  { %10834 = vmatprep.subr.msk.bf16.mxu0 %vm10832_vm0, %v10833_v37  ;;  %10859 = vmatpush3.bf16.msra.mxu1 %v11613_v17 }
0x100d   :  { %10860 = vmatprep.subr.bf16.mxu1 %v11614_v35 }
0x100f   :  { %10837 = vmatpush1.bf16.msk.msra.mxu0 %vm10832_vm0, %v10836_v11 }
0x1010   :  { %10840 = vmatprep.subr.msk.bf16.mxu0 %vm10838_vm12, %v10839_v46  ;;  %10861 = vmatpush3.bf16.msra.mxu1 %v11615_v6 }
0x1011   :  { %10862 = vmatprep.subr.bf16.mxu1 %v11616_v61 }
0x1013   :  { %10843 = vmatpush1.bf16.msk.msra.mxu0 %vm10838_vm12, %v10842_v21 }
0x1014   :  { %10863 = vmatpush3.bf16.msra.mxu1 %v11617_v10 }
0x1015   :  { %10864 = vmatprep.subr.bf16.mxu1 %v11618_v26 }
0x10cd   :  { %v9054_v0 = vpop.f32.mrb[92].mxu0  ;;  %v9095_v15 = vpop.f32.mrb[92].mxu1 }
0x10ce   :  { %v9106_v23 = vadd.f32 %v17037_v54, %v9054_v0  ;;  %v9108_v41 = vadd.f32 %v17038_v33, %v9095_v15  ;;  %v9056_v63 = vpop.f32.mrb[93].mxu0  ;;  %v9097_v39 = vpop.f32.mrb[93].mxu1 }
0x10cf   :  { %v9107_v60 = vadd.f32 %v17039_v56, %v9056_v63  ;;  %v9109_v62 = vadd.f32 %v17040_v31, %v9097_v39  ;;  %v9058_v7 = vpop.f32.mrb[94].mxu0  ;;  %v9099_v1 = vpop.f32.mrb[94].mxu1 }
0x10d0   :  { %v10773_v34 = vmul.f32 -1.442695, %v9106_v23  ;;  %v9059_v4 = vpop.f32.mrb[95].mxu0  ;;  %v9100_v38 = vpop.f32.mrb[95].mxu1  ;;  %v10775_v51 = vmul.f32 -1.442695, %v9108_v41 }
0x10d1   :  { %v10774_v45 = vmul.f32 -1.442695, %v9107_v60  ;;  %v11620_v4 = vld [vmem:[%s16151_s8] sm:$0xff]  }
0x10d2   :  { %11862 = vpow2.f32 %v10773_v34  ;;  %v11621_v38 = vld [vmem:[%s16152_s9] sm:$0xff]  }
0x10d3   :  { %11864 = vpow2.f32 %v10774_v45  ;;  %v9598_v45 = vld [vmem:[#allocation4] sm:$0x1] }
0x10d4   :  { %11866 = vtanh.f32 %v9109_v62  ;;  %10900 = vpush %v9598_v45 }
0x10d5   :  { %11868 = vpow2.f32 %v10775_v51  ;;  %v10800_v51 = vld [vmem:[%s16154_s11 + $0x1] ss:$0 sm:$0xff] }
0x10dc   :  { %v11863_v27 = vpop.eup %11862 }
0x10dd   :  { %v9119_v43 = vadd.f32 1.0, %v11863_v27  ;;  %v11865_v2 = vpop.eup %11864  ;;  %v10799_v27 = vld [vmem:[%s16154_s11] ss:$0 sm:$0xff] }
0x10de   :  { %v9120_v25 = vadd.f32 1.0, %v11865_v2  ;;  %v11867_v29 = vpop.eup %11866 }
0x10df   :  { %11870 = vrcp.f32 %v9119_v43  ;;  %v11869_v20 = vpop.eup %11868 }
0x10e0   :  { %11872 = vrcp.f32 %v9120_v25  ;;  %v9121_v47 = vadd.f32 1.0, %v11869_v20 }
0x10e2   :  { %11874 = vrcp.f32 %v9121_v47 }
0x10e9   :  { %v11871_v19 = vpop.eup %11870 }
0x10ea   :  { %v9130_v5 = vmul.f32 %v11871_v19, %v11867_v29  ;;  %v11873_v36 = vpop.eup %11872 }
0x10eb   :  { %v9129_v40 = vmul.f32 %v11873_v36, %v8621_v3  ;;  %v11619_v3 = vld [vmem:[%s16149_s6 + $0x38] sm:$0xff]  }
0x10ec   :  { %v11875_v58 = vpop.eup %11874  ;;  %10865 = vmatpush3.bf16.msra.mxu1 %v11619_v3 }
0x10ed   :  { %v9131_v32 = vadd.f32 %v9130_v5, %v9129_v40  ;;  %10892 = vmatprep.subr.bf16.mxu1 %v11894_v13 }
0x10ef   :  { %11876 = vtanh.f32 %v9131_v32  ;;  %v9584_v32 = vld [vmem:[%s16153_s10 + $0x8] sm:$0xff] }
0x10f9   :  { %v11877_v37 = vpop.eup %11876 }
0x10fa   :  { %v9133_v16 = vmul.f32 %v11877_v37, %v11875_v58  ;;  %v10801_v58 = vld [vmem:[%s16154_s11 + $0x2] ss:$0 sm:$0xff] }
0x10fb   :  { %v9583_v37 = vld [vmem:[%s16153_s10] sm:$0xff] }
0x10fc   :  { %v9137_v49 = vsel %vm17041_vm5, %v9133_v16, 0.0  ;;  %v9138_v11 = vsel %vm17042_vm15, 0.0, %v9133_v16 }
0x10fd   :  { %v10845_v12 = vpack.c.bf16 %v9138_v11, %v15969_v59  ;;  %v10848_v22 = vpack.c.bf16 %v9137_v49, %v15973_v44  ;;  %v9591_v11 = vmul.f32 %v10801_v58, %v9584_v32 }
0x10ff   :  { %10846 = vmatprep.subr.msk.bf16.mxu0 %vm10844_vm9, %v10845_v12  ;;  %v9590_v12 = vmul.f32 %v10801_v58, %v9583_v37 }
0x1100   :  { %10849 = vmatpush1.bf16.msk.msra.mxu0 %vm10844_vm9, %v10848_v22 }
0x1101   :  { %10884 = vmatprep.subr.bf16.mxu0 %v11894_v13 }
0x1103   :  { %9242 = vmatmul.mubr.bf16.vlgmr.msra.gmra.mrb[96].mxu0 %v11602_v8 }
0x1104   :  { %9251 = vmatprep.mubr.bf16.mxu0 %v17005_v57 }
0x1105   :  { %s10901_s2 = spop %10900 }
0x110b   :  { %9252 = vmatmul.mubr.bf16.gmra.mrb[100].mxu0 %v11603_v9 }
0x110c   :  { %10888 = vmatprep.mubr.msk.bf16.mxu0 %vm11895_vm11, %v11894_v13 }
0x11d6   :  { %v9243_v59 = vpop.f32.mrb[96].mxu0 }
0x11d7   :  { %v9245_v44 = vpop.f32.mrb[97].mxu0 }
0x11d8   :  { %v9247_v57 = vpop.f32.mrb[98].mxu0 }
0x11d9   :  { %v9262_v18 = vpack.c.bf16 %v9247_v57, %v9243_v59  ;;  %v9249_v28 = vpop.f32.mrb[99].mxu0  ;;  %v9600_v57 = vstv %s10901_s2 }
0x11da   :  { %v9263_v46 = vpack.c.bf16 %v9249_v28, %v9245_v44 }
0x11dc   :  { %9433 = vmatprep.mubr.bf16.mxu1 %v9263_v46 }
0x11dd   :  { %9434 = vmatmul.mubr.bf16.vlgmr.msra.gmra.mrb[96].mxu1 %v9262_v18 }
0x11de   :  { %v9253_v52 = vpop.f32.mrb[100].mxu0 }
0x11df   :  { %v9255_v21 = vpop.f32.mrb[101].mxu0 }
0x11e0   :  { %v9257_v55 = vpop.f32.mrb[102].mxu0 }
0x11e1   :  { %v9264_v14 = vpack.c.bf16 %v9257_v55, %v9253_v52  ;;  %v9259_v24 = vpop.f32.mrb[103].mxu0 }
0x11e2   :  { %v9265_v42 = vpack.c.bf16 %v9259_v24, %v9255_v21 }
0x11e4   :  { %9441 = vmatprep.mubr.bf16.mxu1 %v9265_v42 }
0x11e5   :  { %9442 = vmatmul.mubr.bf16.gmra.mrb[100].mxu1 %v9264_v14 }
0x11e6   :  { %10896 = vmatprep.mubr.msk.bf16.mxu1 %vm11895_vm11, %v11894_v13 }
0x12b0   :  { %v10866_v30 = vpop.f32.mrb[96].mxu1 }
0x12b1   :  { %v10867_v53 = vpop.f32.mrb[97].mxu1 }
0x12b2   :  { %v10868_v48 = vadd.f32 %v10867_v53, %v10866_v30  ;;  %v10869_v17 = vpop.f32.mrb[98].mxu1 }
0x12b3   :  { %v10870_v35 = vpop.f32.mrb[99].mxu1 }
0x12b4   :  { %v9436_v6 = vadd.f32 %v10868_v48, %v10778_v50  ;;  %v10871_v61 = vadd.f32 %v10870_v35, %v10869_v17 }
0x12b6   :  { %v9439_v0 = vadd.f32 %v10871_v61, %v10778_v50  ;;  %v9450_v15 = vmax.f32 %v9436_v6, 0.0 }
0x12b8   :  { %v9451_v54 = vmax.f32 %v9439_v0, 0.0  ;;  %v10872_v23 = vpop.f32.mrb[100].mxu1 }
0x12b9   :  { %v10873_v33 = vpop.f32.mrb[101].mxu1 }
0x12ba   :  { %v9454_v41 = vpack.c.bf16 %v9451_v54, %v9450_v15  ;;  %v10874_v63 = vadd.f32 %v10873_v33, %v10872_v23  ;;  %v10875_v39 = vpop.f32.mrb[102].mxu1 }
0x12bb   :  { %v10876_v56 = vpop.f32.mrb[103].mxu1 }
0x12bc   :  { %v9444_v60 = vadd.f32 %v10874_v63, %v10778_v50  ;;  %v10877_v31 = vadd.f32 %v10876_v56, %v10875_v39  ;;  %10885 = vmatpush3.bf16.msra.mxu0 %v9454_v41  ;;  %10893 = vmatpush3.bf16.msra.mxu1 %v9454_v41 }
0x12bd   :  { %10886 = vmatprep.subr.bf16.mxu0 %v11894_v13  ;;  %10894 = vmatprep.subr.bf16.mxu1 %v11894_v13 }
0x12be   :  { %v9447_v62 = vadd.f32 %v10877_v31, %v10778_v50  ;;  %v9452_v7 = vmax.f32 %v9444_v60, 0.0 }
0x12c0   :  { %v9453_v1 = vmax.f32 %v9447_v62, 0.0 }
0x12c2   :  { %v9455_v34 = vpack.c.bf16 %v9453_v1, %v9452_v7 }
0x12c4   :  { %10887 = vmatpush3.bf16.msra.mxu0 %v9455_v34  ;;  %10895 = vmatpush3.bf16.msra.mxu1 %v9455_v34 }
0x12c7   :  { %10889 = vmatmul.mubr.msk.bf16.vlgmr.msra.gmra.mrb[104].mxu0 %vm9463_vm2, %v11620_v4  ;;  %10897 = vmatmul.mubr.msk.bf16.vlgmr.msra.gmra.mrb[104].mxu1 %vm9463_vm2, %v11621_v38 }
0x139a   :  { %v9501_v43 = vpop.f32.mrb[104].mxu0  ;;  %v9552_v2 = vpop.f32.mrb[104].mxu1 }
0x139b   :  { %v9575_v25 = vmul.f32 %v10800_v51, %v9552_v2  ;;  %v10898_v29 = vpop.f32.mrb[105].mxu1  ;;  %v9564_v20 = vmul.f32 %v10799_v27, %v9501_v43  ;;  %v10890_v19 = vpop.f32.mrb[105].mxu0 }
0x139c   :  { %v9504_v5 = vpop.f32.mrb[106].mxu0  ;;  %v9555_v36 = vpop.f32.mrb[106].mxu1 }
0x139d   :  { %9577 = vadd.xlane.f32.xlu1 %v9575_v25  ;;  %9566 = vadd.xlane.f32.xlu0 %v9564_v20  ;;  %v10891_v47 = vpop.f32.mrb[107].mxu0  ;;  %v10899_v40 = vpop.f32.mrb[107].mxu1  ;;  %v9565_v16 = vmul.f32 %v10799_v27, %v9504_v5  ;;  %v9576_v49 = vmul.f32 %v10800_v51, %v9555_v36 }
0x13a1   :  { %9579 = vadd.xlane.f32.xlu1 %v9576_v49  ;;  %9568 = vadd.xlane.f32.xlu0 %v9565_v16 }
0x13a5   :  { %9594 = vadd.xlane.f32.xlu1 %v9591_v11  ;;  %9592 = vadd.xlane.f32.xlu0 %v9590_v12 }
0x142a   :  { %v9578_v22 = vpop.xlane.xlu1 %9577  ;;  %v9567_v8 = vpop.xlane.xlu0 %9566 }
0x142b   :  { %v9581_v26 = vadd.f32 %v9578_v22, %v9567_v8 }
0x142e   :  { %v9580_v9 = vpop.xlane.xlu1 %9579  ;;  %v9569_v10 = vpop.xlane.xlu0 %9568 }
0x142f   :  { %v9582_v3 = vadd.f32 %v9580_v9, %v9569_v10 }
0x1432   :  { %v9595_v59 = vpop.xlane.xlu1 %9594  ;;  %v9593_v44 = vpop.xlane.xlu0 %9592 }
0x1433   :  { %v9597_v18 = vadd.f32 %v9595_v59, %v9582_v3  ;;  %v9596_v28 = vadd.f32 %v9593_v44, %v9581_v26 }
0x1435   :  { %v9601_v46 = vadd.f32 %v9600_v57, %v9596_v28  ;;  %v9602_v52 = vadd.f32 %v9600_v57, %v9597_v18 }
0x1437   :  { %9604 = vst.msk [vmem:[%s16156_s13] sm:$0xff] %vm9603_vm3, %v9601_v46  ;;  %9605 = vst.msk [vmem:[%s16156_s13 + $0x8] sm:$0xff] %vm9603_vm3, %v9602_v52 }
0x1438   :  { %9610 = vsyncpa [#allocation6], 1 }

</bundles_post_ra>
